<compile_context>
chip_gen: v7x
topology: tpu7x:2x2x1
jax: 0.10.0
libtpu: 0.0.40
codegen_flags: <defaults>
</compile_context>

<pallas_src>
import functools

import numpy as np
import jax
import jax.numpy as jnp
from jax.experimental import pallas as pl
from jax.experimental.pallas import tpu as pltpu


# ----------------------------------------------------------------------------
# Pallas kernel: one (TI x TJ) tile of the (i-set x j-set) interaction.
#   ipack: (TI, 8) columns [x, y, z, valid, 0, 0, 0, 0]   (centered coords)
#   jpack: (8, TJ) rows    [x, y, z, valid, 0, 0, 0, 0]
#   out:   (TI, 4) columns [E_i, gx, gy, gz]   (written once per i block)
# ----------------------------------------------------------------------------
def _lj_tile_kernel(ipack_ref, jpack_ref, out_ref,
                    acc_e_ref, acc_g0_ref, acc_g1_ref, acc_g2_ref,
                    *, eps, sigma2, with_energy):
    j = pl.program_id(1)

    @pl.when(j == 0)
    def _init():
        acc_e_ref[...] = jnp.zeros_like(acc_e_ref)
        acc_g0_ref[...] = jnp.zeros_like(acc_g0_ref)
        acc_g1_ref[...] = jnp.zeros_like(acc_g1_ref)
        acc_g2_ref[...] = jnp.zeros_like(acc_g2_ref)

    xi = ipack_ref[:, 0:3]                 # (TI, 3)
    jp = jpack_ref[...]                    # (8, TJ)
    vj = jp[3:4, :]                        # (1, TJ) valid flag

    # exact pairwise differences (self / duplicate pairs give exactly d2 == 0)
    d0 = xi[:, 0:1] - jp[0:1, :]           # (TI, TJ)
    d1 = xi[:, 1:2] - jp[1:2, :]
    d2 = xi[:, 2:3] - jp[2:3, :]
    r2 = d0 * d0 + d1 * d1 + d2 * d2

    pos = r2 > 0.0
    u = r2 if sigma2 == 1.0 else sigma2 * r2
    u = jnp.where(pos, u, 1.0)             # keep reciprocal finite on masked pairs
    inv = pl.reciprocal(u, approx=True)    # EUP (free slot)
    inv = inv * (2.0 - u * inv)            # 1 Newton step -> ~f32 exact
    c6 = jnp.where(pos, inv * inv * inv, 0.0)
    c12 = c6 * c6

    # gradient reductions: exact per-row sums of de * (x_i - x_j)  (XLU).
    # de/dd2 = -6*eps*sigma2 * inv * (2*c12 - c6); constants folded at finalize.
    dev = ((2.0 * c12 - c6) * inv) * vj
    acc_g0_ref[...] += jnp.sum(dev * d0, axis=-1, keepdims=True)
    acc_g1_ref[...] += jnp.sum(dev * d1, axis=-1, keepdims=True)
    acc_g2_ref[...] += jnp.sum(dev * d2, axis=-1, keepdims=True)

    if with_energy:
        acc_e_ref[...] += jnp.sum((c12 - c6) * vj, axis=-1, keepdims=True)

    @pl.when(j == pl.num_programs(1) - 1)
    def _finalize():
        vi = ipack_ref[:, 3:4]             # (TI, 1) valid flag (kills pad rows)
        gscale = -12.0 * eps * sigma2      # 2 * (-6*eps*sigma2)
        if with_energy:
            out_ref[:, 0:1] = (2.0 * eps) * vi * acc_e_ref[...]
        else:
            out_ref[:, 0:1] = jnp.zeros_like(vi)
        out_ref[:, 1:2] = (gscale * vi) * acc_g0_ref[...]
        out_ref[:, 2:3] = (gscale * vi) * acc_g1_ref[...]
        out_ref[:, 3:4] = (gscale * vi) * acc_g2_ref[...]


def _lj_pairs(ipack, jpack, *, eps, sigma, ti, tj, with_energy):
    """All pairs (i-set) x (j-set); returns (Ni, 4) = [E_i, dE/dx_i]."""
    ni = ipack.shape[0]
    nj = jpack.shape[1]
    kernel = functools.partial(_lj_tile_kernel, eps=float(eps),
                               sigma2=float(sigma) * float(sigma),
                               with_energy=with_energy)
    return pl.pallas_call(
        kernel,
        out_shape=jax.ShapeDtypeStruct((ni, 4), jnp.float32),
        grid_spec=pltpu.PrefetchScalarGridSpec(
            num_scalar_prefetch=0,
            grid=(ni // ti, nj // tj),
            in_specs=[
                pl.BlockSpec((ti, 8), lambda i, j: (i, 0)),   # i pack
                pl.BlockSpec((8, tj), lambda i, j: (0, j)),   # j pack (lane-dense)
            ],
            out_specs=pl.BlockSpec((ti, 4), lambda i, j: (i, 0)),
            scratch_shapes=[pltpu.VMEM((ti, 1), jnp.float32)] * 4),
        compiler_params=pltpu.CompilerParams(
            dimension_semantics=("parallel", "arbitrary")),
    )(ipack, jpack)


# ----------------------------------------------------------------------------
# Host-side packing helpers.
# ----------------------------------------------------------------------------
def _pack_i(coords, ti, sentinel):
    n = coords.shape[0]
    npad = (-n) % ti
    xpad = jnp.concatenate(
        [coords, jnp.full((npad, 3), sentinel, jnp.float32)], axis=0)
    v = jnp.concatenate(
        [jnp.ones((n, 1), jnp.float32), jnp.zeros((npad, 1), jnp.float32)],
        axis=0)
    return jnp.concatenate(
        [xpad, v, jnp.zeros((n + npad, 4), jnp.float32)], axis=1)   # (Ni, 8)


def _pack_j(coords, tj, sentinel):
    n = coords.shape[0]
    npad = (-n) % tj
    xpad = jnp.concatenate(
        [coords, jnp.full((npad, 3), sentinel, jnp.float32)], axis=0)
    v = jnp.concatenate(
        [jnp.ones((n,), jnp.float32), jnp.zeros((npad,), jnp.float32)], axis=0)
    jp = jnp.zeros((8, n + npad), jnp.float32)
    jp = jp.at[0:3, :].set(xpad.T)
    jp = jp.at[3, :].set(v)
    return jp                                                        # (8, Nj)


def lennard_jones_forward(positions, cell, offsets, atom_ids,
                          *, eps=1.0, sigma=1.0, ti=256, tj=256):
    """Returns (total_energy, forces) mirroring LennardJonesK.forward."""
    positions = positions.astype(jnp.float32)
    cell = cell.astype(jnp.float32)
    offsets = offsets.astype(jnp.float32)
    atom_ids = atom_ids.astype(jnp.int32)
    N0 = positions.shape[0]

    _xs = positions @ cell                           # root-cell Cartesian
    xs = offsets @ cell + _xs[atom_ids]              # padded (ghost) positions
    M = xs.shape[0]

    # root-cell rows (offsets == 0) -- host-side index build, mirrors
    # pad_ghost_region living outside the kernel.
    root_idx = np.nonzero(np.asarray(jnp.all(offsets == 0.0, axis=1)))[0]
    Nr = int(root_idx.shape[0])

    # center coordinates (pair distances unchanged, keeps values small) and
    # pick a pad sentinel proportional to the extent (finite r^2, no overflow).
    center = 0.5 * (jnp.min(xs, axis=0) + jnp.max(xs, axis=0))
    xs_c = xs - center
    sentinel = 1.0e3 * (jnp.max(jnp.abs(xs_c)) + 1.0)

    xs_root = xs_c[root_idx]
    ids_root = atom_ids[root_idx]

    # Call A: (root i) x (all j)  -> per-root-atom energy + "i is root" grad.
    out_a = _lj_pairs(_pack_i(xs_root, ti, sentinel),
                      _pack_j(xs_c, tj, sentinel),
                      eps=eps, sigma=sigma, ti=ti, tj=tj, with_energy=True)
    # Call B: (all i) x (root j)  -> "j is root" half of the gradient.
    out_b = _lj_pairs(_pack_i(xs_c, ti, sentinel),
                      _pack_j(xs_root, tj, sentinel),
                      eps=eps, sigma=sigma, ti=ti, tj=tj, with_energy=False)

    total_energy = jnp.sum(out_a[:, 0])              # pad rows contribute 0

    # chain rule through xs = offsets@cell + _xs[atom_ids]: scatter-add to _xs
    g = (jax.ops.segment_sum(out_a[:Nr, 1:4], ids_root, num_segments=N0) +
         jax.ops.segment_sum(out_b[:M, 1:4], atom_ids, num_segments=N0))
    forces = -g
    return total_energy, forces


# ----------------------------------------------------------------------------
# Pure-JAX reference (autodiff forces) for verification.
# ----------------------------------------------------------------------------
def _reference(positions, cell, offsets, atom_ids, *, eps=1.0, sigma=1.0):
    positions = positions.astype(jnp.float32)
    cell = cell.astype(jnp.float32)
    offsets = offsets.astype(jnp.float32)
    root = jnp.all(offsets == 0.0, axis=1)

    def energy(_xs):
        xs = offsets @ cell + _xs[atom_ids]
        d2 = jnp.sum((xs[:, None, :] - xs[None, :, :]) ** 2, axis=-1)
        pos = d2 > 0.0
        d2s = jnp.where(pos, d2, 1.0)
        c6 = jnp.where(pos, (sigma ** 2 * d2s) ** (-3.0), 0.0)
        c12 = c6 * c6
        e_i = 2.0 * eps * jnp.sum(c12 - c6, axis=1)
        return jnp.sum(jnp.where(root, e_i, 0.0))

    _xs = positions @ cell
    E = energy(_xs)
    F = -jax.grad(energy)(_xs)
    return E, F


if __name__ == "__main__":
    key = jax.random.PRNGKey(0)

    # 16 atoms on a jittered 4x2x2 fractional lattice inside a 5 Angstrom cube
    N0 = 16
    gx, gy, gz = jnp.meshgrid(jnp.arange(4), jnp.arange(2), jnp.arange(2),
                              indexing="ij")
    base = jnp.stack([gx.ravel() / 4.0, gy.ravel() / 2.0, gz.ravel() / 2.0],
                     axis=1).astype(jnp.float32) + 0.1
    jitter = 0.04 * jax.random.uniform(key, (N0, 3), minval=-1.0, maxval=1.0)
    positions = base + jitter                       # fractional coordinates
    cell = 5.0 * jnp.eye(3, dtype=jnp.float32)

    # synthetic pad_ghost_region: all 27 periodic images, root cell first
    # TODO(synk): real pad_ghost_region prunes images outside rc; the forward
    # pass math is identical for any (offsets, atom_ids) it produces.
    shifts = jnp.array([[a, b, c] for a in (0, -1, 1)
                        for b in (0, -1, 1)
                        for c in (0, -1, 1)], dtype=jnp.float32)   # (27, 3)
    offsets = jnp.repeat(shifts, N0, axis=0)                        # (432, 3)
    atom_ids = jnp.tile(jnp.arange(N0, dtype=jnp.int32), 27)        # (432,)

    E, F = lennard_jones_forward(positions, cell, offsets, atom_ids,
                                 eps=1.0, sigma=1.0, ti=256, tj=256)
    E = jax.block_until_ready(E)
    F = jax.block_until_ready(F)

    E_ref, F_ref = _reference(positions, cell, offsets, atom_ids,
                              eps=1.0, sigma=1.0)
    np.testing.assert_allclose(np.asarray(E), np.asarray(E_ref),
                               rtol=2e-3, atol=2e-3)
    np.testing.assert_allclose(np.asarray(F), np.asarray(F_ref),
                               rtol=2e-3, atol=2e-3)

    print("KERNEL_OK")
</pallas_src>

<mosaic_0001>
module attributes {stable_mosaic.version = 11 : i64} {
  func.func @_lj_tile_kernel(%arg0: i32, %arg1: i32, %arg2: memref<256x8xf32, #tpu.memory_space<vmem>>, %arg3: memref<8x256xf32, #tpu.memory_space<vmem>>, %arg4: memref<256x4xf32, #tpu.memory_space<vmem>>, %arg5: memref<256x1xf32, #tpu.memory_space<vmem>>, %arg6: memref<256x1xf32, #tpu.memory_space<vmem>>, %arg7: memref<256x1xf32, #tpu.memory_space<vmem>>, %arg8: memref<256x1xf32, #tpu.memory_space<vmem>>) attributes {dimension_semantics = [#tpu.dimension_semantics<parallel>, #tpu.dimension_semantics<arbitrary>], iteration_bounds = array<i64: 1, 2>, scalar_prefetch = 0 : i64, scratch_operands = 4 : i64, tpu.core_type = #tpu.core_type<tc>, window_params = [{transform_indices = @transform_0, window_bounds = array<i64: 256, 8>}, {transform_indices = @transform_1, window_bounds = array<i64: 8, 256>}, {transform_indices = @transform_2, window_bounds = array<i64: 256, 4>}]} {
    %c0_i32 = arith.constant 0 : i32
    %0 = arith.cmpi eq, %arg1, %c0_i32 : i32
    %1 = arith.extui %0 : i1 to i32
    %c0_i32_0 = arith.constant 0 : i32
    %2 = arith.cmpi ne, %1, %c0_i32_0 : i32
    scf.if %2 {
      %cst_29 = arith.constant 0.000000e+00 : f32
      %75 = vector.broadcast %cst_29 : f32 to vector<256x1xf32>
      %c0_30 = arith.constant 0 : index
      %c0_31 = arith.constant 0 : index
      %76 = vector.load %arg5[%c0_30, %c0_31] : memref<256x1xf32, #tpu.memory_space<vmem>>, vector<256x1xf32>
      tpu.vector_store %arg5[%c0_30, %c0_31], %75 {strides = array<i32>} : memref<256x1xf32, #tpu.memory_space<vmem>>, vector<256x1xf32>,
      %cst_32 = arith.constant 0.000000e+00 : f32
      %77 = vector.broadcast %cst_32 : f32 to vector<256x1xf32>
      %c0_33 = arith.constant 0 : index
      %c0_34 = arith.constant 0 : index
      %78 = vector.load %arg6[%c0_33, %c0_34] : memref<256x1xf32, #tpu.memory_space<vmem>>, vector<256x1xf32>
      tpu.vector_store %arg6[%c0_33, %c0_34], %77 {strides = array<i32>} : memref<256x1xf32, #tpu.memory_space<vmem>>, vector<256x1xf32>,
      %cst_35 = arith.constant 0.000000e+00 : f32
      %79 = vector.broadcast %cst_35 : f32 to vector<256x1xf32>
      %c0_36 = arith.constant 0 : index
      %c0_37 = arith.constant 0 : index
      %80 = vector.load %arg7[%c0_36, %c0_37] : memref<256x1xf32, #tpu.memory_space<vmem>>, vector<256x1xf32>
      tpu.vector_store %arg7[%c0_36, %c0_37], %79 {strides = array<i32>} : memref<256x1xf32, #tpu.memory_space<vmem>>, vector<256x1xf32>,
      %cst_38 = arith.constant 0.000000e+00 : f32
      %81 = vector.broadcast %cst_38 : f32 to vector<256x1xf32>
      %c0_39 = arith.constant 0 : index
      %c0_40 = arith.constant 0 : index
      %82 = vector.load %arg8[%c0_39, %c0_40] : memref<256x1xf32, #tpu.memory_space<vmem>>, vector<256x1xf32>
      tpu.vector_store %arg8[%c0_39, %c0_40], %81 {strides = array<i32>} : memref<256x1xf32, #tpu.memory_space<vmem>>, vector<256x1xf32>,
    } else {
    }
    %c0 = arith.constant 0 : index
    %c0_1 = arith.constant 0 : index
    %3 = vector.load %arg2[%c0, %c0_1] : memref<256x8xf32, #tpu.memory_space<vmem>>, vector<256x3xf32>
    %c0_2 = arith.constant 0 : index
    %c0_3 = arith.constant 0 : index
    %4 = vector.load %arg3[%c0_2, %c0_3] : memref<8x256xf32, #tpu.memory_space<vmem>>, vector<8x256xf32>
    %5 = vector.extract_strided_slice %4 {offsets = [3, 0], sizes = [1, 256], strides = [1, 1]} : vector<8x256xf32> to vector<1x256xf32>
    %6 = vector.extract_strided_slice %3 {offsets = [0, 0], sizes = [256, 1], strides = [1, 1]} : vector<256x3xf32> to vector<256x1xf32>
    %7 = vector.extract_strided_slice %4 {offsets = [0, 0], sizes = [1, 256], strides = [1, 1]} : vector<8x256xf32> to vector<1x256xf32>
    %8 = vector.broadcast %6 : vector<256x1xf32> to vector<256x256xf32>
    %9 = vector.broadcast %7 : vector<1x256xf32> to vector<256x256xf32>
    %10 = arith.subf %8, %9 : vector<256x256xf32>
    %11 = vector.extract_strided_slice %3 {offsets = [0, 1], sizes = [256, 1], strides = [1, 1]} : vector<256x3xf32> to vector<256x1xf32>
    %12 = vector.extract_strided_slice %4 {offsets = [1, 0], sizes = [1, 256], strides = [1, 1]} : vector<8x256xf32> to vector<1x256xf32>
    %13 = vector.broadcast %11 : vector<256x1xf32> to vector<256x256xf32>
    %14 = vector.broadcast %12 : vector<1x256xf32> to vector<256x256xf32>
    %15 = arith.subf %13, %14 : vector<256x256xf32>
    %16 = vector.extract_strided_slice %3 {offsets = [0, 2], sizes = [256, 1], strides = [1, 1]} : vector<256x3xf32> to vector<256x1xf32>
    %17 = vector.extract_strided_slice %4 {offsets = [2, 0], sizes = [1, 256], strides = [1, 1]} : vector<8x256xf32> to vector<1x256xf32>
    %18 = vector.broadcast %16 : vector<256x1xf32> to vector<256x256xf32>
    %19 = vector.broadcast %17 : vector<1x256xf32> to vector<256x256xf32>
    %20 = arith.subf %18, %19 : vector<256x256xf32>
    %21 = arith.mulf %10, %10 : vector<256x256xf32>
    %22 = arith.mulf %15, %15 : vector<256x256xf32>
    %23 = arith.addf %21, %22 : vector<256x256xf32>
    %24 = arith.mulf %20, %20 : vector<256x256xf32>
    %25 = arith.addf %23, %24 : vector<256x256xf32>
    %cst = arith.constant 0.000000e+00 : f32
    %26 = vector.broadcast %cst : f32 to vector<256x256xf32>
    %27 = arith.cmpf ogt, %25, %26 : vector<256x256xf32>
    %cst_4 = arith.constant 1.000000e+00 : f32
    %28 = vector.broadcast %cst_4 : f32 to vector<256x256xf32>
    %29 = arith.select %27, %25, %28 : vector<256x256xi1>, vector<256x256xf32>
    %30 = tpu.reciprocal %29 {approx = true} : vector<256x256xf32> -> vector<256x256xf32>
    %31 = arith.mulf %29, %30 : vector<256x256xf32>
    %cst_5 = arith.constant 2.000000e+00 : f32
    %32 = vector.broadcast %cst_5 : f32 to vector<256x256xf32>
    %33 = arith.subf %32, %31 : vector<256x256xf32>
    %34 = arith.mulf %30, %33 : vector<256x256xf32>
    %35 = arith.mulf %34, %34 : vector<256x256xf32>
    %36 = arith.mulf %35, %34 : vector<256x256xf32>
    %cst_6 = arith.constant 0.000000e+00 : f32
    %37 = vector.broadcast %cst_6 : f32 to vector<256x256xf32>
    %38 = arith.select %27, %36, %37 : vector<256x256xi1>, vector<256x256xf32>
    %39 = arith.mulf %38, %38 : vector<256x256xf32>
    %cst_7 = arith.constant 2.000000e+00 : f32
    %40 = vector.broadcast %cst_7 : f32 to vector<256x256xf32>
    %41 = arith.mulf %40, %39 : vector<256x256xf32>
    %42 = arith.subf %41, %38 : vector<256x256xf32>
    %43 = arith.mulf %42, %34 : vector<256x256xf32>
    %44 = vector.broadcast %5 : vector<1x256xf32> to vector<256x256xf32>
    %45 = arith.mulf %43, %44 : vector<256x256xf32>
    %c0_8 = arith.constant 0 : index
    %c0_9 = arith.constant 0 : index
    %46 = vector.load %arg6[%c0_8, %c0_9] : memref<256x1xf32, #tpu.memory_space<vmem>>, vector<256x1xf32>
    %47 = arith.mulf %45, %10 : vector<256x256xf32>
    %cst_10 = arith.constant dense<0.000000e+00> : vector<256xf32>
    %48 = vector.multi_reduction <add>, %47, %cst_10 [1] : vector<256x256xf32> to vector<256xf32>
    %49 = vector.shape_cast %48 : vector<256xf32> to vector<256x1xf32>
    %50 = arith.addf %46, %49 : vector<256x1xf32>
    %c0_11 = arith.constant 0 : index
    %c0_12 = arith.constant 0 : index
    %51 = vector.load %arg6[%c0_11, %c0_12] : memref<256x1xf32, #tpu.memory_space<vmem>>, vector<256x1xf32>
    tpu.vector_store %arg6[%c0_11, %c0_12], %50 {strides = array<i32>} : memref<256x1xf32, #tpu.memory_space<vmem>>, vector<256x1xf32>,
    %c0_13 = arith.constant 0 : index
    %c0_14 = arith.constant 0 : index
    %52 = vector.load %arg7[%c0_13, %c0_14] : memref<256x1xf32, #tpu.memory_space<vmem>>, vector<256x1xf32>
    %53 = arith.mulf %45, %15 : vector<256x256xf32>
    %cst_15 = arith.constant dense<0.000000e+00> : vector<256xf32>
    %54 = vector.multi_reduction <add>, %53, %cst_15 [1] : vector<256x256xf32> to vector<256xf32>
    %55 = vector.shape_cast %54 : vector<256xf32> to vector<256x1xf32>
    %56 = arith.addf %52, %55 : vector<256x1xf32>
    %c0_16 = arith.constant 0 : index
    %c0_17 = arith.constant 0 : index
    %57 = vector.load %arg7[%c0_16, %c0_17] : memref<256x1xf32, #tpu.memory_space<vmem>>, vector<256x1xf32>
    tpu.vector_store %arg7[%c0_16, %c0_17], %56 {strides = array<i32>} : memref<256x1xf32, #tpu.memory_space<vmem>>, vector<256x1xf32>,
    %c0_18 = arith.constant 0 : index
    %c0_19 = arith.constant 0 : index
    %58 = vector.load %arg8[%c0_18, %c0_19] : memref<256x1xf32, #tpu.memory_space<vmem>>, vector<256x1xf32>
    %59 = arith.mulf %45, %20 : vector<256x256xf32>
    %cst_20 = arith.constant dense<0.000000e+00> : vector<256xf32>
    %60 = vector.multi_reduction <add>, %59, %cst_20 [1] : vector<256x256xf32> to vector<256xf32>
    %61 = vector.shape_cast %60 : vector<256xf32> to vector<256x1xf32>
    %62 = arith.addf %58, %61 : vector<256x1xf32>
    %c0_21 = arith.constant 0 : index
    %c0_22 = arith.constant 0 : index
    %63 = vector.load %arg8[%c0_21, %c0_22] : memref<256x1xf32, #tpu.memory_space<vmem>>, vector<256x1xf32>
    tpu.vector_store %arg8[%c0_21, %c0_22], %62 {strides = array<i32>} : memref<256x1xf32, #tpu.memory_space<vmem>>, vector<256x1xf32>,
    %c0_23 = arith.constant 0 : index
    %c0_24 = arith.constant 0 : index
    %64 = vector.load %arg5[%c0_23, %c0_24] : memref<256x1xf32, #tpu.memory_space<vmem>>, vector<256x1xf32>
    %65 = arith.subf %39, %38 : vector<256x256xf32>
    %66 = vector.broadcast %5 : vector<1x256xf32> to vector<256x256xf32>
    %67 = arith.mulf %65, %66 : vector<256x256xf32>
    %cst_25 = arith.constant dense<0.000000e+00> : vector<256xf32>
    %68 = vector.multi_reduction <add>, %67, %cst_25 [1] : vector<256x256xf32> to vector<256xf32>
    %69 = vector.shape_cast %68 : vector<256xf32> to vector<256x1xf32>
    %70 = arith.addf %64, %69 : vector<256x1xf32>
    %c0_26 = arith.constant 0 : index
    %c0_27 = arith.constant 0 : index
    %71 = vector.load %arg5[%c0_26, %c0_27] : memref<256x1xf32, #tpu.memory_space<vmem>>, vector<256x1xf32>
    tpu.vector_store %arg5[%c0_26, %c0_27], %70 {strides = array<i32>} : memref<256x1xf32, #tpu.memory_space<vmem>>, vector<256x1xf32>,
    %c1_i32 = arith.constant 1 : i32
    %72 = arith.cmpi eq, %arg1, %c1_i32 : i32
    %73 = arith.extui %72 : i1 to i32
    %c0_i32_28 = arith.constant 0 : i32
    %74 = arith.cmpi ne, %73, %c0_i32_28 : i32
    scf.if %74 {
      %c0_29 = arith.constant 0 : index
      %c3 = arith.constant 3 : index
      %75 = vector.load %arg2[%c0_29, %c3] : memref<256x8xf32, #tpu.memory_space<vmem>>, vector<256x1xf32>
      %cst_30 = arith.constant 2.000000e+00 : f32
      %76 = vector.broadcast %cst_30 : f32 to vector<256x1xf32>
      %77 = arith.mulf %76, %75 : vector<256x1xf32>
      %c0_31 = arith.constant 0 : index
      %c0_32 = arith.constant 0 : index
      %78 = vector.load %arg5[%c0_31, %c0_32] : memref<256x1xf32, #tpu.memory_space<vmem>>, vector<256x1xf32>
      %79 = arith.mulf %77, %78 : vector<256x1xf32>
      %c0_33 = arith.constant 0 : index
      %c0_34 = arith.constant 0 : index
      %80 = vector.load %arg4[%c0_33, %c0_34] : memref<256x4xf32, #tpu.memory_space<vmem>>, vector<256x1xf32>
      tpu.vector_store %arg4[%c0_33, %c0_34], %79 {strides = array<i32>} : memref<256x4xf32, #tpu.memory_space<vmem>>, vector<256x1xf32>,
      %cst_35 = arith.constant -1.200000e+01 : f32
      %81 = vector.broadcast %cst_35 : f32 to vector<256x1xf32>
      %82 = arith.mulf %81, %75 : vector<256x1xf32>
      %c0_36 = arith.constant 0 : index
      %c0_37 = arith.constant 0 : index
      %83 = vector.load %arg6[%c0_36, %c0_37] : memref<256x1xf32, #tpu.memory_space<vmem>>, vector<256x1xf32>
      %84 = arith.mulf %82, %83 : vector<256x1xf32>
      %c0_38 = arith.constant 0 : index
      %c1 = arith.constant 1 : index
      %85 = vector.load %arg4[%c0_38, %c1] : memref<256x4xf32, #tpu.memory_space<vmem>>, vector<256x1xf32>
      tpu.vector_store %arg4[%c0_38, %c1], %84 {strides = array<i32>} : memref<256x4xf32, #tpu.memory_space<vmem>>, vector<256x1xf32>,
      %cst_39 = arith.constant -1.200000e+01 : f32
      %86 = vector.broadcast %cst_39 : f32 to vector<256x1xf32>
      %87 = arith.mulf %86, %75 : vector<256x1xf32>
      %c0_40 = arith.constant 0 : index
      %c0_41 = arith.constant 0 : index
      %88 = vector.load %arg7[%c0_40, %c0_41] : memref<256x1xf32, #tpu.memory_space<vmem>>, vector<256x1xf32>
      %89 = arith.mulf %87, %88 : vector<256x1xf32>
      %c0_42 = arith.constant 0 : index
      %c2 = arith.constant 2 : index
      %90 = vector.load %arg4[%c0_42, %c2] : memref<256x4xf32, #tpu.memory_space<vmem>>, vector<256x1xf32>
      tpu.vector_store %arg4[%c0_42, %c2], %89 {strides = array<i32>} : memref<256x4xf32, #tpu.memory_space<vmem>>, vector<256x1xf32>,
      %cst_43 = arith.constant -1.200000e+01 : f32
      %91 = vector.broadcast %cst_43 : f32 to vector<256x1xf32>
      %92 = arith.mulf %91, %75 : vector<256x1xf32>
      %c0_44 = arith.constant 0 : index
      %c0_45 = arith.constant 0 : index
      %93 = vector.load %arg8[%c0_44, %c0_45] : memref<256x1xf32, #tpu.memory_space<vmem>>, vector<256x1xf32>
      %94 = arith.mulf %92, %93 : vector<256x1xf32>
      %c0_46 = arith.constant 0 : index
      %c3_47 = arith.constant 3 : index
      %95 = vector.load %arg4[%c0_46, %c3_47] : memref<256x4xf32, #tpu.memory_space<vmem>>, vector<256x1xf32>
      tpu.vector_store %arg4[%c0_46, %c3_47], %94 {strides = array<i32>} : memref<256x4xf32, #tpu.memory_space<vmem>>, vector<256x1xf32>,
    } else {
    }
    return
  }
  func.func @transform_0(%arg0: i32, %arg1: i32) -> (i32, i32) {
    %c0_i32 = arith.constant 0 : i32
    %c0_i32_0 = arith.constant 0 : i32
    return %arg0, %c0_i32 : i32, i32
  }
  func.func @transform_1(%arg0: i32, %arg1: i32) -> (i32, i32) {
    %c0_i32 = arith.constant 0 : i32
    %c0_i32_0 = arith.constant 0 : i32
    return %c0_i32, %arg1 : i32, i32
  }
  func.func @transform_2(%arg0: i32, %arg1: i32) -> (i32, i32) {
    %c0_i32 = arith.constant 0 : i32
    %c0_i32_0 = arith.constant 0 : i32
    return %arg0, %c0_i32 : i32, i32
  }
}

</mosaic_0001>

<bundles_post_ra>
// kernel: tpu_custom_call.1
= control target key start
LH: loop header
LB: loop body
LE: loop exit
PB: predicated region body
PF: predicated region fallthrough
CT: control target
= control target key end

     0   :  { %s4979_s9 = smov 0   ;;  %s4981_s10 = smov 0   ;;  %s10874_s0 = inlined_call_operand.vmem [shape: f32[256,8], index: 0, kind: input, shape index: {}]   ;;  %s10875_s1 = inlined_call_operand.vmem [shape: f32[8,512], index: 1, kind: input, shape index: {}]   ;;  %s10876_s2 = inlined_call_operand.vmem [shape: f32[256,4], index: 2, kind: output, shape index: {}]  }
   0x1   :  { %s4983_s11 = smov 0  }
   0x2 LB: > { %s21_s12 = sadd.s32 1, %s4950_s10  ;;  %p4757_p0 = scmp.ge.s32.totalorder %s4954_s11, 1  ;;  %s4954_s11 = sphi %s4983_s11, %s12_s11   ;;  %s4950_s10 = sphi %s4981_s10, %s12294_s10   ;;  %s4946_s9 = sphi %s4979_s9, %s12293_s9  }
   0x3   : > { %p22_p1 = scmp.ge.s32.totalorder %s21_s12, 2  ;;  %p136_p2 = scmp.lt.s32.totalorder %s4954_s11, 3 }
   0x5   : > { %s12296_s12 = smov (%p22_p1, %s21_s12), 0  ;;  %p137_p3 = pnand %p4757_p0, %p136_p2 }
   0x7   : > { %140 = sbr.rel (%p137_p3) target bundleno = 1715 (0x6b3), region = 28 }
   0xe   : > { %s4758_s13 = sshll.u32 %s4946_s9, 1  ;;  %p4760_p5 = scmp.ne.s32.totalorder %s4946_s9, 0 }
   0xf   : > { %p170_p4 = scmp.lt.s32.totalorder %s4758_s13, 3  ;;  %vm185_vm0 = vcmask (!%p4760_p5), 7168   ;;  %v4956_v0 = vmov (!%p4760_p5), 0.0  }
  0x10   : > { %184 = sbr.rel (%p4760_p5) target bundleno = 80 (0x50), region = 32  ;;  %186 = vst.msk [vmem:[#allocation2] sm:$0xff] (!%p4760_p5), %vm185_vm0, %v4956_v0  ;;  %187 = vst.msk [vmem:[#allocation2 + $0x8] sm:$0xff] (!%p4760_p5), %vm185_vm0, %v4956_v0 }
  0x11   : > { %s12298_s13 = smov (!%p170_p4, %s4758_s13), 3  ;;  %188 = vst.msk [vmem:[#allocation2 + $0x10] sm:$0xff] (!%p4760_p5), %vm185_vm0, %v4956_v0  ;;  %189 = vst.msk [vmem:[#allocation2 + $0x18] sm:$0xff] (!%p4760_p5), %vm185_vm0, %v4956_v0 }
  0x12   : > { %s4759_s14 = sshll.u32 %s12298_s13, 3  ;;  %190 = vst.msk [vmem:[#allocation2 + $0x20] sm:$0xff] (!%p4760_p5), %vm185_vm0, %v4956_v0  ;;  %191 = vst.msk [vmem:[#allocation2 + $0x28] sm:$0xff] (!%p4760_p5), %vm185_vm0, %v4956_v0 }
  0x13   : > { %s5003_s17 = scalar_lea.vmem %s10875_s1, %s4759_s14  ;;  %192 = vst.msk [vmem:[#allocation2 + $0x30] sm:$0xff] (!%p4760_p5), %vm185_vm0, %v4956_v0  ;;  %193 = vst.msk [vmem:[#allocation2 + $0x38] sm:$0xff] (!%p4760_p5), %vm185_vm0, %v4956_v0 }
  0x14   : > { %194 = vst.msk [vmem:[#allocation2 + $0x40] sm:$0xff] (!%p4760_p5), %vm185_vm0, %v4956_v0  ;;  %195 = vst.msk [vmem:[#allocation2 + $0x48] sm:$0xff] (!%p4760_p5), %vm185_vm0, %v4956_v0 }
  0x15   : > { %196 = vst.msk [vmem:[#allocation2 + $0x50] sm:$0xff] (!%p4760_p5), %vm185_vm0, %v4956_v0  ;;  %197 = vst.msk [vmem:[#allocation2 + $0x58] sm:$0xff] (!%p4760_p5), %vm185_vm0, %v4956_v0 }
  0x16   : > { %198 = vst.msk [vmem:[#allocation2 + $0x60] sm:$0xff] (!%p4760_p5), %vm185_vm0, %v4956_v0  ;;  %199 = vst.msk [vmem:[#allocation2 + $0x68] sm:$0xff] (!%p4760_p5), %vm185_vm0, %v4956_v0 }
  0x17   : > { %200 = vst.msk [vmem:[#allocation2 + $0x70] sm:$0xff] %vm185_vm0, %v4956_v0  ;;  %201 = vst.msk [vmem:[#allocation2 + $0x78] sm:$0xff] %vm185_vm0, %v4956_v0 }
  0x18   : > { %202 = vst.msk [vmem:[#allocation2 + $0x80] sm:$0xff] %vm185_vm0, %v4956_v0  ;;  %203 = vst.msk [vmem:[#allocation2 + $0x88] sm:$0xff] %vm185_vm0, %v4956_v0 }
  0x19   : > { %204 = vst.msk [vmem:[#allocation2 + $0x90] sm:$0xff] %vm185_vm0, %v4956_v0  ;;  %205 = vst.msk [vmem:[#allocation2 + $0x98] sm:$0xff] %vm185_vm0, %v4956_v0 }
  0x1a   : > { %206 = vst.msk [vmem:[#allocation2 + $0xa0] sm:$0xff] %vm185_vm0, %v4956_v0  ;;  %207 = vst.msk [vmem:[#allocation2 + $0xa8] sm:$0xff] %vm185_vm0, %v4956_v0 }
  0x1b   : > { %208 = vst.msk [vmem:[#allocation2 + $0xb0] sm:$0xff] %vm185_vm0, %v4956_v0  ;;  %209 = vst.msk [vmem:[#allocation2 + $0xb8] sm:$0xff] %vm185_vm0, %v4956_v0 }
  0x1c   : > { %210 = vst.msk [vmem:[#allocation2 + $0xc0] sm:$0xff] %vm185_vm0, %v4956_v0  ;;  %211 = vst.msk [vmem:[#allocation2 + $0xc8] sm:$0xff] %vm185_vm0, %v4956_v0 }
  0x1d   : > { %212 = vst.msk [vmem:[#allocation2 + $0xd0] sm:$0xff] %vm185_vm0, %v4956_v0  ;;  %213 = vst.msk [vmem:[#allocation2 + $0xd8] sm:$0xff] %vm185_vm0, %v4956_v0 }
  0x1e   : > { %214 = vst.msk [vmem:[#allocation2 + $0xe0] sm:$0xff] %vm185_vm0, %v4956_v0  ;;  %215 = vst.msk [vmem:[#allocation2 + $0xe8] sm:$0xff] %vm185_vm0, %v4956_v0 }
  0x1f   : > { %216 = vst.msk [vmem:[#allocation2 + $0xf0] sm:$0xff] %vm185_vm0, %v4956_v0  ;;  %217 = vst.msk [vmem:[#allocation2 + $0xf8] sm:$0xff] %vm185_vm0, %v4956_v0 }
  0x20   : > { %218 = vst.msk [vmem:[#allocation3] sm:$0xff] %vm185_vm0, %v4956_v0  ;;  %219 = vst.msk [vmem:[#allocation3 + $0x8] sm:$0xff] %vm185_vm0, %v4956_v0 }
  0x21   : > { %220 = vst.msk [vmem:[#allocation3 + $0x10] sm:$0xff] %vm185_vm0, %v4956_v0  ;;  %221 = vst.msk [vmem:[#allocation3 + $0x18] sm:$0xff] %vm185_vm0, %v4956_v0 }
  0x22   : > { %222 = vst.msk [vmem:[#allocation3 + $0x20] sm:$0xff] %vm185_vm0, %v4956_v0  ;;  %223 = vst.msk [vmem:[#allocation3 + $0x28] sm:$0xff] %vm185_vm0, %v4956_v0 }
  0x23   : > { %224 = vst.msk [vmem:[#allocation3 + $0x30] sm:$0xff] %vm185_vm0, %v4956_v0  ;;  %225 = vst.msk [vmem:[#allocation3 + $0x38] sm:$0xff] %vm185_vm0, %v4956_v0 }
  0x24   : > { %226 = vst.msk [vmem:[#allocation3 + $0x40] sm:$0xff] %vm185_vm0, %v4956_v0  ;;  %227 = vst.msk [vmem:[#allocation3 + $0x48] sm:$0xff] %vm185_vm0, %v4956_v0 }
  0x25   : > { %228 = vst.msk [vmem:[#allocation3 + $0x50] sm:$0xff] %vm185_vm0, %v4956_v0  ;;  %229 = vst.msk [vmem:[#allocation3 + $0x58] sm:$0xff] %vm185_vm0, %v4956_v0 }
  0x26   : > { %230 = vst.msk [vmem:[#allocation3 + $0x60] sm:$0xff] %vm185_vm0, %v4956_v0  ;;  %231 = vst.msk [vmem:[#allocation3 + $0x68] sm:$0xff] %vm185_vm0, %v4956_v0 }
  0x27   : > { %232 = vst.msk [vmem:[#allocation3 + $0x70] sm:$0xff] %vm185_vm0, %v4956_v0  ;;  %233 = vst.msk [vmem:[#allocation3 + $0x78] sm:$0xff] %vm185_vm0, %v4956_v0 }
  0x28   : > { %234 = vst.msk [vmem:[#allocation3 + $0x80] sm:$0xff] %vm185_vm0, %v4956_v0  ;;  %235 = vst.msk [vmem:[#allocation3 + $0x88] sm:$0xff] %vm185_vm0, %v4956_v0 }
  0x29   : > { %236 = vst.msk [vmem:[#allocation3 + $0x90] sm:$0xff] %vm185_vm0, %v4956_v0  ;;  %237 = vst.msk [vmem:[#allocation3 + $0x98] sm:$0xff] %vm185_vm0, %v4956_v0 }
  0x2a   : > { %238 = vst.msk [vmem:[#allocation3 + $0xa0] sm:$0xff] %vm185_vm0, %v4956_v0  ;;  %239 = vst.msk [vmem:[#allocation3 + $0xa8] sm:$0xff] %vm185_vm0, %v4956_v0 }
  0x2b   : > { %240 = vst.msk [vmem:[#allocation3 + $0xb0] sm:$0xff] %vm185_vm0, %v4956_v0  ;;  %241 = vst.msk [vmem:[#allocation3 + $0xb8] sm:$0xff] %vm185_vm0, %v4956_v0 }
  0x2c   : > { %242 = vst.msk [vmem:[#allocation3 + $0xc0] sm:$0xff] %vm185_vm0, %v4956_v0  ;;  %243 = vst.msk [vmem:[#allocation3 + $0xc8] sm:$0xff] %vm185_vm0, %v4956_v0 }
  0x2d   : > { %244 = vst.msk [vmem:[#allocation3 + $0xd0] sm:$0xff] %vm185_vm0, %v4956_v0  ;;  %245 = vst.msk [vmem:[#allocation3 + $0xd8] sm:$0xff] %vm185_vm0, %v4956_v0 }
  0x2e   : > { %246 = vst.msk [vmem:[#allocation3 + $0xe0] sm:$0xff] %vm185_vm0, %v4956_v0  ;;  %247 = vst.msk [vmem:[#allocation3 + $0xe8] sm:$0xff] %vm185_vm0, %v4956_v0 }
  0x2f   : > { %248 = vst.msk [vmem:[#allocation3 + $0xf0] sm:$0xff] %vm185_vm0, %v4956_v0  ;;  %249 = vst.msk [vmem:[#allocation3 + $0xf8] sm:$0xff] %vm185_vm0, %v4956_v0 }
  0x30   : > { %250 = vst.msk [vmem:[#allocation4] sm:$0xff] %vm185_vm0, %v4956_v0  ;;  %251 = vst.msk [vmem:[#allocation4 + $0x8] sm:$0xff] %vm185_vm0, %v4956_v0 }
  0x31   : > { %252 = vst.msk [vmem:[#allocation4 + $0x10] sm:$0xff] %vm185_vm0, %v4956_v0  ;;  %253 = vst.msk [vmem:[#allocation4 + $0x18] sm:$0xff] %vm185_vm0, %v4956_v0 }
  0x32   : > { %254 = vst.msk [vmem:[#allocation4 + $0x20] sm:$0xff] %vm185_vm0, %v4956_v0  ;;  %255 = vst.msk [vmem:[#allocation4 + $0x28] sm:$0xff] %vm185_vm0, %v4956_v0 }
  0x33   : > { %256 = vst.msk [vmem:[#allocation4 + $0x30] sm:$0xff] %vm185_vm0, %v4956_v0  ;;  %257 = vst.msk [vmem:[#allocation4 + $0x38] sm:$0xff] %vm185_vm0, %v4956_v0 }
  0x34   : > { %258 = vst.msk [vmem:[#allocation4 + $0x40] sm:$0xff] %vm185_vm0, %v4956_v0  ;;  %259 = vst.msk [vmem:[#allocation4 + $0x48] sm:$0xff] %vm185_vm0, %v4956_v0 }
  0x35   : > { %260 = vst.msk [vmem:[#allocation4 + $0x50] sm:$0xff] %vm185_vm0, %v4956_v0  ;;  %261 = vst.msk [vmem:[#allocation4 + $0x58] sm:$0xff] %vm185_vm0, %v4956_v0 }
  0x36   : > { %262 = vst.msk [vmem:[#allocation4 + $0x60] sm:$0xff] %vm185_vm0, %v4956_v0  ;;  %263 = vst.msk [vmem:[#allocation4 + $0x68] sm:$0xff] %vm185_vm0, %v4956_v0 }
  0x37   : > { %264 = vst.msk [vmem:[#allocation4 + $0x70] sm:$0xff] %vm185_vm0, %v4956_v0  ;;  %265 = vst.msk [vmem:[#allocation4 + $0x78] sm:$0xff] %vm185_vm0, %v4956_v0 }
  0x38   : > { %266 = vst.msk [vmem:[#allocation4 + $0x80] sm:$0xff] %vm185_vm0, %v4956_v0  ;;  %267 = vst.msk [vmem:[#allocation4 + $0x88] sm:$0xff] %vm185_vm0, %v4956_v0 }
  0x39   : > { %268 = vst.msk [vmem:[#allocation4 + $0x90] sm:$0xff] %vm185_vm0, %v4956_v0  ;;  %269 = vst.msk [vmem:[#allocation4 + $0x98] sm:$0xff] %vm185_vm0, %v4956_v0 }
  0x3a   : > { %270 = vst.msk [vmem:[#allocation4 + $0xa0] sm:$0xff] %vm185_vm0, %v4956_v0  ;;  %271 = vst.msk [vmem:[#allocation4 + $0xa8] sm:$0xff] %vm185_vm0, %v4956_v0 }
  0x3b   : > { %272 = vst.msk [vmem:[#allocation4 + $0xb0] sm:$0xff] %vm185_vm0, %v4956_v0  ;;  %273 = vst.msk [vmem:[#allocation4 + $0xb8] sm:$0xff] %vm185_vm0, %v4956_v0 }
  0x3c   : > { %274 = vst.msk [vmem:[#allocation4 + $0xc0] sm:$0xff] %vm185_vm0, %v4956_v0  ;;  %275 = vst.msk [vmem:[#allocation4 + $0xc8] sm:$0xff] %vm185_vm0, %v4956_v0 }
  0x3d   : > { %276 = vst.msk [vmem:[#allocation4 + $0xd0] sm:$0xff] %vm185_vm0, %v4956_v0  ;;  %277 = vst.msk [vmem:[#allocation4 + $0xd8] sm:$0xff] %vm185_vm0, %v4956_v0 }
  0x3e   : > { %278 = vst.msk [vmem:[#allocation4 + $0xe0] sm:$0xff] %vm185_vm0, %v4956_v0  ;;  %279 = vst.msk [vmem:[#allocation4 + $0xe8] sm:$0xff] %vm185_vm0, %v4956_v0 }
  0x3f   : > { %280 = vst.msk [vmem:[#allocation4 + $0xf0] sm:$0xff] %vm185_vm0, %v4956_v0  ;;  %281 = vst.msk [vmem:[#allocation4 + $0xf8] sm:$0xff] %vm185_vm0, %v4956_v0 }
  0x40   : > { %282 = vst.msk [vmem:[#allocation5] sm:$0xff] %vm185_vm0, %v4956_v0  ;;  %283 = vst.msk [vmem:[#allocation5 + $0x8] sm:$0xff] %vm185_vm0, %v4956_v0 }
  0x41   : > { %284 = vst.msk [vmem:[#allocation5 + $0x10] sm:$0xff] %vm185_vm0, %v4956_v0  ;;  %285 = vst.msk [vmem:[#allocation5 + $0x18] sm:$0xff] %vm185_vm0, %v4956_v0 }
  0x42   : > { %286 = vst.msk [vmem:[#allocation5 + $0x20] sm:$0xff] %vm185_vm0, %v4956_v0  ;;  %287 = vst.msk [vmem:[#allocation5 + $0x28] sm:$0xff] %vm185_vm0, %v4956_v0 }
  0x43   : > { %288 = vst.msk [vmem:[#allocation5 + $0x30] sm:$0xff] %vm185_vm0, %v4956_v0  ;;  %289 = vst.msk [vmem:[#allocation5 + $0x38] sm:$0xff] %vm185_vm0, %v4956_v0 }
  0x44   : > { %290 = vst.msk [vmem:[#allocation5 + $0x40] sm:$0xff] %vm185_vm0, %v4956_v0  ;;  %291 = vst.msk [vmem:[#allocation5 + $0x48] sm:$0xff] %vm185_vm0, %v4956_v0 }
  0x45   : > { %292 = vst.msk [vmem:[#allocation5 + $0x50] sm:$0xff] %vm185_vm0, %v4956_v0  ;;  %293 = vst.msk [vmem:[#allocation5 + $0x58] sm:$0xff] %vm185_vm0, %v4956_v0 }
  0x46   : > { %294 = vst.msk [vmem:[#allocation5 + $0x60] sm:$0xff] %vm185_vm0, %v4956_v0  ;;  %295 = vst.msk [vmem:[#allocation5 + $0x68] sm:$0xff] %vm185_vm0, %v4956_v0 }
  0x47   : > { %296 = vst.msk [vmem:[#allocation5 + $0x70] sm:$0xff] %vm185_vm0, %v4956_v0  ;;  %297 = vst.msk [vmem:[#allocation5 + $0x78] sm:$0xff] %vm185_vm0, %v4956_v0 }
  0x48   : > { %298 = vst.msk [vmem:[#allocation5 + $0x80] sm:$0xff] %vm185_vm0, %v4956_v0  ;;  %299 = vst.msk [vmem:[#allocation5 + $0x88] sm:$0xff] %vm185_vm0, %v4956_v0 }
  0x49   : > { %300 = vst.msk [vmem:[#allocation5 + $0x90] sm:$0xff] %vm185_vm0, %v4956_v0  ;;  %301 = vst.msk [vmem:[#allocation5 + $0x98] sm:$0xff] %vm185_vm0, %v4956_v0 }
  0x4a   : > { %302 = vst.msk [vmem:[#allocation5 + $0xa0] sm:$0xff] %vm185_vm0, %v4956_v0  ;;  %303 = vst.msk [vmem:[#allocation5 + $0xa8] sm:$0xff] %vm185_vm0, %v4956_v0 }
  0x4b   : > { %304 = vst.msk [vmem:[#allocation5 + $0xb0] sm:$0xff] %vm185_vm0, %v4956_v0  ;;  %305 = vst.msk [vmem:[#allocation5 + $0xb8] sm:$0xff] %vm185_vm0, %v4956_v0 }
  0x4c   : > { %306 = vst.msk [vmem:[#allocation5 + $0xc0] sm:$0xff] %vm185_vm0, %v4956_v0  ;;  %307 = vst.msk [vmem:[#allocation5 + $0xc8] sm:$0xff] %vm185_vm0, %v4956_v0 }
  0x4d   : > { %308 = vst.msk [vmem:[#allocation5 + $0xd0] sm:$0xff] %vm185_vm0, %v4956_v0  ;;  %309 = vst.msk [vmem:[#allocation5 + $0xd8] sm:$0xff] %vm185_vm0, %v4956_v0 }
  0x4e   : > { %310 = vst.msk [vmem:[#allocation5 + $0xe0] sm:$0xff] %vm185_vm0, %v4956_v0  ;;  %311 = vst.msk [vmem:[#allocation5 + $0xe8] sm:$0xff] %vm185_vm0, %v4956_v0 }
  0x4f   : > { %312 = vst.msk [vmem:[#allocation5 + $0xf0] sm:$0xff] %vm185_vm0, %v4956_v0  ;;  %313 = vst.msk [vmem:[#allocation5 + $0xf8] sm:$0xff] %vm185_vm0, %v4956_v0 }
  0x50 PF: > { %v5265_v1 = vld [vmem:[%s10874_s0 + $0x10] sm:$0xff]  ;;  %v5270_v2 = vld [vmem:[%s10874_s0] sm:$0xff]  ;;  %v4957_v3 = vmov 0   ;;  %v5277_v4 = vld [vmem:[%s10874_s0 + $0x18] sm:$0xff]  ;;  %v4958_v34 = vmov 1   ;;  %v4959_v37 = vmov 2   ;;  %v508_v60 = vlaneseq }
  0x51   : > { %4799 = vset.pattern.permute.xlu1 %v4957_v3  ;;  %4798 = vset.pattern.permute.xlu0 %v4957_v3  ;;  %v5282_v5 = vld [vmem:[%s10874_s0 + $0x8] sm:$0xff]  ;;  %v5294_v7 = vld [vmem:[%s10874_s0 + $0x20] sm:$0xff]  ;;  %v5301_v8 = vld [vmem:[%s10874_s0 + $0x38] sm:$0xff]  ;;  %p4761_p6 = scmp.ne.s32.totalorder %s4946_s9, 1 }
  0x52   : > { %360 = vperm.xlu1 %4799, %v5265_v1   ;;  %350 = vperm.xlu0 %4798, %v5270_v2   ;;  %v5289_v6 = vld [vmem:[%s10874_s0 + $0x28] sm:$0xff]  ;;  %v5306_v9 = vld [vmem:[%s10874_s0 + $0x30] sm:$0xff]  ;;  %v5318_v11 = vld [vmem:[%s10874_s0 + $0x40] sm:$0xff]  ;;  %v509_v63 = vshrl.u32 %v508_v60, 7  ;;  %s4961_s22 = smov (!%p4761_p6), 125   ;;  %s4962_s23 = smov (!%p4761_p6), 126  }
  0x53   : > { %v5313_v10 = vld [vmem:[%s10874_s0 + $0x48] sm:$0xff]  ;;  %v5325_v12 = vld [vmem:[%s10874_s0 + $0x58] sm:$0xff]  ;;  %v5330_v13 = vld [vmem:[%s10874_s0 + $0x50] sm:$0xff]  ;;  %s4963_s14 = smov (!%p4761_p6), 127  }
  0x54   : > { %v5337_v14 = vld [vmem:[%s10874_s0 + $0x68] sm:$0xff]  ;;  %v5342_v15 = vld [vmem:[%s10874_s0 + $0x60] sm:$0xff]  ;;  %v5349_v16 = vld [vmem:[%s10874_s0 + $0x78] sm:$0xff] }
  0x55   : > { %v5354_v17 = vld [vmem:[%s10874_s0 + $0x70] sm:$0xff]  ;;  %v5361_v18 = vld [vmem:[%s10874_s0 + $0x88] sm:$0xff]  ;;  %v5366_v19 = vld [vmem:[%s10874_s0 + $0x80] sm:$0xff] }
  0x56   : > { %365 = vperm.xlu1 %4799, %v5277_v4   ;;  %355 = vperm.xlu0 %4798, %v5282_v5   ;;  %v5373_v20 = vld [vmem:[%s10874_s0 + $0x98] sm:$0xff]  ;;  %v5378_v21 = vld [vmem:[%s10874_s0 + $0x90] sm:$0xff]  ;;  %v5385_v22 = vld [vmem:[%s10874_s0 + $0xa8] sm:$0xff] }
  0x57   : > { %v5390_v23 = vld [vmem:[%s10874_s0 + $0xa0] sm:$0xff]  ;;  %v5397_v24 = vld [vmem:[%s10874_s0 + $0xb8] sm:$0xff]  ;;  %v5402_v25 = vld [vmem:[%s10874_s0 + $0xb0] sm:$0xff] }
  0x58   : > { %v5409_v26 = vld [vmem:[%s10874_s0 + $0xc8] sm:$0xff]  ;;  %v5414_v27 = vld [vmem:[%s10874_s0 + $0xc0] sm:$0xff]  ;;  %v5421_v28 = vld [vmem:[%s10874_s0 + $0xd8] sm:$0xff] }
  0x59   : > { %v5426_v29 = vld [vmem:[%s10874_s0 + $0xd0] sm:$0xff]  ;;  %v5433_v30 = vld [vmem:[%s10874_s0 + $0xe8] sm:$0xff]  ;;  %v5438_v31 = vld [vmem:[%s10874_s0 + $0xe0] sm:$0xff] }
  0x5a   : > { %375 = vperm.xlu1 %4799, %v5289_v6   ;;  %370 = vperm.xlu0 %4798, %v5294_v7   ;;  %v5445_v32 = vld [vmem:[%s10874_s0 + $0xf8] sm:$0xff]  ;;  %v5450_v33 = vld [vmem:[%s10874_s0 + $0xf0] sm:$0xff] }
  0x5e   : > { %385 = vperm.xlu1 %4799, %v5301_v8   ;;  %380 = vperm.xlu0 %4798, %v5306_v9  }
  0x62   : > { %395 = vperm.xlu1 %4799, %v5313_v10   ;;  %390 = vperm.xlu0 %4798, %v5318_v11  }
  0x66   : > { %405 = vperm.xlu1 %4799, %v5325_v12   ;;  %400 = vperm.xlu0 %4798, %v5330_v13  }
  0x6a   : > { %415 = vperm.xlu1 %4799, %v5337_v14   ;;  %410 = vperm.xlu0 %4798, %v5342_v15  }
  0x6e   : > { %425 = vperm.xlu1 %4799, %v5349_v16   ;;  %420 = vperm.xlu0 %4798, %v5354_v17  }
  0x72   : > { %435 = vperm.xlu1 %4799, %v5361_v18   ;;  %430 = vperm.xlu0 %4798, %v5366_v19  }
  0x76   : > { %445 = vperm.xlu1 %4799, %v5373_v20   ;;  %440 = vperm.xlu0 %4798, %v5378_v21  }
  0x7a   : > { %455 = vperm.xlu1 %4799, %v5385_v22   ;;  %450 = vperm.xlu0 %4798, %v5390_v23  }
  0x7e   : > { %465 = vperm.xlu1 %4799, %v5397_v24   ;;  %460 = vperm.xlu0 %4798, %v5402_v25  }
  0x82   : > { %475 = vperm.xlu1 %4799, %v5409_v26   ;;  %470 = vperm.xlu0 %4798, %v5414_v27  }
  0x86   : > { %485 = vperm.xlu1 %4799, %v5421_v28   ;;  %480 = vperm.xlu0 %4798, %v5426_v29  }
  0x8a   : > { %495 = vperm.xlu1 %4799, %v5433_v30   ;;  %490 = vperm.xlu0 %4798, %v5438_v31  }
  0x8e   : > { %505 = vperm.xlu1 %4799, %v5445_v32   ;;  %500 = vperm.xlu0 %4798, %v5450_v33  }
  0x92   : > { %4801 = vset.pattern.permute.xlu1 %v4958_v34  ;;  %4800 = vset.pattern.permute.xlu0 %v4958_v34 }
  0x93   : > { %585 = vperm.xlu1 %4801, %v5282_v5   ;;  %581 = vperm.xlu0 %4800, %v5270_v2  }
  0x97   : > { %589 = vperm.xlu1 %4801, %v5265_v1   ;;  %593 = vperm.xlu0 %4800, %v5277_v4  }
  0x9b   : > { %597 = vperm.xlu1 %4801, %v5294_v7   ;;  %601 = vperm.xlu0 %4800, %v5289_v6  }
  0x9f   : > { %605 = vperm.xlu1 %4801, %v5306_v9   ;;  %609 = vperm.xlu0 %4800, %v5301_v8  }
  0xa3   : > { %613 = vperm.xlu1 %4801, %v5318_v11   ;;  %617 = vperm.xlu0 %4800, %v5313_v10  }
  0xa7   : > { %621 = vperm.xlu1 %4801, %v5330_v13   ;;  %625 = vperm.xlu0 %4800, %v5325_v12  }
  0xab   : > { %629 = vperm.xlu1 %4801, %v5342_v15   ;;  %633 = vperm.xlu0 %4800, %v5337_v14  }
  0xaf   : > { %637 = vperm.xlu1 %4801, %v5354_v17   ;;  %641 = vperm.xlu0 %4800, %v5349_v16  }
  0xb3   : > { %645 = vperm.xlu1 %4801, %v5366_v19   ;;  %649 = vperm.xlu0 %4800, %v5361_v18  }
  0xb7   : > { %653 = vperm.xlu1 %4801, %v5378_v21   ;;  %657 = vperm.xlu0 %4800, %v5373_v20  }
  0xbb   : > { %661 = vperm.xlu1 %4801, %v5390_v23   ;;  %665 = vperm.xlu0 %4800, %v5385_v22  }
  0xbf   : > { %669 = vperm.xlu1 %4801, %v5402_v25   ;;  %673 = vperm.xlu0 %4800, %v5397_v24  }
  0xc3   : > { %677 = vperm.xlu1 %4801, %v5414_v27   ;;  %681 = vperm.xlu0 %4800, %v5409_v26  }
  0xc7   : > { %685 = vperm.xlu1 %4801, %v5426_v29   ;;  %689 = vperm.xlu0 %4800, %v5421_v28  }
  0xcb   : > { %693 = vperm.xlu1 %4801, %v5438_v31   ;;  %697 = vperm.xlu0 %4800, %v5433_v30  }
  0xcf   : > { %701 = vperm.xlu1 %4801, %v5450_v33   ;;  %705 = vperm.xlu0 %4800, %v5445_v32  }
  0xd1   : > { %v5486_v35 = vpop.permute.xlu1 %360  ;;  %v5488_v36 = vpop.permute.xlu0 %350 }
  0xd3   : > { %4802 = vset.pattern.permute.xlu1 %v4959_v37  ;;  %4803 = vset.pattern.permute.xlu0 %v4959_v37 }
  0xd4   : > { %781 = vperm.xlu1 %4802, %v5270_v2   ;;  %785 = vperm.xlu0 %4803, %v5282_v5   ;;  %v510_v2 = vsub.s32 0, %v509_v63  ;;  %v346_v5 = vld [vmem:[%s5003_s17] sm:$0xff] }
  0xd5   : > { %v5492_v38 = vpop.permute.xlu1 %365  ;;  %v5494_v39 = vpop.permute.xlu0 %355 }
  0xd8   : > { %789 = vperm.xlu1 %4802, %v5265_v1   ;;  %797 = vperm.xlu0 %4803, %v5294_v7   ;;  %v5577_v7 = vrot.slane %v346_v5, %v510_v2 }
  0xd9   : > { %v5498_v40 = vpop.permute.xlu1 %375  ;;  %v5500_v41 = vpop.permute.xlu0 %370 }
  0xdc   : > { %793 = vperm.xlu1 %4802, %v5277_v4   ;;  %805 = vperm.xlu0 %4803, %v5306_v9  }
  0xdd   : > { %v5504_v42 = vpop.permute.xlu1 %385  ;;  %v5506_v43 = vpop.permute.xlu0 %380 }
  0xe0   : > { %801 = vperm.xlu1 %4802, %v5289_v6   ;;  %813 = vperm.xlu0 %4803, %v5318_v11   ;;  %v347_v6 = vld [vmem:[%s5003_s17 + $0x8] sm:$0xff]  ;;  %s4960_s17 = smov (!%p4761_p6), 3  }
  0xe1   : > { %v5510_v44 = vpop.permute.xlu1 %395  ;;  %v5512_v45 = vpop.permute.xlu0 %390  ;;  %v5584_v11 = vrot.slane %v347_v6, %v510_v2 }
  0xe4   : > { %809 = vperm.xlu1 %4802, %v5301_v8   ;;  %821 = vperm.xlu0 %4803, %v5330_v13  }
  0xe5   : > { %v5516_v46 = vpop.permute.xlu1 %405  ;;  %v5518_v47 = vpop.permute.xlu0 %400 }
  0xe8   : > { %817 = vperm.xlu1 %4802, %v5313_v10   ;;  %829 = vperm.xlu0 %4803, %v5342_v15   ;;  %v710_v10 = vsub.s32 1, %v509_v63  ;;  %v5595_v15 = vsub.f32 %v5486_v35, %v5584_v11 }
  0xe9   : > { %v5522_v48 = vpop.permute.xlu1 %415  ;;  %v5524_v49 = vpop.permute.xlu0 %410 }
  0xea   : > { %v5591_v13 = vrot.slane %v346_v5, %v710_v10  ;;  %11275 = vst [vmem:[#allocation7_spill] sm:$0xff] %v5595_v15  ;;  %v5654_v34 = vmul.f32 %v5595_v15, %v5595_v15  ;;  %v5742_v15 = vsub.f32 %v5516_v46, %v5577_v7 }
  0xec   : > { %825 = vperm.xlu1 %4802, %v5325_v12   ;;  %837 = vperm.xlu0 %4803, %v5354_v17   ;;  %v5589_v12 = vsub.f32 %v5486_v35, %v5577_v7  ;;  %v5603_v17 = vsub.f32 %v5488_v36, %v5584_v11  ;;  %11298 = vst [vmem:[#allocation30_spill] sm:$0xff] %v5742_v15 }
  0xed   : > { %v5528_v50 = vpop.permute.xlu1 %425  ;;  %v5530_v51 = vpop.permute.xlu0 %420 }
  0xee   : > { %11274 = vst [vmem:[#allocation6_spill] sm:$0xff] %v5589_v12  ;;  %11277 = vst [vmem:[#allocation9_spill] sm:$0xff] %v5603_v17 }
  0xf0   : > { %833 = vperm.xlu1 %4802, %v5337_v14   ;;  %845 = vperm.xlu0 %4803, %v5366_v19   ;;  %v910_v14 = vsub.s32 2, %v509_v63 }
  0xf1   : > { %v5534_v52 = vpop.permute.xlu1 %435  ;;  %v5536_v53 = vpop.permute.xlu0 %430 }
  0xf4   : > { %841 = vperm.xlu1 %4802, %v5349_v16   ;;  %853 = vperm.xlu0 %4803, %v5378_v21   ;;  %v5599_v16 = vsub.f32 %v5488_v36, %v5577_v7  ;;  %v5611_v21 = vsub.f32 %v5492_v38, %v5577_v7 }
  0xf5   : > { %v5540_v54 = vpop.permute.xlu1 %445  ;;  %v5542_v55 = vpop.permute.xlu0 %440 }
  0xf6   : > { %11276 = vst [vmem:[#allocation8_spill] sm:$0xff] %v5599_v16  ;;  %11278 = vst [vmem:[#allocation10_spill] sm:$0xff] %v5611_v21  ;;  %v5658_v35 = vmul.f32 %v5599_v16, %v5599_v16 }
  0xf8   : > { %849 = vperm.xlu1 %4802, %v5361_v18   ;;  %861 = vperm.xlu0 %4803, %v5390_v23   ;;  %v5619_v23 = vsub.f32 %v5494_v39, %v5577_v7 }
  0xf9   : > { %v5546_v56 = vpop.permute.xlu1 %455  ;;  %v5548_v57 = vpop.permute.xlu0 %450 }
  0xfa   : > { %11280 = vst [vmem:[#allocation12_spill] sm:$0xff] %v5619_v23 }
  0xfc   : > { %857 = vperm.xlu1 %4802, %v5373_v20   ;;  %869 = vperm.xlu0 %4803, %v5402_v25   ;;  %v2134_v20 = vsub.s32 3, %v509_v63  ;;  %v5625_v25 = vsub.f32 %v5494_v39, %v5584_v11  ;;  %v5672_v39 = vmul.f32 %v5611_v21, %v5611_v21  ;;  %v5726_v21 = vsub.f32 %v5510_v44, %v5584_v11 }
  0xfd   : > { %v5552_v58 = vpop.permute.xlu1 %465  ;;  %v5554_v59 = vpop.permute.xlu0 %460 }
  0xfe   : > { %11281 = vst [vmem:[#allocation13_spill] sm:$0xff] %v5625_v25  ;;  %v5682_v60 = vrot.slane %v347_v6, %v2134_v20  ;;  %v5686_v63 = vmul.f32 %v5625_v25, %v5625_v25  ;;  %11295 = vst [vmem:[#allocation27_spill] sm:$0xff] %v5726_v21  ;;  %v5754_v25 = vsub.f32 %v5518_v47, %v5584_v11 }
 0x100   : > { %865 = vperm.xlu1 %4802, %v5385_v22   ;;  %877 = vperm.xlu0 %4803, %v5414_v27   ;;  %v5615_v22 = vsub.f32 %v5492_v38, %v5584_v11  ;;  %v5633_v27 = vsub.f32 %v5498_v40, %v5584_v11  ;;  %v5668_v38 = vrot.slane %v346_v5, %v2134_v20 }
 0x101   : > { %v5558_v61 = vpop.permute.xlu1 %475  ;;  %v5560_v62 = vpop.permute.xlu0 %470  ;;  %11289 = vst [vmem:[#allocation21_spill] sm:$0xff] %v5682_v60  ;;  %v5710_v20 = vsub.f32 %v5504_v42, %v5584_v11  ;;  %11301 = vst [vmem:[#allocation33_spill] sm:$0xff] %v5754_v25 }
 0x102   : > { %11279 = vst [vmem:[#allocation11_spill] sm:$0xff] %v5615_v22  ;;  %11283 = vst [vmem:[#allocation15_spill] sm:$0xff] %v5633_v27 }
 0x103   : > { %11288 = vst [vmem:[#allocation20_spill] sm:$0xff] %v5668_v38  ;;  %11291 = vst [vmem:[#allocation23_spill] sm:$0xff] %v5710_v20 }
 0x104   : > { %873 = vperm.xlu1 %4802, %v5397_v24   ;;  %885 = vperm.xlu0 %4803, %v5426_v29   ;;  %v5621_v24 = vrot.slane %v347_v6, %v710_v10  ;;  %v5642_v29 = vmul.f32 %v5589_v12, %v5589_v12  ;;  %v5750_v12 = vsub.f32 %v5518_v47, %v5577_v7 }
 0x105   : > { %v5564_v0 = vpop.permute.xlu1 %485  ;;  %v5566_v1 = vpop.permute.xlu0 %480  ;;  %v5774_v47 = vmul.f32 %v5710_v20, %v5710_v20  ;;  %v5794_v20 = vmul.f32 %v5726_v21, %v5726_v21 }
 0x106   : > { %11300 = vst [vmem:[#allocation32_spill] sm:$0xff] %v5750_v12 }
 0x107   : > { %11306 = vst [vmem:[#allocation38_spill] sm:$0xff] %v5794_v20 }
 0x108   : > { %881 = vperm.xlu1 %4802, %v5409_v26   ;;  %893 = vperm.xlu0 %4803, %v5438_v31   ;;  %v5629_v26 = vsub.f32 %v5498_v40, %v5577_v7  ;;  %v5648_v31 = vrot.slane %v346_v5, %v910_v14  ;;  %v5676_v40 = vmul.f32 %v5615_v22, %v5615_v22 }
 0x109   : > { %v5570_v3 = vpop.permute.xlu1 %495  ;;  %v5572_v4 = vpop.permute.xlu0 %490  ;;  %v5694_v5 = vmul.f32 %v5633_v27, %v5633_v27  ;;  %v5714_v27 = vsub.f32 %v5506_v43, %v5577_v7  ;;  %v5722_v22 = vsub.f32 %v5510_v44, %v5577_v7  ;;  %v5746_v44 = vsub.f32 %v5516_v46, %v5584_v11 }
 0x10a   : > { %11282 = vst [vmem:[#allocation14_spill] sm:$0xff] %v5629_v26  ;;  %11286 = vst [vmem:[#allocation18_spill] sm:$0xff] %v5648_v31  ;;  %v5690_v2 = vmul.f32 %v5629_v26, %v5629_v26  ;;  %v5718_v26 = vsub.f32 %v5506_v43, %v5584_v11  ;;  %v5738_v43 = vsub.f32 %v5512_v45, %v5584_v11 }
 0x10b   : > { %11292 = vst [vmem:[#allocation24_spill] sm:$0xff] %v5714_v27  ;;  %11294 = vst [vmem:[#allocation26_spill] sm:$0xff] %v5722_v22  ;;  %v5766_v46 = vsub.f32 %v5524_v49, %v5577_v7  ;;  %v5778_v16 = vmul.f32 %v5714_v27, %v5714_v27  ;;  %v5814_v21 = vmul.f32 %v5746_v44, %v5746_v44 }
 0x10c   : > { %889 = vperm.xlu1 %4802, %v5421_v28   ;;  %901 = vperm.xlu0 %4803, %v5450_v33   ;;  %v5637_v28 = vsub.f32 %v5500_v41, %v5577_v7  ;;  %v5650_v33 = vrot.slane %v347_v6, %v910_v14  ;;  %v5706_v14 = vsub.f32 %v5504_v42, %v5577_v7 }
 0x10d   : > { %v5580_v8 = vpop.permute.xlu1 %505  ;;  %v5582_v9 = vpop.permute.xlu0 %500  ;;  %11293 = vst [vmem:[#allocation25_spill] sm:$0xff] %v5718_v26  ;;  %v5730_v42 = vsub.f32 %v5512_v45, %v5577_v7  ;;  %11297 = vst [vmem:[#allocation29_spill] sm:$0xff] %v5738_v43  ;;  %v5758_v45 = vsub.f32 %v5522_v48, %v5577_v7  ;;  %v5786_v60 = vmul.f32 %v5718_v26, %v5718_v26 }
 0x10e   : > { %11284 = vst [vmem:[#allocation16_spill] sm:$0xff] %v5637_v28  ;;  %11287 = vst [vmem:[#allocation19_spill] sm:$0xff] %v5650_v33  ;;  %v5698_v10 = vmul.f32 %v5637_v28, %v5637_v28  ;;  %v5806_v26 = vmul.f32 %v5738_v43, %v5738_v43  ;;  %v5822_v33 = vmul.f32 %v5754_v25, %v5754_v25 }
 0x10f   : > { %11290 = vst [vmem:[#allocation22_spill] sm:$0xff] %v5706_v14  ;;  %11296 = vst [vmem:[#allocation28_spill] sm:$0xff] %v5730_v42  ;;  %v5798_v27 = vmul.f32 %v5730_v42, %v5730_v42  ;;  %v5818_v42 = vmul.f32 %v5750_v12, %v5750_v12  ;;  %v5826_v43 = vmul.f32 %v5758_v45, %v5758_v45 }
 0x110   : > { %897 = vperm.xlu1 %4802, %v5433_v30   ;;  %v5646_v30 = vsub.f32 %v5500_v41, %v5584_v11  ;;  %v5680_v41 = vmul.f32 %v5619_v23, %v5619_v23  ;;  %11299 = vst [vmem:[#allocation31_spill] sm:$0xff] %v5746_v44  ;;  %11302 = vst [vmem:[#allocation34_spill] sm:$0xff] %v5758_v45  ;;  %v5762_v23 = vsub.f32 %v5522_v48, %v5584_v11 }
 0x111   : > { %11304 = vst [vmem:[#allocation36_spill] sm:$0xff] %v5766_v46  ;;  %v5782_v48 = vsub.f32 %v5524_v49, %v5584_v11  ;;  %11308 = vst [vmem:[#allocation40_spill] sm:$0xff] %v5814_v21  ;;  %v5834_v44 = vmul.f32 %v5766_v46, %v5766_v46  ;;  %v5842_v25 = vsub.f32 %v5528_v50, %v5577_v7 }
 0x112   : > { %v5605_v18 = vpop.permute.xlu1 %585  ;;  %v5607_v19 = vpop.permute.xlu0 %581  ;;  %11285 = vst [vmem:[#allocation17_spill] sm:$0xff] %v5646_v30  ;;  %v5702_v6 = vmul.f32 %v5646_v30, %v5646_v30  ;;  %11303 = vst [vmem:[#allocation35_spill] sm:$0xff] %v5762_v23  ;;  %v5846_v45 = vsub.f32 %v5528_v50, %v5584_v11  ;;  %v5854_v46 = vsub.f32 %v5530_v51, %v5584_v11 }
 0x113   : > { %11305 = vst [vmem:[#allocation37_spill] sm:$0xff] %v5782_v48  ;;  %11309 = vst [vmem:[#allocation41_spill] sm:$0xff] %v5818_v42  ;;  %v5838_v12 = vmul.f32 %v5782_v48, %v5782_v48  ;;  %v5858_v48 = vsub.f32 %v5534_v52, %v5577_v7  ;;  %v5862_v31 = vsub.f32 %v5534_v52, %v5584_v11 }
 0x114   : > { %905 = vperm.xlu1 %4802, %v5445_v32   ;;  %v5662_v32 = vmul.f32 %v5603_v17, %v5603_v17  ;;  %v5770_v17 = vmul.f32 %v5706_v14, %v5706_v14  ;;  %v5790_v14 = vmul.f32 %v5722_v22, %v5722_v22  ;;  %v5810_v22 = vmul.f32 %v5742_v15, %v5742_v15 }
 0x115   : > { %11310 = vst [vmem:[#allocation42_spill] sm:$0xff] %v5822_v33  ;;  %11311 = vst [vmem:[#allocation43_spill] sm:$0xff] %v5826_v43  ;;  %v5830_v15 = vmul.f32 %v5762_v23, %v5762_v23  ;;  %v5850_v23 = vsub.f32 %v5530_v51, %v5577_v7  ;;  %v5866_v50 = vsub.f32 %v5536_v53, %v5577_v7 }
 0x116   : > { %v5664_v36 = vpop.permute.xlu1 %589  ;;  %v5666_v37 = vpop.permute.xlu0 %593  ;;  %11307 = vst [vmem:[#allocation39_spill] sm:$0xff] %v5810_v22  ;;  %11313 = vst [vmem:[#allocation45_spill] sm:$0xff] %v5834_v44  ;;  %v5874_v51 = vsub.f32 %v5536_v53, %v5584_v11  ;;  %v5882_v52 = vsub.f32 %v5540_v54, %v5584_v11  ;;  %v5886_v44 = vsub.f32 %v5542_v55, %v5577_v7 }
 0x117   : > { %11312 = vst [vmem:[#allocation44_spill] sm:$0xff] %v5830_v15  ;;  %11314 = vst [vmem:[#allocation46_spill] sm:$0xff] %v5838_v12  ;;  %v5878_v12 = vsub.f32 %v5540_v54, %v5577_v7  ;;  %v5890_v21 = vsub.f32 %v5542_v55, %v5584_v11  ;;  %v5894_v53 = vsub.f32 %v5546_v56, %v5577_v7 }
 0x118   : > { %11315 = vst [vmem:[#allocation47_spill] sm:$0xff] %v5842_v25  ;;  %11316 = vst [vmem:[#allocation48_spill] sm:$0xff] %v5846_v45  ;;  %v5898_v22 = vsub.f32 %v5546_v56, %v5584_v11  ;;  %v5902_v54 = vsub.f32 %v5548_v57, %v5577_v7  ;;  %v5906_v33 = vmul.f32 %v5842_v25, %v5842_v25 }
 0x119   : > { %11317 = vst [vmem:[#allocation49_spill] sm:$0xff] %v5850_v23  ;;  %11318 = vst [vmem:[#allocation50_spill] sm:$0xff] %v5854_v46  ;;  %v5910_v55 = vmul.f32 %v5846_v45, %v5846_v45  ;;  %v5914_v42 = vmul.f32 %v5850_v23, %v5850_v23  ;;  %v5918_v56 = vsub.f32 %v5548_v57, %v5584_v11 }
 0x11a   : > { %v5732_v30 = vpop.permute.xlu1 %597  ;;  %v5734_v28 = vpop.permute.xlu0 %601  ;;  %11319 = vst [vmem:[#allocation51_spill] sm:$0xff] %v5858_v48  ;;  %11320 = vst [vmem:[#allocation52_spill] sm:$0xff] %v5862_v31  ;;  %v5922_v20 = vmul.f32 %v5854_v46, %v5854_v46  ;;  %v5926_v25 = vmul.f32 %v5858_v48, %v5858_v48  ;;  %v5930_v45 = vmul.f32 %v5862_v31, %v5862_v31 }
 0x11b   : > { %11321 = vst [vmem:[#allocation53_spill] sm:$0xff] %v5866_v50  ;;  %11322 = vst [vmem:[#allocation54_spill] sm:$0xff] %v5874_v51  ;;  %v5934_v23 = vmul.f32 %v5866_v50, %v5866_v50  ;;  %v5942_v46 = vmul.f32 %v5874_v51, %v5874_v51  ;;  %v5946_v48 = vmul.f32 %v5878_v12, %v5878_v12 }
 0x11c   : > { %11323 = vst [vmem:[#allocation55_spill] sm:$0xff] %v5878_v12  ;;  %11324 = vst [vmem:[#allocation56_spill] sm:$0xff] %v5882_v52  ;;  %v5950_v31 = vmul.f32 %v5882_v52, %v5882_v52  ;;  %v5954_v50 = vmul.f32 %v5886_v44, %v5886_v44  ;;  %v5962_v51 = vmul.f32 %v5894_v53, %v5894_v53 }
 0x11d   : > { %11325 = vst [vmem:[#allocation57_spill] sm:$0xff] %v5886_v44  ;;  %11326 = vst [vmem:[#allocation58_spill] sm:$0xff] %v5890_v21  ;;  %v5966_v12 = vmul.f32 %v5898_v22, %v5898_v22  ;;  %v5970_v52 = vmul.f32 %v5902_v54, %v5902_v54  ;;  %v5974_v44 = vmul.f32 %v5918_v56, %v5918_v56 }
 0x11e   : > { %v5800_v38 = vpop.permute.xlu1 %605  ;;  %v5802_v49 = vpop.permute.xlu0 %609  ;;  %11327 = vst [vmem:[#allocation59_spill] sm:$0xff] %v5894_v53  ;;  %11328 = vst [vmem:[#allocation60_spill] sm:$0xff] %v5898_v22  ;;  %v5982_v53 = vsub.f32 %v5552_v58, %v5584_v11  ;;  %v5986_v22 = vsub.f32 %v5554_v59, %v5577_v7 }
 0x11f   : > { %11329 = vst [vmem:[#allocation61_spill] sm:$0xff] %v5902_v54  ;;  %11330 = vst [vmem:[#allocation62_spill] sm:$0xff] %v5910_v55  ;;  %v5990_v54 = vsub.f32 %v5554_v59, %v5584_v11  ;;  %v6010_v59 = vsub.f32 %v5560_v62, %v5584_v11 }
 0x120   : > { %11331 = vst [vmem:[#allocation63_spill] sm:$0xff] %v5918_v56  ;;  %11332 = vst [vmem:[#allocation64_spill] sm:$0xff] %v5926_v25  ;;  %v5994_v56 = vsub.f32 %v5558_v61, %v5577_v7  ;;  %v6050_v25 = vmul.f32 %v5986_v22, %v5986_v22 }
 0x121   : > { %11333 = vst [vmem:[#allocation65_spill] sm:$0xff] %v5930_v45  ;;  %11334 = vst [vmem:[#allocation66_spill] sm:$0xff] %v5942_v46  ;;  %v5958_v45 = vmul.f32 %v5890_v21, %v5890_v21  ;;  %v5978_v21 = vsub.f32 %v5552_v58, %v5577_v7  ;;  %v6002_v58 = vsub.f32 %v5560_v62, %v5577_v7 }
 0x122   : > { %v5868_v15 = vpop.permute.xlu1 %613  ;;  %v5870_v43 = vpop.permute.xlu0 %617  ;;  %11335 = vst [vmem:[#allocation67_spill] sm:$0xff] %v5946_v48  ;;  %11336 = vst [vmem:[#allocation68_spill] sm:$0xff] %v5950_v31  ;;  %v6022_v31 = vsub.f32 %v5566_v1, %v5577_v7  ;;  %v6026_v48 = vsub.f32 %v5566_v1, %v5584_v11  ;;  %v6030_v62 = vsub.f32 %v5570_v3, %v5577_v7 }
 0x123   : > { %11337 = vst [vmem:[#allocation69_spill] sm:$0xff] %v5954_v50  ;;  %11338 = vst [vmem:[#allocation70_spill] sm:$0xff] %v5958_v45  ;;  %v6034_v45 = vsub.f32 %v5570_v3, %v5584_v11  ;;  %v6042_v50 = vmul.f32 %v5978_v21, %v5978_v21  ;;  %v6046_v1 = vmul.f32 %v5982_v53, %v5982_v53 }
 0x124   : > { %11339 = vst [vmem:[#allocation71_spill] sm:$0xff] %v5962_v51  ;;  %11340 = vst [vmem:[#allocation72_spill] sm:$0xff] %v5966_v12  ;;  %v5998_v12 = vsub.f32 %v5558_v61, %v5584_v11  ;;  %v6018_v61 = vsub.f32 %v5564_v0, %v5584_v11  ;;  %v6054_v3 = vsub.f32 %v5572_v4, %v5584_v11 }
 0x125   : > { %11341 = vst [vmem:[#allocation73_spill] sm:$0xff] %v5970_v52  ;;  %11342 = vst [vmem:[#allocation74_spill] sm:$0xff] %v5974_v44  ;;  %v6014_v52 = vsub.f32 %v5564_v0, %v5577_v7  ;;  %v6038_v0 = vsub.f32 %v5572_v4, %v5577_v7  ;;  %v6058_v46 = vmul.f32 %v5990_v54, %v5990_v54 }
 0x126   : > { %v5936_v55 = vpop.permute.xlu1 %621  ;;  %v5938_v57 = vpop.permute.xlu0 %625  ;;  %11343 = vst [vmem:[#allocation75_spill] sm:$0xff] %v5978_v21  ;;  %11344 = vst [vmem:[#allocation76_spill] sm:$0xff] %v5982_v53  ;;  %v6062_v21 = vmul.f32 %v5994_v56, %v5994_v56  ;;  %v6066_v53 = vmul.f32 %v5998_v12, %v5998_v12 }
 0x127   : > { %11345 = vst [vmem:[#allocation77_spill] sm:$0xff] %v5986_v22  ;;  %11346 = vst [vmem:[#allocation78_spill] sm:$0xff] %v5990_v54  ;;  %v6070_v22 = vmul.f32 %v6002_v58, %v6002_v58  ;;  %v6078_v54 = vmul.f32 %v6010_v59, %v6010_v59 }
 0x128   : > { %11347 = vst [vmem:[#allocation79_spill] sm:$0xff] %v5994_v56  ;;  %11348 = vst [vmem:[#allocation80_spill] sm:$0xff] %v5998_v12  ;;  %v6082_v56 = vmul.f32 %v6014_v52, %v6014_v52  ;;  %v6086_v12 = vmul.f32 %v6018_v61, %v6018_v61 }
 0x129   : > { %11349 = vst [vmem:[#allocation81_spill] sm:$0xff] %v6002_v58  ;;  %11350 = vst [vmem:[#allocation82_spill] sm:$0xff] %v6010_v59  ;;  %v6090_v58 = vmul.f32 %v6022_v31, %v6022_v31  ;;  %v6098_v59 = vmul.f32 %v6030_v62, %v6030_v62 }
 0x12a   : > { %v6004_v51 = vpop.permute.xlu1 %629  ;;  %v6006_v44 = vpop.permute.xlu0 %633  ;;  %11351 = vst [vmem:[#allocation83_spill] sm:$0xff] %v6014_v52  ;;  %11352 = vst [vmem:[#allocation84_spill] sm:$0xff] %v6018_v61  ;;  %v6102_v52 = vmul.f32 %v6034_v45, %v6034_v45  ;;  %v6106_v61 = vmul.f32 %v6038_v0, %v6038_v0 }
 0x12b   : > { %11353 = vst [vmem:[#allocation85_spill] sm:$0xff] %v6022_v31  ;;  %11354 = vst [vmem:[#allocation86_spill] sm:$0xff] %v6026_v48  ;;  %v6110_v31 = vmul.f32 %v6054_v3, %v6054_v3 }
 0x12c   : > { %11355 = vst [vmem:[#allocation87_spill] sm:$0xff] %v6030_v62  ;;  %11356 = vst [vmem:[#allocation88_spill] sm:$0xff] %v6034_v45  ;;  %v6118_v62 = vsub.f32 %v5605_v18, %v5621_v24  ;;  %v6122_v45 = vsub.f32 %v5607_v19, %v5591_v13 }
 0x12d   : > { %11357 = vst [vmem:[#allocation89_spill] sm:$0xff] %v6038_v0  ;;  %11358 = vst [vmem:[#allocation90_spill] sm:$0xff] %v6046_v1  ;;  %v6126_v0 = vsub.f32 %v5580_v8, %v5577_v7 }
 0x12e   : > { %11359 = vst [vmem:[#allocation91_spill] sm:$0xff] %v6054_v3  ;;  %11360 = vst [vmem:[#allocation92_spill] sm:$0xff] %v6062_v21  ;;  %v6072_v1 = vpop.permute.xlu1 %637  ;;  %v6074_v4 = vpop.permute.xlu0 %641  ;;  %v6130_v3 = vsub.f32 %v5580_v8, %v5584_v11  ;;  %v6150_v8 = vsub.f32 %v5666_v37, %v5591_v13  ;;  %v1047_v21 = vmul.f32 %v6118_v62, %v6118_v62 }
 0x12f   : > { %11361 = vst [vmem:[#allocation93_spill] sm:$0xff] %v6066_v53  ;;  %11362 = vst [vmem:[#allocation94_spill] sm:$0xff] %v6078_v54  ;;  %v6094_v53 = vmul.f32 %v6026_v48, %v6026_v48  ;;  %v6114_v48 = vsub.f32 %v5605_v18, %v5591_v13  ;;  %v6138_v18 = vsub.f32 %v5664_v36, %v5591_v13 }
 0x130   : > { %11363 = vst [vmem:[#allocation95_spill] sm:$0xff] %v6082_v56  ;;  %11364 = vst [vmem:[#allocation96_spill] sm:$0xff] %v6086_v12  ;;  %v6158_v12 = vsub.f32 %v5732_v30, %v5591_v13  ;;  %v6162_v56 = vsub.f32 %v5582_v9, %v5577_v7  ;;  %v6188_v54 = vmul.f32 %v6126_v0, %v6126_v0 }
 0x131   : > { %11365 = vst [vmem:[#allocation97_spill] sm:$0xff] %v6090_v58  ;;  %11366 = vst [vmem:[#allocation98_spill] sm:$0xff] %v6094_v53  ;;  %v6170_v53 = vsub.f32 %v5734_v28, %v5591_v13  ;;  %v6178_v58 = vsub.f32 %v5582_v9, %v5584_v11  ;;  %v1046_v7 = vmul.f32 %v6114_v48, %v6114_v48 }
 0x132   : > { %11367 = vst [vmem:[#allocation99_spill] sm:$0xff] %v6098_v59  ;;  %11368 = vst [vmem:[#allocation100_spill] sm:$0xff] %v6102_v52  ;;  %v6134_v52 = vsub.f32 %v5607_v19, %v5621_v24  ;;  %v6140_v59 = vpop.permute.xlu1 %645  ;;  %v6154_v19 = vsub.f32 %v5666_v37, %v5621_v24  ;;  %v6174_v37 = vsub.f32 %v5734_v28, %v5621_v24 }
 0x133   : > { %11369 = vst [vmem:[#allocation101_spill] sm:$0xff] %v6106_v61  ;;  %11370 = vst [vmem:[#allocation102_spill] sm:$0xff] %v6110_v31  ;;  %v6142_v31 = vpop.permute.xlu0 %649  ;;  %v6146_v61 = vsub.f32 %v5664_v36, %v5621_v24  ;;  %v6166_v36 = vsub.f32 %v5732_v30, %v5621_v24  ;;  %v1044_v30 = vmul.f32 %v6122_v45, %v6122_v45 }
 0x134   : > { %11371 = vst [vmem:[#allocation103_spill] sm:$0xff] %v6114_v48  ;;  %11372 = vst [vmem:[#allocation104_spill] sm:$0xff] %v6118_v62  ;;  %v6192_v28 = vmul.f32 %v6130_v3, %v6130_v3  ;;  %v1045_v9 = vmul.f32 %v6134_v52, %v6134_v52  ;;  %v1048_v11 = vmul.f32 %v6138_v18, %v6138_v18 }
 0x135   : > { %11373 = vst [vmem:[#allocation105_spill] sm:$0xff] %v6122_v45  ;;  %11374 = vst [vmem:[#allocation106_spill] sm:$0xff] %v6126_v0  ;;  %v1049_v45 = vmul.f32 %v6146_v61, %v6146_v61  ;;  %v1050_v0 = vmul.f32 %v6150_v8, %v6150_v8 }
 0x136   : > { %11375 = vst [vmem:[#allocation107_spill] sm:$0xff] %v6130_v3  ;;  %11376 = vst [vmem:[#allocation108_spill] sm:$0xff] %v6134_v52  ;;  %v6198_v48 = vpop.permute.xlu1 %653  ;;  %v1051_v3 = vmul.f32 %v6154_v19, %v6154_v19  ;;  %v6212_v52 = vmul.f32 %v6162_v56, %v6162_v56 }
 0x137   : > { %11377 = vst [vmem:[#allocation109_spill] sm:$0xff] %v6138_v18  ;;  %11378 = vst [vmem:[#allocation110_spill] sm:$0xff] %v6146_v61  ;;  %v6200_v62 = vpop.permute.xlu0 %657  ;;  %v1053_v18 = vmul.f32 %v6166_v36, %v6166_v36  ;;  %v1055_v61 = vmul.f32 %v6174_v37, %v6174_v37 }
 0x138   : > { %11379 = vst [vmem:[#allocation111_spill] sm:$0xff] %v6150_v8  ;;  %11380 = vst [vmem:[#allocation112_spill] sm:$0xff] %v6154_v19  ;;  %v6222_v8 = vmul.f32 %v6178_v58, %v6178_v58  ;;  %v6225_v19 = vadd.f32 %v1046_v7, %v5680_v41  ;;  %v6245_v41 = vsub.f32 %v5800_v38, %v5621_v24 }
 0x139   : > { %11381 = vst [vmem:[#allocation113_spill] sm:$0xff] %v6158_v12  ;;  %11382 = vst [vmem:[#allocation114_spill] sm:$0xff] %v6162_v56  ;;  %v6231_v56 = vadd.f32 %v1044_v30, %v5658_v35  ;;  %v6252_v35 = vadd.f32 %v1049_v45, %v5654_v34  ;;  %v6264_v30 = vadd.f32 %v1053_v18, %v5702_v6 }
 0x13a   : > { %11383 = vst [vmem:[#allocation115_spill] sm:$0xff] %v6166_v36  ;;  %11384 = vst [vmem:[#allocation116_spill] sm:$0xff] %v6170_v53  ;;  %v6234_v36 = vadd.f32 %v1045_v9, %v5662_v32  ;;  %v6247_v7 = vpop.permute.xlu1 %661  ;;  %v6255_v32 = vadd.f32 %v1050_v0, %v5672_v39  ;;  %v6270_v9 = vadd.f32 %v1055_v61, %v5694_v5 }
 0x13b   : > { %11385 = vst [vmem:[#allocation117_spill] sm:$0xff] %v6174_v37  ;;  %11386 = vst [vmem:[#allocation118_spill] sm:$0xff] %v6178_v58  ;;  %v6241_v37 = vsub.f32 %v5800_v38, %v5591_v13  ;;  %v6274_v34 = vsub.f32 %v5802_v49, %v5591_v13  ;;  %v6278_v39 = vsub.f32 %v5802_v49, %v5621_v24 }
 0x13c   : > { %11387 = vst [vmem:[#allocation119_spill] sm:$0xff] %v6188_v54  ;;  %11388 = vst [vmem:[#allocation120_spill] sm:$0xff] %v6192_v28  ;;  %v1052_v28 = vmul.f32 %v6158_v12, %v6158_v12  ;;  %v1054_v54 = vmul.f32 %v6170_v53, %v6170_v53  ;;  %v6228_v12 = vadd.f32 %v1047_v21, %v5686_v63  ;;  %v6249_v21 = vpop.permute.xlu0 %665 }
 0x13d   : > { %v6237_v53 = vadd.f32 %v1048_v11, %v5642_v29  ;;  %11389 = vst [vmem:[#allocation121_spill] sm:$0xff] %v6241_v37  ;;  %11390 = vst [vmem:[#allocation122_spill] sm:$0xff] %v6245_v41  ;;  %v6258_v29 = vadd.f32 %v1051_v3, %v5676_v40  ;;  %v6282_v40 = vsub.f32 %v5868_v15, %v5591_v13 }
 0x13e   : > { %v6261_v63 = vadd.f32 %v1052_v28, %v5698_v10  ;;  %v6267_v38 = vadd.f32 %v1054_v54, %v5690_v2  ;;  %11391 = vst [vmem:[#allocation123_spill] sm:$0xff] %v6270_v9  ;;  %11392 = vst [vmem:[#allocation124_spill] sm:$0xff] %v6274_v34  ;;  %v6286_v10 = vsub.f32 %v5868_v15, %v5621_v24  ;;  %v6304_v15 = vpop.permute.xlu1 %669 }
 0x13f   : > { %11393 = vst [vmem:[#allocation125_spill] sm:$0xff] %v6278_v39  ;;  %11394 = vst [vmem:[#allocation126_spill] sm:$0xff] %v6282_v40  ;;  %v6290_v2 = vsub.f32 %v5870_v43, %v5591_v13  ;;  %v1056_v5 = vmul.f32 %v6241_v37, %v6241_v37  ;;  %v1057_v6 = vmul.f32 %v6245_v41, %v6245_v41 }
 0x140   : > { %11395 = vst [vmem:[#allocation127_spill] sm:$0xff] %v6286_v10  ;;  %v6298_v45 = vsub.f32 %v5870_v43, %v5621_v24  ;;  %v6302_v49 = vsub.f32 %v5936_v55, %v5591_v13  ;;  %v6306_v54 = vpop.permute.xlu0 %673  ;;  %v6310_v61 = vsub.f32 %v5936_v55, %v5621_v24  ;;  %v6314_v0 = vsub.f32 %v5938_v57, %v5591_v13 }
 0x141   : > { %11396 = vst [vmem:[#allocation128_spill] sm:$0xff] %v6290_v2  ;;  %v6318_v43 = vsub.f32 %v5938_v57, %v5621_v24  ;;  %v6322_v3 = vsub.f32 %v6004_v51, %v5591_v13  ;;  %v1058_v18 = vmul.f32 %v6274_v34, %v6274_v34  ;;  %v6328_v28 = vsub.f32 %v6004_v51, %v5621_v24 }
 0x142   : > { %11397 = vst [vmem:[#allocation129_spill] sm:$0xff] %v6298_v45  ;;  %11398 = vst [vmem:[#allocation130_spill] sm:$0xff] %v6302_v49  ;;  %v6332_v55 = vsub.f32 %v6006_v44, %v5591_v13  ;;  %v6336_v11 = vsub.f32 %v6006_v44, %v5621_v24  ;;  %v1059_v57 = vmul.f32 %v6278_v39, %v6278_v39  ;;  %v6356_v9 = vpop.permute.xlu1 %677 }
 0x143   : > { %11399 = vst [vmem:[#allocation131_spill] sm:$0xff] %v6310_v61  ;;  %11400 = vst [vmem:[#allocation132_spill] sm:$0xff] %v6314_v0  ;;  %v1060_v41 = vmul.f32 %v6282_v40, %v6282_v40  ;;  %v1061_v34 = vmul.f32 %v6286_v10, %v6286_v10  ;;  %v1062_v51 = vmul.f32 %v6290_v2, %v6290_v2 }
 0x144   : > { %11401 = vst [vmem:[#allocation133_spill] sm:$0xff] %v6318_v43  ;;  %11402 = vst [vmem:[#allocation134_spill] sm:$0xff] %v6322_v3  ;;  %v6347_v37 = vadd.f32 %v1056_v5, %v5778_v16  ;;  %v6350_v58 = vadd.f32 %v1057_v6, %v5786_v60  ;;  %v1063_v44 = vmul.f32 %v6298_v45, %v6298_v45  ;;  %v6358_v40 = vpop.permute.xlu0 %681 }
 0x145   : > { %11403 = vst [vmem:[#allocation135_spill] sm:$0xff] %v6328_v28  ;;  %11404 = vst [vmem:[#allocation136_spill] sm:$0xff] %v6332_v55  ;;  %v1064_v39 = vmul.f32 %v6302_v49, %v6302_v49  ;;  %v1065_v10 = vmul.f32 %v6310_v61, %v6310_v61  ;;  %v1066_v16 = vmul.f32 %v6314_v0, %v6314_v0  ;;  %v11410_v49 = vld [vmem:[#allocation41_spill] sm:$0xff] }
 0x146   : > { %11405 = vst [vmem:[#allocation137_spill] sm:$0xff] %v6336_v11  ;;  %v1067_v60 = vmul.f32 %v6318_v43, %v6318_v43  ;;  %v1068_v5 = vmul.f32 %v6322_v3, %v6322_v3  ;;  %v6369_v6 = vadd.f32 %v1058_v18, %v5770_v17  ;;  %v1069_v45 = vmul.f32 %v6328_v28, %v6328_v28  ;;  %v11408_v18 = vld [vmem:[#allocation38_spill] sm:$0xff] }
 0x147   : > { %v1070_v2 = vmul.f32 %v6332_v55, %v6332_v55  ;;  %v1071_v61 = vmul.f32 %v6336_v11, %v6336_v11  ;;  %v6378_v0 = vadd.f32 %v1059_v57, %v5774_v47  ;;  %v6381_v43 = vadd.f32 %v1060_v41, %v5798_v27  ;;  %v6403_v47 = vpop.permute.xlu1 %685 }
 0x148   : > { %v6384_v3 = vadd.f32 %v1061_v34, %v5806_v26  ;;  %v6387_v17 = vadd.f32 %v1062_v51, %v5790_v14  ;;  %v6390_v28 = vadd.f32 %v1063_v44, %v11408_v18  ;;  %v6393_v55 = vadd.f32 %v1064_v39, %v11410_v49  ;;  %v6405_v26 = vpop.permute.xlu0 %689  ;;  %v11414_v14 = vld [vmem:[#allocation42_spill] sm:$0xff]  ;;  %v11415_v34 = vld [vmem:[#allocation39_spill] sm:$0xff]  ;;  %v11417_v39 = vld [vmem:[#allocation40_spill] sm:$0xff] }
 0x149   : > { %11406 = vst [vmem:[#allocation138_spill] sm:$0xff] %v6378_v0  ;;  %v6397_v11 = vsub.f32 %v6072_v1, %v5591_v13  ;;  %v6401_v27 = vsub.f32 %v6072_v1, %v5621_v24  ;;  %v6408_v41 = vadd.f32 %v1065_v10, %v11414_v14  ;;  %v6411_v57 = vadd.f32 %v1066_v16, %v11415_v34  ;;  %v11419_v51 = vld [vmem:[#allocation45_spill] sm:$0xff]  ;;  %v11421_v18 = vld [vmem:[#allocation46_spill] sm:$0xff]  ;;  %v11423_v1 = vld [vmem:[#allocation43_spill] sm:$0xff] }
 0x14a   : > { %11407 = vst [vmem:[#allocation139_spill] sm:$0xff] %v6387_v17  ;;  %11409 = vst [vmem:[#allocation38_spill] sm:$0xff] %v6390_v28  ;;  %v6414_v49 = vadd.f32 %v1067_v60, %v11417_v39  ;;  %v6417_v44 = vadd.f32 %v1068_v5, %v11419_v51  ;;  %v6420_v28 = vadd.f32 %v1069_v45, %v11421_v18 }
 0x14b   : > { %11411 = vst [vmem:[#allocation41_spill] sm:$0xff] %v6393_v55  ;;  %11412 = vst [vmem:[#allocation140_spill] sm:$0xff] %v6397_v11  ;;  %v6423_v17 = vadd.f32 %v1070_v2, %v11423_v1  ;;  %v11425_v55 = vld [vmem:[#allocation44_spill] sm:$0xff]  ;;  %v6430_v10 = vsub.f32 %v6074_v4, %v5591_v13  ;;  %v6434_v16 = vsub.f32 %v6074_v4, %v5621_v24 }
 0x14c   : > { %11413 = vst [vmem:[#allocation141_spill] sm:$0xff] %v6401_v27  ;;  %11416 = vst [vmem:[#allocation42_spill] sm:$0xff] %v6411_v57  ;;  %v6426_v0 = vadd.f32 %v1071_v61, %v11425_v55  ;;  %v6438_v60 = vsub.f32 %v6140_v59, %v5591_v13  ;;  %v6442_v45 = vsub.f32 %v6140_v59, %v5621_v24  ;;  %v6460_v59 = vpop.permute.xlu1 %693  ;;  %v6462_v14 = vpop.permute.xlu0 %697 }
 0x14d   : > { %11418 = vst [vmem:[#allocation39_spill] sm:$0xff] %v6414_v49  ;;  %11420 = vst [vmem:[#allocation40_spill] sm:$0xff] %v6417_v44  ;;  %v6446_v2 = vsub.f32 %v6142_v31, %v5591_v13  ;;  %v1072_v61 = vmul.f32 %v6397_v11, %v6397_v11  ;;  %v1073_v55 = vmul.f32 %v6401_v27, %v6401_v27 }
 0x14e   : > { %11422 = vst [vmem:[#allocation45_spill] sm:$0xff] %v6420_v28  ;;  %11424 = vst [vmem:[#allocation46_spill] sm:$0xff] %v6423_v17  ;;  %v6454_v4 = vsub.f32 %v6142_v31, %v5621_v24  ;;  %v6458_v5 = vsub.f32 %v6198_v48, %v5591_v13  ;;  %v6466_v34 = vsub.f32 %v6198_v48, %v5621_v24 }
 0x14f   : > { %11426 = vst [vmem:[#allocation43_spill] sm:$0xff] %v6426_v0  ;;  %11427 = vst [vmem:[#allocation44_spill] sm:$0xff] %v6430_v10  ;;  %v6470_v39 = vsub.f32 %v6200_v62, %v5591_v13  ;;  %v6474_v31 = vsub.f32 %v6200_v62, %v5621_v24  ;;  %v6478_v51 = vsub.f32 %v6247_v7, %v5591_v13 }
 0x150   : > { %11428 = vst [vmem:[#allocation142_spill] sm:$0xff] %v6434_v16  ;;  %11429 = vst [vmem:[#allocation143_spill] sm:$0xff] %v6438_v60  ;;  %v1074_v18 = vmul.f32 %v6430_v10, %v6430_v10  ;;  %v6484_v1 = vsub.f32 %v6247_v7, %v5621_v24  ;;  %v6488_v48 = vsub.f32 %v6249_v21, %v5591_v13  ;;  %v6512_v49 = vpop.permute.xlu1 %701 }
 0x151   : > { %11430 = vst [vmem:[#allocation144_spill] sm:$0xff] %v6442_v45  ;;  %11431 = vst [vmem:[#allocation145_spill] sm:$0xff] %v6446_v2  ;;  %v6492_v27 = vsub.f32 %v6249_v21, %v5621_v24  ;;  %v1075_v62 = vmul.f32 %v6434_v16, %v6434_v16  ;;  %v1076_v11 = vmul.f32 %v6438_v60, %v6438_v60  ;;  %v6514_v60 = vpop.permute.xlu0 %705 }
 0x152   : > { %11432 = vst [vmem:[#allocation146_spill] sm:$0xff] %v6454_v4  ;;  %11433 = vst [vmem:[#allocation147_spill] sm:$0xff] %v6458_v5  ;;  %v1077_v10 = vmul.f32 %v6442_v45, %v6442_v45  ;;  %v1078_v7 = vmul.f32 %v6446_v2, %v6446_v2  ;;  %v6503_v0 = vadd.f32 %v1072_v61, %v5914_v42 }
 0x153   : > { %11434 = vst [vmem:[#allocation148_spill] sm:$0xff] %v6466_v34  ;;  %11435 = vst [vmem:[#allocation149_spill] sm:$0xff] %v6470_v39  ;;  %v6506_v17 = vadd.f32 %v1073_v55, %v5922_v20  ;;  %v1079_v21 = vmul.f32 %v6454_v4, %v6454_v4  ;;  %v1080_v16 = vmul.f32 %v6458_v5, %v6458_v5  ;;  %v11444_v5 = vld [vmem:[#allocation62_spill] sm:$0xff] }
 0x154   : > { %11436 = vst [vmem:[#allocation150_spill] sm:$0xff] %v6474_v31  ;;  %11437 = vst [vmem:[#allocation151_spill] sm:$0xff] %v6478_v51  ;;  %v1081_v45 = vmul.f32 %v6466_v34, %v6466_v34  ;;  %v1082_v42 = vmul.f32 %v6470_v39, %v6470_v39  ;;  %v1083_v20 = vmul.f32 %v6474_v31, %v6474_v31 }
 0x155   : > { %11438 = vst [vmem:[#allocation152_spill] sm:$0xff] %v6484_v1  ;;  %11439 = vst [vmem:[#allocation153_spill] sm:$0xff] %v6488_v48  ;;  %v1084_v61 = vmul.f32 %v6478_v51, %v6478_v51  ;;  %v6525_v55 = vadd.f32 %v1074_v18, %v5906_v33  ;;  %v1085_v4 = vmul.f32 %v6484_v1, %v6484_v1  ;;  %v11449_v33 = vld [vmem:[#allocation64_spill] sm:$0xff] }
 0x156   : > { %11440 = vst [vmem:[#allocation154_spill] sm:$0xff] %v6492_v27  ;;  %11441 = vst [vmem:[#allocation155_spill] sm:$0xff] %v6503_v0  ;;  %v1086_v2 = vmul.f32 %v6488_v48, %v6488_v48  ;;  %v1087_v34 = vmul.f32 %v6492_v27, %v6492_v27  ;;  %v6534_v39 = vadd.f32 %v1075_v62, %v11444_v5  ;;  %v11453_v0 = vld [vmem:[#allocation69_spill] sm:$0xff]  ;;  %v11461_v62 = vld [vmem:[#allocation68_spill] sm:$0xff] }
 0x157   : > { %11442 = vst [vmem:[#allocation156_spill] sm:$0xff] %v6506_v17  ;;  %11443 = vst [vmem:[#allocation157_spill] sm:$0xff] %v6525_v55  ;;  %v6537_v31 = vadd.f32 %v1076_v11, %v5934_v23  ;;  %v11447_v17 = vld [vmem:[#allocation66_spill] sm:$0xff]  ;;  %v6543_v18 = vadd.f32 %v1078_v7, %v11449_v33  ;;  %v11451_v55 = vld [vmem:[#allocation65_spill] sm:$0xff]  ;;  %v6549_v48 = vadd.f32 %v1080_v16, %v11453_v0  ;;  %v782_v16 = vpop.permute.xlu1 %781 }
 0x158   : > { %11445 = vst [vmem:[#allocation62_spill] sm:$0xff] %v6534_v39  ;;  %v6540_v51 = vadd.f32 %v1077_v10, %v11447_v17  ;;  %v6546_v1 = vadd.f32 %v1079_v21, %v11451_v55  ;;  %v6553_v27 = vsub.f32 %v6304_v15, %v5591_v13  ;;  %v6557_v23 = vsub.f32 %v6304_v15, %v5621_v24  ;;  %v11457_v11 = vld [vmem:[#allocation70_spill] sm:$0xff]  ;;  %v11459_v10 = vld [vmem:[#allocation67_spill] sm:$0xff]  ;;  %v11463_v21 = vld [vmem:[#allocation73_spill] sm:$0xff] }
 0x159   : > { %11446 = vst [vmem:[#allocation158_spill] sm:$0xff] %v6537_v31  ;;  %11450 = vst [vmem:[#allocation64_spill] sm:$0xff] %v6543_v18  ;;  %v6560_v17 = vadd.f32 %v1081_v45, %v11457_v11  ;;  %v6563_v5 = vadd.f32 %v1082_v42, %v11459_v10  ;;  %v6566_v7 = vadd.f32 %v1083_v20, %v11461_v62  ;;  %v11465_v55 = vld [vmem:[#allocation74_spill] sm:$0xff]  ;;  %v11469_v15 = vld [vmem:[#allocation72_spill] sm:$0xff]  ;;  %v786_v42 = vpop.permute.xlu0 %785 }
 0x15a   : > { %11448 = vst [vmem:[#allocation66_spill] sm:$0xff] %v6540_v51  ;;  %11452 = vst [vmem:[#allocation65_spill] sm:$0xff] %v6546_v1  ;;  %v6569_v0 = vadd.f32 %v1084_v61, %v11463_v21  ;;  %v6572_v33 = vadd.f32 %v1085_v4, %v11465_v55  ;;  %v11467_v1 = vld [vmem:[#allocation71_spill] sm:$0xff]  ;;  %v6582_v45 = vsub.f32 %v6306_v54, %v5591_v13  ;;  %v11472_v20 = vld [vmem:[#allocation18_spill] sm:$0xff] }
 0x15b   : > { %11454 = vst [vmem:[#allocation69_spill] sm:$0xff] %v6549_v48  ;;  %11455 = vst [vmem:[#allocation159_spill] sm:$0xff] %v6553_v27  ;;  %v6575_v18 = vadd.f32 %v1086_v2, %v11467_v1  ;;  %v6578_v48 = vadd.f32 %v1087_v34, %v11469_v15  ;;  %v6585_v11 = vsub.f32 %v782_v16, %v11472_v20  ;;  %v11473_v61 = vld [vmem:[#allocation19_spill] sm:$0xff] }
 0x15c   : > { %11456 = vst [vmem:[#allocation160_spill] sm:$0xff] %v6557_v23  ;;  %11458 = vst [vmem:[#allocation70_spill] sm:$0xff] %v6560_v17  ;;  %v6588_v10 = vsub.f32 %v782_v16, %v11473_v61  ;;  %v6591_v4 = vsub.f32 %v786_v42, %v11472_v20  ;;  %v6594_v2 = vsub.f32 %v786_v42, %v11473_v61 }
 0x15d   : > { %11460 = vst [vmem:[#allocation67_spill] sm:$0xff] %v6563_v5  ;;  %11462 = vst [vmem:[#allocation68_spill] sm:$0xff] %v6566_v7  ;;  %v1088_v34 = vmul.f32 %v6553_v27, %v6553_v27  ;;  %v1089_v1 = vmul.f32 %v6557_v23, %v6557_v23  ;;  %v6602_v62 = vsub.f32 %v6306_v54, %v5621_v24  ;;  %v790_v23 = vpop.permute.xlu1 %789  ;;  %v798_v7 = vpop.permute.xlu0 %797 }
 0x15e   : > { %11464 = vst [vmem:[#allocation73_spill] sm:$0xff] %v6569_v0  ;;  %11466 = vst [vmem:[#allocation74_spill] sm:$0xff] %v6572_v33  ;;  %v6606_v21 = vsub.f32 %v6356_v9, %v5591_v13  ;;  %v1172_v16 = vmul.f32 %v6585_v11, %v6585_v11  ;;  %v1173_v55 = vmul.f32 %v6588_v10, %v6588_v10 }
 0x15f   : > { %11468 = vst [vmem:[#allocation71_spill] sm:$0xff] %v6575_v18  ;;  %11470 = vst [vmem:[#allocation72_spill] sm:$0xff] %v6578_v48  ;;  %v1174_v15 = vmul.f32 %v6591_v4, %v6591_v4  ;;  %v1175_v42 = vmul.f32 %v6594_v2, %v6594_v2  ;;  %v6618_v54 = vsub.f32 %v6356_v9, %v5621_v24 }
 0x160   : > { %11471 = vst [vmem:[#allocation161_spill] sm:$0xff] %v6582_v45  ;;  %11474 = vst [vmem:[#allocation18_spill] sm:$0xff] %v6594_v2  ;;  %v6622_v27 = vsub.f32 %v6358_v40, %v5591_v13  ;;  %v6625_v48 = vsub.f32 %v790_v23, %v11472_v20  ;;  %v6628_v18 = vsub.f32 %v790_v23, %v11473_v61 }
 0x161   : > { %11475 = vst [vmem:[#allocation19_spill] sm:$0xff] %v6602_v62  ;;  %11476 = vst [vmem:[#allocation162_spill] sm:$0xff] %v6606_v21  ;;  %v6631_v5 = vadd.f32 %v1172_v16, %v6231_v56  ;;  %v6634_v33 = vadd.f32 %v1173_v55, %v6234_v36  ;;  %v6637_v9 = vadd.f32 %v1174_v15, %v6225_v19 }
 0x162   : > { %11477 = vst [vmem:[#allocation163_spill] sm:$0xff] %v6618_v54  ;;  %11478 = vst [vmem:[#allocation164_spill] sm:$0xff] %v6622_v27  ;;  %v6640_v0 = vadd.f32 %v1175_v42, %v6228_v12  ;;  %v1176_v17 = vmul.f32 %v6625_v48, %v6625_v48  ;;  %v1177_v23 = vmul.f32 %v6628_v18, %v6628_v18 }
 0x163   : > { %11479 = vst [vmem:[#allocation165_spill] sm:$0xff] %v6625_v48  ;;  %11480 = vst [vmem:[#allocation166_spill] sm:$0xff] %v6628_v18  ;;  %v6647_v39 = vsub.f32 %v798_v7, %v11472_v20  ;;  %v6650_v56 = vsub.f32 %v798_v7, %v11473_v61  ;;  %vm1300_vm1 = vcmp.gt.f32.partialorder %v6631_v5, 0.0  ;;  %vm1301_vm2 = vcmp.gt.f32.partialorder %v6634_v33, 0.0 }
 0x164   : > { %vm1302_vm3 = vcmp.gt.f32.partialorder %v6637_v9, 0.0  ;;  %vm1303_vm4 = vcmp.gt.f32.partialorder %v6640_v0, 0.0  ;;  %v1364_v12 = vsel %vm1300_vm1, %v6631_v5, 1.0  ;;  %v1365_v19 = vsel %vm1301_vm2, %v6634_v33, 1.0 }
 0x165   : > { %11481 = vst [vmem:[#allocation167_spill] sm:$0xff] %v6647_v39  ;;  %11482 = vst [vmem:[#allocation168_spill] sm:$0xff] %v6650_v56  ;;  %v1366_v36 = vsel %vm1302_vm3, %v6637_v9, 1.0  ;;  %v6668_v7 = vsel %vm1303_vm4, %v6640_v0, 1.0  ;;  %4804 = vrcp.f32 %v1364_v12  ;;  %v6671_v16 = vadd.f32 %v1176_v17, %v6237_v53  ;;  %v11533_v0 = vld [vmem:[#allocation100_spill] sm:$0xff] }
 0x166   : > { %v6674_v55 = vadd.f32 %v1177_v23, %v6252_v35  ;;  %v1180_v15 = vmul.f32 %v6647_v39, %v6647_v39  ;;  %v1090_v42 = vmul.f32 %v6582_v45, %v6582_v45  ;;  %v6682_v18 = vsub.f32 %v6358_v40, %v5621_v24  ;;  %v794_v23 = vpop.permute.xlu1 %793 }
 0x167   : > { %4806 = vrcp.f32 %v1365_v19  ;;  %v1181_v51 = vmul.f32 %v6650_v56, %v6650_v56  ;;  %v1091_v53 = vmul.f32 %v6602_v62, %v6602_v62  ;;  %vm1304_vm5 = vcmp.gt.f32.partialorder %v6671_v16, 0.0 }
 0x168   : > { %11483 = vst [vmem:[#allocation169_spill] sm:$0xff] %v6682_v18  ;;  %4808 = vrcp.f32 %v1366_v36  ;;  %vm1305_vm6 = vcmp.gt.f32.partialorder %v6674_v55, 0.0  ;;  %v1368_v35 = vsel %vm1304_vm5, %v6671_v16, 1.0  ;;  %v6698_v17 = vadd.f32 %v1180_v15, %v6261_v63 }
 0x169   : > { %4810 = vrcp.f32 %v6668_v7  ;;  %v1369_v40 = vsel %vm1305_vm6, %v6674_v55, 1.0  ;;  %v1092_v62 = vmul.f32 %v6606_v21, %v6606_v21  ;;  %v1093_v45 = vmul.f32 %v6618_v54, %v6618_v54 }
 0x16a   : > { %v1094_v56 = vmul.f32 %v6622_v27, %v6622_v27  ;;  %4812 = vrcp.f32 %v1368_v35  ;;  %v1095_v39 = vmul.f32 %v6682_v18, %v6682_v18  ;;  %v6710_v31 = vsub.f32 %v6403_v47, %v5591_v13 }
 0x16b   : > { %4814 = vrcp.f32 %v1369_v40  ;;  %v6713_v63 = vadd.f32 %v1181_v51, %v6264_v30  ;;  %v6716_v15 = vadd.f32 %v1088_v34, %v6050_v25  ;;  %v6720_v54 = vsub.f32 %v6403_v47, %v5621_v24  ;;  %v11492_v47 = vld [vmem:[#allocation90_spill] sm:$0xff] }
 0x16c   : > { %11484 = vst [vmem:[#allocation170_spill] sm:$0xff] %v6710_v31  ;;  %v6724_v27 = vsub.f32 %v6405_v26, %v5591_v13  ;;  %v6727_v18 = vsub.f32 %v794_v23, %v11472_v20  ;;  %v6730_v21 = vadd.f32 %v1089_v1, %v6058_v46  ;;  %v6733_v30 = vadd.f32 %v1090_v42, %v6042_v50  ;;  %v11498_v50 = vld [vmem:[#allocation92_spill] sm:$0xff]  ;;  %v11500_v42 = vld [vmem:[#allocation93_spill] sm:$0xff] }
 0x16d   : > { %11485 = vst [vmem:[#allocation171_spill] sm:$0xff] %v6716_v15  ;;  %11486 = vst [vmem:[#allocation172_spill] sm:$0xff] %v6720_v54  ;;  %v6737_v25 = vsub.f32 %v6405_v26, %v5621_v24  ;;  %vm1308_vm7 = vcmp.gt.f32.partialorder %v6698_v17, 0.0  ;;  %v6741_v51 = vadd.f32 %v1091_v53, %v11492_v47  ;;  %v6744_v34 = vadd.f32 %v1092_v62, %v6070_v22  ;;  %v11495_v15 = vld [vmem:[#allocation94_spill] sm:$0xff]  ;;  %v806_v53 = vpop.permute.xlu0 %805 }
 0x16e   : > { %11487 = vst [vmem:[#allocation173_spill] sm:$0xff] %v6724_v27  ;;  %11488 = vst [vmem:[#allocation174_spill] sm:$0xff] %v6727_v18  ;;  %v6747_v57 = vadd.f32 %v1093_v45, %v11495_v15  ;;  %v6750_v46 = vsub.f32 %v794_v23, %v11473_v61  ;;  %v6753_v1 = vadd.f32 %v1094_v56, %v11498_v50  ;;  %vm1309_vm8 = vcmp.gt.f32.partialorder %v6713_v63, 0.0 }
 0x16f   : > { %11489 = vst [vmem:[#allocation175_spill] sm:$0xff] %v6730_v21  ;;  %11490 = vst [vmem:[#allocation176_spill] sm:$0xff] %v6733_v30  ;;  %v6756_v26 = vadd.f32 %v1095_v39, %v11500_v42  ;;  %v1096_v30 = vmul.f32 %v6710_v31, %v6710_v31  ;;  %v4805_v22 = vpop.eup %4804  ;;  %v1097_v45 = vmul.f32 %v6720_v54, %v6720_v54  ;;  %v6768_v56 = vsel %vm1308_vm7, %v6698_v17, 1.0 }
 0x170   : > { %11491 = vst [vmem:[#allocation177_spill] sm:$0xff] %v6737_v25  ;;  %11493 = vst [vmem:[#allocation90_spill] sm:$0xff] %v6741_v51  ;;  %v1098_v62 = vmul.f32 %v6724_v27, %v6724_v27  ;;  %v1178_v39 = vmul.f32 %v6727_v18, %v6727_v18  ;;  %v1099_v15 = vmul.f32 %v6737_v25, %v6737_v25  ;;  %v6785_v27 = vsel %vm1309_vm8, %v6713_v63, 1.0  ;;  %v11560_v63 = vld [vmem:[#allocation138_spill] sm:$0xff] }
 0x171   : > { %11494 = vst [vmem:[#allocation178_spill] sm:$0xff] %v6744_v34  ;;  %11496 = vst [vmem:[#allocation94_spill] sm:$0xff] %v6747_v57  ;;  %v4807_v23 = vpop.eup %4806  ;;  %v6776_v47 = vsub.f32 %v6460_v59, %v5591_v13  ;;  %v6780_v50 = vsub.f32 %v6460_v59, %v5621_v24  ;;  %v1492_v42 = vmul.f32 %v4805_v22, %v1364_v12  ;;  %4816 = vrcp.f32 %v6768_v56 }
 0x172   : > { %11497 = vst [vmem:[#allocation179_spill] sm:$0xff] %v6750_v46  ;;  %11499 = vst [vmem:[#allocation92_spill] sm:$0xff] %v6753_v1  ;;  %v4809_v54 = vpop.eup %4808  ;;  %v1493_v31 = vmul.f32 %v4807_v23, %v1365_v19  ;;  %v1179_v18 = vmul.f32 %v6750_v46, %v6750_v46  ;;  %v6790_v25 = vsub.f32 %v806_v53, %v11472_v20  ;;  %4818 = vrcp.f32 %v6785_v27 }
 0x173   : > { %11501 = vst [vmem:[#allocation93_spill] sm:$0xff] %v6756_v26  ;;  %11502 = vst [vmem:[#allocation180_spill] sm:$0xff] %v6776_v47  ;;  %v4811_v26 = vpop.eup %4810  ;;  %v1556_v1 = vsub.f32 2.0, %v1492_v42  ;;  %v1494_v51 = vmul.f32 %v4809_v54, %v1366_v36  ;;  %v6794_v59 = vsub.f32 %v806_v53, %v11473_v61  ;;  %v6798_v19 = vsub.f32 %v6462_v14, %v5591_v13  ;;  %v11507_v53 = vld [vmem:[#allocation97_spill] sm:$0xff] }
 0x174   : > { %11503 = vst [vmem:[#allocation181_spill] sm:$0xff] %v6780_v50  ;;  %11504 = vst [vmem:[#allocation182_spill] sm:$0xff] %v6790_v25  ;;  %v4813_v12 = vpop.eup %4812  ;;  %v1557_v57 = vsub.f32 2.0, %v1493_v31  ;;  %v1495_v34 = vmul.f32 %v4811_v26, %v6668_v7  ;;  %v6802_v46 = vadd.f32 %v1178_v39, %v6255_v32  ;;  %v6808_v48 = vadd.f32 %v1096_v30, %v11507_v53  ;;  %v11512_v39 = vld [vmem:[#allocation96_spill] sm:$0xff] }
 0x175   : > { %11505 = vst [vmem:[#allocation183_spill] sm:$0xff] %v6794_v59  ;;  %11506 = vst [vmem:[#allocation184_spill] sm:$0xff] %v6798_v19  ;;  %v4815_v21 = vpop.eup %4814  ;;  %v6804_v28 = vmul.f32 %v4805_v22, %v1556_v1  ;;  %v1558_v36 = vsub.f32 2.0, %v1494_v51  ;;  %v1496_v42 = vmul.f32 %v4813_v12, %v1368_v35  ;;  %v6812_v44 = vsub.f32 %v6462_v14, %v5621_v24  ;;  %v11509_v1 = vld [vmem:[#allocation98_spill] sm:$0xff] }
 0x176   : > { %v6814_v31 = vmul.f32 %v4807_v23, %v1557_v57  ;;  %v1559_v7 = vsub.f32 2.0, %v1495_v34  ;;  %v1497_v2 = vmul.f32 %v4815_v21, %v1369_v40  ;;  %v6817_v32 = vadd.f32 %v1179_v18, %v6258_v29  ;;  %v11510_v34 = vld [vmem:[#allocation95_spill] sm:$0xff] }
 0x177   : > { %11508 = vst [vmem:[#allocation97_spill] sm:$0xff] %v6812_v44  ;;  %v1184_v51 = vmul.f32 %v6790_v25, %v6790_v25  ;;  %v1185_v35 = vmul.f32 %v6794_v59, %v6794_v59  ;;  %v6824_v30 = vadd.f32 %v1097_v45, %v11509_v1  ;;  %v1684_v14 = vmul.f32 %v6804_v28, %v6804_v28 }
 0x178   : > { %v6828_v22 = vmul.f32 %v4809_v54, %v1558_v36  ;;  %v1560_v57 = vsub.f32 2.0, %v1496_v42  ;;  %v6831_v40 = vadd.f32 %v1098_v62, %v11510_v34  ;;  %v1100_v29 = vmul.f32 %v6776_v47, %v6776_v47 }
 0x179   : > { %v1101_v18 = vmul.f32 %v6780_v50, %v6780_v50  ;;  %vm1306_vm9 = vcmp.gt.f32.partialorder %v6802_v46, 0.0  ;;  %v6839_v45 = vadd.f32 %v1099_v15, %v11512_v39  ;;  %v1102_v23 = vmul.f32 %v6798_v19, %v6798_v19 }
 0x17a   : > { %11511 = vst [vmem:[#allocation98_spill] sm:$0xff] %v6831_v40  ;;  %v1685_v54 = vmul.f32 %v6814_v31, %v6814_v31  ;;  %v6845_v36 = vmul.f32 %v4811_v26, %v1559_v7  ;;  %v1561_v62 = vsub.f32 2.0, %v1497_v2  ;;  %vm1307_vm10 = vcmp.gt.f32.partialorder %v6817_v32, 0.0  ;;  %v11514_v7 = vld [vmem:[#allocation101_spill] sm:$0xff] }
 0x17b   : > { %11513 = vst [vmem:[#allocation95_spill] sm:$0xff] %v6839_v45  ;;  %v6849_v42 = vadd.f32 %v1184_v51, %v6347_v37  ;;  %v6852_v53 = vadd.f32 %v1185_v35, %v6350_v58  ;;  %v1748_v15 = vmul.f32 %v1684_v14, %v6804_v28  ;;  %v1686_v1 = vmul.f32 %v6828_v22, %v6828_v22  ;;  %v4817_v2 = vpop.eup %4816  ;;  %v11516_v37 = vld [vmem:[#allocation102_spill] sm:$0xff] }
 0x17c   : > { %v6857_v34 = vmul.f32 %v4813_v12, %v1560_v57  ;;  %v6862_v26 = vsel %vm1306_vm9, %v6802_v46, 1.0  ;;  %v6865_v39 = vadd.f32 %v1100_v29, %v11514_v7  ;;  %v6868_v51 = vadd.f32 %v1101_v18, %v11516_v37  ;;  %v802_v18 = vpop.permute.xlu1 %801  ;;  %v4819_v7 = vpop.eup %4818 }
 0x17d   : > { %v1103_v58 = vmul.f32 %v6812_v44, %v6812_v44  ;;  %v6874_v35 = vsub.f32 %v6512_v49, %v5591_v13  ;;  %v6878_v12 = vsub.f32 %v6512_v49, %v5621_v24  ;;  %v1749_v14 = vmul.f32 %v1685_v54, %v6814_v31 }
 0x17e   : > { %11515 = vst [vmem:[#allocation96_spill] sm:$0xff] %v6865_v39  ;;  %11517 = vst [vmem:[#allocation101_spill] sm:$0xff] %v6868_v51  ;;  %v1687_v57 = vmul.f32 %v6845_v36, %v6845_v36  ;;  %v6886_v29 = vsel %vm1307_vm10, %v6817_v32, 1.0  ;;  %v6888_v37 = vmul.f32 %v4815_v21, %v1561_v62  ;;  %4820 = vrcp.f32 %v6862_v26 }
 0x17f   : > { %11518 = vst [vmem:[#allocation102_spill] sm:$0xff] %v6874_v35  ;;  %11519 = vst [vmem:[#allocation185_spill] sm:$0xff] %v6878_v12  ;;  %vm1312_vm11 = vcmp.gt.f32.partialorder %v6849_v42, 0.0  ;;  %vm1313_vm12 = vcmp.gt.f32.partialorder %v6852_v53, 0.0  ;;  %v6895_v49 = vsel %vm1300_vm1, %v1748_v15, 0.0  ;;  %v1750_v54 = vmul.f32 %v1686_v1, %v6828_v22 }
 0x180   : > { %11520 = vst [vmem:[#allocation186_spill] sm:$0xff] %v6895_v49  ;;  %v1688_v50 = vmul.f32 %v6857_v34, %v6857_v34  ;;  %v1500_v47 = vmul.f32 %v4817_v2, %v6768_v56  ;;  %v6903_v21 = vsub.f32 %v6514_v60, %v5591_v13  ;;  %4822 = vrcp.f32 %v6886_v29 }
 0x181   : > { %v6907_v62 = vsub.f32 %v802_v18, %v11472_v20  ;;  %v6910_v5 = vsub.f32 %v802_v18, %v11473_v61  ;;  %v6914_v15 = vsel %vm1301_vm2, %v1749_v14, 0.0  ;;  %v1751_v1 = vmul.f32 %v1687_v57, %v6845_v36 }
 0x182   : > { %11521 = vst [vmem:[#allocation187_spill] sm:$0xff] %v6903_v21  ;;  %11524 = vst [vmem:[#allocation190_spill] sm:$0xff] %v6914_v15  ;;  %v1501_v56 = vmul.f32 %v4819_v7, %v6785_v27  ;;  %v6921_v13 = vsel %vm1312_vm11, %v6849_v42, 1.0  ;;  %v6925_v44 = vsub.f32 %v6514_v60, %v5621_v24  ;;  %v6929_v18 = vmul.f32 %v6895_v49, %v6895_v49 }
 0x183   : > { %11522 = vst [vmem:[#allocation188_spill] sm:$0xff] %v6907_v62  ;;  %11523 = vst [vmem:[#allocation189_spill] sm:$0xff] %v6910_v5  ;;  %v1689_v33 = vmul.f32 %v6888_v37, %v6888_v37  ;;  %v6936_v27 = vsel %vm1313_vm12, %v6852_v53, 1.0  ;;  %v1104_v14 = vmul.f32 %v6874_v35, %v6874_v35  ;;  %v6942_v57 = vsel %vm1302_vm3, %v1750_v54, 0.0 }
 0x184   : > { %11525 = vst [vmem:[#allocation191_spill] sm:$0xff] %v6925_v44  ;;  %11526 = vst [vmem:[#allocation192_spill] sm:$0xff] %v6929_v18  ;;  %v1752_v24 = vmul.f32 %v1688_v50, %v6857_v34  ;;  %v1564_v60 = vsub.f32 2.0, %v1500_v47  ;;  %v1105_v19 = vmul.f32 %v6878_v12, %v6878_v12  ;;  %v6949_v59 = vmul.f32 %v6914_v15, %v6914_v15  ;;  %v11530_v50 = vld [vmem:[#allocation99_spill] sm:$0xff] }
 0x185   : > { %11527 = vst [vmem:[#allocation193_spill] sm:$0xff] %v6942_v57  ;;  %4824 = vrcp.f32 %v6921_v13  ;;  %v1182_v25 = vmul.f32 %v6907_v62, %v6907_v62  ;;  %v6956_v9 = vsel %vm1303_vm4, %v1751_v1, 0.0  ;;  %v1565_v54 = vsub.f32 2.0, %v1501_v56 }
 0x186   : > { %11528 = vst [vmem:[#allocation194_spill] sm:$0xff] %v6949_v59  ;;  %11529 = vst [vmem:[#allocation195_spill] sm:$0xff] %v6956_v9  ;;  %4826 = vrcp.f32 %v6936_v27  ;;  %v1183_v47 = vmul.f32 %v6910_v5, %v6910_v5  ;;  %v6962_v12 = vadd.f32 %v1102_v23, %v11530_v50  ;;  %v1940_v35 = vmul.f32 2.0, %v6929_v18 }
 0x187   : > { %v6967_v45 = vmul.f32 %v6942_v57, %v6942_v57  ;;  %v1753_v62 = vmul.f32 %v1689_v33, %v6888_v37  ;;  %v6971_v1 = vadd.f32 %v1103_v58, %v11533_v0  ;;  %v1106_v56 = vmul.f32 %v6903_v21, %v6903_v21  ;;  %v814_v0 = vpop.permute.xlu0 %813 }
 0x188   : > { %11531 = vst [vmem:[#allocation99_spill] sm:$0xff] %v6962_v12  ;;  %v6977_v5 = vsel %vm1304_vm5, %v1752_v24, 0.0  ;;  %v6979_v23 = vmul.f32 %v4817_v2, %v1564_v60  ;;  %v4821_v50 = vpop.eup %4820  ;;  %v1107_v18 = vmul.f32 %v6925_v44, %v6925_v44  ;;  %v1941_v12 = vmul.f32 2.0, %v6949_v59  ;;  %v11539_v60 = vld [vmem:[#allocation123_spill] sm:$0xff] }
 0x189   : > { %11532 = vst [vmem:[#allocation196_spill] sm:$0xff] %v6967_v45  ;;  %11534 = vst [vmem:[#allocation100_spill] sm:$0xff] %v6971_v1  ;;  %v6986_v33 = vmul.f32 %v6956_v9, %v6956_v9  ;;  %v6989_v58 = vadd.f32 %v1182_v25, %v6267_v38  ;;  %v6992_v16 = vadd.f32 %v1104_v14, %v6212_v52  ;;  %v1942_v1 = vmul.f32 2.0, %v6967_v45 }
 0x18a   : > { %11535 = vst [vmem:[#allocation197_spill] sm:$0xff] %v6977_v5  ;;  %v6995_v2 = vadd.f32 %v1105_v19, %v6222_v8  ;;  %v6997_v24 = vmul.f32 %v4819_v7, %v1565_v54  ;;  %v7000_v44 = vadd.f32 %v1183_v47, %v11539_v60  ;;  %v4823_v59 = vpop.eup %4822  ;;  %v2004_v21 = vsub.f32 %v1940_v35, %v6895_v49  ;;  %v11542_v8 = vld [vmem:[#allocation119_spill] sm:$0xff]  ;;  %v11546_v54 = vld [vmem:[#allocation120_spill] sm:$0xff] }
 0x18b   : > { %11536 = vst [vmem:[#allocation198_spill] sm:$0xff] %v6986_v33  ;;  %11537 = vst [vmem:[#allocation199_spill] sm:$0xff] %v6992_v16  ;;  %v7006_v38 = vsel %vm1305_vm6, %v1753_v62, 0.0  ;;  %v7010_v52 = vmul.f32 %v6977_v5, %v6977_v5  ;;  %v7013_v25 = vadd.f32 %v1106_v56, %v11542_v8  ;;  %v1692_v19 = vmul.f32 %v6979_v23, %v6979_v23 }
 0x18c   : > { %11538 = vst [vmem:[#allocation200_spill] sm:$0xff] %v6995_v2  ;;  %11540 = vst [vmem:[#allocation123_spill] sm:$0xff] %v7006_v38  ;;  %v1498_v7 = vmul.f32 %v4821_v50, %v6862_v26  ;;  %v7019_v35 = vsub.f32 %v814_v0, %v11472_v20  ;;  %v2005_v14 = vsub.f32 %v1941_v12, %v6914_v15  ;;  %v1943_v55 = vmul.f32 2.0, %v6986_v33 }
 0x18d   : > { %11541 = vst [vmem:[#allocation201_spill] sm:$0xff] %v7010_v52  ;;  %11543 = vst [vmem:[#allocation119_spill] sm:$0xff] %v7013_v25  ;;  %vm1310_vm13 = vcmp.gt.f32.partialorder %v6989_v58, 0.0  ;;  %v7025_v62 = vsub.f32 %v814_v0, %v11473_v61  ;;  %v7028_v47 = vadd.f32 %v1107_v18, %v11546_v54  ;;  %v7032_v56 = vmul.f32 %v7006_v38, %v7006_v38 }
 0x18e   : > { %11544 = vst [vmem:[#allocation202_spill] sm:$0xff] %v7019_v35  ;;  %v1499_v26 = vmul.f32 %v4823_v59, %v6886_v29  ;;  %vm1311_vm14 = vcmp.gt.f32.partialorder %v7000_v44, 0.0  ;;  %v2068_v12 = vmul.f32 %v2004_v21, %v6804_v28  ;;  %v2006_v8 = vsub.f32 %v1942_v1, %v6942_v57  ;;  %v810_v28 = vpop.permute.xlu1 %809 }
 0x18f   : > { %11545 = vst [vmem:[#allocation203_spill] sm:$0xff] %v7025_v62  ;;  %11547 = vst [vmem:[#allocation120_spill] sm:$0xff] %v7028_v47  ;;  %v4825_v60 = vpop.eup %4824  ;;  %v1944_v33 = vmul.f32 2.0, %v7010_v52  ;;  %v1693_v0 = vmul.f32 %v6997_v24, %v6997_v24  ;;  %v1756_v54 = vmul.f32 %v1692_v19, %v6979_v23  ;;  %v1562_v45 = vsub.f32 2.0, %v1498_v7 }
 0x190   : > { %11548 = vst [vmem:[#allocation204_spill] sm:$0xff] %v7032_v56  ;;  %v4827_v18 = vpop.eup %4826  ;;  %v7045_v29 = vsel %vm1310_vm13, %v6989_v58, 1.0  ;;  %v1188_v15 = vmul.f32 %v7019_v35, %v7019_v35  ;;  %v2069_v21 = vmul.f32 %v2005_v14, %v6814_v31  ;;  %v2007_v1 = vsub.f32 %v1943_v55, %v6956_v9 }
 0x191   : > { %v7054_v57 = vsel %vm1311_vm14, %v7000_v44, 1.0  ;;  %v1189_v19 = vmul.f32 %v7025_v62, %v7025_v62  ;;  %v1945_v7 = vmul.f32 2.0, %v7032_v56  ;;  %v1563_v52 = vsub.f32 2.0, %v1499_v26  ;;  %v11553_v26 = vld [vmem:[#allocation21_spill] sm:$0xff] }
 0x192   : > { %v1504_v49 = vmul.f32 %v4825_v60, %v6921_v13  ;;  %v7061_v35 = vadd.f32 %v1188_v15, %v6381_v43  ;;  %v1505_v31 = vmul.f32 %v4827_v18, %v6936_v27  ;;  %4828 = vrcp.f32 %v7045_v29  ;;  %v11551_v43 = vld [vmem:[#allocation20_spill] sm:$0xff] }
 0x193   : > { %v7066_v14 = vadd.f32 %v1189_v19, %v6384_v3  ;;  %v7069_v55 = vsub.f32 %v810_v28, %v11472_v20  ;;  %v1757_v9 = vmul.f32 %v1693_v0, %v6997_v24  ;;  %v7072_v62 = vmul.f32 %v4821_v50, %v1562_v45 }
 0x194   : > { %4830 = vrcp.f32 %v7054_v57  ;;  %v7076_v13 = vsub.f32 %v810_v28, %v11473_v61  ;;  %v7079_v15 = vmul.f32 %v11551_v43, %v2068_v12  ;;  %v2070_v27 = vmul.f32 %v2006_v8, %v6828_v22 }
 0x195   : > { %11549 = vst [vmem:[#allocation205_spill] sm:$0xff] %v7069_v55  ;;  %v2008_v3 = vsub.f32 %v1944_v33, %v6977_v5  ;;  %vm1316_vm15 = vcmp.gt.f32.partialorder %v7061_v35, 0.0  ;;  %v7085_v19 = vmul.f32 %v11553_v26, %v2069_v21  ;;  %v7089_v45 = vsel %vm1308_vm7, %v1756_v54, 0.0 }
 0x196   : > { %11550 = vst [vmem:[#allocation206_spill] sm:$0xff] %v7076_v13  ;;  %11552 = vst [vmem:[#allocation207_spill] sm:$0xff] %v7079_v15  ;;  %v1568_v50 = vsub.f32 2.0, %v1504_v49  ;;  %vm1317_vm0 = vcmp.gt.f32.partialorder %v7066_v14, 0.0  ;;  %v2071_v0 = vmul.f32 %v2007_v1, %v6845_v36  ;;  %v7093_v12 = vmul.f32 %v4823_v59, %v1563_v52 }
 0x197   : > { %11554 = vst [vmem:[#allocation208_spill] sm:$0xff] %v7085_v19  ;;  %11555 = vst [vmem:[#allocation209_spill] sm:$0xff] %v7089_v45  ;;  %v1569_v28 = vsub.f32 2.0, %v1505_v31  ;;  %v1186_v22 = vmul.f32 %v7069_v55, %v7069_v55  ;;  %v2009_v33 = vsub.f32 %v1945_v7, %v7006_v38  ;;  %v1690_v8 = vmul.f32 %v7072_v62, %v7072_v62  ;;  %v11572_v55 = vld [vmem:[#allocation41_spill] sm:$0xff] }
 0x198   : > { %v7103_v17 = vsel %vm1316_vm15, %v7061_v35, 1.0  ;;  %v1187_v49 = vmul.f32 %v7076_v13, %v7076_v13  ;;  %v7109_v59 = vmul.f32 %v7079_v15, %v6585_v11  ;;  %v7113_v36 = vsel %vm1309_vm8, %v1757_v9, 0.0 }
 0x199   : > { %11557 = vst [vmem:[#allocation211_spill] sm:$0xff] %v7113_v36  ;;  %v7118_v52 = vsel %vm1317_vm0, %v7066_v14, 1.0  ;;  %v7121_v54 = vadd.f32 %v1186_v22, %v6369_v6  ;;  %v7124_v21 = vmul.f32 %v11551_v43, %v2070_v27  ;;  %v7128_v1 = vmul.f32 %v7089_v45, %v7089_v45  ;;  %v11607_v14 = vld [vmem:[#allocation39_spill] sm:$0xff] }
 0x19a   : > { %11556 = vst [vmem:[#allocation210_spill] sm:$0xff] %v7109_v59  ;;  %v7130_v11 = vmul.f32 %v4825_v60, %v1568_v50  ;;  %v7133_v9 = vadd.f32 %v1187_v49, %v11560_v63  ;;  %v1691_v7 = vmul.f32 %v7093_v12, %v7093_v12  ;;  %v7137_v31 = vmul.f32 %v4827_v18, %v1569_v28  ;;  %v822_v60 = vpop.permute.xlu0 %821  ;;  %v818_v63 = vpop.permute.xlu1 %817 }
 0x19b   : > { %11558 = vst [vmem:[#allocation212_spill] sm:$0xff] %v7124_v21  ;;  %11559 = vst [vmem:[#allocation213_spill] sm:$0xff] %v7128_v1  ;;  %4832 = vrcp.f32 %v7103_v17  ;;  %vm1314_vm1 = vcmp.gt.f32.partialorder %v7121_v54, 0.0  ;;  %v2072_v6 = vmul.f32 %v2008_v3, %v6857_v34  ;;  %v1754_v27 = vmul.f32 %v1690_v8, %v7072_v62 }
 0x19c   : > { %4834 = vrcp.f32 %v7118_v52  ;;  %vm1315_vm2 = vcmp.gt.f32.partialorder %v7133_v9, 0.0  ;;  %v4829_v50 = vpop.eup %4828  ;;  %v7147_v22 = vmul.f32 %v7085_v19, %v6588_v10  ;;  %v7150_v18 = vmul.f32 %v11553_v26, %v2071_v0 }
 0x19d   : > { %v2073_v28 = vmul.f32 %v2009_v33, %v6888_v37  ;;  %v1378_v34 = vsel %vm1314_vm1, %v7121_v54, 1.0  ;;  %v7158_v8 = vmul.f32 %v7113_v36, %v7113_v36  ;;  %v1948_v49 = vmul.f32 2.0, %v7128_v1 }
 0x19e   : > { %11561 = vst [vmem:[#allocation138_spill] sm:$0xff] %v7147_v22  ;;  %11562 = vst [vmem:[#allocation214_spill] sm:$0xff] %v7150_v18  ;;  %v4831_v3 = vpop.eup %4830  ;;  %v1696_v10 = vmul.f32 %v7130_v11, %v7130_v11  ;;  %v1379_v0 = vsel %vm1315_vm2, %v7133_v9, 1.0  ;;  %v1755_v37 = vmul.f32 %v1691_v7, %v7093_v12  ;;  %v1697_v33 = vmul.f32 %v7137_v31, %v7137_v31 }
 0x19f   : > { %11563 = vst [vmem:[#allocation215_spill] sm:$0xff] %v7158_v8  ;;  %4836 = vrcp.f32 %v1378_v34  ;;  %v7170_v56 = vsub.f32 %v822_v60, %v11472_v20  ;;  %v7174_v1 = vsel %vm1306_vm9, %v1754_v27, 0.0  ;;  %v1502_v38 = vmul.f32 %v4829_v50, %v7045_v29 }
 0x1a0   : > { %11565 = vst [vmem:[#allocation217_spill] sm:$0xff] %v7174_v1  ;;  %4838 = vrcp.f32 %v1379_v0  ;;  %v7178_v5 = vsub.f32 %v822_v60, %v11473_v61  ;;  %v1503_v22 = vmul.f32 %v4831_v3, %v7054_v57  ;;  %v7184_v59 = vsub.f32 %v818_v63, %v11472_v20 }
 0x1a1   : > { %11564 = vst [vmem:[#allocation216_spill] sm:$0xff] %v7170_v56  ;;  %v1192_v7 = vmul.f32 %v7170_v56, %v7170_v56  ;;  %v7187_v13 = vsub.f32 %v818_v63, %v11473_v61  ;;  %v7191_v46 = vmul.f32 %v7124_v21, %v6591_v4  ;;  %v1949_v29 = vmul.f32 2.0, %v7158_v8 }
 0x1a2   : > { %11566 = vst [vmem:[#allocation218_spill] sm:$0xff] %v7178_v5  ;;  %11567 = vst [vmem:[#allocation219_spill] sm:$0xff] %v7184_v59  ;;  %v2012_v27 = vsub.f32 %v1948_v49, %v7089_v45  ;;  %v1193_v57 = vmul.f32 %v7178_v5, %v7178_v5  ;;  %v7199_v60 = vsel %vm1307_vm10, %v1755_v37, 0.0  ;;  %v7203_v56 = vmul.f32 %v7174_v1, %v7174_v1 }
 0x1a3   : > { %11568 = vst [vmem:[#allocation220_spill] sm:$0xff] %v7187_v13  ;;  %11569 = vst [vmem:[#allocation221_spill] sm:$0xff] %v7191_v46  ;;  %v1760_v63 = vmul.f32 %v1696_v10, %v7130_v11  ;;  %v7207_v4 = vadd.f32 %v1192_v7, %v11572_v55  ;;  %v1761_v8 = vmul.f32 %v1697_v33, %v7137_v31  ;;  %v1566_v46 = vsub.f32 2.0, %v1502_v38  ;;  %v11574_v7 = vld [vmem:[#allocation18_spill] sm:$0xff] }
 0x1a4   : > { %11570 = vst [vmem:[#allocation222_spill] sm:$0xff] %v7199_v60  ;;  %11571 = vst [vmem:[#allocation223_spill] sm:$0xff] %v7203_v56  ;;  %v7211_v49 = vadd.f32 %v1193_v57, %v6408_v41  ;;  %v1190_v32 = vmul.f32 %v7184_v59, %v7184_v59  ;;  %v7216_v45 = vmul.f32 %v11551_v43, %v2072_v6  ;;  %v1567_v5 = vsub.f32 2.0, %v1503_v22  ;;  %v11581_v59 = vld [vmem:[#allocation38_spill] sm:$0xff] }
 0x1a5   : > { %v4833_v37 = vpop.eup %4832  ;;  %vm1320_vm3 = vcmp.gt.f32.partialorder %v7207_v4, 0.0  ;;  %v1191_v55 = vmul.f32 %v7187_v13, %v7187_v13  ;;  %v7223_v38 = vmul.f32 %v7150_v18, %v11574_v7  ;;  %v7226_v41 = vmul.f32 %v11553_v26, %v2073_v28 }
 0x1a6   : > { %11573 = vst [vmem:[#allocation41_spill] sm:$0xff] %v7216_v45  ;;  %v4835_v10 = vpop.eup %4834  ;;  %v2013_v33 = vsub.f32 %v1949_v29, %v7113_v36  ;;  %v2076_v57 = vmul.f32 %v2012_v27, %v6979_v23  ;;  %v7232_v6 = vmul.f32 %v7199_v60, %v7199_v60  ;;  %v7236_v22 = vsel %vm1312_vm11, %v1760_v63, 0.0  ;;  %v11580_v27 = vld [vmem:[#allocation139_spill] sm:$0xff] }
 0x1a7   : > { %11575 = vst [vmem:[#allocation18_spill] sm:$0xff] %v7223_v38  ;;  %11576 = vst [vmem:[#allocation224_spill] sm:$0xff] %v7226_v41  ;;  %vm1321_vm4 = vcmp.gt.f32.partialorder %v7211_v49, 0.0  ;;  %v7242_v7 = vsel %vm1320_vm3, %v7207_v4, 1.0  ;;  %v1946_v28 = vmul.f32 2.0, %v7203_v56  ;;  %v7247_v23 = vsel %vm1313_vm12, %v1761_v8, 0.0  ;;  %v830_v56 = vpop.permute.xlu0 %829 }
 0x1a8   : > { %11577 = vst [vmem:[#allocation225_spill] sm:$0xff] %v7232_v6  ;;  %11578 = vst [vmem:[#allocation226_spill] sm:$0xff] %v7236_v22  ;;  %v7249_v29 = vmul.f32 %v4829_v50, %v1566_v46  ;;  %v7252_v36 = vadd.f32 %v1190_v32, %v11580_v27  ;;  %v7254_v63 = vmul.f32 %v4831_v3, %v1567_v5  ;;  %v7264_v50 = vsel %vm1321_vm4, %v7211_v49, 1.0  ;;  %v11625_v49 = vld [vmem:[#allocation46_spill] sm:$0xff] }
 0x1a9   : > { %11579 = vst [vmem:[#allocation227_spill] sm:$0xff] %v7247_v23  ;;  %v4837_v42 = vpop.eup %4836  ;;  %v1508_v38 = vmul.f32 %v4833_v37, %v7103_v17  ;;  %v1509_v13 = vmul.f32 %v4835_v10, %v7118_v52  ;;  %v7259_v47 = vadd.f32 %v1191_v55, %v11581_v59  ;;  %4840 = vrcp.f32 %v7242_v7 }
 0x1aa   : > { %v4839_v25 = vpop.eup %4838  ;;  %v1506_v53 = vmul.f32 %v4837_v42, %v1378_v34  ;;  %vm1318_vm5 = vcmp.gt.f32.partialorder %v7252_v36, 0.0  ;;  %v1947_v5 = vmul.f32 2.0, %v7232_v6  ;;  %v7271_v17 = vmul.f32 %v7236_v22, %v7236_v22 }
 0x1ab   : > { %v1507_v59 = vmul.f32 %v4839_v25, %v1379_v0  ;;  %vm1319_vm6 = vcmp.gt.f32.partialorder %v7259_v47, 0.0  ;;  %v7276_v52 = vmul.f32 %v7247_v23, %v7247_v23  ;;  %v1694_v34 = vmul.f32 %v7249_v29, %v7249_v29  ;;  %v838_v9 = vpop.permute.xlu0 %837 }
 0x1ac   : > { %11582 = vst [vmem:[#allocation139_spill] sm:$0xff] %v7271_v17  ;;  %v7283_v3 = vsel %vm1318_vm5, %v7252_v36, 1.0  ;;  %v7286_v8 = vsub.f32 %v830_v56, %v11472_v20  ;;  %v1572_v46 = vsub.f32 2.0, %v1508_v38  ;;  %v1573_v32 = vsub.f32 2.0, %v1509_v13 }
 0x1ad   : > { %11583 = vst [vmem:[#allocation38_spill] sm:$0xff] %v7276_v52  ;;  %4842 = vrcp.f32 %v7264_v50  ;;  %v7290_v0 = vsub.f32 %v830_v56, %v11473_v61  ;;  %v2010_v55 = vsub.f32 %v1946_v28, %v7174_v1  ;;  %v1695_v27 = vmul.f32 %v7254_v63, %v7254_v63 }
 0x1ae   : > { %11584 = vst [vmem:[#allocation228_spill] sm:$0xff] %v7286_v8  ;;  %v1570_v6 = vsub.f32 2.0, %v1506_v53  ;;  %v1383_v2 = vsel %vm1319_vm6, %v7259_v47, 1.0  ;;  %v2077_v16 = vmul.f32 %v2013_v33, %v6997_v24  ;;  %v1952_v38 = vmul.f32 2.0, %v7271_v17 }
 0x1af   : > { %11585 = vst [vmem:[#allocation229_spill] sm:$0xff] %v7290_v0  ;;  %v1571_v13 = vsub.f32 2.0, %v1507_v59  ;;  %4844 = vrcp.f32 %v7283_v3  ;;  %v2011_v56 = vsub.f32 %v1947_v5, %v7199_v60  ;;  %v1953_v40 = vmul.f32 2.0, %v7276_v52  ;;  %v11586_v52 = vld [vmem:[#allocation40_spill] sm:$0xff]  ;;  %v11587_v60 = vld [vmem:[#allocation165_spill] sm:$0xff] }
 0x1b0   : > { %4846 = vrcp.f32 %v1383_v2  ;;  %v1196_v28 = vmul.f32 %v7286_v8, %v7286_v8  ;;  %v1758_v53 = vmul.f32 %v1694_v34, %v7249_v29  ;;  %v7306_v1 = vmul.f32 %v4833_v37, %v1572_v46  ;;  %v11590_v34 = vld [vmem:[#allocation45_spill] sm:$0xff] }
 0x1b1   : > { %v7308_v51 = vmul.f32 %v4835_v10, %v1573_v32  ;;  %v1197_v24 = vmul.f32 %v7290_v0, %v7290_v0  ;;  %v2074_v33 = vmul.f32 %v2010_v55, %v7072_v62  ;;  %v1759_v59 = vmul.f32 %v1695_v27, %v7254_v63 }
 0x1b2   : > { %v7314_v5 = vmul.f32 %v4837_v42, %v1570_v6  ;;  %v7317_v17 = vadd.f32 %v1196_v28, %v11586_v52  ;;  %v7321_v8 = vmul.f32 %v7216_v45, %v11587_v60  ;;  %v7324_v37 = vmul.f32 %v11551_v43, %v2076_v57  ;;  %v826_v60 = vpop.permute.xlu1 %825 }
 0x1b3   : > { %v7326_v10 = vmul.f32 %v4839_v25, %v1571_v13  ;;  %v7329_v46 = vadd.f32 %v1197_v24, %v11590_v34  ;;  %v4841_v62 = vpop.eup %4840  ;;  %v7332_v32 = vmul.f32 %v11553_v26, %v2077_v16  ;;  %v2016_v6 = vsub.f32 %v1952_v38, %v7236_v22 }
 0x1b4   : > { %11588 = vst [vmem:[#allocation40_spill] sm:$0xff] %v7321_v8  ;;  %11589 = vst [vmem:[#allocation165_spill] sm:$0xff] %v7324_v37  ;;  %v2017_v42 = vsub.f32 %v1953_v40, %v7247_v23  ;;  %vm1324_vm7 = vcmp.gt.f32.partialorder %v7317_v17, 0.0  ;;  %v2075_v52 = vmul.f32 %v2011_v56, %v7093_v12  ;;  %v7340_v25 = vsel %vm1310_vm13, %v1758_v53, 0.0 }
 0x1b5   : > { %11591 = vst [vmem:[#allocation45_spill] sm:$0xff] %v7332_v32  ;;  %11592 = vst [vmem:[#allocation230_spill] sm:$0xff] %v7340_v25  ;;  %v1700_v57 = vmul.f32 %v7306_v1, %v7306_v1  ;;  %v1701_v16 = vmul.f32 %v7308_v51, %v7308_v51  ;;  %v7347_v55 = vmul.f32 %v11551_v43, %v2074_v33  ;;  %v7351_v40 = vsel %vm1311_vm14, %v1759_v59, 0.0 }
 0x1b6   : > { %11594 = vst [vmem:[#allocation232_spill] sm:$0xff] %v7351_v40  ;;  %v1698_v12 = vmul.f32 %v7314_v5, %v7314_v5  ;;  %vm1325_vm8 = vcmp.gt.f32.partialorder %v7329_v46, 0.0  ;;  %v1699_v27 = vmul.f32 %v7326_v10, %v7326_v10  ;;  %v1512_v38 = vmul.f32 %v4841_v62, %v7242_v7 }
 0x1b7   : > { %11593 = vst [vmem:[#allocation231_spill] sm:$0xff] %v7347_v55  ;;  %v4843_v58 = vpop.eup %4842  ;;  %v1388_v13 = vsel %vm1324_vm7, %v7317_v17, 1.0  ;;  %v7363_v56 = vsub.f32 %v826_v60, %v11472_v20  ;;  %v2080_v44 = vmul.f32 %v2016_v6, %v7130_v11  ;;  %v2081_v28 = vmul.f32 %v2017_v42, %v7137_v31 }
 0x1b8   : > { %v7369_v53 = vmul.f32 %v7340_v25, %v7340_v25  ;;  %v1389_v24 = vsel %vm1325_vm8, %v7329_v46, 1.0  ;;  %v1764_v33 = vmul.f32 %v1700_v57, %v7306_v1  ;;  %v1765_v59 = vmul.f32 %v1701_v16, %v7308_v51 }
 0x1b9   : > { %11595 = vst [vmem:[#allocation233_spill] sm:$0xff] %v7363_v56  ;;  %v4845_v7 = vpop.eup %4844  ;;  %4848 = vrcp.f32 %v1388_v13  ;;  %v7377_v34 = vsub.f32 %v826_v60, %v11473_v61  ;;  %v7381_v31 = vmul.f32 %v7351_v40, %v7351_v40  ;;  %v1762_v6 = vmul.f32 %v1698_v12, %v7314_v5 }
 0x1ba   : > { %11596 = vst [vmem:[#allocation234_spill] sm:$0xff] %v7369_v53  ;;  %v4847_v11 = vpop.eup %4846  ;;  %v1513_v42 = vmul.f32 %v4843_v58, %v7264_v50  ;;  %4850 = vrcp.f32 %v1389_v24  ;;  %v1763_v23 = vmul.f32 %v1699_v27, %v7326_v10  ;;  %v1576_v22 = vsub.f32 2.0, %v1512_v38 }
 0x1bb   : > { %11597 = vst [vmem:[#allocation235_spill] sm:$0xff] %v7377_v34  ;;  %11598 = vst [vmem:[#allocation236_spill] sm:$0xff] %v7381_v31  ;;  %v1510_v57 = vmul.f32 %v4845_v7, %v7283_v3  ;;  %v1194_v16 = vmul.f32 %v7363_v56, %v7363_v56  ;;  %v7390_v60 = vmul.f32 %v11553_v26, %v2075_v52  ;;  %v1950_v27 = vmul.f32 2.0, %v7369_v53 }
 0x1bc   : > { %v7393_v8 = vmul.f32 %v11551_v43, %v2080_v44  ;;  %v1511_v0 = vmul.f32 %v4847_v11, %v1383_v2  ;;  %v1195_v12 = vmul.f32 %v7377_v34, %v7377_v34  ;;  %v7398_v50 = vmul.f32 %v11553_v26, %v2081_v28  ;;  %v11605_v34 = vld [vmem:[#allocation42_spill] sm:$0xff] }
 0x1bd   : > { %11599 = vst [vmem:[#allocation237_spill] sm:$0xff] %v7390_v60  ;;  %v7403_v3 = vsel %vm1316_vm15, %v1764_v33, 0.0  ;;  %v7407_v52 = vsel %vm1317_vm0, %v1765_v59, 0.0  ;;  %v1951_v38 = vmul.f32 2.0, %v7381_v31  ;;  %v7412_v2 = vsel %vm1314_vm1, %v1762_v6, 0.0  ;;  %v11615_v60 = vld [vmem:[#allocation156_spill] sm:$0xff] }
 0x1be   : > { %11600 = vst [vmem:[#allocation238_spill] sm:$0xff] %v7393_v8  ;;  %11601 = vst [vmem:[#allocation239_spill] sm:$0xff] %v7398_v50  ;;  %v1577_v44 = vsub.f32 2.0, %v1513_v42  ;;  %v7415_v28 = vadd.f32 %v1194_v16, %v11605_v34  ;;  %v7419_v53 = vsel %vm1315_vm2, %v1763_v23, 0.0  ;;  %v7421_v35 = vmul.f32 %v4841_v62, %v1576_v22 }
 0x1bf   : > { %11602 = vst [vmem:[#allocation240_spill] sm:$0xff] %v7403_v3  ;;  %11603 = vst [vmem:[#allocation241_spill] sm:$0xff] %v7407_v52  ;;  %v1574_v33 = vsub.f32 2.0, %v1510_v57  ;;  %v7424_v59 = vadd.f32 %v1195_v12, %v11607_v14  ;;  %v7428_v31 = vmul.f32 %v7403_v3, %v7403_v3  ;;  %v7432_v54 = vmul.f32 %v7407_v52, %v7407_v52 }
 0x1c0   : > { %11604 = vst [vmem:[#allocation242_spill] sm:$0xff] %v7412_v2  ;;  %11606 = vst [vmem:[#allocation42_spill] sm:$0xff] %v7419_v53  ;;  %v1575_v34 = vsub.f32 2.0, %v1511_v0  ;;  %vm1322_vm9 = vcmp.gt.f32.partialorder %v7415_v28, 0.0  ;;  %v2014_v23 = vsub.f32 %v1950_v27, %v7340_v25  ;;  %v7438_v22 = vmul.f32 %v7412_v2, %v7412_v2 }
 0x1c1   : > { %11608 = vst [vmem:[#allocation39_spill] sm:$0xff] %v7428_v31  ;;  %11609 = vst [vmem:[#allocation243_spill] sm:$0xff] %v7432_v54  ;;  %vm1323_vm10 = vcmp.gt.f32.partialorder %v7424_v59, 0.0  ;;  %v1386_v62 = vsel %vm1322_vm9, %v7415_v28, 1.0  ;;  %v7446_v6 = vmul.f32 %v7419_v53, %v7419_v53  ;;  %v7448_v0 = vmul.f32 %v4843_v58, %v1577_v44 }
 0x1c2   : > { %11610 = vst [vmem:[#allocation244_spill] sm:$0xff] %v7438_v22  ;;  %v7453_v42 = vsel %vm1323_vm10, %v7424_v59, 1.0  ;;  %4852 = vrcp.f32 %v1386_v62  ;;  %v2015_v16 = vsub.f32 %v1951_v38, %v7351_v40  ;;  %v1704_v12 = vmul.f32 %v7421_v35, %v7421_v35 }
 0x1c3   : > { %11611 = vst [vmem:[#allocation245_spill] sm:$0xff] %v7446_v6  ;;  %v4849_v57 = vpop.eup %4848  ;;  %v7458_v27 = vmul.f32 %v4845_v7, %v1574_v33  ;;  %v7461_v14 = vsub.f32 %v838_v9, %v11472_v20  ;;  %v1956_v58 = vmul.f32 2.0, %v7428_v31  ;;  %v1957_v44 = vmul.f32 2.0, %v7432_v54  ;;  %v11614_v54 = vld [vmem:[#allocation155_spill] sm:$0xff] }
 0x1c4   : > { %v4851_v25 = vpop.eup %4850  ;;  %v7465_v56 = vmul.f32 %v4847_v11, %v1575_v34  ;;  %v7468_v50 = vsub.f32 %v838_v9, %v11473_v61  ;;  %v1954_v38 = vmul.f32 2.0, %v7438_v22  ;;  %v1516_v40 = vmul.f32 %v4849_v57, %v1388_v13  ;;  %v834_v22 = vpop.permute.xlu1 %833 }
 0x1c5   : > { %11612 = vst [vmem:[#allocation246_spill] sm:$0xff] %v7461_v14  ;;  %v1517_v8 = vmul.f32 %v4851_v25, %v1389_v24  ;;  %4854 = vrcp.f32 %v7453_v42  ;;  %v2078_v7 = vmul.f32 %v2014_v23, %v7249_v29  ;;  %v1955_v33 = vmul.f32 2.0, %v7446_v6 }
 0x1c6   : > { %11613 = vst [vmem:[#allocation247_spill] sm:$0xff] %v7468_v50  ;;  %v1705_v31 = vmul.f32 %v7448_v0, %v7448_v0  ;;  %v1200_v11 = vmul.f32 %v7461_v14, %v7461_v14  ;;  %v2079_v34 = vmul.f32 %v2015_v16, %v7254_v63  ;;  %v1768_v9 = vmul.f32 %v1704_v12, %v7421_v35 }
 0x1c7   : > { %v1702_v13 = vmul.f32 %v7458_v27, %v7458_v27  ;;  %v1201_v24 = vmul.f32 %v7468_v50, %v7468_v50  ;;  %v2020_v29 = vsub.f32 %v1956_v58, %v7403_v3  ;;  %v2021_v23 = vsub.f32 %v1957_v44, %v7407_v52 }
 0x1c8   : > { %v1703_v6 = vmul.f32 %v7465_v56, %v7465_v56  ;;  %v7489_v14 = vadd.f32 %v1200_v11, %v11614_v54  ;;  %v2018_v63 = vsub.f32 %v1954_v38, %v7412_v2  ;;  %v1580_v16 = vsub.f32 2.0, %v1516_v40 }
 0x1c9   : > { %v1581_v12 = vsub.f32 2.0, %v1517_v8  ;;  %v7493_v55 = vadd.f32 %v1201_v24, %v11615_v60  ;;  %v2019_v50 = vsub.f32 %v1955_v33, %v7419_v53  ;;  %v1769_v39 = vmul.f32 %v1705_v31, %v7448_v0 }
 0x1ca   : > { %vm1328_vm11 = vcmp.gt.f32.partialorder %v7489_v14, 0.0  ;;  %v7499_v58 = vsub.f32 %v834_v22, %v11472_v20  ;;  %v7503_v54 = vsel %vm1320_vm3, %v1768_v9, 0.0  ;;  %v1766_v44 = vmul.f32 %v1702_v13, %v7458_v27 }
 0x1cb   : > { %11617 = vst [vmem:[#allocation156_spill] sm:$0xff] %v7503_v54  ;;  %vm1329_vm12 = vcmp.gt.f32.partialorder %v7493_v55, 0.0  ;;  %v1392_v8 = vsel %vm1328_vm11, %v7489_v14, 1.0  ;;  %v1767_v31 = vmul.f32 %v1703_v6, %v7465_v56  ;;  %v7517_v4 = vsub.f32 %v834_v22, %v11473_v61  ;;  %v846_v22 = vpop.permute.xlu0 %845 }
 0x1cc   : > { %11616 = vst [vmem:[#allocation155_spill] sm:$0xff] %v7499_v58  ;;  %v4853_v40 = vpop.eup %4852  ;;  %v7514_v60 = vsel %vm1329_vm12, %v7493_v55, 1.0  ;;  %4856 = vrcp.f32 %v1392_v8  ;;  %v7520_v38 = vmul.f32 %v11551_v43, %v2078_v7  ;;  %v7523_v33 = vmul.f32 %v11553_v26, %v2079_v34 }
 0x1cd   : > { %11618 = vst [vmem:[#allocation248_spill] sm:$0xff] %v7517_v4  ;;  %v7525_v11 = vmul.f32 %v4849_v57, %v1580_v16  ;;  %v7527_v9 = vmul.f32 %v4851_v25, %v1581_v12  ;;  %v2084_v6 = vmul.f32 %v2020_v29, %v7306_v1  ;;  %v1514_v13 = vmul.f32 %v4853_v40, %v1386_v62  ;;  %v11627_v29 = vld [vmem:[#allocation43_spill] sm:$0xff] }
 0x1ce   : > { %11619 = vst [vmem:[#allocation249_spill] sm:$0xff] %v7520_v38  ;;  %11620 = vst [vmem:[#allocation250_spill] sm:$0xff] %v7523_v33  ;;  %4858 = vrcp.f32 %v7514_v60  ;;  %v1198_v24 = vmul.f32 %v7499_v58, %v7499_v58  ;;  %v2085_v7 = vmul.f32 %v2021_v23, %v7308_v51  ;;  %v2082_v2 = vmul.f32 %v2018_v63, %v7314_v5 }
 0x1cf   : > { %v4855_v53 = vpop.eup %4854  ;;  %v2083_v34 = vmul.f32 %v2019_v50, %v7326_v10  ;;  %v7538_v25 = vmul.f32 %v7503_v54, %v7503_v54  ;;  %v7542_v1 = vsel %vm1321_vm4, %v1769_v39, 0.0  ;;  %v7546_v62 = vsel %vm1318_vm5, %v1766_v44, 0.0 }
 0x1d0   : > { %11622 = vst [vmem:[#allocation252_spill] sm:$0xff] %v7542_v1  ;;  %11623 = vst [vmem:[#allocation253_spill] sm:$0xff] %v7546_v62  ;;  %v7550_v57 = vsel %vm1319_vm6, %v1767_v31, 0.0  ;;  %v1199_v51 = vmul.f32 %v7517_v4, %v7517_v4  ;;  %v1708_v5 = vmul.f32 %v7525_v11, %v7525_v11  ;;  %v1709_v10 = vmul.f32 %v7527_v9, %v7527_v9 }
 0x1d1   : > { %11621 = vst [vmem:[#allocation251_spill] sm:$0xff] %v7538_v25  ;;  %11624 = vst [vmem:[#allocation254_spill] sm:$0xff] %v7550_v57  ;;  %v7559_v39 = vadd.f32 %v1198_v24, %v11625_v49  ;;  %v7562_v36 = vsub.f32 %v846_v22, %v11472_v20  ;;  %v1515_v50 = vmul.f32 %v4855_v53, %v7453_v42  ;;  %v1578_v47 = vsub.f32 2.0, %v1514_v13 }
 0x1d2   : > { %v7566_v23 = vadd.f32 %v1199_v51, %v11627_v29  ;;  %v7569_v63 = vsub.f32 %v846_v22, %v11473_v61  ;;  %v7573_v16 = vmul.f32 %v7542_v1, %v7542_v1  ;;  %v1960_v12 = vmul.f32 2.0, %v7538_v25 }
 0x1d3   : > { %11626 = vst [vmem:[#allocation46_spill] sm:$0xff] %v7562_v36  ;;  %vm1326_vm13 = vcmp.gt.f32.partialorder %v7559_v39, 0.0  ;;  %v1204_v44 = vmul.f32 %v7562_v36, %v7562_v36  ;;  %v7581_v42 = vmul.f32 %v7546_v62, %v7546_v62  ;;  %v7585_v31 = vmul.f32 %v7550_v57, %v7550_v57  ;;  %v11634_v36 = vld [vmem:[#allocation158_spill] sm:$0xff] }
 0x1d4   : > { %11628 = vst [vmem:[#allocation43_spill] sm:$0xff] %v7569_v63  ;;  %11629 = vst [vmem:[#allocation255_spill] sm:$0xff] %v7573_v16  ;;  %vm1327_vm14 = vcmp.gt.f32.partialorder %v7566_v23, 0.0  ;;  %v1390_v13 = vsel %vm1326_vm13, %v7559_v39, 1.0  ;;  %v1772_v24 = vmul.f32 %v1708_v5, %v7525_v11  ;;  %v1773_v22 = vmul.f32 %v1709_v10, %v7527_v9 }
 0x1d5   : > { %11630 = vst [vmem:[#allocation256_spill] sm:$0xff] %v7581_v42  ;;  %11631 = vst [vmem:[#allocation257_spill] sm:$0xff] %v7585_v31  ;;  %v1391_v51 = vsel %vm1327_vm14, %v7566_v23, 1.0  ;;  %4860 = vrcp.f32 %v1390_v13  ;;  %v1579_v29 = vsub.f32 2.0, %v1515_v50  ;;  %v7596_v25 = vmul.f32 %v4853_v40, %v1578_v47 }
 0x1d6   : > { %v4857_v49 = vpop.eup %4856  ;;  %4862 = vrcp.f32 %v1391_v51  ;;  %v1205_v52 = vmul.f32 %v7569_v63, %v7569_v63  ;;  %v7601_v3 = vmul.f32 %v11551_v43, %v2084_v6  ;;  %v7604_v5 = vmul.f32 %v11553_v26, %v2085_v7 }
 0x1d7   : > { %v1520_v10 = vmul.f32 %v4857_v49, %v1392_v8  ;;  %v7607_v4 = vadd.f32 %v1204_v44, %v11634_v36  ;;  %v7610_v33 = vmul.f32 %v11551_v43, %v2082_v2  ;;  %v7613_v40 = vmul.f32 %v11553_v26, %v2083_v34  ;;  %v11638_v36 = vld [vmem:[#allocation66_spill] sm:$0xff] }
 0x1d8   : > { %11632 = vst [vmem:[#allocation258_spill] sm:$0xff] %v7601_v3  ;;  %11633 = vst [vmem:[#allocation259_spill] sm:$0xff] %v7604_v5  ;;  %v4859_v58 = vpop.eup %4858  ;;  %v1961_v50 = vmul.f32 2.0, %v7573_v16  ;;  %v2024_v47 = vsub.f32 %v1960_v12, %v7503_v54  ;;  %v1958_v6 = vmul.f32 2.0, %v7581_v42  ;;  %v1959_v7 = vmul.f32 2.0, %v7585_v31  ;;  %v842_v42 = vpop.permute.xlu1 %841 }
 0x1d9   : > { %11635 = vst [vmem:[#allocation158_spill] sm:$0xff] %v7610_v33  ;;  %11636 = vst [vmem:[#allocation260_spill] sm:$0xff] %v7613_v40  ;;  %v7621_v8 = vsel %vm1324_vm7, %v1772_v24, 0.0  ;;  %v7624_v44 = vadd.f32 %v1205_v52, %v11638_v36  ;;  %v7628_v2 = vsel %vm1325_vm8, %v1773_v22, 0.0  ;;  %v7630_v34 = vmul.f32 %v4855_v53, %v1579_v29 }
 0x1da   : > { %11637 = vst [vmem:[#allocation261_spill] sm:$0xff] %v7621_v8  ;;  %11639 = vst [vmem:[#allocation66_spill] sm:$0xff] %v7628_v2  ;;  %v1706_v12 = vmul.f32 %v7596_v25, %v7596_v25  ;;  %vm1332_vm15 = vcmp.gt.f32.partialorder %v7607_v4, 0.0  ;;  %v1521_v31 = vmul.f32 %v4859_v58, %v7514_v60  ;;  %v1584_v17 = vsub.f32 2.0, %v1520_v10 }
 0x1db   : > { %vm1333_vm0 = vcmp.gt.f32.partialorder %v7624_v44, 0.0  ;;  %v1396_v52 = vsel %vm1332_vm15, %v7607_v4, 1.0  ;;  %v2025_v46 = vsub.f32 %v1961_v50, %v7542_v1  ;;  %v2088_v53 = vmul.f32 %v2024_v47, %v7421_v35 }
 0x1dc   : > { %v1397_v24 = vsel %vm1333_vm0, %v7624_v44, 1.0  ;;  %4864 = vrcp.f32 %v1396_v52  ;;  %v2022_v22 = vsub.f32 %v1958_v6, %v7546_v62  ;;  %v7648_v60 = vmul.f32 %v7621_v8, %v7621_v8  ;;  %v854_v6 = vpop.permute.xlu0 %853 }
 0x1dd   : > { %4866 = vrcp.f32 %v1397_v24  ;;  %v7651_v29 = vsub.f32 %v842_v42, %v11472_v20  ;;  %v2023_v10 = vsub.f32 %v1959_v7, %v7550_v57  ;;  %v7656_v35 = vmul.f32 %v7628_v2, %v7628_v2 }
 0x1de   : > { %11640 = vst [vmem:[#allocation262_spill] sm:$0xff] %v7648_v60  ;;  %v1707_v50 = vmul.f32 %v7630_v34, %v7630_v34  ;;  %v7661_v47 = vsub.f32 %v842_v42, %v11473_v61  ;;  %v1770_v62 = vmul.f32 %v1706_v12, %v7596_v25  ;;  %v1585_v16 = vsub.f32 2.0, %v1521_v31  ;;  %v11645_v12 = vld [vmem:[#allocation157_spill] sm:$0xff] }
 0x1df   : > { %11641 = vst [vmem:[#allocation263_spill] sm:$0xff] %v7651_v29  ;;  %11642 = vst [vmem:[#allocation264_spill] sm:$0xff] %v7656_v35  ;;  %v4861_v36 = vpop.eup %4860  ;;  %v7664_v1 = vmul.f32 %v4857_v49, %v1584_v17  ;;  %v1202_v7 = vmul.f32 %v7651_v29, %v7651_v29  ;;  %v2089_v54 = vmul.f32 %v2025_v46, %v7448_v0  ;;  %v1964_v33 = vmul.f32 2.0, %v7648_v60 }
 0x1e0   : > { %11643 = vst [vmem:[#allocation265_spill] sm:$0xff] %v7661_v47  ;;  %v4863_v57 = vpop.eup %4862  ;;  %v7670_v63 = vmul.f32 %v11551_v43, %v2088_v53  ;;  %v1518_v40 = vmul.f32 %v4861_v36, %v1390_v13  ;;  %v1203_v42 = vmul.f32 %v7661_v47, %v7661_v47  ;;  %v7679_v49 = vsub.f32 %v854_v6, %v11472_v20 }
 0x1e1   : > { %v1519_v5 = vmul.f32 %v4863_v57, %v1391_v51  ;;  %v7676_v31 = vadd.f32 %v1202_v7, %v11645_v12  ;;  %v2086_v17 = vmul.f32 %v2022_v22, %v7458_v27  ;;  %v2087_v0 = vmul.f32 %v2023_v10, %v7465_v56  ;;  %v11648_v7 = vld [vmem:[#allocation62_spill] sm:$0xff] }
 0x1e2   : > { %11644 = vst [vmem:[#allocation266_spill] sm:$0xff] %v7670_v63  ;;  %11646 = vst [vmem:[#allocation157_spill] sm:$0xff] %v7679_v49  ;;  %v1965_v46 = vmul.f32 2.0, %v7656_v35  ;;  %v1771_v13 = vmul.f32 %v1707_v50, %v7630_v34  ;;  %v7687_v53 = vsel %vm1322_vm9, %v1770_v62, 0.0  ;;  %v7689_v60 = vmul.f32 %v4859_v58, %v1585_v16 }
 0x1e3   : > { %11647 = vst [vmem:[#allocation267_spill] sm:$0xff] %v7687_v53  ;;  %v1712_v51 = vmul.f32 %v7664_v1, %v7664_v1  ;;  %v7694_v12 = vadd.f32 %v1203_v42, %v11648_v7  ;;  %v1582_v47 = vsub.f32 2.0, %v1518_v40  ;;  %v1583_v27 = vsub.f32 2.0, %v1519_v5 }
 0x1e4   : > { %vm1330_vm1 = vcmp.gt.f32.partialorder %v7676_v31, 0.0  ;;  %v7698_v56 = vsub.f32 %v854_v6, %v11473_v61  ;;  %v2028_v22 = vsub.f32 %v1964_v33, %v7621_v8  ;;  %v1208_v58 = vmul.f32 %v7679_v49, %v7679_v49 }
 0x1e5   : > { %vm1331_vm2 = vcmp.gt.f32.partialorder %v7694_v12, 0.0  ;;  %v1394_v28 = vsel %vm1330_vm1, %v7676_v31, 1.0  ;;  %v7709_v16 = vsel %vm1323_vm10, %v1771_v13, 0.0  ;;  %v7713_v5 = vmul.f32 %v7687_v53, %v7687_v53 }
 0x1e6   : > { %11649 = vst [vmem:[#allocation62_spill] sm:$0xff] %v7698_v56  ;;  %v4865_v62 = vpop.eup %4864  ;;  %11650 = vst [vmem:[#allocation268_spill] sm:$0xff] %v7709_v16  ;;  %v1395_v33 = vsel %vm1331_vm2, %v7694_v12, 1.0  ;;  %4868 = vrcp.f32 %v1394_v28  ;;  %v2029_v10 = vsub.f32 %v1965_v46, %v7628_v2  ;;  %v1713_v50 = vmul.f32 %v7689_v60, %v7689_v60  ;;  %v11653_v2 = vld [vmem:[#allocation69_spill] sm:$0xff] }
 0x1e7   : > { %11651 = vst [vmem:[#allocation269_spill] sm:$0xff] %v7713_v5  ;;  %v4867_v40 = vpop.eup %4866  ;;  %v1524_v6 = vmul.f32 %v4865_v62, %v1396_v52  ;;  %4870 = vrcp.f32 %v1395_v33  ;;  %v1776_v59 = vmul.f32 %v1712_v51, %v7664_v1  ;;  %v7722_v42 = vmul.f32 %v4861_v36, %v1582_v47  ;;  %v11655_v36 = vld [vmem:[#allocation70_spill] sm:$0xff] }
 0x1e8   : > { %v7724_v13 = vmul.f32 %v4863_v57, %v1583_v27  ;;  %v1209_v7 = vmul.f32 %v7698_v56, %v7698_v56  ;;  %v2092_v35 = vmul.f32 %v2028_v22, %v7525_v11  ;;  %v7731_v8 = vmul.f32 %v7709_v16, %v7709_v16 }
 0x1e9   : > { %v1525_v46 = vmul.f32 %v4867_v40, %v1397_v24  ;;  %v7734_v49 = vadd.f32 %v1208_v58, %v11653_v2  ;;  %v7737_v52 = vmul.f32 %v11553_v26, %v2089_v54  ;;  %v1962_v47 = vmul.f32 2.0, %v7713_v5 }
 0x1ea   : > { %11652 = vst [vmem:[#allocation270_spill] sm:$0xff] %v7731_v8  ;;  %v1588_v57 = vsub.f32 2.0, %v1524_v6  ;;  %v7741_v51 = vadd.f32 %v1209_v7, %v11655_v36  ;;  %v7744_v27 = vmul.f32 %v11551_v43, %v2086_v17  ;;  %v7747_v11 = vmul.f32 %v11553_v26, %v2087_v0  ;;  %v850_v17 = vpop.permute.xlu1 %849 }
 0x1eb   : > { %11654 = vst [vmem:[#allocation69_spill] sm:$0xff] %v7737_v52  ;;  %v2093_v24 = vmul.f32 %v2029_v10, %v7527_v9  ;;  %v1777_v2 = vmul.f32 %v1713_v50, %v7689_v60  ;;  %v7753_v54 = vsel %vm1328_vm11, %v1776_v59, 0.0  ;;  %v1710_v22 = vmul.f32 %v7722_v42, %v7722_v42 }
 0x1ec   : > { %11656 = vst [vmem:[#allocation70_spill] sm:$0xff] %v7744_v27  ;;  %11657 = vst [vmem:[#allocation271_spill] sm:$0xff] %v7747_v11  ;;  %v1711_v58 = vmul.f32 %v7724_v13, %v7724_v13  ;;  %vm1336_vm3 = vcmp.gt.f32.partialorder %v7734_v49, 0.0  ;;  %v7761_v0 = vmul.f32 %v11551_v43, %v2092_v35  ;;  %v1963_v9 = vmul.f32 2.0, %v7731_v8 }
 0x1ed   : > { %11658 = vst [vmem:[#allocation272_spill] sm:$0xff] %v7753_v54  ;;  %v1589_v10 = vsub.f32 2.0, %v1525_v46  ;;  %vm1337_vm4 = vcmp.gt.f32.partialorder %v7741_v51, 0.0  ;;  %v2026_v14 = vsub.f32 %v1962_v47, %v7687_v53  ;;  %v7766_v50 = vmul.f32 %v4865_v62, %v1588_v57 }
 0x1ee   : > { %11659 = vst [vmem:[#allocation273_spill] sm:$0xff] %v7761_v0  ;;  %v1400_v6 = vsel %vm1336_vm3, %v7734_v49, 1.0  ;;  %v1401_v59 = vsel %vm1337_vm4, %v7741_v51, 1.0  ;;  %v7776_v35 = vsel %vm1329_vm12, %v1777_v2, 0.0  ;;  %v7780_v7 = vmul.f32 %v7753_v54, %v7753_v54  ;;  %v858_v27 = vpop.permute.xlu1 %857  ;;  %v11700_v49 = vld [vmem:[#allocation175_spill] sm:$0xff] }
 0x1ef   : > { %11660 = vst [vmem:[#allocation274_spill] sm:$0xff] %v7776_v35  ;;  %4872 = vrcp.f32 %v1400_v6  ;;  %v7783_v62 = vsub.f32 %v850_v17, %v11472_v20  ;;  %v1774_v47 = vmul.f32 %v1710_v22, %v7722_v42  ;;  %v1775_v57 = vmul.f32 %v1711_v58, %v7724_v13 }
 0x1f0   : > { %11661 = vst [vmem:[#allocation275_spill] sm:$0xff] %v7780_v7  ;;  %v4869_v46 = vpop.eup %4868  ;;  %4874 = vrcp.f32 %v1401_v59  ;;  %v7788_v36 = vsub.f32 %v850_v17, %v11473_v61  ;;  %v2027_v2 = vsub.f32 %v1963_v9, %v7709_v16  ;;  %v7791_v8 = vmul.f32 %v4867_v40, %v1589_v10 }
 0x1f1   : > { %11662 = vst [vmem:[#allocation276_spill] sm:$0xff] %v7783_v62  ;;  %v4871_v55 = vpop.eup %4870  ;;  %v1522_v5 = vmul.f32 %v4869_v46, %v1394_v28  ;;  %v1206_v53 = vmul.f32 %v7783_v62, %v7783_v62  ;;  %v7796_v56 = vmul.f32 %v11553_v26, %v2093_v24  ;;  %v7800_v22 = vmul.f32 %v7776_v35, %v7776_v35  ;;  %v11668_v62 = vld [vmem:[#allocation64_spill] sm:$0xff] }
 0x1f2   : > { %11663 = vst [vmem:[#allocation277_spill] sm:$0xff] %v7788_v36  ;;  %v1716_v58 = vmul.f32 %v7766_v50, %v7766_v50  ;;  %v1523_v17 = vmul.f32 %v4871_v55, %v1395_v33  ;;  %v2090_v29 = vmul.f32 %v2026_v14, %v7596_v25  ;;  %v1968_v40 = vmul.f32 2.0, %v7780_v7  ;;  %v11669_v14 = vld [vmem:[#allocation65_spill] sm:$0xff] }
 0x1f3   : > { %11664 = vst [vmem:[#allocation278_spill] sm:$0xff] %v7796_v56  ;;  %11665 = vst [vmem:[#allocation279_spill] sm:$0xff] %v7800_v22  ;;  %v1586_v9 = vsub.f32 2.0, %v1522_v5  ;;  %v1207_v28 = vmul.f32 %v7788_v36, %v7788_v36  ;;  %v7810_v24 = vsel %vm1326_vm13, %v1774_v47, 0.0  ;;  %v7814_v10 = vsel %vm1327_vm14, %v1775_v57, 0.0 }
 0x1f4   : > { %11666 = vst [vmem:[#allocation280_spill] sm:$0xff] %v7810_v24  ;;  %11667 = vst [vmem:[#allocation281_spill] sm:$0xff] %v7814_v10  ;;  %v1587_v16 = vsub.f32 2.0, %v1523_v17  ;;  %v7817_v56 = vadd.f32 %v1206_v53, %v11668_v62  ;;  %v2091_v25 = vmul.f32 %v2027_v2, %v7630_v34  ;;  %v1717_v5 = vmul.f32 %v7791_v8, %v7791_v8  ;;  %v862_v53 = vpop.permute.xlu0 %861 }
 0x1f5   : > { %v7822_v33 = vmul.f32 %v4869_v46, %v1586_v9  ;;  %v7825_v7 = vadd.f32 %v1207_v28, %v11669_v14  ;;  %v1969_v39 = vmul.f32 2.0, %v7800_v22  ;;  %v1780_v23 = vmul.f32 %v1716_v58, %v7766_v50 }
 0x1f6   : > { %v7829_v47 = vmul.f32 %v4871_v55, %v1587_v16  ;;  %vm1334_vm5 = vcmp.gt.f32.partialorder %v7817_v56, 0.0  ;;  %v7834_v34 = vmul.f32 %v7810_v24, %v7810_v24  ;;  %v7838_v62 = vmul.f32 %v7814_v10, %v7814_v10 }
 0x1f7   : > { %vm1335_vm6 = vcmp.gt.f32.partialorder %v7825_v7, 0.0  ;;  %v1398_v46 = vsel %vm1334_vm5, %v7817_v56, 1.0  ;;  %v2032_v16 = vsub.f32 %v1968_v40, %v7753_v54  ;;  %v1714_v57 = vmul.f32 %v7822_v33, %v7822_v33 }
 0x1f8   : > { %11670 = vst [vmem:[#allocation64_spill] sm:$0xff] %v7834_v34  ;;  %11671 = vst [vmem:[#allocation65_spill] sm:$0xff] %v7838_v62  ;;  %v1399_v55 = vsel %vm1335_vm6, %v7825_v7, 1.0  ;;  %4876 = vrcp.f32 %v1398_v46  ;;  %v1781_v58 = vmul.f32 %v1717_v5, %v7791_v8  ;;  %v1715_v17 = vmul.f32 %v7829_v47, %v7829_v47 }
 0x1f9   : > { %v4873_v2 = vpop.eup %4872  ;;  %4878 = vrcp.f32 %v1399_v55  ;;  %v7854_v9 = vsub.f32 %v862_v53, %v11472_v20  ;;  %v2033_v40 = vsub.f32 %v1969_v39, %v7776_v35  ;;  %v7859_v14 = vsel %vm1332_vm15, %v1780_v23, 0.0  ;;  %v11681_v35 = vld [vmem:[#allocation74_spill] sm:$0xff] }
 0x1fa   : > { %v4875_v28 = vpop.eup %4874  ;;  %11673 = vst [vmem:[#allocation283_spill] sm:$0xff] %v7859_v14  ;;  %v1528_v22 = vmul.f32 %v4873_v2, %v1400_v6  ;;  %v7862_v54 = vsub.f32 %v862_v53, %v11473_v61  ;;  %v1966_v5 = vmul.f32 2.0, %v7834_v34  ;;  %v1967_v36 = vmul.f32 2.0, %v7838_v62  ;;  %v11679_v34 = vld [vmem:[#allocation73_spill] sm:$0xff] }
 0x1fb   : > { %11672 = vst [vmem:[#allocation282_spill] sm:$0xff] %v7854_v9  ;;  %v1529_v0 = vmul.f32 %v4875_v28, %v1401_v59  ;;  %v1212_v11 = vmul.f32 %v7854_v9, %v7854_v9  ;;  %v7869_v52 = vmul.f32 %v11551_v43, %v2090_v29  ;;  %v7872_v4 = vmul.f32 %v11553_v26, %v2091_v25 }
 0x1fc   : > { %11674 = vst [vmem:[#allocation284_spill] sm:$0xff] %v7862_v54  ;;  %v2096_v6 = vmul.f32 %v2032_v16, %v7664_v1  ;;  %v1778_v39 = vmul.f32 %v1714_v57, %v7822_v33  ;;  %v7878_v23 = vsel %vm1333_vm0, %v1781_v58, 0.0  ;;  %v7882_v59 = vmul.f32 %v7859_v14, %v7859_v14 }
 0x1fd   : > { %11675 = vst [vmem:[#allocation285_spill] sm:$0xff] %v7869_v52  ;;  %11676 = vst [vmem:[#allocation286_spill] sm:$0xff] %v7872_v4  ;;  %v1779_v53 = vmul.f32 %v1715_v17, %v7829_v47  ;;  %v1213_v29 = vmul.f32 %v7862_v54, %v7862_v54  ;;  %v2097_v25 = vmul.f32 %v2033_v40, %v7689_v60  ;;  %v1592_v62 = vsub.f32 2.0, %v1528_v22 }
 0x1fe   : > { %11677 = vst [vmem:[#allocation287_spill] sm:$0xff] %v7878_v23  ;;  %11678 = vst [vmem:[#allocation288_spill] sm:$0xff] %v7882_v59  ;;  %v7889_v1 = vadd.f32 %v1212_v11, %v11679_v34  ;;  %v7892_v16 = vsub.f32 %v858_v27, %v11472_v20  ;;  %v2030_v44 = vsub.f32 %v1966_v5, %v7810_v24  ;;  %v1593_v58 = vsub.f32 2.0, %v1529_v0  ;;  %v11690_v24 = vld [vmem:[#allocation67_spill] sm:$0xff] }
 0x1ff   : > { %v2031_v57 = vsub.f32 %v1967_v36, %v7814_v10  ;;  %v7897_v9 = vadd.f32 %v1213_v29, %v11681_v35  ;;  %v7901_v17 = vmul.f32 %v7878_v23, %v7878_v23  ;;  %v7905_v60 = vsel %vm1330_vm1, %v1778_v39, 0.0 }
 0x200   : > { %11680 = vst [vmem:[#allocation73_spill] sm:$0xff] %v7892_v16  ;;  %11683 = vst [vmem:[#allocation289_spill] sm:$0xff] %v7905_v60  ;;  %vm1340_vm7 = vcmp.gt.f32.partialorder %v7889_v1, 0.0  ;;  %v7909_v11 = vsub.f32 %v858_v27, %v11473_v61  ;;  %v1972_v22 = vmul.f32 2.0, %v7882_v59  ;;  %v7914_v0 = vsel %vm1331_vm2, %v1779_v53, 0.0 }
 0x201   : > { %11682 = vst [vmem:[#allocation74_spill] sm:$0xff] %v7901_v17  ;;  %11685 = vst [vmem:[#allocation291_spill] sm:$0xff] %v7914_v0  ;;  %vm1341_vm8 = vcmp.gt.f32.partialorder %v7897_v9, 0.0  ;;  %v1404_v35 = vsel %vm1340_vm7, %v7889_v1, 1.0  ;;  %v7920_v36 = vmul.f32 %v4873_v2, %v1592_v62  ;;  %v1210_v34 = vmul.f32 %v7892_v16, %v7892_v16 }
 0x202   : > { %11684 = vst [vmem:[#allocation290_spill] sm:$0xff] %v7909_v11  ;;  %v4877_v31 = vpop.eup %4876  ;;  %v1405_v27 = vsel %vm1341_vm8, %v7897_v9, 1.0  ;;  %4880 = vrcp.f32 %v1404_v35  ;;  %v7929_v40 = vmul.f32 %v7905_v60, %v7905_v60  ;;  %v7931_v5 = vmul.f32 %v4875_v28, %v1593_v58  ;;  %v870_v58 = vpop.permute.xlu0 %869 }
 0x203   : > { %v4879_v12 = vpop.eup %4878  ;;  %v1526_v39 = vmul.f32 %v4877_v31, %v1398_v46  ;;  %4882 = vrcp.f32 %v1405_v27  ;;  %v7934_v62 = vmul.f32 %v11551_v43, %v2096_v6  ;;  %v1973_v2 = vmul.f32 2.0, %v7901_v17 }
 0x204   : > { %11686 = vst [vmem:[#allocation292_spill] sm:$0xff] %v7929_v40  ;;  %v1527_v53 = vmul.f32 %v4879_v12, %v1399_v55  ;;  %v1211_v29 = vmul.f32 %v7909_v11, %v7909_v11  ;;  %v7940_v59 = vmul.f32 %v11553_v26, %v2097_v25  ;;  %v2036_v10 = vsub.f32 %v1972_v22, %v7859_v14  ;;  %v11691_v14 = vld [vmem:[#allocation68_spill] sm:$0xff] }
 0x205   : > { %11687 = vst [vmem:[#allocation293_spill] sm:$0xff] %v7934_v62  ;;  %v7945_v28 = vmul.f32 %v7914_v0, %v7914_v0  ;;  %v1590_v46 = vsub.f32 2.0, %v1526_v39  ;;  %v2094_v6 = vmul.f32 %v2030_v44, %v7722_v42  ;;  %v1720_v17 = vmul.f32 %v7920_v36, %v7920_v36 }
 0x206   : > { %11688 = vst [vmem:[#allocation294_spill] sm:$0xff] %v7940_v59  ;;  %v1591_v55 = vsub.f32 2.0, %v1527_v53  ;;  %v7951_v16 = vadd.f32 %v1210_v34, %v11690_v24  ;;  %v2095_v25 = vmul.f32 %v2031_v57, %v7724_v13  ;;  %v1970_v11 = vmul.f32 2.0, %v7929_v40  ;;  %v11721_v59 = vld [vmem:[#allocation178_spill] sm:$0xff] }
 0x207   : > { %11689 = vst [vmem:[#allocation295_spill] sm:$0xff] %v7945_v28  ;;  %v1721_v22 = vmul.f32 %v7931_v5, %v7931_v5  ;;  %v7958_v54 = vadd.f32 %v1211_v29, %v11691_v14  ;;  %v2037_v39 = vsub.f32 %v1973_v2, %v7878_v23  ;;  %v7961_v42 = vmul.f32 %v4877_v31, %v1590_v46 }
 0x208   : > { %vm1338_vm9 = vcmp.gt.f32.partialorder %v7951_v16, 0.0  ;;  %v7965_v44 = vsub.f32 %v870_v58, %v11472_v20  ;;  %v2100_v24 = vmul.f32 %v2036_v10, %v7766_v50  ;;  %v1971_v13 = vmul.f32 2.0, %v7945_v28  ;;  %v866_v28 = vpop.permute.xlu1 %865 }
 0x209   : > { %vm1339_vm10 = vcmp.gt.f32.partialorder %v7958_v54, 0.0  ;;  %v1402_v14 = vsel %vm1338_vm9, %v7951_v16, 1.0  ;;  %v1784_v57 = vmul.f32 %v1720_v17, %v7920_v36  ;;  %v7974_v34 = vmul.f32 %v4879_v12, %v1591_v55  ;;  %v11724_v16 = vld [vmem:[#allocation94_spill] sm:$0xff] }
 0x20a   : > { %11692 = vst [vmem:[#allocation67_spill] sm:$0xff] %v7965_v44  ;;  %v1403_v31 = vsel %vm1339_vm10, %v7958_v54, 1.0  ;;  %4884 = vrcp.f32 %v1402_v14  ;;  %v2034_v2 = vsub.f32 %v1970_v11, %v7905_v60  ;;  %v1785_v50 = vmul.f32 %v1721_v22, %v7931_v5 }
 0x20b   : > { %4886 = vrcp.f32 %v1403_v31  ;;  %v7982_v10 = vsub.f32 %v870_v58, %v11473_v61  ;;  %v7985_v29 = vmul.f32 %v11551_v43, %v2094_v6  ;;  %v7988_v17 = vmul.f32 %v11553_v26, %v2095_v25 }
 0x20c   : > { %v4881_v53 = vpop.eup %4880  ;;  %v1718_v12 = vmul.f32 %v7961_v42, %v7961_v42  ;;  %v1216_v46 = vmul.f32 %v7965_v44, %v7965_v44  ;;  %v2101_v55 = vmul.f32 %v2037_v39, %v7791_v8  ;;  %v7996_v22 = vmul.f32 %v11551_v43, %v2100_v24  ;;  %v11699_v24 = vld [vmem:[#allocation171_spill] sm:$0xff] }
 0x20d   : > { %11693 = vst [vmem:[#allocation68_spill] sm:$0xff] %v7982_v10  ;;  %11694 = vst [vmem:[#allocation296_spill] sm:$0xff] %v7985_v29  ;;  %v4883_v11 = vpop.eup %4882  ;;  %v1532_v58 = vmul.f32 %v4881_v53, %v1404_v35  ;;  %v1217_v6 = vmul.f32 %v7982_v10, %v7982_v10  ;;  %v2035_v25 = vsub.f32 %v1971_v13, %v7914_v0  ;;  %v8003_v40 = vsel %vm1336_vm3, %v1784_v57, 0.0 }
 0x20e   : > { %11695 = vst [vmem:[#allocation297_spill] sm:$0xff] %v7988_v17  ;;  %11696 = vst [vmem:[#allocation298_spill] sm:$0xff] %v7996_v22  ;;  %v1719_v60 = vmul.f32 %v7974_v34, %v7974_v34  ;;  %v1533_v23 = vmul.f32 %v4883_v11, %v1405_v27  ;;  %v2098_v8 = vmul.f32 %v2034_v2, %v7822_v33  ;;  %v8010_v39 = vsel %vm1337_vm4, %v1785_v50, 0.0  ;;  %v11708_v17 = vld [vmem:[#allocation71_spill] sm:$0xff] }
 0x20f   : > { %11697 = vst [vmem:[#allocation299_spill] sm:$0xff] %v8003_v40  ;;  %11698 = vst [vmem:[#allocation300_spill] sm:$0xff] %v8010_v39  ;;  %v1596_v35 = vsub.f32 2.0, %v1532_v58  ;;  %v8013_v10 = vadd.f32 %v1216_v46, %v11699_v24  ;;  %v1782_v13 = vmul.f32 %v1718_v12, %v7961_v42  ;;  %v8017_v57 = vadd.f32 %v1217_v6, %v11700_v49 }
 0x210   : > { %v1597_v0 = vsub.f32 2.0, %v1533_v23  ;;  %v8020_v44 = vsub.f32 %v866_v28, %v11472_v20  ;;  %v8024_v33 = vmul.f32 %v8003_v40, %v8003_v40  ;;  %v8030_v27 = vsub.f32 %v866_v28, %v11473_v61 }
 0x211   : > { %v8026_v51 = vmul.f32 %v4881_v53, %v1596_v35  ;;  %vm1344_vm11 = vcmp.gt.f32.partialorder %v8013_v10, 0.0  ;;  %v1783_v2 = vmul.f32 %v1719_v60, %v7974_v34  ;;  %vm1345_vm12 = vcmp.gt.f32.partialorder %v8017_v57, 0.0 }
 0x212   : > { %11701 = vst [vmem:[#allocation171_spill] sm:$0xff] %v8020_v44  ;;  %11702 = vst [vmem:[#allocation175_spill] sm:$0xff] %v8024_v33  ;;  %v8033_v23 = vmul.f32 %v4883_v11, %v1597_v0  ;;  %v1408_v50 = vsel %vm1344_vm11, %v8013_v10, 1.0  ;;  %v8041_v12 = vmul.f32 %v8010_v39, %v8010_v39  ;;  %v1409_v28 = vsel %vm1345_vm12, %v8017_v57, 1.0 }
 0x213   : > { %11703 = vst [vmem:[#allocation301_spill] sm:$0xff] %v8030_v27  ;;  %v1724_v53 = vmul.f32 %v8026_v51, %v8026_v51  ;;  %4888 = vrcp.f32 %v1408_v50  ;;  %v8050_v0 = vsel %vm1334_vm5, %v1782_v13, 0.0  ;;  %v1214_v11 = vmul.f32 %v8020_v44, %v8020_v44 }
 0x214   : > { %11704 = vst [vmem:[#allocation302_spill] sm:$0xff] %v8041_v12  ;;  %v4885_v60 = vpop.eup %4884  ;;  %11705 = vst [vmem:[#allocation303_spill] sm:$0xff] %v8050_v0  ;;  %v1725_v46 = vmul.f32 %v8033_v23, %v8033_v23  ;;  %4890 = vrcp.f32 %v1409_v28  ;;  %v8057_v6 = vmul.f32 %v11553_v26, %v2101_v55  ;;  %v1976_v35 = vmul.f32 2.0, %v8024_v33  ;;  %v11710_v33 = vld [vmem:[#allocation72_spill] sm:$0xff] }
 0x215   : > { %v4887_v58 = vpop.eup %4886  ;;  %v1530_v24 = vmul.f32 %v4885_v60, %v1402_v14  ;;  %v1215_v49 = vmul.f32 %v8030_v27, %v8030_v27  ;;  %v8064_v56 = vsel %vm1335_vm6, %v1783_v2, 0.0  ;;  %v1788_v13 = vmul.f32 %v1724_v53, %v8026_v51 }
 0x216   : > { %11706 = vst [vmem:[#allocation304_spill] sm:$0xff] %v8057_v6  ;;  %11707 = vst [vmem:[#allocation305_spill] sm:$0xff] %v8064_v56  ;;  %v1531_v22 = vmul.f32 %v4887_v58, %v1403_v31  ;;  %v8068_v29 = vadd.f32 %v1214_v11, %v11708_v17  ;;  %v2099_v44 = vmul.f32 %v2035_v25, %v7829_v47  ;;  %v1977_v2 = vmul.f32 2.0, %v8041_v12 }
 0x217   : > { %v8073_v55 = vmul.f32 %v8050_v0, %v8050_v0  ;;  %v1594_v14 = vsub.f32 2.0, %v1530_v24  ;;  %v8076_v6 = vadd.f32 %v1215_v49, %v11710_v33  ;;  %v8079_v7 = vmul.f32 %v11551_v43, %v2098_v8  ;;  %v878_v33 = vpop.permute.xlu0 %877 }
 0x218   : > { %v1789_v31 = vmul.f32 %v1725_v46, %v8033_v23  ;;  %v1595_v53 = vsub.f32 2.0, %v1531_v22  ;;  %v2040_v17 = vsub.f32 %v1976_v35, %v8003_v40  ;;  %v8086_v47 = vmul.f32 %v8064_v56, %v8064_v56 }
 0x219   : > { %11709 = vst [vmem:[#allocation71_spill] sm:$0xff] %v8073_v55  ;;  %11711 = vst [vmem:[#allocation72_spill] sm:$0xff] %v8079_v7  ;;  %v8088_v25 = vmul.f32 %v4885_v60, %v1594_v14  ;;  %vm1342_vm13 = vcmp.gt.f32.partialorder %v8068_v29, 0.0  ;;  %v8093_v8 = vsel %vm1340_vm7, %v1788_v13, 0.0  ;;  %vm1343_vm14 = vcmp.gt.f32.partialorder %v8076_v6, 0.0 }
 0x21a   : > { %11712 = vst [vmem:[#allocation306_spill] sm:$0xff] %v8086_v47  ;;  %11713 = vst [vmem:[#allocation307_spill] sm:$0xff] %v8093_v8  ;;  %v8095_v11 = vmul.f32 %v4887_v58, %v1595_v53  ;;  %v1406_v22 = vsel %vm1342_vm13, %v8068_v29, 1.0  ;;  %v1974_v46 = vmul.f32 2.0, %v8073_v55  ;;  %v1407_v35 = vsel %vm1343_vm14, %v8076_v6, 1.0 }
 0x21b   : > { %v1722_v60 = vmul.f32 %v8088_v25, %v8088_v25  ;;  %4892 = vrcp.f32 %v1406_v22  ;;  %v8109_v1 = vsel %vm1341_vm8, %v1789_v31, 0.0  ;;  %v8114_v24 = vsub.f32 %v878_v33, %v11472_v20 }
 0x21c   : > { %11714 = vst [vmem:[#allocation308_spill] sm:$0xff] %v8109_v1  ;;  %v1723_v58 = vmul.f32 %v8095_v11, %v8095_v11  ;;  %4894 = vrcp.f32 %v1407_v35  ;;  %v2041_v13 = vsub.f32 %v1977_v2, %v8010_v39  ;;  %v8119_v14 = vmul.f32 %v8093_v8, %v8093_v8 }
 0x21d   : > { %11715 = vst [vmem:[#allocation309_spill] sm:$0xff] %v8114_v24  ;;  %v4889_v49 = vpop.eup %4888  ;;  %v1786_v53 = vmul.f32 %v1722_v60, %v8088_v25  ;;  %v8123_v9 = vsub.f32 %v878_v33, %v11473_v61  ;;  %v2104_v55 = vmul.f32 %v2040_v17, %v7920_v36  ;;  %v1220_v27 = vmul.f32 %v8114_v24, %v8114_v24 }
 0x21e   : > { %11716 = vst [vmem:[#allocation310_spill] sm:$0xff] %v8119_v14  ;;  %v4891_v31 = vpop.eup %4890  ;;  %v1787_v12 = vmul.f32 %v1723_v58, %v8095_v11  ;;  %v1536_v40 = vmul.f32 %v4889_v49, %v1408_v50  ;;  %v1975_v2 = vmul.f32 2.0, %v8086_v47  ;;  %v8132_v39 = vmul.f32 %v8109_v1, %v8109_v1 }
 0x21f   : > { %11717 = vst [vmem:[#allocation311_spill] sm:$0xff] %v8123_v9  ;;  %v1537_v7 = vmul.f32 %v4891_v31, %v1409_v28  ;;  %v1221_v33 = vmul.f32 %v8123_v9, %v8123_v9  ;;  %v8137_v60 = vmul.f32 %v11553_v26, %v2099_v44  ;;  %v2038_v36 = vsub.f32 %v1974_v46, %v8050_v0 }
 0x220   : > { %11718 = vst [vmem:[#allocation312_spill] sm:$0xff] %v8132_v39  ;;  %v8142_v50 = vsel %vm1338_vm9, %v1786_v53, 0.0  ;;  %v1600_v17 = vsub.f32 2.0, %v1536_v40  ;;  %v2105_v58 = vmul.f32 %v2041_v13, %v7931_v5  ;;  %v1980_v47 = vmul.f32 2.0, %v8119_v14 }
 0x221   : > { %11719 = vst [vmem:[#allocation313_spill] sm:$0xff] %v8137_v60  ;;  %11720 = vst [vmem:[#allocation314_spill] sm:$0xff] %v8142_v50  ;;  %v1601_v24 = vsub.f32 2.0, %v1537_v7  ;;  %v8147_v28 = vadd.f32 %v1220_v27, %v11721_v59  ;;  %v8150_v9 = vmul.f32 %v11551_v43, %v2104_v55  ;;  %v8154_v44 = vsel %vm1339_vm10, %v1787_v12, 0.0 }
 0x222   : > { %11723 = vst [vmem:[#allocation315_spill] sm:$0xff] %v8154_v44  ;;  %v8156_v46 = vmul.f32 %v4889_v49, %v1600_v17  ;;  %v8159_v53 = vadd.f32 %v1221_v33, %v11724_v16  ;;  %v2039_v40 = vsub.f32 %v1975_v2, %v8064_v56  ;;  %v1981_v5 = vmul.f32 2.0, %v8132_v39  ;;  %v11727_v2 = vld [vmem:[#allocation8_spill] sm:$0xff]  ;;  %v11728_v16 = vld [vmem:[#allocation9_spill] sm:$0xff] }
 0x223   : > { %11722 = vst [vmem:[#allocation178_spill] sm:$0xff] %v8150_v9  ;;  %v8165_v59 = vmul.f32 %v8142_v50, %v8142_v50  ;;  %vm1348_vm15 = vcmp.gt.f32.partialorder %v8147_v28, 0.0  ;;  %v2102_v27 = vmul.f32 %v2038_v36, %v7961_v42  ;;  %v8169_v54 = vmul.f32 %v4891_v31, %v1601_v24 }
 0x224   : > { %vm1349_vm0 = vcmp.gt.f32.partialorder %v8159_v53, 0.0  ;;  %v1412_v12 = vsel %vm1348_vm15, %v8147_v28, 1.0  ;;  %v2044_v7 = vsub.f32 %v1980_v47, %v8093_v8  ;;  %v8178_v49 = vmul.f32 %v8154_v44, %v8154_v44 }
 0x225   : > { %11725 = vst [vmem:[#allocation94_spill] sm:$0xff] %v8165_v59  ;;  %v4893_v55 = vpop.eup %4892  ;;  %v1413_v13 = vsel %vm1349_vm0, %v8159_v53, 1.0  ;;  %4896 = vrcp.f32 %v1412_v12  ;;  %v1728_v24 = vmul.f32 %v8156_v46, %v8156_v46  ;;  %v2236_v33 = vmul.f32 %v7079_v15, %v11727_v2  ;;  %v11732_v15 = vld [vmem:[#allocation13_spill] sm:$0xff] }
 0x226   : > { %11726 = vst [vmem:[#allocation316_spill] sm:$0xff] %v8178_v49  ;;  %v4895_v42 = vpop.eup %4894  ;;  %v1534_v31 = vmul.f32 %v4893_v55, %v1406_v22  ;;  %4898 = vrcp.f32 %v1413_v13  ;;  %v2045_v47 = vsub.f32 %v1981_v5, %v8109_v1  ;;  %v1978_v36 = vmul.f32 2.0, %v8165_v59  ;;  %v11731_v59 = vld [vmem:[#allocation12_spill] sm:$0xff]  ;;  %v874_v1 = vpop.permute.xlu1 %873 }
 0x227   : > { %v1535_v17 = vmul.f32 %v4895_v42, %v1407_v35  ;;  %v2237_v39 = vmul.f32 %v7085_v19, %v11728_v16  ;;  %v8192_v14 = vmul.f32 %v11553_v26, %v2105_v58  ;;  %v2103_v8 = vmul.f32 %v2039_v40, %v7974_v34 }
 0x228   : > { %v1729_v22 = vmul.f32 %v8169_v54, %v8169_v54  ;;  %v1598_v56 = vsub.f32 2.0, %v1534_v31  ;;  %v8198_v0 = vmul.f32 %v11551_v43, %v2102_v27  ;;  %v1979_v5 = vmul.f32 2.0, %v8178_v49 }
 0x229   : > { %11729 = vst [vmem:[#allocation8_spill] sm:$0xff] %v8192_v14  ;;  %v1599_v2 = vsub.f32 2.0, %v1535_v17  ;;  %v2238_v35 = vmul.f32 %v7124_v21, %v11731_v59  ;;  %v2108_v16 = vmul.f32 %v2044_v7, %v8026_v51  ;;  %v1792_v58 = vmul.f32 %v1728_v24, %v8156_v46 }
 0x22a   : > { %11730 = vst [vmem:[#allocation9_spill] sm:$0xff] %v8198_v0  ;;  %v8205_v19 = vmul.f32 %v4893_v55, %v1598_v56  ;;  %v2300_v34 = vadd.f32 %v2237_v39, %v2236_v33  ;;  %v2109_v40 = vmul.f32 %v2045_v47, %v8033_v23  ;;  %v2042_v31 = vsub.f32 %v1978_v36, %v8142_v50  ;;  %v886_v23 = vpop.permute.xlu0 %885  ;;  %v11752_v50 = vld [vmem:[#allocation7_spill] sm:$0xff] }
 0x22b   : > { %v8209_v27 = vmul.f32 %v4895_v42, %v1599_v2  ;;  %v2239_v17 = vmul.f32 %v7150_v18, %v11732_v15  ;;  %v1793_v49 = vmul.f32 %v1729_v22, %v8169_v54  ;;  %v8217_v51 = vsub.f32 %v874_v1, %v11472_v20 }
 0x22c   : > { %v1726_v59 = vmul.f32 %v8205_v19, %v8205_v19  ;;  %2301 = vadd.xlane.f32.xlu0 %v2300_v34  ;;  %v8220_v39 = vsub.f32 %v874_v1, %v11473_v61  ;;  %v8223_v56 = vmul.f32 %v11553_v26, %v2103_v8  ;;  %v2043_v55 = vsub.f32 %v1979_v5, %v8154_v44  ;;  %v11741_v34 = vld [vmem:[#allocation176_spill] sm:$0xff] }
 0x22d   : > { %11733 = vst [vmem:[#allocation12_spill] sm:$0xff] %v8217_v51  ;;  %v1727_v15 = vmul.f32 %v8209_v27, %v8209_v27  ;;  %v2303_v7 = vadd.f32 %v2239_v17, %v2238_v35  ;;  %v8230_v42 = vsel %vm1344_vm11, %v1792_v58, 0.0  ;;  %v1218_v1 = vmul.f32 %v8217_v51, %v8217_v51 }
 0x22e   : > { %11734 = vst [vmem:[#allocation13_spill] sm:$0xff] %v8220_v39  ;;  %11735 = vst [vmem:[#allocation317_spill] sm:$0xff] %v8223_v56  ;;  %v1790_v24 = vmul.f32 %v1726_v59, %v8205_v19  ;;  %v1219_v33 = vmul.f32 %v8220_v39, %v8220_v39  ;;  %v8238_v47 = vmul.f32 %v11551_v43, %v2108_v16  ;;  %v8250_v35 = vsel %vm1345_vm12, %v1793_v49, 0.0  ;;  %v11745_v49 = vld [vmem:[#allocation90_spill] sm:$0xff] }
 0x22f   : > { %11736 = vst [vmem:[#allocation318_spill] sm:$0xff] %v8230_v42  ;;  %v4897_v8 = vpop.eup %4896  ;;  %v8241_v36 = vmul.f32 %v11553_v26, %v2109_v40  ;;  %v1791_v22 = vmul.f32 %v1727_v15, %v8209_v27  ;;  %2304 = vadd.xlane.f32.xlu1 %v2303_v7  ;;  %v8245_v10 = vsub.f32 %v886_v23, %v11472_v20  ;;  %11740 = vst [vmem:[#allocation322_spill] sm:$0xff] %v8250_v35 }
 0x230   : > { %11737 = vst [vmem:[#allocation319_spill] sm:$0xff] %v8238_v47  ;;  %v4899_v5 = vpop.eup %4898  ;;  %v2106_v2 = vmul.f32 %v2042_v31, %v8088_v25  ;;  %v1540_v58 = vmul.f32 %v4897_v8, %v1412_v12  ;;  %v8253_v16 = vadd.f32 %v1218_v1, %v11741_v34  ;;  %v8256_v40 = vmul.f32 %v2043_v55, %v8095_v11 }
 0x231   : > { %11738 = vst [vmem:[#allocation320_spill] sm:$0xff] %v8241_v36  ;;  %11739 = vst [vmem:[#allocation321_spill] sm:$0xff] %v8245_v10  ;;  %v8260_v17 = vmul.f32 %v8230_v42, %v8230_v42  ;;  %v8264_v59 = vsel %vm1342_vm13, %v1790_v24, 0.0  ;;  %v1541_v25 = vmul.f32 %v4899_v5, %v1413_v13  ;;  %v8268_v57 = vsel %vm1343_vm14, %v1791_v22, 0.0 }
 0x232   : > { %11743 = vst [vmem:[#allocation323_spill] sm:$0xff] %v8264_v59  ;;  %11744 = vst [vmem:[#allocation324_spill] sm:$0xff] %v8268_v57  ;;  %v1604_v12 = vsub.f32 2.0, %v1540_v58  ;;  %v8271_v31 = vadd.f32 %v1219_v33, %v11745_v49  ;;  %v8274_v11 = vsub.f32 %v886_v23, %v11473_v61  ;;  %v8278_v55 = vmul.f32 %v8250_v35, %v8250_v35 }
 0x233   : > { %11742 = vst [vmem:[#allocation176_spill] sm:$0xff] %v8260_v17  ;;  %v1605_v15 = vsub.f32 2.0, %v1541_v25  ;;  %vm1346_vm1 = vcmp.gt.f32.partialorder %v8253_v16, 0.0  ;;  %v1224_v29 = vmul.f32 %v8245_v10, %v8245_v10  ;;  %v8284_v6 = vmul.f32 %v11551_v43, %v2106_v2  ;;  %v11764_v10 = vld [vmem:[#allocation93_spill] sm:$0xff] }
 0x234   : > { %11746 = vst [vmem:[#allocation90_spill] sm:$0xff] %v8274_v11  ;;  %11747 = vst [vmem:[#allocation325_spill] sm:$0xff] %v8278_v55  ;;  %v8288_v13 = vmul.f32 %v8264_v59, %v8264_v59  ;;  %v8290_v7 = vmul.f32 %v4897_v8, %v1604_v12  ;;  %vm1347_vm2 = vcmp.gt.f32.partialorder %v8271_v31, 0.0  ;;  %v8295_v23 = vmul.f32 %v8268_v57, %v8268_v57 }
 0x235   : > { %11748 = vst [vmem:[#allocation326_spill] sm:$0xff] %v8284_v6  ;;  %v8297_v24 = vmul.f32 %v4899_v5, %v1605_v15  ;;  %v1410_v1 = vsel %vm1346_vm1, %v8253_v16, 1.0  ;;  %v1411_v33 = vsel %vm1347_vm2, %v8271_v31, 1.0  ;;  %v1984_v22 = vmul.f32 2.0, %v8260_v17  ;;  %v11751_v15 = vld [vmem:[#allocation6_spill] sm:$0xff] }
 0x236   : > { %11749 = vst [vmem:[#allocation327_spill] sm:$0xff] %v8288_v13  ;;  %11750 = vst [vmem:[#allocation328_spill] sm:$0xff] %v8295_v23  ;;  %v1732_v8 = vmul.f32 %v8290_v7, %v8290_v7  ;;  %4900 = vrcp.f32 %v1410_v1  ;;  %v1225_v2 = vmul.f32 %v8274_v11, %v8274_v11  ;;  %v1985_v5 = vmul.f32 2.0, %v8278_v55 }
 0x237   : > { %v1733_v58 = vmul.f32 %v8297_v24, %v8297_v24  ;;  %4902 = vrcp.f32 %v1411_v33  ;;  %v8314_v34 = vadd.f32 %v1224_v29, %v6808_v48  ;;  %v1982_v25 = vmul.f32 2.0, %v8288_v13 }
 0x238   : > { %v1796_v12 = vmul.f32 %v1732_v8, %v8290_v7  ;;  %v8319_v49 = vadd.f32 %v1225_v2, %v6824_v30  ;;  %v2240_v17 = vmul.f32 %v7216_v45, %v11751_v15  ;;  %v1983_v44 = vmul.f32 2.0, %v8295_v23 }
 0x239   : > { %v1797_v55 = vmul.f32 %v1733_v58, %v8297_v24  ;;  %vm1352_vm3 = vcmp.gt.f32.partialorder %v8314_v34, 0.0  ;;  %v2241_v48 = vmul.f32 %v7226_v41, %v11752_v50  ;;  %v2048_v29 = vsub.f32 %v1984_v22, %v8230_v42  ;;  %v882_v22 = vpop.permute.xlu1 %881 }
 0x23a   : > { %v8331_v8 = vsel %vm1348_vm15, %v1796_v12, 0.0  ;;  %vm1353_vm4 = vcmp.gt.f32.partialorder %v8319_v49, 0.0  ;;  %v1416_v30 = vsel %vm1352_vm3, %v8314_v34, 1.0  ;;  %v2049_v2 = vsub.f32 %v1985_v5, %v8250_v35  ;;  %v894_v12 = vpop.permute.xlu0 %893  ;;  %v11757_v5 = vld [vmem:[#allocation16_spill] sm:$0xff]  ;;  %v11758_v35 = vld [vmem:[#allocation17_spill] sm:$0xff] }
 0x23b   : > { %11753 = vst [vmem:[#allocation6_spill] sm:$0xff] %v8331_v8  ;;  %v8340_v58 = vsel %vm1349_vm0, %v1797_v55, 0.0  ;;  %v8344_v50 = vmul.f32 %v8331_v8, %v8331_v8  ;;  %v1417_v28 = vsel %vm1353_vm4, %v8319_v49, 1.0  ;;  %v2046_v15 = vsub.f32 %v1982_v25, %v8264_v59 }
 0x23c   : > { %11754 = vst [vmem:[#allocation7_spill] sm:$0xff] %v8340_v58  ;;  %v8352_v23 = vmul.f32 %v8340_v58, %v8340_v58  ;;  %4904 = vrcp.f32 %v1416_v30  ;;  %v2306_v53 = vadd.f32 %v2241_v48, %v2240_v17  ;;  %v2047_v55 = vsub.f32 %v1983_v44, %v8268_v57 }
 0x23d   : > { %11755 = vst [vmem:[#allocation329_spill] sm:$0xff] %v8344_v50  ;;  %4906 = vrcp.f32 %v1417_v28  ;;  %v2244_v13 = vmul.f32 %v7324_v37, %v11757_v5  ;;  %v2245_v42 = vmul.f32 %v7332_v32, %v11758_v35  ;;  %v1988_v11 = vmul.f32 2.0, %v8344_v50 }
 0x23e   : > { %11756 = vst [vmem:[#allocation330_spill] sm:$0xff] %v8352_v23  ;;  %2307 = vadd.xlane.f32.xlu0 %v2306_v53  ;;  %v8361_v25 = vsub.f32 %v882_v22, %v11472_v20  ;;  %v8364_v59 = vsub.f32 %v882_v22, %v11473_v61  ;;  %v8367_v17 = vsub.f32 %v894_v12, %v11472_v20  ;;  %v8379_v50 = vmul.f32 2.0, %v8352_v23 }
 0x23f   : > { %v8370_v44 = vmul.f32 %v2048_v29, %v8156_v46  ;;  %v8373_v48 = vmul.f32 %v2049_v2, %v8169_v54  ;;  %v2312_v5 = vadd.f32 %v2245_v42, %v2244_v13  ;;  %v8376_v35 = vsub.f32 %v894_v12, %v11473_v61 }
 0x240   : > { %11759 = vst [vmem:[#allocation16_spill] sm:$0xff] %v8361_v25  ;;  %11760 = vst [vmem:[#allocation17_spill] sm:$0xff] %v8364_v59  ;;  %v4901_v53 = vpop.eup %4900  ;;  %v1222_v22 = vmul.f32 %v8361_v25, %v8361_v25  ;;  %v1223_v57 = vmul.f32 %v8364_v59, %v8364_v59  ;;  %v1228_v46 = vmul.f32 %v8367_v17, %v8367_v17  ;;  %v11763_v25 = vld [vmem:[#allocation92_spill] sm:$0xff] }
 0x241   : > { %11761 = vst [vmem:[#allocation331_spill] sm:$0xff] %v8367_v17  ;;  %11762 = vst [vmem:[#allocation332_spill] sm:$0xff] %v8376_v35  ;;  %v4903_v29 = vpop.eup %4902  ;;  %v8388_v54 = vmul.f32 %v2046_v15, %v8205_v19  ;;  %v8391_v42 = vmul.f32 %v2047_v55, %v8209_v27  ;;  %v1538_v13 = vmul.f32 %v4901_v53, %v1410_v1  ;;  %2313 = vadd.xlane.f32.xlu1 %v2312_v5  ;;  %v11765_v19 = vld [vmem:[#allocation96_spill] sm:$0xff]  ;;  %v11766_v27 = vld [vmem:[#allocation101_spill] sm:$0xff] }
 0x242   : > { %v1229_v2 = vmul.f32 %v8376_v35, %v8376_v35  ;;  %v2052_v12 = vsub.f32 %v1988_v11, %v8331_v8  ;;  %v1539_v23 = vmul.f32 %v4903_v29, %v1411_v33  ;;  %v8397_v59 = vadd.f32 %v1222_v22, %v11763_v25  ;;  %v11767_v1 = vld [vmem:[#allocation10_spill] sm:$0xff]  ;;  %v11768_v5 = vld [vmem:[#allocation231_spill] sm:$0xff]  ;;  %v11771_v35 = vld [vmem:[#allocation24_spill] sm:$0xff] }
 0x243   : > { %v8400_v17 = vadd.f32 %v1223_v57, %v11764_v10  ;;  %v1602_v39 = vsub.f32 2.0, %v1538_v13  ;;  %v8403_v15 = vadd.f32 %v1228_v46, %v11765_v19  ;;  %v2242_v18 = vmul.f32 %v11768_v5, %v11767_v1  ;;  %v11769_v22 = vld [vmem:[#allocation11_spill] sm:$0xff]  ;;  %v11770_v46 = vld [vmem:[#allocation237_spill] sm:$0xff] }
 0x244   : > { %v8406_v55 = vadd.f32 %v1229_v2, %v11766_v27  ;;  %v2053_v11 = vsub.f32 %v8379_v50, %v8340_v58  ;;  %v1603_v33 = vsub.f32 2.0, %v1539_v23  ;;  %vm1350_vm5 = vcmp.gt.f32.partialorder %v8397_v59, 0.0  ;;  %v11775_v5 = vld [vmem:[#allocation239_spill] sm:$0xff] }
 0x245   : > { %vm1351_vm6 = vcmp.gt.f32.partialorder %v8400_v17, 0.0  ;;  %v8414_v10 = vmul.f32 %v4901_v53, %v1602_v39  ;;  %v1414_v57 = vsel %vm1350_vm5, %v8397_v59, 1.0  ;;  %v2243_v13 = vmul.f32 %v11770_v46, %v11769_v22  ;;  %v11774_v46 = vld [vmem:[#allocation25_spill] sm:$0xff] }
 0x246   : > { %v1415_v25 = vsel %vm1351_vm6, %v8400_v17, 1.0  ;;  %v4905_v2 = vpop.eup %4904  ;;  %v2116_v23 = vmul.f32 %v2052_v12, %v8290_v7  ;;  %v8425_v50 = vmul.f32 %v4903_v29, %v1603_v33  ;;  %4908 = vrcp.f32 %v1414_v57  ;;  %v890_v12 = vpop.permute.xlu1 %889 }
 0x247   : > { %vm1356_vm7 = vcmp.gt.f32.partialorder %v8403_v15, 0.0  ;;  %v4907_v39 = vpop.eup %4906  ;;  %v1730_v53 = vmul.f32 %v8414_v10, %v8414_v10  ;;  %v1544_v19 = vmul.f32 %v4905_v2, %v1416_v30  ;;  %4910 = vrcp.f32 %v1415_v25 }
 0x248   : > { %vm1357_vm8 = vcmp.gt.f32.partialorder %v8406_v55, 0.0  ;;  %v1731_v27 = vmul.f32 %v8425_v50, %v8425_v50  ;;  %v1545_v1 = vmul.f32 %v4907_v39, %v1417_v28  ;;  %v1420_v7 = vsel %vm1356_vm7, %v8403_v15, 1.0  ;;  %v11772_v28 = vld [vmem:[#allocation238_spill] sm:$0xff] }
 0x249   : > { %v1421_v29 = vsel %vm1357_vm8, %v8406_v55, 1.0  ;;  %v1794_v33 = vmul.f32 %v1730_v53, %v8414_v10  ;;  %v1608_v22 = vsub.f32 2.0, %v1544_v19  ;;  %4912 = vrcp.f32 %v1420_v7 }
 0x24a   : > { %v2309_v30 = vadd.f32 %v2243_v13, %v2242_v18  ;;  %v1795_v58 = vmul.f32 %v1731_v27, %v8425_v50  ;;  %v1609_v8 = vsub.f32 2.0, %v1545_v1  ;;  %4914 = vrcp.f32 %v1421_v29 }
 0x24b   : > { %v2248_v21 = vmul.f32 %v11772_v28, %v11771_v35  ;;  %v8445_v51 = vsel %vm1346_vm1, %v1794_v33, 0.0  ;;  %v8447_v45 = vmul.f32 %v4905_v2, %v1608_v22  ;;  %v2249_v53 = vmul.f32 %v11775_v5, %v11774_v46  ;;  %v11789_v28 = vld [vmem:[#allocation95_spill] sm:$0xff] }
 0x24c   : > { %11773 = vst [vmem:[#allocation92_spill] sm:$0xff] %v8445_v51  ;;  %2310 = vadd.xlane.f32.xlu0 %v2309_v30  ;;  %v8452_v19 = vsub.f32 %v890_v12, %v11472_v20  ;;  %v8456_v18 = vsel %vm1347_vm2, %v1795_v58, 0.0  ;;  %v8460_v35 = vmul.f32 %v8445_v51, %v8445_v51  ;;  %v8462_v16 = vmul.f32 %v4907_v39, %v1609_v8 }
 0x24d   : > { %11776 = vst [vmem:[#allocation93_spill] sm:$0xff] %v8456_v18  ;;  %v8465_v13 = vsub.f32 %v890_v12, %v11473_v61  ;;  %v8469_v2 = vmul.f32 %v8456_v18, %v8456_v18  ;;  %v1736_v46 = vmul.f32 %v8447_v45, %v8447_v45  ;;  %v2318_v27 = vadd.f32 %v2249_v53, %v2248_v21 }
 0x24e   : > { %11777 = vst [vmem:[#allocation96_spill] sm:$0xff] %v8460_v35  ;;  %v1226_v31 = vmul.f32 %v8452_v19, %v8452_v19  ;;  %v8477_v58 = vmul.f32 %v11553_v26, %v8256_v40  ;;  %v8481_v8 = vmul.f32 %v11551_v43, %v8370_v44  ;;  %v1737_v39 = vmul.f32 %v8462_v16, %v8462_v16 }
 0x24f   : > { %11778 = vst [vmem:[#allocation101_spill] sm:$0xff] %v8469_v2  ;;  %v1227_v1 = vmul.f32 %v8465_v13, %v8465_v13  ;;  %v8489_v21 = vmul.f32 %v11553_v26, %v8373_v48  ;;  %v2117_v12 = vmul.f32 %v2053_v11, %v8297_v24  ;;  %v1986_v33 = vmul.f32 2.0, %v8460_v35  ;;  %2319 = vadd.xlane.f32.xlu1 %v2318_v27  ;;  %v902_v24 = vpop.permute.xlu0 %901 }
 0x250   : > { %11779 = vst [vmem:[#allocation10_spill] sm:$0xff] %v8477_v58  ;;  %11780 = vst [vmem:[#allocation11_spill] sm:$0xff] %v8481_v8  ;;  %v1800_v40 = vmul.f32 %v1736_v46, %v8447_v45  ;;  %v4909_v22 = vpop.eup %4908  ;;  %v8496_v44 = vmul.f32 %v11551_v43, %v8388_v54  ;;  %v8500_v30 = vmul.f32 %v11553_v26, %v8391_v42  ;;  %v1987_v35 = vmul.f32 2.0, %v8469_v2  ;;  %v11786_v54 = vld [vmem:[#allocation98_spill] sm:$0xff] }
 0x251   : > { %11781 = vst [vmem:[#allocation24_spill] sm:$0xff] %v8489_v21  ;;  %v8503_v53 = vmul.f32 %v11551_v43, %v2116_v23  ;;  %v1801_v48 = vmul.f32 %v1737_v39, %v8462_v16  ;;  %v4911_v11 = vpop.eup %4910  ;;  %v1542_v27 = vmul.f32 %v4909_v22, %v1414_v57  ;;  %v8512_v5 = vadd.f32 %v1226_v31, %v11786_v54 }
 0x252   : > { %11782 = vst [vmem:[#allocation25_spill] sm:$0xff] %v8496_v44  ;;  %11783 = vst [vmem:[#allocation333_spill] sm:$0xff] %v8500_v30  ;;  %v8509_v46 = vsel %vm1352_vm3, %v1800_v40, 0.0  ;;  %v1543_v39 = vmul.f32 %v4911_v11, %v1415_v25  ;;  %v8523_v32 = vadd.f32 %v1227_v1, %v11789_v28  ;;  %v8526_v34 = vmul.f32 %v11553_v26, %v2117_v12 }
 0x253   : > { %11784 = vst [vmem:[#allocation334_spill] sm:$0xff] %v8503_v53  ;;  %11785 = vst [vmem:[#allocation335_spill] sm:$0xff] %v8509_v46  ;;  %v8516_v42 = vsel %vm1353_vm4, %v1801_v48, 0.0  ;;  %v8520_v23 = vmul.f32 %v8509_v46, %v8509_v46  ;;  %v4913_v2 = vpop.eup %4912  ;;  %v2050_v57 = vsub.f32 %v1986_v33, %v8445_v51  ;;  %v1606_v31 = vsub.f32 2.0, %v1542_v27 }
 0x254   : > { %11787 = vst [vmem:[#allocation98_spill] sm:$0xff] %v8516_v42  ;;  %11790 = vst [vmem:[#allocation95_spill] sm:$0xff] %v8526_v34  ;;  %v8530_v40 = vsub.f32 %v902_v24, %v11472_v20  ;;  %v4915_v49 = vpop.eup %4914  ;;  %v8534_v48 = vmul.f32 %v8516_v42, %v8516_v42  ;;  %v1607_v54 = vsub.f32 2.0, %v1543_v39  ;;  %v1548_v25 = vmul.f32 %v4913_v2, %v1420_v7 }
 0x255   : > { %11788 = vst [vmem:[#allocation336_spill] sm:$0xff] %v8520_v23  ;;  %v8537_v28 = vsub.f32 %v902_v24, %v11473_v61  ;;  %v1992_v1 = vmul.f32 2.0, %v8520_v23  ;;  %v1670_v12 = vmul.f32 %v4909_v22, %v1606_v31  ;;  %v1549_v37 = vmul.f32 %v4915_v49, %v1421_v29 }
 0x256   : > { %11791 = vst [vmem:[#allocation337_spill] sm:$0xff] %v8534_v48  ;;  %vm1354_vm9 = vcmp.gt.f32.partialorder %v8512_v5, 0.0  ;;  %v2051_v33 = vsub.f32 %v1987_v35, %v8456_v18  ;;  %v1671_v27 = vmul.f32 %v4911_v11, %v1607_v54  ;;  %v1612_v51 = vsub.f32 2.0, %v1548_v25  ;;  %v11806_v18 = vld [vmem:[#allocation28_spill] sm:$0xff] }
 0x257   : > { %vm1355_vm10 = vcmp.gt.f32.partialorder %v8523_v32, 0.0  ;;  %v2114_v41 = vmul.f32 %v2050_v57, %v8414_v10  ;;  %v1734_v34 = vmul.f32 %v1670_v12, %v1670_v12  ;;  %v1613_v39 = vsub.f32 2.0, %v1549_v37 }
 0x258   : > { %v1232_v7 = vmul.f32 %v8530_v40, %v8530_v40  ;;  %v1993_v24 = vmul.f32 2.0, %v8534_v48  ;;  %v1735_v23 = vmul.f32 %v1671_v27, %v1671_v27  ;;  %v1676_v22 = vmul.f32 %v4913_v2, %v1612_v51 }
 0x259   : > { %v1418_v29 = vsel %vm1354_vm9, %v8512_v5, 1.0  ;;  %v2056_v35 = vsub.f32 %v1992_v1, %v8509_v46  ;;  %v1798_v11 = vmul.f32 %v1734_v34, %v1670_v12  ;;  %v1677_v31 = vmul.f32 %v4915_v49, %v1613_v39 }
 0x25a   : > { %v1419_v10 = vsel %vm1355_vm10, %v8523_v32, 1.0  ;;  %v2115_v37 = vmul.f32 %v2051_v33, %v8425_v50  ;;  %v1799_v57 = vmul.f32 %v1735_v23, %v1671_v27  ;;  %v1740_v54 = vmul.f32 %v1676_v22, %v1676_v22  ;;  %v11830_v32 = vld [vmem:[#allocation26_spill] sm:$0xff] }
 0x25b   : > { %4916 = vrcp.f32 %v1418_v29  ;;  %v8556_v25 = vmul.f32 %v11551_v43, %v2114_v41  ;;  %v8560_v51 = vsel %vm1350_vm5, %v1798_v11, 0.0  ;;  %v1741_v2 = vmul.f32 %v1677_v31, %v1677_v31 }
 0x25c   : > { %11793 = vst [vmem:[#allocation339_spill] sm:$0xff] %v8560_v51  ;;  %4918 = vrcp.f32 %v1419_v10  ;;  %v2057_v34 = vsub.f32 %v1993_v24, %v8516_v42  ;;  %v8565_v49 = vsel %vm1351_vm6, %v1799_v57, 0.0  ;;  %v8569_v50 = vmul.f32 %v8560_v51, %v8560_v51  ;;  %v11798_v24 = vld [vmem:[#allocation199_spill] sm:$0xff]  ;;  %v11799_v57 = vld [vmem:[#allocation14_spill] sm:$0xff] }
 0x25d   : > { %11792 = vst [vmem:[#allocation338_spill] sm:$0xff] %v8556_v25  ;;  %11794 = vst [vmem:[#allocation340_spill] sm:$0xff] %v8565_v49  ;;  %v1804_v23 = vmul.f32 %v1740_v54, %v1676_v22  ;;  %v2120_v41 = vmul.f32 %v2056_v35, %v8447_v45  ;;  %v8574_v59 = vmul.f32 %v8565_v49, %v8565_v49  ;;  %vm2428_vm1 = vcmask 7168  }
 0x25e   : > { %11795 = vst [vmem:[#allocation341_spill] sm:$0xff] %v8569_v50  ;;  %v1805_v1 = vmul.f32 %v1741_v2, %v1677_v31  ;;  %v1233_v33 = vmul.f32 %v8537_v28, %v8537_v28  ;;  %v1990_v39 = vmul.f32 2.0, %v8569_v50  ;;  %v8584_v11 = vadd.f32 %v1232_v7, %v11798_v24  ;;  %v11802_v50 = vld [vmem:[#allocation200_spill] sm:$0xff]  ;;  %v11804_v24 = vld [vmem:[#allocation15_spill] sm:$0xff] }
 0x25f   : > { %11796 = vst [vmem:[#allocation342_spill] sm:$0xff] %v8574_v59  ;;  %v8581_v17 = vsel %vm1356_vm7, %v1804_v23, 0.0  ;;  %v2246_v45 = vmul.f32 %v7520_v38, %v11799_v57  ;;  %v1991_v35 = vmul.f32 2.0, %v8574_v59  ;;  %v11805_v57 = vld [vmem:[#allocation250_spill] sm:$0xff]  ;;  %v8626_v25 = vmul.f32 %v11553_v26, %v2115_v37 }
 0x260   : > { %11797 = vst [vmem:[#allocation343_spill] sm:$0xff] %v8581_v17  ;;  %v8591_v54 = vsel %vm1357_vm8, %v1805_v1, 0.0  ;;  %v8595_v2 = vmul.f32 %v8581_v17, %v8581_v17  ;;  %v8598_v15 = vadd.f32 %v1233_v33, %v11802_v50  ;;  %v2054_v23 = vsub.f32 %v1990_v39, %v8560_v51 }
 0x261   : > { %11800 = vst [vmem:[#allocation199_spill] sm:$0xff] %v8591_v54  ;;  %v8603_v7 = vmul.f32 %v8591_v54, %v8591_v54  ;;  %vm1360_vm11 = vcmp.gt.f32.partialorder %v8584_v11, 0.0  ;;  %v2247_v55 = vmul.f32 %v11805_v57, %v11804_v24  ;;  %v2055_v1 = vsub.f32 %v1991_v35, %v8565_v49  ;;  %v898_v24 = vpop.permute.xlu1 %897 }
 0x262   : > { %11801 = vst [vmem:[#allocation14_spill] sm:$0xff] %v8595_v2  ;;  %v1996_v59 = vmul.f32 2.0, %v8595_v2  ;;  %vm1361_vm12 = vcmp.gt.f32.partialorder %v8598_v15, 0.0  ;;  %v1424_v50 = vsel %vm1360_vm11, %v8584_v11, 1.0  ;;  %v2121_v33 = vmul.f32 %v2057_v34, %v8462_v16  ;;  %v11807_v34 = vld [vmem:[#allocation29_spill] sm:$0xff] }
 0x263   : > { %11803 = vst [vmem:[#allocation200_spill] sm:$0xff] %v8603_v7  ;;  %v1997_v39 = vmul.f32 2.0, %v8603_v7  ;;  %v1425_v51 = vsel %vm1361_vm12, %v8598_v15, 1.0  ;;  %4920 = vrcp.f32 %v1424_v50  ;;  %v2118_v48 = vmul.f32 %v2054_v23, %v1670_v12  ;;  %v11808_v7 = vld [vmem:[#allocation259_spill] sm:$0xff] }
 0x264   : > { %v2060_v35 = vsub.f32 %v1996_v59, %v8581_v17  ;;  %4922 = vrcp.f32 %v1425_v51  ;;  %v2315_v2 = vadd.f32 %v2247_v55, %v2246_v45  ;;  %v2119_v42 = vmul.f32 %v2055_v1, %v1671_v27  ;;  %v11822_v17 = vld [vmem:[#allocation33_spill] sm:$0xff] }
 0x265   : > { %v4917_v49 = vpop.eup %4916  ;;  %v2061_v46 = vsub.f32 %v1997_v39, %v8591_v54  ;;  %v2252_v16 = vmul.f32 %v7601_v3, %v11806_v18  ;;  %v2253_v57 = vmul.f32 %v11808_v7, %v11807_v34  ;;  %v8629_v59 = vsub.f32 %v898_v24, %v11472_v20  ;;  %v11816_v39 = vld [vmem:[#allocation23_spill] sm:$0xff]  ;;  %v11821_v54 = vld [vmem:[#allocation100_spill] sm:$0xff] }
 0x266   : > { %v4919_v38 = vpop.eup %4918  ;;  %v2124_v53 = vmul.f32 %v2060_v35, %v1676_v22  ;;  %v1546_v12 = vmul.f32 %v4917_v49, %v1418_v29  ;;  %2316 = vadd.xlane.f32.xlu0 %v2315_v2  ;;  %v8632_v27 = vmul.f32 %v11551_v43, %v2120_v41  ;;  %v8635_v18 = vmul.f32 %v11553_v26, %v2121_v33 }
 0x267   : > { %v2125_v45 = vmul.f32 %v2061_v46, %v1677_v31  ;;  %v1547_v23 = vmul.f32 %v4919_v38, %v1419_v10  ;;  %v2324_v55 = vadd.f32 %v2253_v57, %v2252_v16  ;;  %v8638_v1 = vmul.f32 %v11551_v43, %v2118_v48  ;;  %v11813_v31 = vld [vmem:[#allocation22_spill] sm:$0xff] }
 0x268   : > { %11809 = vst [vmem:[#allocation15_spill] sm:$0xff] %v8632_v27  ;;  %11810 = vst [vmem:[#allocation28_spill] sm:$0xff] %v8635_v18  ;;  %v1610_v37 = vsub.f32 2.0, %v1546_v12  ;;  %v8641_v22 = vsub.f32 %v898_v24, %v11473_v61  ;;  %v8644_v29 = vmul.f32 %v11553_v26, %v2119_v42  ;;  %v1230_v46 = vmul.f32 %v8629_v59, %v8629_v59  ;;  %v11814_v10 = vld [vmem:[#allocation158_spill] sm:$0xff]  ;;  %v11817_v24 = vld [vmem:[#allocation260_spill] sm:$0xff]  ;;  %v906_v42 = vpop.permute.xlu1 %905 }
 0x269   : > { %11811 = vst [vmem:[#allocation29_spill] sm:$0xff] %v8638_v1  ;;  %v1611_v2 = vsub.f32 2.0, %v1547_v23  ;;  %2325 = vadd.xlane.f32.xlu1 %v2324_v55  ;;  %v2250_v41 = vmul.f32 %v11814_v10, %v11813_v31  ;;  %v8651_v57 = vmul.f32 %v11551_v43, %v2124_v53  ;;  %v2251_v35 = vmul.f32 %v11817_v24, %v11816_v39  ;;  %v11819_v12 = vld [vmem:[#allocation99_spill] sm:$0xff]  ;;  %v11820_v55 = vld [vmem:[#allocation32_spill] sm:$0xff]  ;;  %v11823_v10 = vld [vmem:[#allocation69_spill] sm:$0xff] }
 0x26a   : > { %11812 = vst [vmem:[#allocation344_spill] sm:$0xff] %v8644_v29  ;;  %v1674_v48 = vmul.f32 %v4917_v49, %v1610_v37  ;;  %v1231_v33 = vmul.f32 %v8641_v22, %v8641_v22  ;;  %v8658_v16 = vmul.f32 %v11553_v26, %v2125_v45  ;;  %v8661_v23 = vadd.f32 %v1230_v46, %v11819_v12 }
 0x26b   : > { %11815 = vst [vmem:[#allocation22_spill] sm:$0xff] %v8651_v57  ;;  %v1675_v34 = vmul.f32 %v4919_v38, %v1611_v2  ;;  %v2256_v31 = vmul.f32 %v7670_v63, %v11820_v55  ;;  %v2321_v37 = vadd.f32 %v2251_v35, %v2250_v41  ;;  %v2257_v7 = vmul.f32 %v11823_v10, %v11822_v17  ;;  %v11834_v10 = vld [vmem:[#allocation271_spill] sm:$0xff] }
 0x26c   : > { %11818 = vst [vmem:[#allocation23_spill] sm:$0xff] %v8658_v16  ;;  %v1738_v53 = vmul.f32 %v1674_v48, %v1674_v48  ;;  %v8666_v49 = vadd.f32 %v1231_v33, %v11821_v54  ;;  %vm1358_vm13 = vcmp.gt.f32.partialorder %v8661_v23, 0.0  ;;  %v8672_v38 = vsub.f32 %v906_v42, %v11472_v20 }
 0x26d   : > { %v4921_v39 = vpop.eup %4920  ;;  %v1739_v24 = vmul.f32 %v1675_v34, %v1675_v34  ;;  %v8675_v45 = vsub.f32 %v906_v42, %v11473_v61  ;;  %v1422_v54 = vsel %vm1358_vm13, %v8661_v23, 1.0  ;;  %2322 = vadd.xlane.f32.xlu0 %v2321_v37  ;;  %vm4065_vm2 = vcmask (!%p4761_p6), 15368  }
 0x26e   : > { %11824 = vst [vmem:[#allocation99_spill] sm:$0xff] %v8672_v38  ;;  %v4923_v2 = vpop.eup %4922  ;;  %v1802_v46 = vmul.f32 %v1738_v53, %v1674_v48  ;;  %v1552_v12 = vmul.f32 %v4921_v39, %v1424_v50  ;;  %vm1359_vm14 = vcmp.gt.f32.partialorder %v8666_v49, 0.0  ;;  %4924 = vrcp.f32 %v1422_v54 }
 0x26f   : > { %11825 = vst [vmem:[#allocation32_spill] sm:$0xff] %v8675_v45  ;;  %v1803_v17 = vmul.f32 %v1739_v24, %v1675_v34  ;;  %v1553_v41 = vmul.f32 %v4923_v2, %v1425_v51  ;;  %v1423_v20 = vsel %vm1359_vm14, %v8666_v49, 1.0  ;;  %v2330_v50 = vadd.f32 %v2257_v7, %v2256_v31  ;;  %v11831_v31 = vld [vmem:[#allocation70_spill] sm:$0xff]  ;;  %v11875_v49 = vld [vmem:[#allocation52_spill] sm:$0xff] }
 0x270   : > { %v8686_v61 = vsel %vm1354_vm9, %v1802_v46, 0.0  ;;  %v1616_v33 = vsub.f32 2.0, %v1552_v12  ;;  %4926 = vrcp.f32 %v1423_v20  ;;  %v1234_v42 = vmul.f32 %v8672_v38, %v8672_v38  ;;  %v11832_v12 = vld [vmem:[#allocation119_spill] sm:$0xff] }
 0x271   : > { %11826 = vst [vmem:[#allocation100_spill] sm:$0xff] %v8686_v61  ;;  %v8690_v35 = vsel %vm1355_vm10, %v1803_v17, 0.0  ;;  %v8694_v24 = vmul.f32 %v8686_v61, %v8686_v61  ;;  %v1617_v51 = vsub.f32 2.0, %v1553_v41  ;;  %2331 = vadd.xlane.f32.xlu1 %v2330_v50  ;;  %v1235_v7 = vmul.f32 %v8675_v45, %v8675_v45  ;;  %v11833_v41 = vld [vmem:[#allocation27_spill] sm:$0xff]  ;;  %v11836_v50 = vld [vmem:[#allocation36_spill] sm:$0xff]  ;;  %v11837_v45 = vld [vmem:[#allocation273_spill] sm:$0xff] }
 0x272   : > { %11827 = vst [vmem:[#allocation33_spill] sm:$0xff] %v8690_v35  ;;  %v8700_v5 = vmul.f32 %v8690_v35, %v8690_v35  ;;  %v1680_v55 = vmul.f32 %v4921_v39, %v1616_v33  ;;  %v2254_v53 = vmul.f32 %v11831_v31, %v11830_v32  ;;  %v8708_v17 = vadd.f32 %v1234_v42, %v11832_v12  ;;  %v11835_v39 = vld [vmem:[#allocation120_spill] sm:$0xff] }
 0x273   : > { %11828 = vst [vmem:[#allocation345_spill] sm:$0xff] %v8694_v24  ;;  %v1994_v37 = vmul.f32 2.0, %v8694_v24  ;;  %v1681_v46 = vmul.f32 %v4923_v2, %v1617_v51  ;;  %v2255_v63 = vmul.f32 %v11834_v10, %v11833_v41  ;;  %v8714_v33 = vadd.f32 %v1235_v7, %v11835_v39 }
 0x274   : > { %11829 = vst [vmem:[#allocation346_spill] sm:$0xff] %v8700_v5  ;;  %v1995_v3 = vmul.f32 2.0, %v8700_v5  ;;  %v1744_v38 = vmul.f32 %v1680_v55, %v1680_v55  ;;  %v2260_v16 = vmul.f32 %v11837_v45, %v11836_v50  ;;  %vm1362_vm15 = vcmp.gt.f32.partialorder %v8708_v17, 0.0  ;;  %v11855_v45 = vld [vmem:[#allocation35_spill] sm:$0xff] }
 0x275   : > { %v2058_v32 = vsub.f32 %v1994_v37, %v8686_v61  ;;  %v1745_v31 = vmul.f32 %v1681_v46, %v1681_v46  ;;  %v2327_v2 = vadd.f32 %v2255_v63, %v2254_v53  ;;  %vm1363_vm0 = vcmp.gt.f32.partialorder %v8714_v33, 0.0 }
 0x276   : > { %v2059_v51 = vsub.f32 %v1995_v3, %v8690_v35  ;;  %v1808_v42 = vmul.f32 %v1744_v38, %v1680_v55  ;;  %v1426_v12 = vsel %vm1362_vm15, %v8708_v17, 1.0  ;;  %v1427_v39 = vsel %vm1363_vm0, %v8714_v33, 1.0  ;;  %v11839_v3 = vld [vmem:[#allocation37_spill] sm:$0xff]  ;;  %v11840_v38 = vld [vmem:[#allocation278_spill] sm:$0xff]  ;;  %v11848_v35 = vld [vmem:[#allocation31_spill] sm:$0xff] }
 0x277   : > { %v2122_v7 = vmul.f32 %v2058_v32, %v1674_v48  ;;  %v1809_v41 = vmul.f32 %v1745_v31, %v1681_v46  ;;  %4928 = vrcp.f32 %v1426_v12  ;;  %2328 = vadd.xlane.f32.xlu0 %v2327_v2  ;;  %v2261_v53 = vmul.f32 %v11840_v38, %v11839_v3  ;;  %v11853_v38 = vld [vmem:[#allocation34_spill] sm:$0xff] }
 0x278   : > { %v2123_v37 = vmul.f32 %v2059_v51, %v1675_v34  ;;  %v8730_v63 = vsel %vm1360_vm11, %v1808_v42, 0.0  ;;  %4930 = vrcp.f32 %v1427_v39  ;;  %v4925_v50 = vpop.eup %4924  ;;  %v11844_v34 = vld [vmem:[#allocation30_spill] sm:$0xff]  ;;  %vm4418_vm3 = vcmask (!%p4761_p6), 23568  }
 0x279   : > { %11838 = vst [vmem:[#allocation26_spill] sm:$0xff] %v8730_v63  ;;  %v8735_v5 = vmul.f32 %v11551_v43, %v2122_v7  ;;  %v8739_v48 = vsel %vm1361_vm12, %v1809_v41, 0.0  ;;  %v8743_v31 = vmul.f32 %v8730_v63, %v8730_v63  ;;  %v2258_v11 = vmul.f32 %v7869_v52, %v11844_v34 }
 0x27a   : > { %11842 = vst [vmem:[#allocation27_spill] sm:$0xff] %v8739_v48  ;;  %v4927_v32 = vpop.eup %4926  ;;  %v8748_v2 = vmul.f32 %v11553_v26, %v2123_v37  ;;  %v8752_v51 = vmul.f32 %v8739_v48, %v8739_v48  ;;  %v1550_v42 = vmul.f32 %v4925_v50, %v1422_v54  ;;  %v2336_v7 = vadd.f32 %v2261_v53, %v2260_v16  ;;  %v11850_v54 = vld [vmem:[#allocation49_spill] sm:$0xff] }
 0x27b   : > { %11841 = vst [vmem:[#allocation119_spill] sm:$0xff] %v8735_v5  ;;  %11843 = vst [vmem:[#allocation120_spill] sm:$0xff] %v8743_v31  ;;  %v8756_v15 = vmul.f32 %v8735_v5, %v8452_v19  ;;  %v2000_v41 = vmul.f32 2.0, %v8743_v31  ;;  %v1551_v3 = vmul.f32 %v4927_v32, %v1423_v20  ;;  %v2259_v34 = vmul.f32 %v7872_v4, %v11848_v35  ;;  %v11851_v31 = vld [vmem:[#allocation50_spill] sm:$0xff] }
 0x27c   : > { %11845 = vst [vmem:[#allocation36_spill] sm:$0xff] %v8748_v2  ;;  %11846 = vst [vmem:[#allocation37_spill] sm:$0xff] %v8752_v51  ;;  %v8763_v37 = vmul.f32 %v8748_v2, %v8465_v13  ;;  %v2001_v24 = vmul.f32 2.0, %v8752_v51  ;;  %v1614_v61 = vsub.f32 2.0, %v1550_v42  ;;  %2337 = vadd.xlane.f32.xlu1 %v2336_v7  ;;  %v2264_v16 = vmul.f32 %v7934_v62, %v11850_v54  ;;  %v11852_v20 = vld [vmem:[#allocation294_spill] sm:$0xff]  ;;  %v11854_v13 = vld [vmem:[#allocation296_spill] sm:$0xff] }
 0x27d   : > { %11847 = vst [vmem:[#allocation30_spill] sm:$0xff] %v8756_v15  ;;  %v2064_v19 = vsub.f32 %v2000_v41, %v8730_v63  ;;  %v1615_v53 = vsub.f32 2.0, %v1551_v3  ;;  %v2333_v15 = vadd.f32 %v2259_v34, %v2258_v11  ;;  %v2265_v52 = vmul.f32 %v11852_v20, %v11851_v31  ;;  %v11856_v51 = vld [vmem:[#allocation297_spill] sm:$0xff]  ;;  %v11858_v41 = vld [vmem:[#allocation298_spill] sm:$0xff]  ;;  %v11860_v20 = vld [vmem:[#allocation304_spill] sm:$0xff] }
 0x27e   : > { %11849 = vst [vmem:[#allocation31_spill] sm:$0xff] %v8763_v37  ;;  %v2065_v35 = vsub.f32 %v2001_v24, %v8739_v48  ;;  %v1678_v4 = vmul.f32 %v4925_v50, %v1614_v61  ;;  %v2262_v37 = vmul.f32 %v11854_v13, %v11853_v38  ;;  %v2263_v42 = vmul.f32 %v11856_v51, %v11855_v45  ;;  %v11857_v62 = vld [vmem:[#allocation53_spill] sm:$0xff]  ;;  %v11859_v31 = vld [vmem:[#allocation54_spill] sm:$0xff]  ;;  %v11862_v45 = vld [vmem:[#allocation47_spill] sm:$0xff] }
 0x27f   : > { %v2128_v7 = vmul.f32 %v2064_v19, %v1680_v55  ;;  %v1679_v10 = vmul.f32 %v4927_v32, %v1615_v53  ;;  %2334 = vadd.xlane.f32.xlu0 %v2333_v15  ;;  %v2342_v54 = vadd.f32 %v2265_v52, %v2264_v16  ;;  %v2268_v3 = vmul.f32 %v11858_v41, %v11857_v62  ;;  %v11863_v55 = vld [vmem:[#allocation72_spill] sm:$0xff] }
 0x280   : > { %v2129_v11 = vmul.f32 %v2065_v35, %v1681_v46  ;;  %v1742_v34 = vmul.f32 %v1678_v4, %v1678_v4  ;;  %v2339_v63 = vadd.f32 %v2263_v42, %v2262_v37  ;;  %v2269_v24 = vmul.f32 %v11860_v20, %v11859_v31  ;;  %v11864_v15 = vld [vmem:[#allocation48_spill] sm:$0xff] }
 0x281   : > { %v4929_v61 = vpop.eup %4928  ;;  %v8781_v50 = vmul.f32 %v11551_v43, %v2128_v7  ;;  %v1743_v38 = vmul.f32 %v1679_v10, %v1679_v10  ;;  %2343 = vadd.xlane.f32.xlu1 %v2342_v54  ;;  %v2266_v32 = vmul.f32 %v11863_v55, %v11862_v45  ;;  %v2267_v52 = vmul.f32 %v8137_v60, %v11864_v15 }
 0x282   : > { %v4931_v16 = vpop.eup %4930  ;;  %v8788_v62 = vmul.f32 %v11553_v26, %v2129_v11  ;;  %v1806_v46 = vmul.f32 %v1742_v34, %v1678_v4  ;;  %v1554_v37 = vmul.f32 %v4929_v61, %v1426_v12  ;;  %v2348_v19 = vadd.f32 %v2269_v24, %v2268_v3  ;;  %v11869_v34 = vld [vmem:[#allocation57_spill] sm:$0xff] }
 0x283   : > { %11861 = vst [vmem:[#allocation49_spill] sm:$0xff] %v8781_v50  ;;  %v8792_v53 = vmul.f32 %v8781_v50, %v8530_v40  ;;  %v1807_v35 = vmul.f32 %v1743_v38, %v1679_v10  ;;  %v1555_v42 = vmul.f32 %v4931_v16, %v1427_v39  ;;  %2340 = vadd.xlane.f32.xlu0 %v2339_v63  ;;  %v11874_v38 = vld [vmem:[#allocation51_spill] sm:$0xff]  ;;  %vm4643_vm4 = vcmask (!%p4761_p6), 31768  }
 0x284   : > { %11865 = vst [vmem:[#allocation50_spill] sm:$0xff] %v8788_v62  ;;  %v2345_v7 = vadd.f32 %v2267_v52, %v2266_v32  ;;  %v8796_v54 = vmul.f32 %v8788_v62, %v8537_v28  ;;  %v8800_v31 = vsel %vm1358_vm13, %v1806_v46, 0.0  ;;  %v1618_v11 = vsub.f32 2.0, %v1554_v37  ;;  %v11872_v28 = vld [vmem:[#allocation58_spill] sm:$0xff]  ;;  %v11876_v37 = vld [vmem:[#allocation61_spill] sm:$0xff] }
 0x285   : > { %11866 = vst [vmem:[#allocation34_spill] sm:$0xff] %v8792_v53  ;;  %11868 = vst [vmem:[#allocation53_spill] sm:$0xff] %v8800_v31  ;;  %v2272_v12 = vmul.f32 %v8150_v9, %v11869_v34  ;;  %v8806_v40 = vsel %vm1359_vm14, %v1807_v35, 0.0  ;;  %v8810_v39 = vmul.f32 %v8800_v31, %v8800_v31  ;;  %v1619_v63 = vsub.f32 2.0, %v1555_v42  ;;  %2349 = vadd.xlane.f32.xlu1 %v2348_v19  ;;  %v11936_v53 = vld [vmem:[#allocation238_spill] sm:$0xff] }
 0x286   : > { %11867 = vst [vmem:[#allocation35_spill] sm:$0xff] %v8796_v54  ;;  %11870 = vst [vmem:[#allocation54_spill] sm:$0xff] %v8806_v40  ;;  %v2273_v3 = vmul.f32 %v8192_v14, %v11872_v28  ;;  %v8816_v23 = vmul.f32 %v8806_v40, %v8806_v40  ;;  %v1682_v24 = vmul.f32 %v4929_v61, %v1618_v11  ;;  %v11877_v28 = vld [vmem:[#allocation63_spill] sm:$0xff]  ;;  %v11907_v54 = vld [vmem:[#allocation84_spill] sm:$0xff] }
 0x287   : > { %11871 = vst [vmem:[#allocation47_spill] sm:$0xff] %v8810_v39  ;;  %v2270_v45 = vmul.f32 %v8198_v0, %v11874_v38  ;;  %v2271_v32 = vmul.f32 %v8223_v56, %v11875_v49  ;;  %v1998_v15 = vmul.f32 2.0, %v8810_v39  ;;  %v1683_v52 = vmul.f32 %v4931_v16, %v1619_v63  ;;  %2346 = vadd.xlane.f32.xlu0 %v2345_v7  ;;  %v11878_v49 = vld [vmem:[#allocation55_spill] sm:$0xff]  ;;  %v11879_v16 = vld [vmem:[#allocation56_spill] sm:$0xff] }
 0x288   : > { %11873 = vst [vmem:[#allocation48_spill] sm:$0xff] %v8816_v23  ;;  %v2354_v46 = vadd.f32 %v2273_v3, %v2272_v12  ;;  %v2276_v19 = vmul.f32 %v8238_v47, %v11876_v37  ;;  %v1999_v35 = vmul.f32 2.0, %v8816_v23  ;;  %v1746_v42 = vmul.f32 %v1682_v24, %v1682_v24  ;;  %v11880_v37 = vld [vmem:[#allocation77_spill] sm:$0xff] }
 0x289   : > { %v2351_v34 = vadd.f32 %v2271_v32, %v2270_v45  ;;  %v2277_v61 = vmul.f32 %v8241_v36, %v11877_v28  ;;  %v2062_v11 = vsub.f32 %v1998_v15, %v8800_v31  ;;  %v1747_v38 = vmul.f32 %v1683_v52, %v1683_v52  ;;  %v11881_v15 = vld [vmem:[#allocation78_spill] sm:$0xff] }
 0x28a   : > { %2355 = vadd.xlane.f32.xlu1 %v2354_v46  ;;  %v2274_v39 = vmul.f32 %v8284_v6, %v11878_v49  ;;  %v2275_v7 = vmul.f32 %v8477_v58, %v11879_v16  ;;  %v2063_v12 = vsub.f32 %v1999_v35, %v8806_v40  ;;  %v1810_v63 = vmul.f32 %v1746_v42, %v1682_v24  ;;  %v11883_v16 = vld [vmem:[#allocation59_spill] sm:$0xff]  ;;  %v11884_v42 = vld [vmem:[#allocation60_spill] sm:$0xff] }
 0x28b   : > { %v2360_v3 = vadd.f32 %v2277_v61, %v2276_v19  ;;  %v2280_v45 = vmul.f32 %v8481_v8, %v11880_v37  ;;  %v2126_v32 = vmul.f32 %v2062_v11, %v1678_v4  ;;  %v1811_v23 = vmul.f32 %v1747_v38, %v1683_v52  ;;  %2352 = vadd.xlane.f32.xlu0 %v2351_v34  ;;  %v11890_v38 = vld [vmem:[#allocation81_spill] sm:$0xff] }
 0x28c   : > { %v2357_v28 = vadd.f32 %v2275_v7, %v2274_v39  ;;  %v2281_v46 = vmul.f32 %v8489_v21, %v11881_v15  ;;  %v2127_v31 = vmul.f32 %v2063_v12, %v1679_v10  ;;  %v8840_v49 = vsel %vm1362_vm15, %v1810_v63, 0.0  ;;  %v11891_v7 = vld [vmem:[#allocation334_spill] sm:$0xff] }
 0x28d   : > { %11882 = vst [vmem:[#allocation57_spill] sm:$0xff] %v8840_v49  ;;  %v2278_v35 = vmul.f32 %v8496_v44, %v11883_v16  ;;  %v2279_v19 = vmul.f32 %v8500_v30, %v11884_v42  ;;  %v8847_v61 = vmul.f32 %v11551_v43, %v2126_v32  ;;  %v8851_v4 = vsel %vm1363_vm0, %v1811_v23, 0.0  ;;  %v11893_v63 = vld [vmem:[#allocation82_spill] sm:$0xff]  ;;  %v11898_v16 = vld [vmem:[#allocation76_spill] sm:$0xff] }
 0x28e   : > { %11886 = vst [vmem:[#allocation51_spill] sm:$0xff] %v8851_v4  ;;  %v8855_v10 = vmul.f32 %v8840_v49, %v8840_v49  ;;  %2361 = vadd.xlane.f32.xlu1 %v2360_v3  ;;  %v2366_v17 = vadd.f32 %v2281_v46, %v2280_v45  ;;  %v8858_v39 = vmul.f32 %v11553_v26, %v2127_v31  ;;  %v11894_v3 = vld [vmem:[#allocation95_spill] sm:$0xff]  ;;  %v11896_v45 = vld [vmem:[#allocation338_spill] sm:$0xff] }
 0x28f   : > { %11885 = vst [vmem:[#allocation58_spill] sm:$0xff] %v8847_v61  ;;  %v8862_v34 = vmul.f32 %v8851_v4, %v8851_v4  ;;  %v2363_v11 = vadd.f32 %v2279_v19, %v2278_v35  ;;  %v2284_v12 = vmul.f32 %v11891_v7, %v11890_v38  ;;  %v8868_v33 = vmul.f32 %v8847_v61, %v8629_v59  ;;  %v11895_v31 = vld [vmem:[#allocation75_spill] sm:$0xff]  ;;  %v11899_v59 = vld [vmem:[#allocation85_spill] sm:$0xff]  ;;  %v11900_v38 = vld [vmem:[#allocation86_spill] sm:$0xff] }
 0x290   : > { %11887 = vst [vmem:[#allocation52_spill] sm:$0xff] %v8855_v10  ;;  %11888 = vst [vmem:[#allocation61_spill] sm:$0xff] %v8858_v39  ;;  %v2002_v23 = vmul.f32 2.0, %v8855_v10  ;;  %2358 = vadd.xlane.f32.xlu0 %v2357_v28  ;;  %v2285_v37 = vmul.f32 %v11894_v3, %v11893_v63  ;;  %v2282_v32 = vmul.f32 %v11896_v45, %v11895_v31  ;;  %v11901_v31 = vld [vmem:[#allocation79_spill] sm:$0xff] }
 0x291   : > { %11889 = vst [vmem:[#allocation63_spill] sm:$0xff] %v8862_v34  ;;  %11892 = vst [vmem:[#allocation55_spill] sm:$0xff] %v8868_v33  ;;  %v8877_v15 = vmul.f32 %v8858_v39, %v8641_v22  ;;  %v2003_v46 = vmul.f32 2.0, %v8862_v34  ;;  %v2283_v35 = vmul.f32 %v8626_v25, %v11898_v16  ;;  %v2288_v42 = vmul.f32 %v8632_v27, %v11899_v59  ;;  %v11902_v34 = vld [vmem:[#allocation80_spill] sm:$0xff]  ;;  %v11903_v16 = vld [vmem:[#allocation89_spill] sm:$0xff] }
 0x292   : > { %v2066_v28 = vsub.f32 %v2002_v23, %v8840_v49  ;;  %2367 = vadd.xlane.f32.xlu1 %v2366_v17  ;;  %v2372_v19 = vadd.f32 %v2285_v37, %v2284_v12  ;;  %v2289_v63 = vmul.f32 %v8635_v18, %v11900_v38  ;;  %v2286_v10 = vmul.f32 %v8638_v1, %v11901_v31  ;;  %v11904_v17 = vld [vmem:[#allocation91_spill] sm:$0xff] }
 0x293   : > { %11897 = vst [vmem:[#allocation56_spill] sm:$0xff] %v8877_v15  ;;  %v2067_v22 = vsub.f32 %v2003_v46, %v8851_v4  ;;  %v2369_v40 = vadd.f32 %v2283_v35, %v2282_v32  ;;  %v2287_v48 = vmul.f32 %v8644_v29, %v11902_v34  ;;  %v2292_v15 = vmul.f32 %v8651_v57, %v11903_v16  ;;  %v11905_v12 = vld [vmem:[#allocation23_spill] sm:$0xff]  ;;  %v11908_v46 = vld [vmem:[#allocation114_spill] sm:$0xff] }
 0x294   : > { %v2130_v59 = vmul.f32 %v2066_v28, %v1682_v24  ;;  %2364 = vadd.xlane.f32.xlu0 %v2363_v11  ;;  %v2378_v23 = vadd.f32 %v2289_v63, %v2288_v42  ;;  %v2293_v37 = vmul.f32 %v11905_v12, %v11904_v17  ;;  %v11906_v49 = vld [vmem:[#allocation83_spill] sm:$0xff]  ;;  %v2291_v32 = vmul.f32 %v8748_v2, %v11907_v54  ;;  %v11910_v11 = vld [vmem:[#allocation118_spill] sm:$0xff]  ;;  %v11974_v2 = vld [vmem:[#allocation229_spill] sm:$0xff] }
 0x295   : > { %v2290_v38 = vmul.f32 %v8735_v5, %v11906_v49  ;;  %v2131_v33 = vmul.f32 %v2067_v22, %v1683_v52  ;;  %v2375_v31 = vadd.f32 %v2287_v48, %v2286_v10  ;;  %v2296_v34 = vmul.f32 %v8781_v50, %v11908_v46  ;;  %v11911_v28 = vld [vmem:[#allocation87_spill] sm:$0xff]  ;;  %v11912_v49 = vld [vmem:[#allocation166_spill] sm:$0xff]  ;;  %v11913_v52 = vld [vmem:[#allocation224_spill] sm:$0xff] }
 0x296   : > { %v8903_v35 = vmul.f32 %v11551_v43, %v2130_v59  ;;  %2373 = vadd.xlane.f32.xlu1 %v2372_v19  ;;  %v2384_v24 = vadd.f32 %v2293_v37, %v2292_v15  ;;  %v2297_v42 = vmul.f32 %v8788_v62, %v11910_v11  ;;  %v2294_v63 = vmul.f32 %v8847_v61, %v11911_v28  ;;  %v11916_v22 = vld [vmem:[#allocation88_spill] sm:$0xff]  ;;  %v11917_v59 = vld [vmem:[#allocation167_spill] sm:$0xff]  ;;  %v11918_v19 = vld [vmem:[#allocation165_spill] sm:$0xff] }
 0x297   : > { %v8911_v48 = vmul.f32 %v11913_v52, %v11912_v49  ;;  %v8914_v54 = vmul.f32 %v11553_v26, %v2131_v33  ;;  %v2381_v10 = vadd.f32 %v2291_v32, %v2290_v38  ;;  %v2295_v16 = vmul.f32 %v8858_v39, %v11916_v22  ;;  %v11920_v17 = vld [vmem:[#allocation99_spill] sm:$0xff]  ;;  %v11922_v11 = vld [vmem:[#allocation106_spill] sm:$0xff]  ;;  %v11923_v49 = vld [vmem:[#allocation168_spill] sm:$0xff] }
 0x298   : > { %11909 = vst [vmem:[#allocation77_spill] sm:$0xff] %v8903_v35  ;;  %v8920_v15 = vmul.f32 %v11918_v19, %v11917_v59  ;;  %v8924_v37 = vmul.f32 %v8903_v35, %v11920_v17  ;;  %2370 = vadd.xlane.f32.xlu0 %v2369_v40  ;;  %v2390_v46 = vadd.f32 %v2297_v42, %v2296_v34  ;;  %v11924_v33 = vld [vmem:[#allocation45_spill] sm:$0xff]  ;;  %v11926_v38 = vld [vmem:[#allocation32_spill] sm:$0xff]  ;;  %v11928_v59 = vld [vmem:[#allocation107_spill] sm:$0xff] }
 0x299   : > { %11914 = vst [vmem:[#allocation78_spill] sm:$0xff] %v8911_v48  ;;  %11915 = vst [vmem:[#allocation59_spill] sm:$0xff] %v8914_v54  ;;  %v2298_v28 = vmul.f32 %v8903_v35, %v11922_v11  ;;  %v8930_v4 = vmul.f32 %v11924_v33, %v11923_v49  ;;  %v8934_v32 = vmul.f32 %v8914_v54, %v11926_v38  ;;  %v11929_v43 = vld [vmem:[#allocation174_spill] sm:$0xff]  ;;  %v11930_v17 = vld [vmem:[#allocation231_spill] sm:$0xff] }
 0x29a   : > { %11919 = vst [vmem:[#allocation60_spill] sm:$0xff] %v8920_v15  ;;  %11921 = vst [vmem:[#allocation81_spill] sm:$0xff] %v8924_v37  ;;  %v2387_v22 = vadd.f32 %v2295_v16, %v2294_v63  ;;  %v2299_v26 = vmul.f32 %v8914_v54, %v11928_v59  ;;  %v8940_v37 = vmul.f32 %v11930_v17, %v11929_v43  ;;  %v11932_v40 = vld [vmem:[#allocation179_spill] sm:$0xff]  ;;  %v11933_v34 = vld [vmem:[#allocation237_spill] sm:$0xff]  ;;  %2379 = vadd.xlane.f32.xlu1 %v2378_v23 }
 0x29b   : > { %11925 = vst [vmem:[#allocation82_spill] sm:$0xff] %v8930_v4  ;;  %11927 = vst [vmem:[#allocation75_spill] sm:$0xff] %v8934_v32  ;;  %v8944_v42 = vmul.f32 %v11933_v34, %v11932_v40  ;;  %v11935_v11 = vld [vmem:[#allocation182_spill] sm:$0xff]  ;;  %v11938_v4 = vld [vmem:[#allocation183_spill] sm:$0xff] }
 0x29c   : > { %11931 = vst [vmem:[#allocation76_spill] sm:$0xff] %v8940_v37  ;;  %v8948_v49 = vmul.f32 %v11936_v53, %v11935_v11  ;;  %v11939_v15 = vld [vmem:[#allocation239_spill] sm:$0xff]  ;;  %v11941_v63 = vld [vmem:[#allocation188_spill] sm:$0xff]  ;;  %v11942_v16 = vld [vmem:[#allocation249_spill] sm:$0xff]  ;;  %v2393_v54 = vadd.f32 %v2299_v26, %v2298_v28  ;;  %2376 = vadd.xlane.f32.xlu0 %v2375_v31 }
 0x29d   : > { %11934 = vst [vmem:[#allocation85_spill] sm:$0xff] %v8944_v42  ;;  %v8952_v38 = vmul.f32 %v11939_v15, %v11938_v4  ;;  %v8956_v59 = vmul.f32 %v11942_v16, %v11941_v63  ;;  %v11944_v32 = vld [vmem:[#allocation189_spill] sm:$0xff]  ;;  %v11945_v43 = vld [vmem:[#allocation250_spill] sm:$0xff]  ;;  %v11950_v11 = vld [vmem:[#allocation203_spill] sm:$0xff] }
 0x29e   : > { %11937 = vst [vmem:[#allocation86_spill] sm:$0xff] %v8948_v49  ;;  %v8960_v37 = vmul.f32 %v11945_v43, %v11944_v32  ;;  %v11947_v48 = vld [vmem:[#allocation202_spill] sm:$0xff]  ;;  %v11951_v49 = vld [vmem:[#allocation259_spill] sm:$0xff]  ;;  %v11953_v4 = vld [vmem:[#allocation205_spill] sm:$0xff]  ;;  %2385 = vadd.xlane.f32.xlu1 %v2384_v24 }
 0x29f   : > { %11940 = vst [vmem:[#allocation79_spill] sm:$0xff] %v8952_v38  ;;  %11943 = vst [vmem:[#allocation80_spill] sm:$0xff] %v8956_v59  ;;  %v11948_v40 = vld [vmem:[#allocation258_spill] sm:$0xff]  ;;  %v8968_v35 = vmul.f32 %v11951_v49, %v11950_v11  ;;  %v11957_v63 = vld [vmem:[#allocation260_spill] sm:$0xff] }
 0x2a0   : > { %11946 = vst [vmem:[#allocation89_spill] sm:$0xff] %v8960_v37  ;;  %v8964_v42 = vmul.f32 %v11948_v40, %v11947_v48  ;;  %v11954_v38 = vld [vmem:[#allocation158_spill] sm:$0xff]  ;;  %v11959_v61 = vld [vmem:[#allocation216_spill] sm:$0xff]  ;;  %v11965_v28 = vld [vmem:[#allocation219_spill] sm:$0xff]  ;;  %2382 = vadd.xlane.f32.xlu0 %v2381_v10 }
 0x2a1   : > { %11952 = vst [vmem:[#allocation23_spill] sm:$0xff] %v8968_v35  ;;  %v8972_v23 = vmul.f32 %v11954_v38, %v11953_v4  ;;  %v11956_v39 = vld [vmem:[#allocation206_spill] sm:$0xff]  ;;  %v11968_v62 = vld [vmem:[#allocation220_spill] sm:$0xff]  ;;  %v11969_v4 = vld [vmem:[#allocation271_spill] sm:$0xff] }
 0x2a2   : > { %11949 = vst [vmem:[#allocation91_spill] sm:$0xff] %v8964_v42  ;;  %v8976_v59 = vmul.f32 %v11957_v63, %v11956_v39  ;;  %v11960_v32 = vld [vmem:[#allocation266_spill] sm:$0xff]  ;;  %v11963_v42 = vld [vmem:[#allocation69_spill] sm:$0xff]  ;;  %v11971_v50 = vld [vmem:[#allocation228_spill] sm:$0xff]  ;;  %2391 = vadd.xlane.f32.xlu1 %v2390_v46 }
 0x2a3   : > { %11955 = vst [vmem:[#allocation83_spill] sm:$0xff] %v8972_v23  ;;  %v8980_v37 = vmul.f32 %v11960_v32, %v11959_v61  ;;  %v11962_v48 = vld [vmem:[#allocation218_spill] sm:$0xff]  ;;  %v8992_v23 = vmul.f32 %v11969_v4, %v11968_v62  ;;  %v11972_v39 = vld [vmem:[#allocation273_spill] sm:$0xff]  ;;  %v11991_v24 = vld [vmem:[#allocation263_spill] sm:$0xff] }
 0x2a4   : > { %11958 = vst [vmem:[#allocation84_spill] sm:$0xff] %v8976_v59  ;;  %v8984_v26 = vmul.f32 %v11963_v42, %v11962_v48  ;;  %v11966_v11 = vld [vmem:[#allocation70_spill] sm:$0xff]  ;;  %v8996_v59 = vmul.f32 %v11972_v39, %v11971_v50  ;;  %v11977_v31 = vld [vmem:[#allocation233_spill] sm:$0xff]  ;;  %v11985_v39 = vld [vmem:[#allocation155_spill] sm:$0xff]  ;;  %2388 = vadd.xlane.f32.xlu0 %v2387_v22 }
 0x2a5   : > { %11961 = vst [vmem:[#allocation114_spill] sm:$0xff] %v8980_v37  ;;  %v8988_v35 = vmul.f32 %v11966_v11, %v11965_v28  ;;  %11970 = vst [vmem:[#allocation166_spill] sm:$0xff] %v8992_v23  ;;  %v11975_v61 = vld [vmem:[#allocation278_spill] sm:$0xff]  ;;  %v11978_v5 = vld [vmem:[#allocation285_spill] sm:$0xff] }
 0x2a6   : > { %11964 = vst [vmem:[#allocation118_spill] sm:$0xff] %v8984_v26  ;;  %11973 = vst [vmem:[#allocation224_spill] sm:$0xff] %v8996_v59  ;;  %v9000_v37 = vmul.f32 %v11975_v61, %v11974_v2  ;;  %v9004_v48 = vmul.f32 %v11978_v5, %v11977_v31  ;;  %v11979_v26 = vld [vmem:[#allocation235_spill] sm:$0xff]  ;;  %v11980_v42 = vld [vmem:[#allocation286_spill] sm:$0xff]  ;;  %v9020_v2 = vmul.f32 %v11854_v13, %v11985_v39 }
 0x2a7   : > { %11967 = vst [vmem:[#allocation87_spill] sm:$0xff] %v8988_v35  ;;  %v9008_v28 = vmul.f32 %v11980_v42, %v11979_v26  ;;  %v11981_v35 = vld [vmem:[#allocation246_spill] sm:$0xff]  ;;  %v11982_v11 = vld [vmem:[#allocation293_spill] sm:$0xff]  ;;  %v11983_v23 = vld [vmem:[#allocation247_spill] sm:$0xff] }
 0x2a8   : > { %11976 = vst [vmem:[#allocation88_spill] sm:$0xff] %v9000_v37  ;;  %v9012_v62 = vmul.f32 %v11982_v11, %v11981_v35  ;;  %v11984_v50 = vld [vmem:[#allocation294_spill] sm:$0xff]  ;;  %11986 = vst [vmem:[#allocation167_spill] sm:$0xff] %v9020_v2  ;;  %v11987_v37 = vld [vmem:[#allocation248_spill] sm:$0xff]  ;;  %2394 = vadd.xlane.f32.xlu0 %v2393_v54 }
 0x2a9   : > { %v9016_v59 = vmul.f32 %v11984_v50, %v11983_v23  ;;  %v9024_v31 = vmul.f32 %v11856_v51, %v11987_v37  ;;  %v11989_v5 = vld [vmem:[#allocation46_spill] sm:$0xff]  ;;  %v11990_v42 = vld [vmem:[#allocation43_spill] sm:$0xff]  ;;  %v9036_v23 = vmul.f32 %v11863_v55, %v11991_v24  ;;  %v11992_v50 = vld [vmem:[#allocation105_spill] sm:$0xff] }
 0x2aa   : > { %v9028_v26 = vmul.f32 %v11858_v41, %v11989_v5  ;;  %v9032_v35 = vmul.f32 %v11860_v20, %v11990_v42  ;;  %v11993_v39 = vld [vmem:[#allocation207_spill] sm:$0xff]  ;;  %v11994_v11 = vld [vmem:[#allocation108_spill] sm:$0xff]  ;;  %v11996_v51 = vld [vmem:[#allocation265_spill] sm:$0xff] }
 0x2ab   : > { %11988 = vst [vmem:[#allocation165_spill] sm:$0xff] %v9024_v31  ;;  %v2493_v13 = vmul.f32 %v11993_v39, %v11992_v50  ;;  %v11995_v2 = vld [vmem:[#allocation208_spill] sm:$0xff]  ;;  %v9044_v31 = vmul.f32 %v8137_v60, %v11996_v51  ;;  %v11997_v5 = vld [vmem:[#allocation157_spill] sm:$0xff]  ;;  %v11998_v42 = vld [vmem:[#allocation62_spill] sm:$0xff] }
 0x2ac   : > { %v2494_v37 = vmul.f32 %v11995_v2, %v11994_v11  ;;  %v9048_v41 = vmul.f32 %v8150_v9, %v11997_v5  ;;  %v9052_v20 = vmul.f32 %v8192_v14, %v11998_v42  ;;  %v11999_v24 = vld [vmem:[#allocation276_spill] sm:$0xff]  ;;  %v12000_v50 = vld [vmem:[#allocation277_spill] sm:$0xff]  ;;  %v12001_v11 = vld [vmem:[#allocation282_spill] sm:$0xff] }
 0x2ad   : > { %v9056_v10 = vmul.f32 %v8198_v0, %v11999_v24  ;;  %v9060_v39 = vmul.f32 %v8223_v56, %v12000_v50  ;;  %v9064_v51 = vmul.f32 %v8238_v47, %v12001_v11  ;;  %v12002_v2 = vld [vmem:[#allocation284_spill] sm:$0xff]  ;;  %v12003_v9 = vld [vmem:[#allocation73_spill] sm:$0xff]  ;;  %v12004_v14 = vld [vmem:[#allocation290_spill] sm:$0xff] }
 0x2ae   : > { %v9068_v5 = vmul.f32 %v8241_v36, %v12002_v2  ;;  %v9072_v42 = vmul.f32 %v8284_v6, %v12003_v9  ;;  %v9076_v24 = vmul.f32 %v8477_v58, %v12004_v14  ;;  %v12005_v0 = vld [vmem:[#allocation67_spill] sm:$0xff]  ;;  %v12006_v56 = vld [vmem:[#allocation109_spill] sm:$0xff]  ;;  %v12008_v60 = vld [vmem:[#allocation110_spill] sm:$0xff] }
 0x2af   : > { %v9080_v50 = vmul.f32 %v8481_v8, %v12005_v0  ;;  %v12007_v11 = vld [vmem:[#allocation41_spill] sm:$0xff]  ;;  %v2498_v2 = vmul.f32 %v11913_v52, %v12008_v60  ;;  %v12009_v36 = vld [vmem:[#allocation68_spill] sm:$0xff]  ;;  %v12010_v9 = vld [vmem:[#allocation171_spill] sm:$0xff]  ;;  %v2557_v0 = vadd.f32 %v2494_v37, %v2493_v13 }
 0x2b0   : > { %v2497_v47 = vmul.f32 %v12007_v11, %v12006_v56  ;;  %v9088_v55 = vmul.f32 %v8489_v21, %v12009_v36  ;;  %v9092_v46 = vmul.f32 %v8496_v44, %v12010_v9  ;;  %v12011_v14 = vld [vmem:[#allocation301_spill] sm:$0xff]  ;;  %v12013_v11 = vld [vmem:[#allocation311_spill] sm:$0xff]  ;;  %v12015_v36 = vld [vmem:[#allocation12_spill] sm:$0xff] }
 0x2b1   : > { %v9096_v58 = vmul.f32 %v8500_v30, %v12011_v14  ;;  %v12012_v8 = vld [vmem:[#allocation309_spill] sm:$0xff]  ;;  %v9104_v60 = vmul.f32 %v11894_v3, %v12013_v11  ;;  %v9108_v52 = vmul.f32 %v11896_v45, %v12015_v36  ;;  %v12016_v9 = vld [vmem:[#allocation103_spill] sm:$0xff]  ;;  %v12017_v44 = vld [vmem:[#allocation212_spill] sm:$0xff]  ;;  %2558 = vadd.xlane.f32.xlu1 %v2557_v0 }
 0x2b2   : > { %v9100_v56 = vmul.f32 %v11891_v7, %v12012_v8  ;;  %v2495_v21 = vmul.f32 %v12017_v44, %v12016_v9  ;;  %v12018_v14 = vld [vmem:[#allocation104_spill] sm:$0xff]  ;;  %v12019_v30 = vld [vmem:[#allocation214_spill] sm:$0xff]  ;;  %v12020_v13 = vld [vmem:[#allocation113_spill] sm:$0xff]  ;;  %v2563_v3 = vadd.f32 %v2498_v2, %v2497_v47 }
 0x2b3   : > { %12014 = vst [vmem:[#allocation99_spill] sm:$0xff] %v9104_v60  ;;  %v2496_v22 = vmul.f32 %v12019_v30, %v12018_v14  ;;  %v2501_v37 = vmul.f32 %v11918_v19, %v12020_v13  ;;  %v12021_v8 = vld [vmem:[#allocation115_spill] sm:$0xff]  ;;  %v12023_v60 = vld [vmem:[#allocation112_spill] sm:$0xff]  ;;  %v12024_v45 = vld [vmem:[#allocation121_spill] sm:$0xff] }
 0x2b4   : > { %v2502_v7 = vmul.f32 %v11924_v33, %v12021_v8  ;;  %v12022_v6 = vld [vmem:[#allocation111_spill] sm:$0xff]  ;;  %v2500_v36 = vmul.f32 %v11933_v34, %v12023_v60  ;;  %v2505_v44 = vmul.f32 %v11936_v53, %v12024_v45  ;;  %v12025_v0 = vld [vmem:[#allocation122_spill] sm:$0xff]  ;;  %v12026_v30 = vld [vmem:[#allocation116_spill] sm:$0xff] }
 0x2b5   : > { %v2499_v11 = vmul.f32 %v11930_v17, %v12022_v6  ;;  %v2506_v9 = vmul.f32 %v11939_v15, %v12025_v0  ;;  %v2503_v19 = vmul.f32 %v11942_v16, %v12026_v30  ;;  %v12027_v14 = vld [vmem:[#allocation117_spill] sm:$0xff]  ;;  %v12028_v13 = vld [vmem:[#allocation126_spill] sm:$0xff]  ;;  %v12029_v47 = vld [vmem:[#allocation127_spill] sm:$0xff]  ;;  %2564 = vadd.xlane.f32.xlu1 %v2563_v3 }
 0x2b6   : > { %v2504_v33 = vmul.f32 %v11945_v43, %v12027_v14  ;;  %v2509_v6 = vmul.f32 %v11948_v40, %v12028_v13  ;;  %v2510_v17 = vmul.f32 %v11951_v49, %v12029_v47  ;;  %v12030_v34 = vld [vmem:[#allocation13_spill] sm:$0xff]  ;;  %v12032_v54 = vld [vmem:[#allocation90_spill] sm:$0xff]  ;;  %v12033_v16 = vld [vmem:[#allocation16_spill] sm:$0xff]  ;;  %v2560_v49 = vadd.f32 %v2496_v22, %v2495_v21 }
 0x2b7   : > { %v9136_v2 = vmul.f32 %v8626_v25, %v12030_v34  ;;  %v12031_v53 = vld [vmem:[#allocation321_spill] sm:$0xff]  ;;  %v9144_v15 = vmul.f32 %v8635_v18, %v12032_v54  ;;  %v9148_v43 = vmul.f32 %v8638_v1, %v12033_v16  ;;  %v12035_v8 = vld [vmem:[#allocation124_spill] sm:$0xff]  ;;  %v12037_v13 = vld [vmem:[#allocation331_spill] sm:$0xff]  ;;  %v2569_v54 = vadd.f32 %v2502_v7, %v2501_v37 }
 0x2b8   : > { %v9140_v45 = vmul.f32 %v8632_v27, %v12031_v53  ;;  %v12034_v40 = vld [vmem:[#allocation17_spill] sm:$0xff]  ;;  %v2507_v0 = vmul.f32 %v11954_v38, %v12035_v8  ;;  %v2805_v47 = vmul.f32 %v8651_v57, %v12037_v13  ;;  %v12038_v34 = vld [vmem:[#allocation332_spill] sm:$0xff]  ;;  %v2566_v16 = vadd.f32 %v2500_v36, %v2499_v11  ;;  %2561 = vadd.xlane.f32.xlu0 %v2560_v49  ;;  %v12039_v3 = vld [vmem:[#allocation130_spill] sm:$0xff] }
 0x2b9   : > { %v9152_v60 = vmul.f32 %v8644_v29, %v12034_v40  ;;  %v12036_v30 = vld [vmem:[#allocation125_spill] sm:$0xff]  ;;  %v2806_v53 = vmul.f32 %v11905_v12, %v12038_v34  ;;  %v2575_v1 = vadd.f32 %v2506_v9, %v2505_v44  ;;  %v2572_v40 = vadd.f32 %v2504_v33, %v2503_v19  ;;  %v12040_v22 = vld [vmem:[#allocation131_spill] sm:$0xff]  ;;  %v12042_v18 = vld [vmem:[#allocation128_spill] sm:$0xff]  ;;  %2570 = vadd.xlane.f32.xlu1 %v2569_v54 }
 0x2ba   : > { %v2508_v14 = vmul.f32 %v11957_v63, %v12036_v30  ;;  %v2581_v29 = vadd.f32 %v2510_v17, %v2509_v6  ;;  %v2513_v21 = vmul.f32 %v11960_v32, %v12039_v3  ;;  %v12041_v38 = vld [vmem:[#allocation69_spill] sm:$0xff]  ;;  %v12043_v63 = vld [vmem:[#allocation70_spill] sm:$0xff]  ;;  %v12046_v34 = vld [vmem:[#allocation119_spill] sm:$0xff] }
 0x2bb   : > { %v2514_v8 = vmul.f32 %v12041_v38, %v12040_v22  ;;  %v2511_v30 = vmul.f32 %v12043_v63, %v12042_v18  ;;  %v12044_v27 = vld [vmem:[#allocation129_spill] sm:$0xff]  ;;  %v12047_v11 = vld [vmem:[#allocation134_spill] sm:$0xff]  ;;  %v12050_v19 = vld [vmem:[#allocation36_spill] sm:$0xff] }
 0x2bc   : > { %v2512_v13 = vmul.f32 %v11969_v4, %v12044_v27  ;;  %v12045_v57 = vld [vmem:[#allocation173_spill] sm:$0xff]  ;;  %v2578_v37 = vadd.f32 %v2508_v14, %v2507_v0  ;;  %v12051_v33 = vld [vmem:[#allocation102_spill] sm:$0xff]  ;;  %v12053_v49 = vld [vmem:[#allocation135_spill] sm:$0xff]  ;;  %2567 = vadd.xlane.f32.xlu0 %v2566_v16 }
 0x2bd   : > { %v2547_v7 = vmul.f32 %v12046_v34, %v12045_v57  ;;  %v12048_v36 = vld [vmem:[#allocation273_spill] sm:$0xff]  ;;  %v2518_v18 = vmul.f32 %v11975_v61, %v12053_v49  ;;  %v12055_v22 = vld [vmem:[#allocation50_spill] sm:$0xff]  ;;  %v12056_v4 = vld [vmem:[#allocation184_spill] sm:$0xff]  ;;  %2576 = vadd.xlane.f32.xlu1 %v2575_v1 }
 0x2be   : > { %v2517_v44 = vmul.f32 %v12048_v36, %v12047_v11  ;;  %v12049_v9 = vld [vmem:[#allocation177_spill] sm:$0xff]  ;;  %v12057_v38 = vld [vmem:[#allocation58_spill] sm:$0xff]  ;;  %v12064_v61 = vld [vmem:[#allocation191_spill] sm:$0xff] }
 0x2bf   : > { %v2548_v32 = vmul.f32 %v12050_v19, %v12049_v9  ;;  %v12052_v6 = vld [vmem:[#allocation49_spill] sm:$0xff]  ;;  %v2551_v57 = vmul.f32 %v12057_v38, %v12056_v4  ;;  %v12060_v34 = vld [vmem:[#allocation210_spill] sm:$0xff]  ;;  %v12062_v9 = vld [vmem:[#allocation187_spill] sm:$0xff] }
 0x2c0   : > { %v2553_v17 = vmul.f32 %v12052_v6, %v12051_v33  ;;  %v12054_v3 = vld [vmem:[#allocation185_spill] sm:$0xff]  ;;  %v12061_v11 = vld [vmem:[#allocation138_spill] sm:$0xff]  ;;  %v12065_v6 = vld [vmem:[#allocation59_spill] sm:$0xff]  ;;  %2573 = vadd.xlane.f32.xlu0 %v2572_v40 }
 0x2c1   : > { %v2554_v27 = vmul.f32 %v12055_v22, %v12054_v3  ;;  %v12058_v54 = vld [vmem:[#allocation97_spill] sm:$0xff]  ;;  %v9186_v63 = vadd.f32 %v2548_v32, %v2547_v7  ;;  %v9190_v36 = vadd.f32 %v12061_v11, %v12060_v34  ;;  %v2556_v49 = vmul.f32 %v12065_v6, %v12064_v61  ;;  %v12066_v4 = vld [vmem:[#allocation40_spill] sm:$0xff]  ;;  %v12067_v38 = vld [vmem:[#allocation78_spill] sm:$0xff]  ;;  %2582 = vadd.xlane.f32.xlu1 %v2581_v29 }
 0x2c2   : > { %v12059_v0 = vld [vmem:[#allocation61_spill] sm:$0xff]  ;;  %v12069_v7 = vld [vmem:[#allocation18_spill] sm:$0xff]  ;;  %v12070_v34 = vld [vmem:[#allocation60_spill] sm:$0xff]  ;;  %v2587_v6 = vadd.f32 %v2514_v8, %v2513_v21  ;;  %v9288_v29 = vadd.f32 %v9096_v58, %v9092_v46 }
 0x2c3   : > { %v2552_v14 = vmul.f32 %v12059_v0, %v12058_v54  ;;  %v12063_v19 = vld [vmem:[#allocation77_spill] sm:$0xff]  ;;  %v9196_v3 = vadd.f32 %v2554_v27, %v2553_v17  ;;  %v9202_v54 = vadd.f32 %v12067_v38, %v12066_v4  ;;  %v12071_v11 = vld [vmem:[#allocation82_spill] sm:$0xff]  ;;  %v12077_v4 = vld [vmem:[#allocation80_spill] sm:$0xff] }
 0x2c4   : > { %v2555_v33 = vmul.f32 %v12063_v19, %v12062_v9  ;;  %v12068_v16 = vld [vmem:[#allocation221_spill] sm:$0xff]  ;;  %v9212_v9 = vadd.f32 %v12071_v11, %v12070_v34  ;;  %v12072_v19 = vld [vmem:[#allocation76_spill] sm:$0xff]  ;;  %v12079_v1 = vld [vmem:[#allocation91_spill] sm:$0xff]  ;;  %2579 = vadd.xlane.f32.xlu0 %v2578_v37 }
 0x2c5   : > { %v9198_v22 = vadd.f32 %v2552_v14, %v2551_v57  ;;  %v9206_v32 = vadd.f32 %v12069_v7, %v12068_v16  ;;  %v12073_v17 = vld [vmem:[#allocation85_spill] sm:$0xff]  ;;  %v12075_v57 = vld [vmem:[#allocation86_spill] sm:$0xff]  ;;  %v12076_v14 = vld [vmem:[#allocation79_spill] sm:$0xff]  ;;  %2588 = vadd.xlane.f32.xlu1 %v2587_v6 }
 0x2c6   : > { %v9208_v0 = vadd.f32 %v2556_v49, %v2555_v33  ;;  %v9216_v27 = vadd.f32 %v12073_v17, %v12072_v19  ;;  %v9220_v61 = vadd.f32 %v12076_v14, %v12075_v57  ;;  %v12078_v38 = vld [vmem:[#allocation89_spill] sm:$0xff]  ;;  %v12080_v33 = vld [vmem:[#allocation23_spill] sm:$0xff]  ;;  %v12082_v34 = vld [vmem:[#allocation84_spill] sm:$0xff] }
 0x2c7   : > { %v9224_v16 = vadd.f32 %v12078_v38, %v12077_v4  ;;  %v9228_v49 = vadd.f32 %v12080_v33, %v12079_v1  ;;  %v12081_v7 = vld [vmem:[#allocation83_spill] sm:$0xff]  ;;  %v12083_v19 = vld [vmem:[#allocation114_spill] sm:$0xff]  ;;  %v12087_v8 = vld [vmem:[#allocation224_spill] sm:$0xff]  ;;  %v9248_v1 = vadd.f32 %v9008_v28, %v9004_v48  ;;  %v9252_v33 = vadd.f32 %v9016_v59, %v9012_v62 }
 0x2c8   : > { %12074 = vst [vmem:[#allocation106_spill] sm:$0xff] %v9216_v27  ;;  %v9232_v11 = vadd.f32 %v12082_v34, %v12081_v7  ;;  %v12084_v17 = vld [vmem:[#allocation118_spill] sm:$0xff]  ;;  %v12085_v57 = vld [vmem:[#allocation87_spill] sm:$0xff]  ;;  %v12088_v4 = vld [vmem:[#allocation88_spill] sm:$0xff]  ;;  %v9268_v48 = vadd.f32 %v9052_v20, %v9048_v41  ;;  %v9272_v59 = vadd.f32 %v9060_v39, %v9056_v10  ;;  %v9276_v28 = vadd.f32 %v9068_v5, %v9064_v51 }
 0x2c9   : > { %v9236_v27 = vadd.f32 %v12084_v17, %v12083_v19  ;;  %v12086_v14 = vld [vmem:[#allocation166_spill] sm:$0xff]  ;;  %v9244_v38 = vadd.f32 %v12088_v4, %v12087_v8  ;;  %v12089_v40 = vld [vmem:[#allocation167_spill] sm:$0xff]  ;;  %v12090_v7 = vld [vmem:[#allocation165_spill] sm:$0xff]  ;;  %v9260_v19 = vadd.f32 %v9032_v35, %v9028_v26  ;;  %v9264_v17 = vadd.f32 %v9044_v31, %v9036_v23 }
 0x2ca   : > { %v9240_v21 = vadd.f32 %v12086_v14, %v12085_v57  ;;  %v9256_v34 = vadd.f32 %v12090_v7, %v12089_v40  ;;  %v9280_v62 = vadd.f32 %v9076_v24, %v9072_v42  ;;  %v9284_v31 = vadd.f32 %v9088_v55, %v9080_v50  ;;  %v12091_v20 = vld [vmem:[#allocation99_spill] sm:$0xff]  ;;  %v12092_v58 = vld [vmem:[#allocation30_spill] sm:$0xff]  ;;  %v12097_v46 = vld [vmem:[#allocation56_spill] sm:$0xff]  ;;  %v2302_v14 = vpop.xlane.xlu0 %2301 }
 0x2cb   : > { %v9292_v41 = vadd.f32 %v12091_v20, %v9100_v56  ;;  %v9296_v26 = vadd.f32 %v9136_v2, %v9108_v52  ;;  %v9300_v35 = vadd.f32 %v9144_v15, %v9140_v45  ;;  %v9304_v55 = vadd.f32 %v9152_v60, %v9148_v43  ;;  %v12093_v10 = vld [vmem:[#allocation31_spill] sm:$0xff]  ;;  %v2204_v51 = vld [vmem:[#allocation3] sm:$0xff]  ;;  %v12098_v2 = vld [vmem:[#allocation132_spill] sm:$0xff] }
 0x2cc   : > { %v9306_v23 = vadd.f32 %v2806_v53, %v2805_v47  ;;  %v9310_v39 = vadd.f32 %v12093_v10, %v12092_v58  ;;  %v12094_v5 = vld [vmem:[#allocation34_spill] sm:$0xff]  ;;  %v12095_v42 = vld [vmem:[#allocation35_spill] sm:$0xff]  ;;  %v2584_v52 = vadd.f32 %v2512_v13, %v2511_v30  ;;  %v12099_v45 = vld [vmem:[#allocation285_spill] sm:$0xff]  ;;  %v2593_v8 = vadd.f32 %v2518_v18, %v2517_v44 }
 0x2cd   : > { %v9314_v24 = vadd.f32 %v12095_v42, %v12094_v5  ;;  %v12096_v50 = vld [vmem:[#allocation55_spill] sm:$0xff]  ;;  %v2515_v15 = vmul.f32 %v12099_v45, %v12098_v2  ;;  %v12100_v43 = vld [vmem:[#allocation133_spill] sm:$0xff]  ;;  %v12101_v60 = vld [vmem:[#allocation286_spill] sm:$0xff]  ;;  %v2396_v58 = vadd.f32 %v2302_v14, %v2204_v51 }
 0x2ce   : > { %v9318_v56 = vadd.f32 %v12097_v46, %v12096_v50  ;;  %v2516_v47 = vmul.f32 %v12101_v60, %v12100_v43  ;;  %v12102_v53 = vld [vmem:[#allocation81_spill] sm:$0xff]  ;;  %v12103_v37 = vld [vmem:[#allocation75_spill] sm:$0xff]  ;;  %2585 = vadd.xlane.f32.xlu0 %v2584_v52  ;;  %v12104_v4 = vld [vmem:[#allocation140_spill] sm:$0xff]  ;;  %2594 = vadd.xlane.f32.xlu1 %v2593_v8  ;;  %v2305_v43 = vpop.xlane.xlu1 %2304 }
 0x2cf   : > { %v9326_v57 = vadd.f32 %v12103_v37, %v12102_v53  ;;  %v12105_v40 = vld [vmem:[#allocation293_spill] sm:$0xff]  ;;  %v12107_v6 = vld [vmem:[#allocation294_spill] sm:$0xff]  ;;  %v2205_v13 = vld [vmem:[#allocation3 + $0x8] sm:$0xff]  ;;  %2429 = vst.msk [vmem:[#allocation3] sm:$0xff] %vm2428_vm1, %v2396_v58 }
 0x2d0   : > { %v2521_v7 = vmul.f32 %v12105_v40, %v12104_v4  ;;  %v12106_v20 = vld [vmem:[#allocation141_spill] sm:$0xff]  ;;  %v2590_v10 = vadd.f32 %v2516_v47, %v2515_v15  ;;  %v12108_v5 = vld [vmem:[#allocation136_spill] sm:$0xff]  ;;  %v2397_v44 = vadd.f32 %v2305_v43, %v2205_v13  ;;  %v12112_v52 = vld [vmem:[#allocation143_spill] sm:$0xff] }
 0x2d1   : > { %v2522_v30 = vmul.f32 %v12107_v6, %v12106_v20  ;;  %v12109_v42 = vld [vmem:[#allocation296_spill] sm:$0xff]  ;;  %v12110_v46 = vld [vmem:[#allocation137_spill] sm:$0xff]  ;;  %v12113_v60 = vld [vmem:[#allocation298_spill] sm:$0xff] }
 0x2d2   : > { %v2519_v50 = vmul.f32 %v12109_v42, %v12108_v5  ;;  %v12111_v2 = vld [vmem:[#allocation297_spill] sm:$0xff]  ;;  %2591 = vadd.xlane.f32.xlu0 %v2590_v10  ;;  %v2525_v53 = vmul.f32 %v12113_v60, %v12112_v52  ;;  %v12114_v37 = vld [vmem:[#allocation144_spill] sm:$0xff]  ;;  %2430 = vst.msk [vmem:[#allocation3 + $0x8] sm:$0xff] %vm2428_vm1, %v2397_v44  ;;  %v12118_v40 = vld [vmem:[#allocation142_spill] sm:$0xff] }
 0x2d3   : > { %v2520_v45 = vmul.f32 %v12111_v2, %v12110_v46  ;;  %v2599_v18 = vadd.f32 %v2522_v30, %v2521_v7  ;;  %v12115_v4 = vld [vmem:[#allocation304_spill] sm:$0xff]  ;;  %v12119_v20 = vld [vmem:[#allocation313_spill] sm:$0xff]  ;;  %v12120_v58 = vld [vmem:[#allocation147_spill] sm:$0xff] }
 0x2d4   : > { %v2526_v51 = vmul.f32 %v12115_v4, %v12114_v37  ;;  %v12116_v47 = vld [vmem:[#allocation44_spill] sm:$0xff]  ;;  %v2524_v6 = vmul.f32 %v12119_v20, %v12118_v40  ;;  %v12121_v7 = vld [vmem:[#allocation178_spill] sm:$0xff]  ;;  %v12124_v2 = vld [vmem:[#allocation145_spill] sm:$0xff] }
 0x2d5   : > { %2600 = vadd.xlane.f32.xlu1 %v2599_v18  ;;  %v2596_v15 = vadd.f32 %v2520_v45, %v2519_v50  ;;  %v12117_v14 = vld [vmem:[#allocation72_spill] sm:$0xff]  ;;  %v2529_v30 = vmul.f32 %v12121_v7, %v12120_v58  ;;  %v12125_v43 = vld [vmem:[#allocation9_spill] sm:$0xff]  ;;  %v12126_v50 = vld [vmem:[#allocation146_spill] sm:$0xff] }
 0x2d6   : > { %v2523_v8 = vmul.f32 %v12117_v14, %v12116_v47  ;;  %v2605_v13 = vadd.f32 %v2526_v51, %v2525_v53  ;;  %v12122_v10 = vld [vmem:[#allocation148_spill] sm:$0xff]  ;;  %v2527_v44 = vmul.f32 %v12125_v43, %v12124_v2  ;;  %v12127_v45 = vld [vmem:[#allocation317_spill] sm:$0xff]  ;;  %v12128_v60 = vld [vmem:[#allocation151_spill] sm:$0xff]  ;;  %v2308_v43 = vpop.xlane.xlu0 %2307 }
 0x2d7   : > { %2597 = vadd.xlane.f32.xlu0 %v2596_v15  ;;  %v12123_v5 = vld [vmem:[#allocation8_spill] sm:$0xff]  ;;  %v2528_v18 = vmul.f32 %v12127_v45, %v12126_v50  ;;  %v12129_v37 = vld [vmem:[#allocation319_spill] sm:$0xff]  ;;  %v12132_v14 = vld [vmem:[#allocation149_spill] sm:$0xff] }
 0x2d8   : > { %v2530_v42 = vmul.f32 %v12123_v5, %v12122_v10  ;;  %v2602_v46 = vadd.f32 %v2524_v6, %v2523_v8  ;;  %v2533_v4 = vmul.f32 %v12129_v37, %v12128_v60  ;;  %v12130_v53 = vld [vmem:[#allocation152_spill] sm:$0xff]  ;;  %v12133_v40 = vld [vmem:[#allocation326_spill] sm:$0xff]  ;;  %v12136_v10 = vld [vmem:[#allocation159_spill] sm:$0xff] }
 0x2d9   : > { %2606 = vadd.xlane.f32.xlu1 %v2605_v13  ;;  %v12131_v51 = vld [vmem:[#allocation320_spill] sm:$0xff]  ;;  %v2608_v47 = vadd.f32 %v2528_v18, %v2527_v44  ;;  %v2531_v20 = vmul.f32 %v12133_v40, %v12132_v14  ;;  %v12134_v8 = vld [vmem:[#allocation150_spill] sm:$0xff]  ;;  %v12137_v5 = vld [vmem:[#allocation11_spill] sm:$0xff] }
 0x2da   : > { %v2611_v52 = vadd.f32 %v2530_v42, %v2529_v30  ;;  %v2534_v15 = vmul.f32 %v12131_v51, %v12130_v53  ;;  %v12135_v6 = vld [vmem:[#allocation10_spill] sm:$0xff]  ;;  %v2206_v58 = vld [vmem:[#allocation3 + $0x10] sm:$0xff]  ;;  %v2537_v30 = vmul.f32 %v12137_v5, %v12136_v10  ;;  %v12140_v45 = vld [vmem:[#allocation153_spill] sm:$0xff]  ;;  %v2314_v10 = vpop.xlane.xlu1 %2313 }
 0x2db   : > { %2603 = vadd.xlane.f32.xlu0 %v2602_v46  ;;  %v2532_v13 = vmul.f32 %v12135_v6, %v12134_v8  ;;  %v12138_v42 = vld [vmem:[#allocation160_spill] sm:$0xff]  ;;  %v12141_v44 = vld [vmem:[#allocation25_spill] sm:$0xff]  ;;  %v2208_v53 = vld [vmem:[#allocation3 + $0x20] sm:$0xff]  ;;  %v2398_v51 = vadd.f32 %v2308_v43, %v2206_v58 }
 0x2dc   : > { %v2617_v7 = vadd.f32 %v2534_v15, %v2533_v4  ;;  %v12139_v46 = vld [vmem:[#allocation24_spill] sm:$0xff]  ;;  %v2535_v18 = vmul.f32 %v12141_v44, %v12140_v45  ;;  %v12143_v60 = vld [vmem:[#allocation333_spill] sm:$0xff]  ;;  %v12144_v4 = vld [vmem:[#allocation162_spill] sm:$0xff] }
 0x2dd   : > { %2612 = vadd.xlane.f32.xlu1 %v2611_v52  ;;  %v2538_v2 = vmul.f32 %v12139_v46, %v12138_v42  ;;  %v2614_v50 = vadd.f32 %v2532_v13, %v2531_v20  ;;  %v12142_v52 = vld [vmem:[#allocation154_spill] sm:$0xff]  ;;  %v12146_v40 = vld [vmem:[#allocation163_spill] sm:$0xff]  ;;  %2431 = vst.msk [vmem:[#allocation3 + $0x10] sm:$0xff] %vm2428_vm1, %v2398_v51  ;;  %v2400_v20 = vadd.f32 %v2314_v10, %v2208_v53  ;;  %v12153_v45 = vld [vmem:[#allocation172_spill] sm:$0xff] }
 0x2de   : > { %v2536_v37 = vmul.f32 %v12143_v60, %v12142_v52  ;;  %v12145_v15 = vld [vmem:[#allocation334_spill] sm:$0xff]  ;;  %v12147_v8 = vld [vmem:[#allocation95_spill] sm:$0xff]  ;;  %v12154_v44 = vld [vmem:[#allocation28_spill] sm:$0xff] }
 0x2df   : > { %2609 = vadd.xlane.f32.xlu0 %v2608_v47  ;;  %v2623_v47 = vadd.f32 %v2538_v2, %v2537_v30  ;;  %v2541_v14 = vmul.f32 %v12145_v15, %v12144_v4  ;;  %v2542_v6 = vmul.f32 %v12147_v8, %v12146_v40  ;;  %v12149_v5 = vld [vmem:[#allocation338_spill] sm:$0xff]  ;;  %v12150_v46 = vld [vmem:[#allocation19_spill] sm:$0xff]  ;;  %2433 = vst.msk [vmem:[#allocation3 + $0x20] sm:$0xff] %vm2428_vm1, %v2400_v20  ;;  %v12155_v53 = vld [vmem:[#allocation164_spill] sm:$0xff] }
 0x2e0   : > { %v2620_v13 = vadd.f32 %v2536_v37, %v2535_v18  ;;  %v2540_v58 = vmul.f32 %v8626_v25, %v12150_v46  ;;  %v12151_v2 = vld [vmem:[#allocation170_spill] sm:$0xff]  ;;  %v12152_v43 = vld [vmem:[#allocation15_spill] sm:$0xff]  ;;  %v2546_v52 = vmul.f32 %v12154_v44, %v12153_v45  ;;  %v12156_v18 = vld [vmem:[#allocation29_spill] sm:$0xff]  ;;  %v2320_v46 = vpop.xlane.xlu1 %2319 }
 0x2e1   : > { %2618 = vadd.xlane.f32.xlu1 %v2617_v7  ;;  %v12148_v7 = vld [vmem:[#allocation161_spill] sm:$0xff]  ;;  %v2629_v30 = vadd.f32 %v2542_v6, %v2541_v14  ;;  %v2543_v37 = vmul.f32 %v12156_v18, %v12155_v53  ;;  %v12159_v15 = vld [vmem:[#allocation180_spill] sm:$0xff]  ;;  %v12160_v40 = vld [vmem:[#allocation22_spill] sm:$0xff] }
 0x2e2   : > { %v2539_v42 = vmul.f32 %v12149_v5, %v12148_v7  ;;  %v12157_v51 = vld [vmem:[#allocation169_spill] sm:$0xff]  ;;  %v2549_v8 = vmul.f32 %v12160_v40, %v12159_v15  ;;  %v2217_v45 = vld [vmem:[#allocation3 + $0x68] sm:$0xff] }
 0x2e3   : > { %2615 = vadd.xlane.f32.xlu0 %v2614_v50  ;;  %v2545_v50 = vmul.f32 %v12152_v43, %v12151_v2  ;;  %v12161_v14 = vld [vmem:[#allocation181_spill] sm:$0xff] }
 0x2e4   : > { %v2626_v60 = vadd.f32 %v2540_v58, %v2539_v42  ;;  %v2550_v6 = vmul.f32 %v11905_v12, %v12161_v14  ;;  %v2207_v10 = vld [vmem:[#allocation3 + $0x18] sm:$0xff]  ;;  %v2210_v42 = vld [vmem:[#allocation3 + $0x30] sm:$0xff]  ;;  %v12162_v12 = vld [vmem:[#allocation106_spill] sm:$0xff] }
 0x2e5   : > { %2624 = vadd.xlane.f32.xlu1 %v2623_v47  ;;  %v12158_v47 = vld [vmem:[#allocation344_spill] sm:$0xff]  ;;  %v2635_v25 = vadd.f32 %v2546_v52, %v2545_v50  ;;  %v2402_v58 = vadd.f32 %v2320_v46, %v2210_v42  ;;  %v2215_v43 = vld [vmem:[#allocation3 + $0x58] sm:$0xff] }
 0x2e6   : > { %v2544_v4 = vmul.f32 %v12158_v47, %v12157_v51  ;;  %v2641_v5 = vadd.f32 %v2550_v6, %v2549_v8  ;;  %v2221_v51 = vld [vmem:[#allocation3 + $0x88] sm:$0xff]  ;;  %v2223_v15 = vld [vmem:[#allocation3 + $0x98] sm:$0xff]  ;;  %v12164_v8 = vld [vmem:[#allocation192_spill] sm:$0xff] }
 0x2e7   : > { %2621 = vadd.xlane.f32.xlu0 %v2620_v13  ;;  %v2311_v13 = vpop.xlane.xlu0 %2310  ;;  %2435 = vst.msk [vmem:[#allocation3 + $0x30] sm:$0xff] %vm2428_vm1, %v2402_v58  ;;  %v12165_v6 = vld [vmem:[#allocation190_spill] sm:$0xff]  ;;  %v12167_v42 = vld [vmem:[#allocation197_spill] sm:$0xff] }
 0x2e8   : > { %v2632_v20 = vadd.f32 %v2544_v4, %v2543_v37  ;;  %v2399_v7 = vadd.f32 %v2311_v13, %v2207_v10  ;;  %v12166_v10 = vld [vmem:[#allocation194_spill] sm:$0xff]  ;;  %v12168_v46 = vld [vmem:[#allocation201_spill] sm:$0xff] }
 0x2e9   : > { %2630 = vadd.xlane.f32.xlu1 %v2629_v30  ;;  %v2212_v30 = vld [vmem:[#allocation3 + $0x40] sm:$0xff]  ;;  %v3009_v58 = vsub.f32 %v12168_v46, %v12167_v42  ;;  %v12191_v42 = vld [vmem:[#allocation232_spill] sm:$0xff] }
 0x2ea   : > { %2432 = vst.msk [vmem:[#allocation3 + $0x18] sm:$0xff] %vm2428_vm1, %v2399_v7  ;;  %v12192_v46 = vld [vmem:[#allocation236_spill] sm:$0xff] }
 0x2eb   : > { %2627 = vadd.xlane.f32.xlu0 %v2626_v60  ;;  %v2219_v60 = vld [vmem:[#allocation3 + $0x78] sm:$0xff] }
 0x2ed   : > { %2636 = vadd.xlane.f32.xlu1 %v2635_v25 }
 0x2ef   : > { %2633 = vadd.xlane.f32.xlu0 %v2632_v20  ;;  %v2226_v20 = vld [vmem:[#allocation3 + $0xb0] sm:$0xff] }
 0x2f1   : > { %2642 = vadd.xlane.f32.xlu1 %v2641_v5  ;;  %v2225_v5 = vld [vmem:[#allocation3 + $0xa8] sm:$0xff] }
 0x2f3   : > { %2639 = vadd.xlane.f32.xlu0 %v9186_v63  ;;  %v2209_v63 = vld [vmem:[#allocation3 + $0x28] sm:$0xff] }
 0x2f5   : > { %2648 = vadd.xlane.f32.xlu1 %v9196_v3  ;;  %v2317_v3 = vpop.xlane.xlu0 %2316 }
 0x2f7   : > { %2645 = vadd.xlane.f32.xlu0 %v9198_v22  ;;  %v2401_v22 = vadd.f32 %v2317_v3, %v2209_v63  ;;  %v12170_v3 = vld [vmem:[#allocation21_spill] sm:$0xff] }
 0x2f9   : > { %2814 = vadd.xlane.f32.xlu1 %v9190_v36  ;;  %v2326_v36 = vpop.xlane.xlu1 %2325  ;;  %2434 = vst.msk [vmem:[#allocation3 + $0x28] sm:$0xff] %vm2428_vm1, %v2401_v22  ;;  %v12171_v22 = vld [vmem:[#allocation123_spill] sm:$0xff] }
 0x2fb   : > { %2651 = vadd.xlane.f32.xlu0 %v9208_v0  ;;  %v2323_v0 = vpop.xlane.xlu0 %2322 }
 0x2fd   : > { %2820 = vadd.xlane.f32.xlu1 %v9202_v54  ;;  %v2404_v54 = vadd.f32 %v2326_v36, %v2212_v30  ;;  %v12172_v36 = vld [vmem:[#allocation204_spill] sm:$0xff] }
 0x2ff   : > { %2817 = vadd.xlane.f32.xlu0 %v9206_v32  ;;  %2437 = vst.msk [vmem:[#allocation3 + $0x40] sm:$0xff] %vm2428_vm1, %v2404_v54  ;;  %v2211_v32 = vld [vmem:[#allocation3 + $0x38] sm:$0xff]  ;;  %v3010_v54 = vsub.f32 %v12172_v36, %v12171_v22  ;;  %v12194_v22 = vld [vmem:[#allocation39_spill] sm:$0xff] }
 0x301   : > { %2826 = vadd.xlane.f32.xlu1 %v9212_v9  ;;  %v2403_v9 = vadd.f32 %v2323_v0, %v2211_v32  ;;  %v2228_v32 = vld [vmem:[#allocation3 + $0xc0] sm:$0xff]  ;;  %v12173_v0 = vld [vmem:[#allocation193_spill] sm:$0xff] }
 0x303   : > { %2823 = vadd.xlane.f32.xlu0 %v12162_v12  ;;  %2436 = vst.msk [vmem:[#allocation3 + $0x38] sm:$0xff] %vm2428_vm1, %v2403_v9  ;;  %v12174_v9 = vld [vmem:[#allocation196_spill] sm:$0xff] }
 0x305   : > { %2832 = vadd.xlane.f32.xlu1 %v9220_v61  ;;  %v2214_v61 = vld [vmem:[#allocation3 + $0x50] sm:$0xff] }
 0x307   : > { %2829 = vadd.xlane.f32.xlu0 %v9224_v16  ;;  %v2332_v16 = vpop.xlane.xlu1 %2331 }
 0x309   : > { %2838 = vadd.xlane.f32.xlu1 %v9228_v49  ;;  %v2406_v49 = vadd.f32 %v2332_v16, %v2214_v61  ;;  %v3007_v61 = vsub.f32 %v12174_v9, %v12173_v0  ;;  %v12175_v16 = vld [vmem:[#allocation195_spill] sm:$0xff] }
 0x30b   : > { %2835 = vadd.xlane.f32.xlu0 %v9232_v11  ;;  %2439 = vst.msk [vmem:[#allocation3 + $0x50] sm:$0xff] %vm2428_vm1, %v2406_v49  ;;  %v2329_v11 = vpop.xlane.xlu0 %2328  ;;  %v12176_v49 = vld [vmem:[#allocation198_spill] sm:$0xff] }
 0x30d   : > { %2844 = vadd.xlane.f32.xlu1 %v9236_v27  ;;  %v2213_v27 = vld [vmem:[#allocation3 + $0x48] sm:$0xff] }
 0x30f   : > { %2841 = vadd.xlane.f32.xlu0 %v9240_v21  ;;  %v2405_v21 = vadd.f32 %v2329_v11, %v2213_v27  ;;  %v3008_v27 = vsub.f32 %v12176_v49, %v12175_v16  ;;  %v2234_v49 = vld [vmem:[#allocation3 + $0xf0] sm:$0xff] }
 0x311   : > { %2850 = vadd.xlane.f32.xlu1 %v9244_v38  ;;  %v2216_v38 = vld [vmem:[#allocation3 + $0x60] sm:$0xff]  ;;  %2438 = vst.msk [vmem:[#allocation3 + $0x48] sm:$0xff] %vm2428_vm1, %v2405_v21  ;;  %v2227_v21 = vld [vmem:[#allocation3 + $0xb8] sm:$0xff] }
 0x313   : > { %2847 = vadd.xlane.f32.xlu0 %v9248_v1  ;;  %v2338_v1 = vpop.xlane.xlu1 %2337 }
 0x314   : > { %v2408_v2 = vadd.f32 %v2338_v1, %v2216_v38  ;;  %v12177_v38 = vld [vmem:[#allocation209_spill] sm:$0xff] }
 0x315   : > { %2856 = vadd.xlane.f32.xlu1 %v9252_v33  ;;  %v2218_v33 = vld [vmem:[#allocation3 + $0x70] sm:$0xff]  ;;  %v12178_v1 = vld [vmem:[#allocation213_spill] sm:$0xff] }
 0x316   : > { %2441 = vst.msk [vmem:[#allocation3 + $0x60] sm:$0xff] %vm2428_vm1, %v2408_v2  ;;  %v3013_v2 = vsub.f32 %v12178_v1, %v12177_v38  ;;  %v12199_v38 = vld [vmem:[#allocation42_spill] sm:$0xff]  ;;  %v12200_v1 = vld [vmem:[#allocation245_spill] sm:$0xff] }
 0x317   : > { %2853 = vadd.xlane.f32.xlu0 %v9256_v34  ;;  %v2335_v34 = vpop.xlane.xlu0 %2334  ;;  %v2344_v50 = vpop.xlane.xlu1 %2343 }
 0x319   : > { %2862 = vadd.xlane.f32.xlu1 %v9260_v19  ;;  %v2407_v19 = vadd.f32 %v2335_v34, %v2215_v43  ;;  %v12179_v43 = vld [vmem:[#allocation211_spill] sm:$0xff] }
 0x31b   : > { %2859 = vadd.xlane.f32.xlu0 %v9264_v17  ;;  %v2410_v17 = vadd.f32 %v2344_v50, %v2218_v33  ;;  %2440 = vst.msk [vmem:[#allocation3 + $0x58] sm:$0xff] %vm2428_vm1, %v2407_v19  ;;  %v2341_v44 = vpop.xlane.xlu0 %2340  ;;  %v2350_v52 = vpop.xlane.xlu1 %2349  ;;  %v12180_v33 = vld [vmem:[#allocation215_spill] sm:$0xff] }
 0x31c   : > { %v3014_v34 = vsub.f32 %v12180_v33, %v12179_v43 }
 0x31d   : > { %2868 = vadd.xlane.f32.xlu1 %v9268_v48  ;;  %v2220_v48 = vld [vmem:[#allocation3 + $0x80] sm:$0xff]  ;;  %2443 = vst.msk [vmem:[#allocation3 + $0x70] sm:$0xff] %vm2428_vm1, %v2410_v17  ;;  %v3074_v17 = vmul.f32 %v3010_v54, %v12170_v3  ;;  %v12195_v54 = vld [vmem:[#allocation241_spill] sm:$0xff] }
 0x31e   : > { %v2412_v53 = vadd.f32 %v2350_v52, %v2220_v48  ;;  %v12181_v52 = vld [vmem:[#allocation217_spill] sm:$0xff] }
 0x31f   : > { %2865 = vadd.xlane.f32.xlu0 %v9272_v59  ;;  %v2409_v59 = vadd.f32 %v2341_v44, %v2217_v45  ;;  %v2347_v18 = vpop.xlane.xlu0 %2346  ;;  %v2356_v37 = vpop.xlane.xlu1 %2355 }
 0x320   : > { %2445 = vst.msk [vmem:[#allocation3 + $0x80] sm:$0xff] %vm2428_vm1, %v2412_v53 }
 0x321   : > { %2874 = vadd.xlane.f32.xlu1 %v9276_v28  ;;  %2442 = vst.msk [vmem:[#allocation3 + $0x68] sm:$0xff] %vm2428_vm1, %v2409_v59  ;;  %v2222_v28 = vld [vmem:[#allocation3 + $0x90] sm:$0xff]  ;;  %v3072_v59 = vmul.f32 %v3008_v27, %v12170_v3 }
 0x322   : > { %v2414_v47 = vadd.f32 %v2356_v37, %v2222_v28 }
 0x323   : > { %2871 = vadd.xlane.f32.xlu0 %v9280_v62  ;;  %v2411_v62 = vadd.f32 %v2347_v18, %v2219_v60  ;;  %v2353_v4 = vpop.xlane.xlu0 %2352  ;;  %v2362_v25 = vpop.xlane.xlu1 %2361  ;;  %v12182_v60 = vld [vmem:[#allocation223_spill] sm:$0xff]  ;;  %v12183_v18 = vld [vmem:[#allocation222_spill] sm:$0xff] }
 0x324   : > { %2447 = vst.msk [vmem:[#allocation3 + $0x90] sm:$0xff] %vm2428_vm1, %v2414_v47  ;;  %v3011_v53 = vsub.f32 %v12182_v60, %v12181_v52 }
 0x325   : > { %2880 = vadd.xlane.f32.xlu1 %v9284_v31  ;;  %2444 = vst.msk [vmem:[#allocation3 + $0x78] sm:$0xff] %vm2428_vm1, %v2411_v62  ;;  %v2224_v31 = vld [vmem:[#allocation3 + $0xa0] sm:$0xff] }
 0x326   : > { %v2416_v40 = vadd.f32 %v2362_v25, %v2224_v31  ;;  %v3078_v31 = vmul.f32 %v3014_v34, %v12170_v3  ;;  %v12185_v25 = vld [vmem:[#allocation226_spill] sm:$0xff] }
 0x327   : > { %2877 = vadd.xlane.f32.xlu0 %v9288_v29  ;;  %v2413_v29 = vadd.f32 %v2353_v4, %v2221_v51  ;;  %v2359_v13 = vpop.xlane.xlu0 %2358  ;;  %v2368_v7 = vpop.xlane.xlu1 %2367  ;;  %v2229_v51 = vld [vmem:[#allocation3 + $0xc8] sm:$0xff] }
 0x328   : > { %2449 = vst.msk [vmem:[#allocation3 + $0xa0] sm:$0xff] %vm2428_vm1, %v2416_v40  ;;  %v2418_v12 = vadd.f32 %v2368_v7, %v2226_v20  ;;  %v12189_v7 = vld [vmem:[#allocation230_spill] sm:$0xff] }
 0x329   : > { %2886 = vadd.xlane.f32.xlu1 %v9292_v41  ;;  %2446 = vst.msk [vmem:[#allocation3 + $0x88] sm:$0xff] %vm2428_vm1, %v2413_v29  ;;  %v12163_v41 = vld [vmem:[#allocation186_spill] sm:$0xff] }
 0x32a   : > { %v3005_v14 = vsub.f32 %v12164_v8, %v12163_v41  ;;  %2451 = vst.msk [vmem:[#allocation3 + $0xb0] sm:$0xff] %vm2428_vm1, %v2418_v12  ;;  %v12187_v41 = vld [vmem:[#allocation227_spill] sm:$0xff]  ;;  %v12188_v8 = vld [vmem:[#allocation38_spill] sm:$0xff] }
 0x32b   : > { %2883 = vadd.xlane.f32.xlu0 %v9296_v26  ;;  %v3006_v26 = vsub.f32 %v12166_v10, %v12165_v6  ;;  %v2374_v11 = vpop.xlane.xlu1 %2373  ;;  %v2232_v6 = vld [vmem:[#allocation3 + $0xe0] sm:$0xff] }
 0x32c   : > { %v2420_v19 = vadd.f32 %v2374_v11, %v2228_v32  ;;  %v12196_v32 = vld [vmem:[#allocation243_spill] sm:$0xff]  ;;  %v12198_v11 = vld [vmem:[#allocation244_spill] sm:$0xff] }
 0x32d   : > { %2892 = vadd.xlane.f32.xlu1 %v9300_v35  ;;  %v2415_v35 = vadd.f32 %v2359_v13, %v2223_v15  ;;  %v3070_v30 = vmul.f32 %v3006_v26, %v12170_v3  ;;  %v12186_v15 = vld [vmem:[#allocation139_spill] sm:$0xff] }
 0x32e   : > { %2453 = vst.msk [vmem:[#allocation3 + $0xc0] sm:$0xff] %vm2428_vm1, %v2420_v19  ;;  %v3017_v40 = vsub.f32 %v12186_v15, %v12185_v25  ;;  %v12207_v15 = vld [vmem:[#allocation254_spill] sm:$0xff] }
 0x32f   : > { %2889 = vadd.xlane.f32.xlu0 %v9304_v55  ;;  %2448 = vst.msk [vmem:[#allocation3 + $0x98] sm:$0xff] %vm2428_vm1, %v2415_v35  ;;  %v12169_v55 = vld [vmem:[#allocation20_spill] sm:$0xff]  ;;  %v2380_v37 = vpop.xlane.xlu1 %2379 }
 0x330   : > { %v3069_v63 = vmul.f32 %v3005_v14, %v12169_v55  ;;  %v3073_v45 = vmul.f32 %v3009_v58, %v12169_v55  ;;  %v3071_v44 = vmul.f32 %v3007_v61, %v12169_v55  ;;  %v3077_v47 = vmul.f32 %v3013_v2, %v12169_v55 }
 0x331   : > { %2898 = vadd.xlane.f32.xlu1 %v9306_v23  ;;  %v2365_v23 = vpop.xlane.xlu0 %2364  ;;  %v3018_v14 = vsub.f32 %v12188_v8, %v12187_v41  ;;  %v3075_v20 = vmul.f32 %v3011_v53, %v12169_v55  ;;  %v3016_v58 = vsub.f32 %v12192_v46, %v12191_v42  ;;  %v3081_v61 = vmul.f32 %v3017_v40, %v12169_v55  ;;  %v12203_v53 = vld [vmem:[#allocation252_spill] sm:$0xff]  ;;  %v12208_v40 = vld [vmem:[#allocation257_spill] sm:$0xff] }
 0x332   : > { %v3133_v50 = vadd.f32 %v3070_v30, %v3069_v63  ;;  %v3139_v29 = vadd.f32 %v3074_v17, %v3073_v45  ;;  %v3136_v26 = vadd.f32 %v3072_v59, %v3071_v44  ;;  %v2231_v63 = vld [vmem:[#allocation3 + $0xd8] sm:$0xff]  ;;  %v12193_v30 = vld [vmem:[#allocation240_spill] sm:$0xff]  ;;  %v3145_v9 = vadd.f32 %v3078_v31, %v3077_v47  ;;  %v2233_v45 = vld [vmem:[#allocation3 + $0xe8] sm:$0xff] }
 0x333   : > { %2895 = vadd.xlane.f32.xlu0 %v9310_v39  ;;  %v2417_v39 = vadd.f32 %v2365_v23, %v2225_v5  ;;  %v12190_v5 = vld [vmem:[#allocation234_spill] sm:$0xff]  ;;  %v2386_v12 = vpop.xlane.xlu1 %2385  ;;  %v3021_v36 = vsub.f32 %v12194_v22, %v12193_v30  ;;  %v3022_v23 = vsub.f32 %v12196_v32, %v12195_v54  ;;  %v3082_v16 = vmul.f32 %v3018_v14, %v12170_v3  ;;  %v12202_v44 = vld [vmem:[#allocation251_spill] sm:$0xff]  ;;  %v12205_v47 = vld [vmem:[#allocation253_spill] sm:$0xff] }
 0x334   : > { %v2424_v0 = vadd.f32 %v2386_v12, %v2232_v6  ;;  %v3020_v2 = vsub.f32 %v12200_v1, %v12199_v38  ;;  %v3080_v19 = vmul.f32 %v3016_v58, %v12170_v3  ;;  %v12206_v31 = vld [vmem:[#allocation256_spill] sm:$0xff]  ;;  %v3024_v41 = vsub.f32 %v12208_v40, %v12207_v15  ;;  %v2235_v6 = vld [vmem:[#allocation3 + $0xf8] sm:$0xff] }
 0x335   : > { %2904 = vadd.xlane.f32.xlu1 %v9314_v24  ;;  %2450 = vst.msk [vmem:[#allocation3 + $0xa8] sm:$0xff] %vm2428_vm1, %v2417_v39  ;;  %v2230_v24 = vld [vmem:[#allocation3 + $0xd0] sm:$0xff]  ;;  %v2371_v48 = vpop.xlane.xlu0 %2370  ;;  %v12197_v39 = vld [vmem:[#allocation242_spill] sm:$0xff]  ;;  %v3085_v17 = vmul.f32 %v3021_v36, %v12169_v55  ;;  %v3151_v60 = vadd.f32 %v3082_v16, %v3081_v61  ;;  %v12213_v36 = vld [vmem:[#allocation267_spill] sm:$0xff] }
 0x336   : > { %v2419_v28 = vadd.f32 %v2371_v48, %v2227_v21  ;;  %v2422_v4 = vadd.f32 %v2380_v37, %v2230_v24  ;;  %v3019_v21 = vsub.f32 %v12198_v11, %v12197_v39  ;;  %2457 = vst.msk [vmem:[#allocation3 + $0xe0] sm:$0xff] %vm2428_vm1, %v2424_v0  ;;  %v3086_v24 = vmul.f32 %v3022_v23, %v12170_v3  ;;  %v12201_v48 = vld [vmem:[#allocation156_spill] sm:$0xff]  ;;  %v12214_v54 = vld [vmem:[#allocation269_spill] sm:$0xff]  ;;  %v12216_v0 = vld [vmem:[#allocation270_spill] sm:$0xff] }
 0x337   : > { %2901 = vadd.xlane.f32.xlu0 %v9318_v56  ;;  %v12184_v56 = vld [vmem:[#allocation225_spill] sm:$0xff]  ;;  %v3025_v59 = vsub.f32 %v12202_v44, %v12201_v48  ;;  %v2463_v46 = vld [vmem:[#allocation4 + $0x10] sm:$0xff]  ;;  %v3088_v22 = vmul.f32 %v3024_v41, %v12170_v3  ;;  %v3027_v32 = vsub.f32 %v12214_v54, %v12213_v36  ;;  %v2462_v16 = vld [vmem:[#allocation4 + $0x8] sm:$0xff] }
 0x338   : > { %v3012_v62 = vsub.f32 %v12184_v56, %v12183_v18  ;;  %2452 = vst.msk [vmem:[#allocation3 + $0xb8] sm:$0xff] %vm2428_vm1, %v2419_v28  ;;  %2455 = vst.msk [vmem:[#allocation3 + $0xd0] sm:$0xff] %vm2428_vm1, %v2422_v4  ;;  %v12204_v28 = vld [vmem:[#allocation255_spill] sm:$0xff]  ;;  %v2461_v56 = vld [vmem:[#allocation4] sm:$0xff]  ;;  %v3083_v37 = vmul.f32 %v3019_v21, %v12169_v55  ;;  %v3023_v4 = vsub.f32 %v12206_v31, %v12205_v47 }
 0x339   : > { %3134 = vadd.xlane.f32.xlu1 %v3133_v50  ;;  %v2377_v10 = vpop.xlane.xlu0 %2376  ;;  %v2392_v50 = vpop.xlane.xlu1 %2391  ;;  %v3026_v18 = vsub.f32 %v12204_v28, %v12203_v53  ;;  %v3157_v14 = vadd.f32 %v3086_v24, %v3085_v17  ;;  %v12215_v23 = vld [vmem:[#allocation268_spill] sm:$0xff]  ;;  %v12219_v11 = vld [vmem:[#allocation274_spill] sm:$0xff]  ;;  %v12220_v21 = vld [vmem:[#allocation279_spill] sm:$0xff] }
 0x33a   : > { %v2421_v13 = vadd.f32 %v2377_v10, %v2229_v51  ;;  %v3076_v35 = vmul.f32 %v3012_v62, %v12170_v3  ;;  %v2426_v52 = vadd.f32 %v2392_v50, %v2234_v49  ;;  %v3084_v51 = vmul.f32 %v3020_v2, %v12170_v3  ;;  %v12217_v49 = vld [vmem:[#allocation272_spill] sm:$0xff]  ;;  %v12223_v24 = vld [vmem:[#allocation281_spill] sm:$0xff] }
 0x33b   : > { %2907 = vadd.xlane.f32.xlu0 %v9326_v57  ;;  %v3015_v57 = vsub.f32 %v12190_v5, %v12189_v7  ;;  %v3089_v10 = vmul.f32 %v3025_v59, %v12169_v55  ;;  %v12211_v5 = vld [vmem:[#allocation66_spill] sm:$0xff]  ;;  %v3034_v38 = vsub.f32 %v12220_v21, %v12219_v11  ;;  %v12221_v50 = vld [vmem:[#allocation280_spill] sm:$0xff]  ;;  %v12224_v48 = vld [vmem:[#allocation65_spill] sm:$0xff] }
 0x33c   : > { %2454 = vst.msk [vmem:[#allocation3 + $0xc8] sm:$0xff] %vm2428_vm1, %v2421_v13  ;;  %v3142_v33 = vadd.f32 %v3076_v35, %v3075_v20  ;;  %2459 = vst.msk [vmem:[#allocation3 + $0xf0] sm:$0xff] %vm2428_vm1, %v2426_v52  ;;  %v3090_v20 = vmul.f32 %v3026_v18, %v12170_v3  ;;  %v12209_v13 = vld [vmem:[#allocation261_spill] sm:$0xff]  ;;  %v12210_v35 = vld [vmem:[#allocation262_spill] sm:$0xff]  ;;  %v3154_v12 = vadd.f32 %v3084_v51, %v3083_v37 }
 0x33d   : > { %3140 = vadd.xlane.f32.xlu1 %v3139_v29  ;;  %v2383_v27 = vpop.xlane.xlu0 %2382  ;;  %v3079_v34 = vmul.f32 %v3015_v57, %v12169_v55  ;;  %v3029_v7 = vsub.f32 %v12210_v35, %v12209_v13  ;;  %v12212_v57 = vld [vmem:[#allocation264_spill] sm:$0xff]  ;;  %v3032_v44 = vsub.f32 %v12224_v48, %v12223_v24  ;;  %v2464_v18 = vld [vmem:[#allocation4 + $0x18] sm:$0xff]  ;;  %v12225_v37 = vld [vmem:[#allocation283_spill] sm:$0xff] }
 0x33e   : > { %v2423_v43 = vadd.f32 %v2383_v27, %v2231_v63  ;;  %v2559_v8 = vpop.xlane.xlu1 %2558  ;;  %v3030_v42 = vsub.f32 %v12212_v57, %v12211_v5  ;;  %v3087_v63 = vmul.f32 %v3023_v4, %v12169_v55  ;;  %v12218_v27 = vld [vmem:[#allocation275_spill] sm:$0xff]  ;;  %v3163_v2 = vadd.f32 %v3090_v20, %v3089_v10  ;;  %v12226_v51 = vld [vmem:[#allocation288_spill] sm:$0xff] }
 0x33f   : > { %3137 = vadd.xlane.f32.xlu0 %v3136_v26  ;;  %v3148_v25 = vadd.f32 %v3080_v19, %v3079_v34  ;;  %v2653_v26 = vadd.f32 %v2559_v8, %v2461_v56  ;;  %v3033_v39 = vsub.f32 %v12218_v27, %v12217_v49  ;;  %v2465_v34 = vld [vmem:[#allocation4 + $0x20] sm:$0xff]  ;;  %v3037_v47 = vsub.f32 %v12226_v51, %v12225_v37  ;;  %v2467_v40 = vld [vmem:[#allocation4 + $0x30] sm:$0xff]  ;;  %v12231_v35 = vld [vmem:[#allocation291_spill] sm:$0xff] }
 0x340   : > { %2456 = vst.msk [vmem:[#allocation3 + $0xd8] sm:$0xff] %vm2428_vm1, %v2423_v43  ;;  %v3093_v43 = vmul.f32 %v3029_v7, %v12169_v55  ;;  %v3160_v52 = vadd.f32 %v3088_v22, %v3087_v63  ;;  %v12230_v10 = vld [vmem:[#allocation292_spill] sm:$0xff]  ;;  %v12232_v7 = vld [vmem:[#allocation295_spill] sm:$0xff] }
 0x341   : > { %3146 = vadd.xlane.f32.xlu1 %v3145_v9  ;;  %v2389_v62 = vpop.xlane.xlu0 %2388  ;;  %2685 = vst.msk [vmem:[#allocation4] sm:$0xff] %vm2428_vm1, %v2653_v26  ;;  %v3028_v9 = vsub.f32 %v12216_v0, %v12215_v23  ;;  %v3097_v56 = vmul.f32 %v3033_v39, %v12169_v55  ;;  %v3036_v5 = vsub.f32 %v12232_v7, %v12231_v35  ;;  %v12234_v22 = vld [vmem:[#allocation175_spill] sm:$0xff]  ;;  %v12235_v54 = vld [vmem:[#allocation300_spill] sm:$0xff]  ;;  %v2469_v0 = vld [vmem:[#allocation4 + $0x40] sm:$0xff] }
 0x342   : > { %v2425_v29 = vadd.f32 %v2389_v62, %v2233_v45  ;;  %v2565_v61 = vpop.xlane.xlu1 %2564  ;;  %v12222_v45 = vld [vmem:[#allocation64_spill] sm:$0xff]  ;;  %v3098_v62 = vmul.f32 %v3034_v38, %v12170_v3  ;;  %v12237_v39 = vld [vmem:[#allocation303_spill] sm:$0xff]  ;;  %v12239_v38 = vld [vmem:[#allocation305_spill] sm:$0xff] }
 0x343   : > { %3143 = vadd.xlane.f32.xlu0 %v3142_v33  ;;  %v2655_v1 = vadd.f32 %v2565_v61, %v2463_v46  ;;  %v3094_v33 = vmul.f32 %v3030_v42, %v12170_v3  ;;  %v3031_v17 = vsub.f32 %v12222_v45, %v12221_v50  ;;  %v3092_v53 = vmul.f32 %v3028_v9, %v12170_v3  ;;  %v2466_v46 = vld [vmem:[#allocation4 + $0x28] sm:$0xff]  ;;  %v12243_v45 = vld [vmem:[#allocation308_spill] sm:$0xff]  ;;  %v2473_v7 = vld [vmem:[#allocation4 + $0x60] sm:$0xff] }
 0x344   : > { %2458 = vst.msk [vmem:[#allocation3 + $0xe8] sm:$0xff] %vm2428_vm1, %v2425_v29  ;;  %v12227_v29 = vld [vmem:[#allocation287_spill] sm:$0xff]  ;;  %v3175_v42 = vadd.f32 %v3098_v62, %v3097_v56  ;;  %v3100_v27 = vmul.f32 %v3036_v5, %v12170_v3  ;;  %v12248_v37 = vld [vmem:[#allocation316_spill] sm:$0xff] }
 0x345   : > { %3152 = vadd.xlane.f32.xlu1 %v3151_v60  ;;  %v2395_v58 = vpop.xlane.xlu0 %2394  ;;  %2687 = vst.msk [vmem:[#allocation4 + $0x10] sm:$0xff] %vm2428_vm1, %v2655_v1  ;;  %v3091_v60 = vmul.f32 %v3027_v32, %v12169_v55  ;;  %v3169_v4 = vadd.f32 %v3094_v33, %v3093_v43  ;;  %v3095_v8 = vmul.f32 %v3031_v17, %v12169_v55  ;;  %v12236_v32 = vld [vmem:[#allocation302_spill] sm:$0xff]  ;;  %v12238_v11 = vld [vmem:[#allocation71_spill] sm:$0xff]  ;;  %v2468_v33 = vld [vmem:[#allocation4 + $0x38] sm:$0xff] }
 0x346   : > { %v2427_v30 = vadd.f32 %v2395_v58, %v2235_v6  ;;  %v2571_v28 = vpop.xlane.xlu1 %2570  ;;  %v12229_v6 = vld [vmem:[#allocation289_spill] sm:$0xff]  ;;  %v3101_v58 = vmul.f32 %v3037_v47, %v12169_v55  ;;  %v3042_v23 = vsub.f32 %v12236_v32, %v12235_v54  ;;  %v3039_v21 = vsub.f32 %v12238_v11, %v12237_v39  ;;  %v12240_v1 = vld [vmem:[#allocation306_spill] sm:$0xff]  ;;  %v12244_v17 = vld [vmem:[#allocation312_spill] sm:$0xff] }
 0x347   : > { %3149 = vadd.xlane.f32.xlu0 %v3148_v25  ;;  %v2657_v31 = vadd.f32 %v2571_v28, %v2465_v34  ;;  %v12228_v25 = vld [vmem:[#allocation74_spill] sm:$0xff]  ;;  %v3035_v26 = vsub.f32 %v12230_v10, %v12229_v6  ;;  %v3166_v13 = vadd.f32 %v3092_v53, %v3091_v60  ;;  %v12241_v34 = vld [vmem:[#allocation307_spill] sm:$0xff]  ;;  %v3046_v24 = vsub.f32 %v12244_v17, %v12243_v45  ;;  %v2471_v60 = vld [vmem:[#allocation4 + $0x50] sm:$0xff] }
 0x348   : > { %2460 = vst.msk [vmem:[#allocation3 + $0xf8] sm:$0xff] %vm2428_vm1, %v2427_v30  ;;  %v3038_v15 = vsub.f32 %v12228_v25, %v12227_v29  ;;  %v12233_v30 = vld [vmem:[#allocation299_spill] sm:$0xff]  ;;  %v12245_v28 = vld [vmem:[#allocation314_spill] sm:$0xff] }
 0x349   : > { %3158 = vadd.xlane.f32.xlu1 %v3157_v14  ;;  %v2562_v19 = vpop.xlane.xlu0 %2561  ;;  %v3096_v14 = vmul.f32 %v3032_v44, %v12170_v3  ;;  %2689 = vst.msk [vmem:[#allocation4 + $0x20] sm:$0xff] %vm2428_vm1, %v2657_v31  ;;  %v3041_v36 = vsub.f32 %v12234_v22, %v12233_v30  ;;  %v12247_v62 = vld [vmem:[#allocation315_spill] sm:$0xff]  ;;  %v12255_v22 = vld [vmem:[#allocation324_spill] sm:$0xff] }
 0x34a   : > { %v2654_v59 = vadd.f32 %v2562_v19, %v2462_v16  ;;  %v2577_v57 = vpop.xlane.xlu1 %2576  ;;  %v3102_v63 = vmul.f32 %v3038_v15, %v12170_v3  ;;  %v3099_v16 = vmul.f32 %v3035_v26, %v12169_v55  ;;  %v12242_v19 = vld [vmem:[#allocation310_spill] sm:$0xff]  ;;  %v3044_v51 = vsub.f32 %v12248_v37, %v12247_v62  ;;  %v2470_v15 = vld [vmem:[#allocation4 + $0x48] sm:$0xff] }
 0x34b   : > { %3155 = vadd.xlane.f32.xlu0 %v3154_v12  ;;  %v2659_v12 = vadd.f32 %v2577_v57, %v2467_v40  ;;  %v3172_v61 = vadd.f32 %v3096_v14, %v3095_v8  ;;  %v3045_v50 = vsub.f32 %v12242_v19, %v12241_v34  ;;  %v12249_v8 = vld [vmem:[#allocation318_spill] sm:$0xff]  ;;  %v12250_v14 = vld [vmem:[#allocation176_spill] sm:$0xff]  ;;  %v12259_v11 = vld [vmem:[#allocation7_spill] sm:$0xff] }
 0x34c   : > { %2686 = vst.msk [vmem:[#allocation4 + $0x8] sm:$0xff] %vm2428_vm1, %v2654_v59  ;;  %v3181_v44 = vadd.f32 %v3102_v63, %v3101_v58  ;;  %v3105_v59 = vmul.f32 %v3041_v36, %v12169_v55  ;;  %v3178_v31 = vadd.f32 %v3100_v27, %v3099_v16  ;;  %v3049_v6 = vsub.f32 %v12250_v14, %v12249_v8  ;;  %v12254_v63 = vld [vmem:[#allocation327_spill] sm:$0xff]  ;;  %v12256_v36 = vld [vmem:[#allocation328_spill] sm:$0xff]  ;;  %v12258_v27 = vld [vmem:[#allocation329_spill] sm:$0xff] }
 0x34d   : > { %3164 = vadd.xlane.f32.xlu1 %v3163_v2  ;;  %v2568_v41 = vpop.xlane.xlu0 %2567  ;;  %2691 = vst.msk [vmem:[#allocation4 + $0x30] sm:$0xff] %vm2428_vm1, %v2659_v12  ;;  %v3040_v2 = vsub.f32 %v12240_v1, %v12239_v38  ;;  %v3109_v40 = vmul.f32 %v3045_v50, %v12169_v55  ;;  %v12253_v12 = vld [vmem:[#allocation323_spill] sm:$0xff]  ;;  %v3048_v54 = vsub.f32 %v12256_v36, %v12255_v22  ;;  %v2475_v1 = vld [vmem:[#allocation4 + $0x70] sm:$0xff]  ;;  %v12263_v19 = vld [vmem:[#allocation93_spill] sm:$0xff] }
 0x34e   : > { %v2656_v20 = vadd.f32 %v2568_v41, %v2464_v18  ;;  %v2583_v43 = vpop.xlane.xlu1 %2582  ;;  %v12246_v18 = vld [vmem:[#allocation94_spill] sm:$0xff]  ;;  %v3110_v41 = vmul.f32 %v3046_v24, %v12170_v3  ;;  %v3047_v30 = vsub.f32 %v12254_v63, %v12253_v12  ;;  %v12264_v50 = vld [vmem:[#allocation101_spill] sm:$0xff]  ;;  %v12269_v8 = vld [vmem:[#allocation339_spill] sm:$0xff] }
 0x34f   : > { %3161 = vadd.xlane.f32.xlu0 %v3160_v52  ;;  %v2661_v48 = vadd.f32 %v2583_v43, %v2469_v0  ;;  %v3106_v52 = vmul.f32 %v3042_v23, %v12170_v3  ;;  %v3043_v56 = vsub.f32 %v12246_v18, %v12245_v28  ;;  %v3104_v29 = vmul.f32 %v3040_v2, %v12170_v3  ;;  %v2472_v0 = vld [vmem:[#allocation4 + $0x58] sm:$0xff]  ;;  %v12261_v43 = vld [vmem:[#allocation92_spill] sm:$0xff]  ;;  %v12267_v18 = vld [vmem:[#allocation98_spill] sm:$0xff] }
 0x350   : > { %2688 = vst.msk [vmem:[#allocation4 + $0x18] sm:$0xff] %vm2428_vm1, %v2656_v20  ;;  %v12251_v20 = vld [vmem:[#allocation322_spill] sm:$0xff]  ;;  %v3193_v23 = vadd.f32 %v3110_v41, %v3109_v40  ;;  %v3052_v45 = vsub.f32 %v12264_v50, %v12263_v19  ;;  %v12270_v14 = vld [vmem:[#allocation341_spill] sm:$0xff]  ;;  %v12275_v63 = vld [vmem:[#allocation199_spill] sm:$0xff] }
 0x351   : > { %3170 = vadd.xlane.f32.xlu1 %v3169_v4  ;;  %v2574_v9 = vpop.xlane.xlu0 %2573  ;;  %2693 = vst.msk [vmem:[#allocation4 + $0x40] sm:$0xff] %vm2428_vm1, %v2661_v48  ;;  %v3103_v4 = vmul.f32 %v3039_v21, %v12169_v55  ;;  %v3187_v26 = vadd.f32 %v3106_v52, %v3105_v59  ;;  %v3107_v57 = vmul.f32 %v3043_v56, %v12169_v55  ;;  %v12260_v21 = vld [vmem:[#allocation330_spill] sm:$0xff]  ;;  %v2474_v52 = vld [vmem:[#allocation4 + $0x68] sm:$0xff]  ;;  %v12268_v56 = vld [vmem:[#allocation337_spill] sm:$0xff] }
 0x352   : > { %v2658_v49 = vadd.f32 %v2574_v9, %v2466_v46  ;;  %v2589_v25 = vpop.xlane.xlu1 %2588  ;;  %v3113_v9 = vmul.f32 %v3049_v6, %v12169_v55  ;;  %v3054_v38 = vsub.f32 %v12260_v21, %v12259_v11  ;;  %v3111_v48 = vmul.f32 %v3047_v30, %v12169_v55  ;;  %v12276_v30 = vld [vmem:[#allocation200_spill] sm:$0xff] }
 0x353   : > { %3167 = vadd.xlane.f32.xlu0 %v3166_v13  ;;  %v2663_v10 = vadd.f32 %v2589_v25, %v2471_v60  ;;  %v12252_v13 = vld [vmem:[#allocation325_spill] sm:$0xff]  ;;  %v3184_v58 = vadd.f32 %v3104_v29, %v3103_v4  ;;  %v12265_v60 = vld [vmem:[#allocation335_spill] sm:$0xff]  ;;  %v3058_v62 = vsub.f32 %v12268_v56, %v12267_v18  ;;  %v2477_v4 = vld [vmem:[#allocation4 + $0x80] sm:$0xff]  ;;  %v3055_v6 = vsub.f32 %v12270_v14, %v12269_v8 }
 0x354   : > { %2690 = vst.msk [vmem:[#allocation4 + $0x28] sm:$0xff] %vm2428_vm1, %v2658_v49  ;;  %v3050_v35 = vsub.f32 %v12252_v13, %v12251_v20  ;;  %v12257_v49 = vld [vmem:[#allocation6_spill] sm:$0xff]  ;;  %v3062_v22 = vsub.f32 %v12276_v30, %v12275_v63  ;;  %v2479_v36 = vld [vmem:[#allocation4 + $0x90] sm:$0xff]  ;;  %v12289_v14 = vld [vmem:[#allocation57_spill] sm:$0xff] }
 0x355   : > { %3176 = vadd.xlane.f32.xlu1 %v3175_v42  ;;  %v2580_v53 = vpop.xlane.xlu0 %2579  ;;  %v3108_v42 = vmul.f32 %v3044_v51, %v12170_v3  ;;  %2695 = vst.msk [vmem:[#allocation4 + $0x50] sm:$0xff] %vm2428_vm1, %v2663_v10  ;;  %v3053_v39 = vsub.f32 %v12258_v27, %v12257_v49  ;;  %v12271_v10 = vld [vmem:[#allocation340_spill] sm:$0xff]  ;;  %v12279_v27 = vld [vmem:[#allocation33_spill] sm:$0xff] }
 0x356   : > { %v2660_v47 = vadd.f32 %v2580_v53, %v2468_v33  ;;  %v3114_v16 = vmul.f32 %v3050_v35, %v12170_v3  ;;  %v12262_v33 = vld [vmem:[#allocation96_spill] sm:$0xff]  ;;  %v2476_v35 = vld [vmem:[#allocation4 + $0x78] sm:$0xff] }
 0x357   : > { %3173 = vadd.xlane.f32.xlu0 %v3172_v61  ;;  %v3051_v34 = vsub.f32 %v12262_v33, %v12261_v43  ;;  %v3190_v24 = vadd.f32 %v3108_v42, %v3107_v57  ;;  %v12266_v53 = vld [vmem:[#allocation336_spill] sm:$0xff]  ;;  %v12273_v57 = vld [vmem:[#allocation343_spill] sm:$0xff]  ;;  %v12274_v42 = vld [vmem:[#allocation14_spill] sm:$0xff]  ;;  %v3126_v33 = vmul.f32 %v3062_v22, %v12170_v3 }
 0x358   : > { %2692 = vst.msk [vmem:[#allocation4 + $0x38] sm:$0xff] %vm2428_vm1, %v2660_v47  ;;  %v3057_v28 = vsub.f32 %v12266_v53, %v12265_v60  ;;  %v3199_v51 = vadd.f32 %v3114_v16, %v3113_v9  ;;  %v3117_v47 = vmul.f32 %v3053_v39, %v12169_v55  ;;  %v3119_v16 = vmul.f32 %v3055_v6, %v12169_v55  ;;  %v12280_v39 = vld [vmem:[#allocation346_spill] sm:$0xff]  ;;  %v12282_v19 = vld [vmem:[#allocation120_spill] sm:$0xff]  ;;  %v12286_v60 = vld [vmem:[#allocation47_spill] sm:$0xff] }
 0x359   : > { %3182 = vadd.xlane.f32.xlu1 %v3181_v44  ;;  %v3112_v44 = vmul.f32 %v3048_v54, %v12170_v3  ;;  %v3115_v25 = vmul.f32 %v3051_v34, %v12169_v55  ;;  %v3060_v11 = vsub.f32 %v12280_v39, %v12279_v27  ;;  %v12281_v34 = vld [vmem:[#allocation26_spill] sm:$0xff]  ;;  %v12290_v6 = vld [vmem:[#allocation52_spill] sm:$0xff]  ;;  %v2486_v39 = vld [vmem:[#allocation4 + $0xc8] sm:$0xff] }
 0x35a   : > { %v3065_v50 = vsub.f32 %v12282_v19, %v12281_v34 }
 0x35b   : > { %3179 = vadd.xlane.f32.xlu0 %v3178_v31  ;;  %v2586_v5 = vpop.xlane.xlu0 %2585  ;;  %v2595_v32 = vpop.xlane.xlu1 %2594  ;;  %v3118_v31 = vmul.f32 %v3054_v38, %v12170_v3  ;;  %v3196_v41 = vadd.f32 %v3112_v44, %v3111_v48  ;;  %v2481_v48 = vld [vmem:[#allocation4 + $0xa0] sm:$0xff]  ;;  %v3124_v56 = vmul.f32 %v3060_v11, %v12170_v3 }
 0x35c   : > { %v2662_v46 = vadd.f32 %v2586_v5, %v2470_v15  ;;  %v2665_v61 = vadd.f32 %v2595_v32, %v2473_v7  ;;  %v3116_v15 = vmul.f32 %v3052_v45, %v12170_v3  ;;  %v3121_v7 = vmul.f32 %v3057_v28, %v12169_v55  ;;  %v12283_v45 = vld [vmem:[#allocation27_spill] sm:$0xff] }
 0x35d   : > { %3188 = vadd.xlane.f32.xlu1 %v3187_v26  ;;  %v12272_v26 = vld [vmem:[#allocation342_spill] sm:$0xff]  ;;  %v3122_v5 = vmul.f32 %v3058_v62, %v12170_v3  ;;  %v3205_v12 = vadd.f32 %v3118_v31, %v3117_v47  ;;  %v2480_v31 = vld [vmem:[#allocation4 + $0x98] sm:$0xff] }
 0x35e   : > { %2694 = vst.msk [vmem:[#allocation4 + $0x48] sm:$0xff] %vm2428_vm1, %v2662_v46  ;;  %2697 = vst.msk [vmem:[#allocation4 + $0x60] sm:$0xff] %vm2428_vm1, %v2665_v61  ;;  %v3056_v20 = vsub.f32 %v12272_v26, %v12271_v10  ;;  %v3061_v46 = vsub.f32 %v12274_v42, %v12273_v57  ;;  %v3202_v32 = vadd.f32 %v3116_v15, %v3115_v25  ;;  %v12287_v62 = vld [vmem:[#allocation54_spill] sm:$0xff]  ;;  %v2482_v42 = vld [vmem:[#allocation4 + $0xa8] sm:$0xff] }
 0x35f   : > { %3185 = vadd.xlane.f32.xlu0 %v3184_v58  ;;  %v2592_v2 = vpop.xlane.xlu0 %2591  ;;  %v3211_v38 = vadd.f32 %v3122_v5, %v3121_v7  ;;  %v3129_v25 = vmul.f32 %v3065_v50, %v12169_v55  ;;  %v3067_v10 = vsub.f32 %v12290_v6, %v12289_v14  ;;  %v12292_v7 = vld [vmem:[#allocation63_spill] sm:$0xff]  ;;  %v2725_v6 = vld [vmem:[#allocation5 + $0x40] sm:$0xff] }
 0x360   : > { %v2664_v17 = vadd.f32 %v2592_v2, %v2472_v0  ;;  %v12278_v0 = vld [vmem:[#allocation345_spill] sm:$0xff]  ;;  %v3120_v49 = vmul.f32 %v3056_v20, %v12170_v3  ;;  %v3125_v2 = vmul.f32 %v3061_v46, %v12169_v55  ;;  %v2490_v50 = vld [vmem:[#allocation4 + $0xe8] sm:$0xff] }
 0x361   : > { %3194 = vadd.xlane.f32.xlu1 %v3193_v23  ;;  %v12277_v23 = vld [vmem:[#allocation100_spill] sm:$0xff] }
 0x362   : > { %v2601_v59 = vpop.xlane.xlu1 %2600  ;;  %2696 = vst.msk [vmem:[#allocation4 + $0x58] sm:$0xff] %vm2428_vm1, %v2664_v17  ;;  %v3059_v9 = vsub.f32 %v12278_v0, %v12277_v23  ;;  %v12284_v17 = vld [vmem:[#allocation37_spill] sm:$0xff]  ;;  %v3208_v18 = vadd.f32 %v3120_v49, %v3119_v16 }
 0x363   : > { %v2667_v37 = vadd.f32 %v2601_v59, %v2475_v1  ;;  %3191 = vadd.xlane.f32.xlu0 %v3190_v24  ;;  %v2478_v1 = vld [vmem:[#allocation4 + $0x88] sm:$0xff]  ;;  %v3066_v24 = vsub.f32 %v12284_v17, %v12283_v45  ;;  %v2484_v23 = vld [vmem:[#allocation4 + $0xb8] sm:$0xff]  ;;  %v2717_v17 = vld [vmem:[#allocation5] sm:$0xff] }
 0x364   : > { %v2598_v29 = vpop.xlane.xlu0 %2597  ;;  %v3123_v59 = vmul.f32 %v3059_v9, %v12169_v55  ;;  %v2487_v9 = vld [vmem:[#allocation4 + $0xd0] sm:$0xff] }
 0x365   : > { %2699 = vst.msk [vmem:[#allocation4 + $0x70] sm:$0xff] %vm2428_vm1, %v2667_v37  ;;  %3200 = vadd.xlane.f32.xlu1 %v3199_v51  ;;  %v2666_v40 = vadd.f32 %v2598_v29, %v2474_v52  ;;  %v12285_v52 = vld [vmem:[#allocation53_spill] sm:$0xff]  ;;  %v12288_v37 = vld [vmem:[#allocation48_spill] sm:$0xff]  ;;  %v3217_v29 = vadd.f32 %v3126_v33, %v3125_v2  ;;  %v3130_v15 = vmul.f32 %v3066_v24, %v12170_v3 }
 0x366   : > { %v2607_v13 = vpop.xlane.xlu1 %2606  ;;  %v3063_v53 = vsub.f32 %v12286_v60, %v12285_v52  ;;  %v3064_v51 = vsub.f32 %v12288_v37, %v12287_v62  ;;  %v3214_v20 = vadd.f32 %v3124_v56, %v3123_v59  ;;  %v2492_v59 = vld [vmem:[#allocation4 + $0xf8] sm:$0xff]  ;;  %v2719_v60 = vld [vmem:[#allocation5 + $0x10] sm:$0xff]  ;;  %v2718_v56 = vld [vmem:[#allocation5 + $0x8] sm:$0xff] }
 0x367   : > { %v2669_v58 = vadd.f32 %v2607_v13, %v2477_v4  ;;  %2698 = vst.msk [vmem:[#allocation4 + $0x68] sm:$0xff] %vm2428_vm1, %v2666_v40  ;;  %3197 = vadd.xlane.f32.xlu0 %v3196_v41  ;;  %v2483_v40 = vld [vmem:[#allocation4 + $0xb0] sm:$0xff]  ;;  %v2721_v37 = vld [vmem:[#allocation5 + $0x20] sm:$0xff] }
 0x368   : > { %v2604_v54 = vpop.xlane.xlu0 %2603  ;;  %v3127_v8 = vmul.f32 %v3063_v53, %v12169_v55  ;;  %v3128_v13 = vmul.f32 %v3064_v51, %v12170_v3 }
 0x369   : > { %2701 = vst.msk [vmem:[#allocation4 + $0x80] sm:$0xff] %vm2428_vm1, %v2669_v58  ;;  %3206 = vadd.xlane.f32.xlu1 %v3205_v12  ;;  %v2668_v61 = vadd.f32 %v2604_v54, %v2476_v35  ;;  %v12291_v35 = vld [vmem:[#allocation51_spill] sm:$0xff]  ;;  %v3223_v58 = vadd.f32 %v3130_v15, %v3129_v25  ;;  %v2485_v12 = vld [vmem:[#allocation4 + $0xc0] sm:$0xff]  ;;  %v2723_v25 = vld [vmem:[#allocation5 + $0x30] sm:$0xff] }
 0x36a   : > { %v2613_v21 = vpop.xlane.xlu1 %2612  ;;  %v3068_v5 = vsub.f32 %v12292_v7, %v12291_v35  ;;  %v3220_v22 = vadd.f32 %v3128_v13, %v3127_v8  ;;  %v2722_v8 = vld [vmem:[#allocation5 + $0x28] sm:$0xff]  ;;  %v2724_v13 = vld [vmem:[#allocation5 + $0x38] sm:$0xff]  ;;  %v2727_v7 = vld [vmem:[#allocation5 + $0x50] sm:$0xff] }
 0x36b   : > { %v2671_v43 = vadd.f32 %v2613_v21, %v2479_v36  ;;  %2700 = vst.msk [vmem:[#allocation4 + $0x78] sm:$0xff] %vm2428_vm1, %v2668_v61  ;;  %3203 = vadd.xlane.f32.xlu0 %v3202_v32  ;;  %v3131_v36 = vmul.f32 %v3067_v10, %v12169_v55  ;;  %v2489_v55 = vld [vmem:[#allocation4 + $0xe0] sm:$0xff] }
 0x36c   : > { %v2610_v44 = vpop.xlane.xlu0 %2609  ;;  %v3132_v54 = vmul.f32 %v3068_v5, %v12170_v3 }
 0x36d   : > { %2703 = vst.msk [vmem:[#allocation4 + $0x90] sm:$0xff] %vm2428_vm1, %v2671_v43  ;;  %3212 = vadd.xlane.f32.xlu1 %v3211_v38  ;;  %v2670_v28 = vadd.f32 %v2610_v44, %v2478_v1  ;;  %v2488_v1 = vld [vmem:[#allocation4 + $0xd8] sm:$0xff]  ;;  %v2491_v43 = vld [vmem:[#allocation4 + $0xf0] sm:$0xff] }
 0x36e   : > { %v2619_v47 = vpop.xlane.xlu1 %2618  ;;  %v3226_v49 = vadd.f32 %v3132_v54, %v3131_v36  ;;  %v2728_v36 = vld [vmem:[#allocation5 + $0x58] sm:$0xff] }
 0x36f   : > { %v2673_v4 = vadd.f32 %v2619_v47, %v2481_v48  ;;  %2702 = vst.msk [vmem:[#allocation4 + $0x88] sm:$0xff] %vm2428_vm1, %v2670_v28  ;;  %3209 = vadd.xlane.f32.xlu0 %v3208_v18 }
 0x370   : > { %v2616_v41 = vpop.xlane.xlu0 %2615 }
 0x371   : > { %2705 = vst.msk [vmem:[#allocation4 + $0xa0] sm:$0xff] %vm2428_vm1, %v2673_v4  ;;  %3218 = vadd.xlane.f32.xlu1 %v3217_v29  ;;  %v2672_v26 = vadd.f32 %v2616_v41, %v2480_v31  ;;  %v2720_v4 = vld [vmem:[#allocation5 + $0x18] sm:$0xff] }
 0x372   : > { %v2625_v57 = vpop.xlane.xlu1 %2624 }
 0x373   : > { %v2675_v46 = vadd.f32 %v2625_v57, %v2483_v40  ;;  %2704 = vst.msk [vmem:[#allocation4 + $0x98] sm:$0xff] %vm2428_vm1, %v2672_v26  ;;  %3215 = vadd.xlane.f32.xlu0 %v3214_v20 }
 0x374   : > { %v2622_v63 = vpop.xlane.xlu0 %2621 }
 0x375   : > { %2707 = vst.msk [vmem:[#allocation4 + $0xb0] sm:$0xff] %vm2428_vm1, %v2675_v46  ;;  %3224 = vadd.xlane.f32.xlu1 %v3223_v58  ;;  %v2674_v30 = vadd.f32 %v2622_v63, %v2482_v42  ;;  %v2726_v46 = vld [vmem:[#allocation5 + $0x48] sm:$0xff] }
 0x376   : > { %v2631_v32 = vpop.xlane.xlu1 %2630 }
 0x377   : > { %v2677_v0 = vadd.f32 %v2631_v32, %v2485_v12  ;;  %2706 = vst.msk [vmem:[#allocation4 + $0xa8] sm:$0xff] %vm2428_vm1, %v2674_v30  ;;  %3221 = vadd.xlane.f32.xlu0 %v3220_v22  ;;  %v2729_v12 = vld [vmem:[#allocation5 + $0x60] sm:$0xff]  ;;  %v2731_v32 = vld [vmem:[#allocation5 + $0x70] sm:$0xff] }
 0x378   : > { %v2628_v61 = vpop.xlane.xlu0 %2627 }
 0x379   : > { %2709 = vst.msk [vmem:[#allocation4 + $0xc0] sm:$0xff] %vm2428_vm1, %v2677_v0  ;;  %v2676_v16 = vadd.f32 %v2628_v61, %v2484_v23  ;;  %v2730_v61 = vld [vmem:[#allocation5 + $0x68] sm:$0xff] }
 0x37a   : > { %v2637_v27 = vpop.xlane.xlu1 %2636 }
 0x37b   : > { %v2679_v11 = vadd.f32 %v2637_v27, %v2487_v9  ;;  %2708 = vst.msk [vmem:[#allocation4 + $0xb8] sm:$0xff] %vm2428_vm1, %v2676_v16  ;;  %3227 = vadd.xlane.f32.xlu0 %v3226_v49  ;;  %v2733_v49 = vld [vmem:[#allocation5 + $0x80] sm:$0xff] }
 0x37c   : > { %v2634_v3 = vpop.xlane.xlu0 %2633 }
 0x37d   : > { %2711 = vst.msk [vmem:[#allocation4 + $0xd0] sm:$0xff] %vm2428_vm1, %v2679_v11  ;;  %v2678_v21 = vadd.f32 %v2634_v3, %v2486_v39 }
 0x37e   : > { %v2643_v38 = vpop.xlane.xlu1 %2642 }
 0x37f   : > { %v2681_v2 = vadd.f32 %v2643_v38, %v2489_v55  ;;  %2710 = vst.msk [vmem:[#allocation4 + $0xc8] sm:$0xff] %vm2428_vm1, %v2678_v21  ;;  %v2732_v55 = vld [vmem:[#allocation5 + $0x78] sm:$0xff]  ;;  %v2735_v21 = vld [vmem:[#allocation5 + $0x90] sm:$0xff] }
 0x380   : > { %v2640_v33 = vpop.xlane.xlu0 %2639 }
 0x381   : > { %2713 = vst.msk [vmem:[#allocation4 + $0xe0] sm:$0xff] %vm2428_vm1, %v2681_v2  ;;  %v2680_v34 = vadd.f32 %v2640_v33, %v2488_v1 }
 0x382   : > { %v2649_v19 = vpop.xlane.xlu1 %2648 }
 0x383   : > { %v2683_v45 = vadd.f32 %v2649_v19, %v2491_v43  ;;  %2712 = vst.msk [vmem:[#allocation4 + $0xd8] sm:$0xff] %vm2428_vm1, %v2680_v34  ;;  %v2734_v43 = vld [vmem:[#allocation5 + $0x88] sm:$0xff]  ;;  %v2737_v34 = vld [vmem:[#allocation5 + $0xa0] sm:$0xff] }
 0x384   : > { %v2646_v24 = vpop.xlane.xlu0 %2645 }
 0x385   : > { %2715 = vst.msk [vmem:[#allocation4 + $0xf0] sm:$0xff] %vm2428_vm1, %v2683_v45  ;;  %v2682_v48 = vadd.f32 %v2646_v24, %v2490_v50 }
 0x386   : > { %v2815_v44 = vpop.xlane.xlu1 %2814 }
 0x387   : > { %v2909_v52 = vadd.f32 %v2815_v44, %v2717_v17  ;;  %2714 = vst.msk [vmem:[#allocation4 + $0xe8] sm:$0xff] %vm2428_vm1, %v2682_v48  ;;  %v2736_v17 = vld [vmem:[#allocation5 + $0x98] sm:$0xff]  ;;  %v2739_v48 = vld [vmem:[#allocation5 + $0xb0] sm:$0xff] }
 0x388   : > { %v2652_v53 = vpop.xlane.xlu0 %2651 }
 0x389   : > { %2941 = vst.msk [vmem:[#allocation5] sm:$0xff] %vm2428_vm1, %v2909_v52  ;;  %v2684_v28 = vadd.f32 %v2652_v53, %v2492_v59 }
 0x38a   : > { %v2821_v18 = vpop.xlane.xlu1 %2820 }
 0x38b   : > { %v2911_v62 = vadd.f32 %v2821_v18, %v2719_v60  ;;  %2716 = vst.msk [vmem:[#allocation4 + $0xf8] sm:$0xff] %vm2428_vm1, %v2684_v28  ;;  %v2738_v60 = vld [vmem:[#allocation5 + $0xa8] sm:$0xff]  ;;  %v2741_v28 = vld [vmem:[#allocation5 + $0xc0] sm:$0xff] }
 0x38c   : > { %v2818_v51 = vpop.xlane.xlu0 %2817 }
 0x38d   : > { %2943 = vst.msk [vmem:[#allocation5 + $0x10] sm:$0xff] %vm2428_vm1, %v2911_v62  ;;  %v2910_v47 = vadd.f32 %v2818_v51, %v2718_v56 }
 0x38e   : > { %v2827_v31 = vpop.xlane.xlu1 %2826 }
 0x38f   : > { %v2913_v29 = vadd.f32 %v2827_v31, %v2721_v37  ;;  %2942 = vst.msk [vmem:[#allocation5 + $0x8] sm:$0xff] %vm2428_vm1, %v2910_v47  ;;  %v2740_v37 = vld [vmem:[#allocation5 + $0xb8] sm:$0xff]  ;;  %v2743_v47 = vld [vmem:[#allocation5 + $0xd0] sm:$0xff] }
 0x390   : > { %v2824_v15 = vpop.xlane.xlu0 %2823 }
 0x391   : > { %2945 = vst.msk [vmem:[#allocation5 + $0x20] sm:$0xff] %vm2428_vm1, %v2913_v29  ;;  %v2912_v40 = vadd.f32 %v2824_v15, %v2720_v4 }
 0x392   : > { %v2833_v41 = vpop.xlane.xlu1 %2832 }
 0x393   : > { %v2915_v14 = vadd.f32 %v2833_v41, %v2723_v25  ;;  %2944 = vst.msk [vmem:[#allocation5 + $0x18] sm:$0xff] %vm2428_vm1, %v2912_v40  ;;  %v2742_v25 = vld [vmem:[#allocation5 + $0xc8] sm:$0xff]  ;;  %v2745_v40 = vld [vmem:[#allocation5 + $0xe0] sm:$0xff] }
 0x394   : > { %v2830_v10 = vpop.xlane.xlu0 %2829 }
 0x395   : > { %2947 = vst.msk [vmem:[#allocation5 + $0x30] sm:$0xff] %vm2428_vm1, %v2915_v14  ;;  %v2914_v26 = vadd.f32 %v2830_v10, %v2722_v8 }
 0x396   : > { %v2839_v20 = vpop.xlane.xlu1 %2838 }
 0x397   : > { %v2917_v35 = vadd.f32 %v2839_v20, %v2725_v6  ;;  %2946 = vst.msk [vmem:[#allocation5 + $0x28] sm:$0xff] %vm2428_vm1, %v2914_v26  ;;  %v2744_v6 = vld [vmem:[#allocation5 + $0xd8] sm:$0xff]  ;;  %v2747_v26 = vld [vmem:[#allocation5 + $0xf0] sm:$0xff] }
 0x398   : > { %v2836_v5 = vpop.xlane.xlu0 %2835 }
 0x399   : > { %2949 = vst.msk [vmem:[#allocation5 + $0x40] sm:$0xff] %vm2428_vm1, %v2917_v35  ;;  %v2916_v57 = vadd.f32 %v2836_v5, %v2724_v13 }
 0x39a   : > { %v2845_v42 = vpop.xlane.xlu1 %2844 }
 0x39b   : > { %v2919_v58 = vadd.f32 %v2845_v42, %v2727_v7  ;;  %2948 = vst.msk [vmem:[#allocation5 + $0x38] sm:$0xff] %vm2428_vm1, %v2916_v57  ;;  %v2746_v7 = vld [vmem:[#allocation5 + $0xe8] sm:$0xff]  ;;  %v2973_v57 = vld [vmem:[#allocation2] sm:$0xff] }
 0x39c   : > { %v2842_v63 = vpop.xlane.xlu0 %2841 }
 0x39d   : > { %2951 = vst.msk [vmem:[#allocation5 + $0x50] sm:$0xff] %vm2428_vm1, %v2919_v58  ;;  %v2918_v30 = vadd.f32 %v2842_v63, %v2726_v46 }
 0x39e   : > { %v2851_v22 = vpop.xlane.xlu1 %2850 }
 0x39f   : > { %v2921_v54 = vadd.f32 %v2851_v22, %v2729_v12  ;;  %2950 = vst.msk [vmem:[#allocation5 + $0x48] sm:$0xff] %vm2428_vm1, %v2918_v30  ;;  %v2748_v12 = vld [vmem:[#allocation5 + $0xf8] sm:$0xff]  ;;  %v2975_v30 = vld [vmem:[#allocation2 + $0x10] sm:$0xff] }
 0x3a0   : > { %v2848_v23 = vpop.xlane.xlu0 %2847 }
 0x3a1   : > { %2953 = vst.msk [vmem:[#allocation5 + $0x60] sm:$0xff] %vm2428_vm1, %v2921_v54  ;;  %v2920_v0 = vadd.f32 %v2848_v23, %v2728_v36 }
 0x3a2   : > { %v2857_v9 = vpop.xlane.xlu1 %2856 }
 0x3a3   : > { %v2923_v16 = vadd.f32 %v2857_v9, %v2731_v32  ;;  %2952 = vst.msk [vmem:[#allocation5 + $0x58] sm:$0xff] %vm2428_vm1, %v2920_v0  ;;  %v2974_v32 = vld [vmem:[#allocation2 + $0x8] sm:$0xff]  ;;  %v2977_v0 = vld [vmem:[#allocation2 + $0x20] sm:$0xff] }
 0x3a4   : > { %v2854_v27 = vpop.xlane.xlu0 %2853 }
 0x3a5   : > { %2955 = vst.msk [vmem:[#allocation5 + $0x70] sm:$0xff] %vm2428_vm1, %v2923_v16  ;;  %v2922_v39 = vadd.f32 %v2854_v27, %v2730_v61 }
 0x3a6   : > { %v2863_v11 = vpop.xlane.xlu1 %2862 }
 0x3a7   : > { %v2925_v3 = vadd.f32 %v2863_v11, %v2733_v49  ;;  %2954 = vst.msk [vmem:[#allocation5 + $0x68] sm:$0xff] %vm2428_vm1, %v2922_v39  ;;  %v2976_v49 = vld [vmem:[#allocation2 + $0x18] sm:$0xff]  ;;  %v2979_v39 = vld [vmem:[#allocation2 + $0x30] sm:$0xff] }
 0x3a8   : > { %v2860_v38 = vpop.xlane.xlu0 %2859 }
 0x3a9   : > { %2957 = vst.msk [vmem:[#allocation5 + $0x80] sm:$0xff] %vm2428_vm1, %v2925_v3  ;;  %v2924_v1 = vadd.f32 %v2860_v38, %v2732_v55 }
 0x3aa   : > { %v2869_v2 = vpop.xlane.xlu1 %2868 }
 0x3ab   : > { %v2927_v33 = vadd.f32 %v2869_v2, %v2735_v21  ;;  %2956 = vst.msk [vmem:[#allocation5 + $0x78] sm:$0xff] %vm2428_vm1, %v2924_v1  ;;  %v2978_v21 = vld [vmem:[#allocation2 + $0x28] sm:$0xff]  ;;  %v2981_v1 = vld [vmem:[#allocation2 + $0x40] sm:$0xff] }
 0x3ac   : > { %v2866_v19 = vpop.xlane.xlu0 %2865 }
 0x3ad   : > { %2959 = vst.msk [vmem:[#allocation5 + $0x90] sm:$0xff] %vm2428_vm1, %v2927_v33  ;;  %v2926_v50 = vadd.f32 %v2866_v19, %v2734_v43 }
 0x3ae   : > { %v2875_v45 = vpop.xlane.xlu1 %2874 }
 0x3af   : > { %v2929_v24 = vadd.f32 %v2875_v45, %v2737_v34  ;;  %2958 = vst.msk [vmem:[#allocation5 + $0x88] sm:$0xff] %vm2428_vm1, %v2926_v50  ;;  %v2980_v34 = vld [vmem:[#allocation2 + $0x38] sm:$0xff]  ;;  %v2983_v50 = vld [vmem:[#allocation2 + $0x50] sm:$0xff] }
 0x3b0   : > { %v2872_v44 = vpop.xlane.xlu0 %2871 }
 0x3b1   : > { %2961 = vst.msk [vmem:[#allocation5 + $0xa0] sm:$0xff] %vm2428_vm1, %v2929_v24  ;;  %v2928_v59 = vadd.f32 %v2872_v44, %v2736_v17 }
 0x3b2   : > { %v2881_v52 = vpop.xlane.xlu1 %2880 }
 0x3b3   : > { %v2931_v53 = vadd.f32 %v2881_v52, %v2739_v48  ;;  %2960 = vst.msk [vmem:[#allocation5 + $0x98] sm:$0xff] %vm2428_vm1, %v2928_v59  ;;  %v2982_v48 = vld [vmem:[#allocation2 + $0x48] sm:$0xff]  ;;  %v2985_v59 = vld [vmem:[#allocation2 + $0x60] sm:$0xff] }
 0x3b4   : > { %v2878_v18 = vpop.xlane.xlu0 %2877 }
 0x3b5   : > { %2963 = vst.msk [vmem:[#allocation5 + $0xb0] sm:$0xff] %vm2428_vm1, %v2931_v53  ;;  %v2930_v56 = vadd.f32 %v2878_v18, %v2738_v60 }
 0x3b6   : > { %v2887_v62 = vpop.xlane.xlu1 %2886 }
 0x3b7   : > { %v2933_v51 = vadd.f32 %v2887_v62, %v2741_v28  ;;  %2962 = vst.msk [vmem:[#allocation5 + $0xa8] sm:$0xff] %vm2428_vm1, %v2930_v56  ;;  %v2984_v28 = vld [vmem:[#allocation2 + $0x58] sm:$0xff]  ;;  %v2987_v56 = vld [vmem:[#allocation2 + $0x70] sm:$0xff] }
 0x3b8   : > { %v2884_v31 = vpop.xlane.xlu0 %2883 }
 0x3b9   : > { %2965 = vst.msk [vmem:[#allocation5 + $0xc0] sm:$0xff] %vm2428_vm1, %v2933_v51  ;;  %v2932_v4 = vadd.f32 %v2884_v31, %v2740_v37 }
 0x3ba   : > { %v2893_v29 = vpop.xlane.xlu1 %2892 }
 0x3bb   : > { %v2935_v15 = vadd.f32 %v2893_v29, %v2743_v47  ;;  %2964 = vst.msk [vmem:[#allocation5 + $0xb8] sm:$0xff] %vm2428_vm1, %v2932_v4  ;;  %v2986_v47 = vld [vmem:[#allocation2 + $0x68] sm:$0xff]  ;;  %v2989_v4 = vld [vmem:[#allocation2 + $0x80] sm:$0xff] }
 0x3bc   : > { %v2890_v41 = vpop.xlane.xlu0 %2889 }
 0x3bd   : > { %2967 = vst.msk [vmem:[#allocation5 + $0xd0] sm:$0xff] %vm2428_vm1, %v2935_v15  ;;  %v2934_v8 = vadd.f32 %v2890_v41, %v2742_v25 }
 0x3be   : > { %v2899_v14 = vpop.xlane.xlu1 %2898 }
 0x3bf   : > { %v2937_v10 = vadd.f32 %v2899_v14, %v2745_v40  ;;  %2966 = vst.msk [vmem:[#allocation5 + $0xc8] sm:$0xff] %vm2428_vm1, %v2934_v8  ;;  %v2988_v40 = vld [vmem:[#allocation2 + $0x78] sm:$0xff]  ;;  %v2991_v8 = vld [vmem:[#allocation2 + $0x90] sm:$0xff] }
 0x3c0   : > { %v2896_v20 = vpop.xlane.xlu0 %2895 }
 0x3c1   : > { %2969 = vst.msk [vmem:[#allocation5 + $0xe0] sm:$0xff] %vm2428_vm1, %v2937_v10  ;;  %v2936_v13 = vadd.f32 %v2896_v20, %v2744_v6 }
 0x3c2   : > { %v2905_v35 = vpop.xlane.xlu1 %2904 }
 0x3c3   : > { %v2939_v5 = vadd.f32 %v2905_v35, %v2747_v26  ;;  %2968 = vst.msk [vmem:[#allocation5 + $0xd8] sm:$0xff] %vm2428_vm1, %v2936_v13  ;;  %v2990_v26 = vld [vmem:[#allocation2 + $0x88] sm:$0xff]  ;;  %v2993_v13 = vld [vmem:[#allocation2 + $0xa0] sm:$0xff] }
 0x3c4   : > { %v2902_v42 = vpop.xlane.xlu0 %2901 }
 0x3c5   : > { %2971 = vst.msk [vmem:[#allocation5 + $0xf0] sm:$0xff] %vm2428_vm1, %v2939_v5  ;;  %v2938_v46 = vadd.f32 %v2902_v42, %v2746_v7 }
 0x3c6   : > { %v3135_v58 = vpop.xlane.xlu1 %3134 }
 0x3c7   : > { %v3229_v63 = vadd.f32 %v3135_v58, %v2973_v57  ;;  %2970 = vst.msk [vmem:[#allocation5 + $0xe8] sm:$0xff] %vm2428_vm1, %v2938_v46  ;;  %v2992_v57 = vld [vmem:[#allocation2 + $0x98] sm:$0xff]  ;;  %v2995_v46 = vld [vmem:[#allocation2 + $0xb0] sm:$0xff] }
 0x3c8   : > { %v2908_v22 = vpop.xlane.xlu0 %2907 }
 0x3c9   : > { %3261 = vst.msk [vmem:[#allocation2] sm:$0xff] %vm2428_vm1, %v3229_v63  ;;  %v2940_v36 = vadd.f32 %v2908_v22, %v2748_v12 }
 0x3ca   : > { %v3141_v54 = vpop.xlane.xlu1 %3140 }
 0x3cb   : > { %v3231_v23 = vadd.f32 %v3141_v54, %v2975_v30  ;;  %2972 = vst.msk [vmem:[#allocation5 + $0xf8] sm:$0xff] %vm2428_vm1, %v2940_v36  ;;  %v2994_v30 = vld [vmem:[#allocation2 + $0xa8] sm:$0xff]  ;;  %v2997_v36 = vld [vmem:[#allocation2 + $0xc0] sm:$0xff] }
 0x3cc   : > { %v3138_v9 = vpop.xlane.xlu0 %3137 }
 0x3cd   : > { %3263 = vst.msk [vmem:[#allocation2 + $0x10] sm:$0xff] %vm2428_vm1, %v3231_v23  ;;  %v3230_v61 = vadd.f32 %v3138_v9, %v2974_v32 }
 0x3ce   : > { %v3147_v16 = vpop.xlane.xlu1 %3146 }
 0x3cf   : > { %v3233_v27 = vadd.f32 %v3147_v16, %v2977_v0  ;;  %3262 = vst.msk [vmem:[#allocation2 + $0x8] sm:$0xff] %vm2428_vm1, %v3230_v61  ;;  %v2996_v0 = vld [vmem:[#allocation2 + $0xb8] sm:$0xff]  ;;  %v2999_v61 = vld [vmem:[#allocation2 + $0xd0] sm:$0xff] }
 0x3d0   : > { %v3144_v11 = vpop.xlane.xlu0 %3143 }
 0x3d1   : > { %3265 = vst.msk [vmem:[#allocation2 + $0x20] sm:$0xff] %vm2428_vm1, %v3233_v27  ;;  %v3232_v55 = vadd.f32 %v3144_v11, %v2976_v49 }
 0x3d2   : > { %v3153_v3 = vpop.xlane.xlu1 %3152 }
 0x3d3   : > { %v3235_v38 = vadd.f32 %v3153_v3, %v2979_v39  ;;  %3264 = vst.msk [vmem:[#allocation2 + $0x18] sm:$0xff] %vm2428_vm1, %v3232_v55  ;;  %v2998_v39 = vld [vmem:[#allocation2 + $0xc8] sm:$0xff]  ;;  %v3001_v55 = vld [vmem:[#allocation2 + $0xe0] sm:$0xff] }
 0x3d4   : > { %v3150_v2 = vpop.xlane.xlu0 %3149 }
 0x3d5   : > { %3267 = vst.msk [vmem:[#allocation2 + $0x30] sm:$0xff] %vm2428_vm1, %v3235_v38  ;;  %v3234_v43 = vadd.f32 %v3150_v2, %v2978_v21 }
 0x3d6   : > { %v3159_v33 = vpop.xlane.xlu1 %3158 }
 0x3d7   : > { %v3237_v19 = vadd.f32 %v3159_v33, %v2981_v1  ;;  %3266 = vst.msk [vmem:[#allocation2 + $0x28] sm:$0xff] %vm2428_vm1, %v3234_v43  ;;  %v3000_v1 = vld [vmem:[#allocation2 + $0xd8] sm:$0xff]  ;;  %v3003_v43 = vld [vmem:[#allocation2 + $0xf0] sm:$0xff] }
 0x3d8   : > { %v3156_v45 = vpop.xlane.xlu0 %3155 }
 0x3d9   : > { %3269 = vst.msk [vmem:[#allocation2 + $0x40] sm:$0xff] %vm2428_vm1, %v3237_v19  ;;  %v3236_v17 = vadd.f32 %v3156_v45, %v2980_v34 }
 0x3da   : > { %v3165_v24 = vpop.xlane.xlu1 %3164 }
 0x3db   : > { %v3239_v44 = vadd.f32 %v3165_v24, %v2983_v50  ;;  %3268 = vst.msk [vmem:[#allocation2 + $0x38] sm:$0xff] %vm2428_vm1, %v3236_v17  ;;  %v3002_v50 = vld [vmem:[#allocation2 + $0xe8] sm:$0xff] }
 0x3dc   : > { %v3162_v52 = vpop.xlane.xlu0 %3161 }
 0x3dd   : > { %3271 = vst.msk [vmem:[#allocation2 + $0x50] sm:$0xff] %vm2428_vm1, %v3239_v44  ;;  %v3238_v60 = vadd.f32 %v3162_v52, %v2982_v48  ;;  %v3004_v48 = vld [vmem:[#allocation2 + $0xf8] sm:$0xff]  ;;  %v3361_v52 = vld [vmem:[#allocation2] sm:$0xff] (!%p4761_p6) }
 0x3de   : > { %v3171_v53 = vpop.xlane.xlu1 %3170  ;;  %3425 = vrot.lane.b32.xlu0 (!%p4761_p6), %v3361_v52, %s4960_s17 }
 0x3df   : > { %v3241_v18 = vadd.f32 %v3171_v53, %v2985_v59  ;;  %3270 = vst.msk [vmem:[#allocation2 + $0x48] sm:$0xff] %vm2428_vm1, %v3238_v60  ;;  %v3363_v60 = vld [vmem:[#allocation2 + $0x10] sm:$0xff] (!%p4761_p6)  ;;  %v3362_v53 = vld [vmem:[#allocation2 + $0x8] sm:$0xff] (!%p4761_p6) }
 0x3e0   : > { %v3168_v62 = vpop.xlane.xlu0 %3167  ;;  %3429 = vrot.lane.b32.xlu1 (!%p4761_p6), %v3363_v60, %s4960_s17 }
 0x3e1   : > { %3273 = vst.msk [vmem:[#allocation2 + $0x60] sm:$0xff] %vm2428_vm1, %v3241_v18  ;;  %v3240_v37 = vadd.f32 %v3168_v62, %v2984_v28  ;;  %v3364_v28 = vld [vmem:[#allocation2 + $0x18] sm:$0xff] (!%p4761_p6)  ;;  %v3366_v18 = vld [vmem:[#allocation2 + $0x28] sm:$0xff] (!%p4761_p6) }
 0x3e2   : > { %v3177_v51 = vpop.xlane.xlu1 %3176  ;;  %3427 = vrot.lane.b32.xlu0 (!%p4761_p6), %v3362_v53, %s4960_s17  ;;  %v3368_v62 = vld [vmem:[#allocation2 + $0x38] sm:$0xff] (!%p4761_p6)  ;;  %v9844_v53 = vld [vmem:[%s10874_s0 + $0x50] sm:$0xff] (!%p4761_p6) }
 0x3e3   : > { %v3243_v31 = vadd.f32 %v3177_v51, %v2987_v56  ;;  %3272 = vst.msk [vmem:[#allocation2 + $0x58] sm:$0xff] %vm2428_vm1, %v3240_v37  ;;  %v3365_v56 = vld [vmem:[#allocation2 + $0x20] sm:$0xff] (!%p4761_p6)  ;;  %v3367_v37 = vld [vmem:[#allocation2 + $0x30] sm:$0xff] (!%p4761_p6) }
 0x3e4   : > { %v3174_v29 = vpop.xlane.xlu0 %3173  ;;  %3431 = vrot.lane.b32.xlu1 (!%p4761_p6), %v3364_v28, %s4960_s17 }
 0x3e5   : > { %3275 = vst.msk [vmem:[#allocation2 + $0x70] sm:$0xff] %vm2428_vm1, %v3243_v31  ;;  %v3242_v25 = vadd.f32 %v3174_v29, %v2986_v47  ;;  %v3369_v47 = vld [vmem:[#allocation2 + $0x40] sm:$0xff] (!%p4761_p6) }
 0x3e6   : > { %v3183_v15 = vpop.xlane.xlu1 %3182  ;;  %3433 = vrot.lane.b32.xlu0 (!%p4761_p6), %v3365_v56, %s4960_s17  ;;  %v3370_v51 = vld [vmem:[#allocation2 + $0x48] sm:$0xff] (!%p4761_p6) }
 0x3e7   : > { %v3245_v41 = vadd.f32 %v3183_v15, %v2989_v4  ;;  %3274 = vst.msk [vmem:[#allocation2 + $0x68] sm:$0xff] %vm2428_vm1, %v3242_v25  ;;  %v3371_v4 = vld [vmem:[#allocation2 + $0x50] sm:$0xff] (!%p4761_p6) }
 0x3e8   : > { %v3180_v14 = vpop.xlane.xlu0 %3179  ;;  %3435 = vrot.lane.b32.xlu1 (!%p4761_p6), %v3366_v18, %s4960_s17  ;;  %v3373_v25 = vld [vmem:[#allocation2 + $0x60] sm:$0xff] (!%p4761_p6) }
 0x3e9   : > { %3277 = vst.msk [vmem:[#allocation2 + $0x80] sm:$0xff] %vm2428_vm1, %v3245_v41  ;;  %v3244_v6 = vadd.f32 %v3180_v14, %v2988_v40 }
 0x3ea   : > { %v3189_v10 = vpop.xlane.xlu1 %3188  ;;  %3437 = vrot.lane.b32.xlu0 (!%p4761_p6), %v3367_v37, %s4960_s17  ;;  %v3372_v31 = vld [vmem:[#allocation2 + $0x58] sm:$0xff] (!%p4761_p6) }
 0x3eb   : > { %v3247_v20 = vadd.f32 %v3189_v10, %v2991_v8  ;;  %3276 = vst.msk [vmem:[#allocation2 + $0x78] sm:$0xff] %vm2428_vm1, %v3244_v6  ;;  %v9852_v37 = vld [vmem:[%s10874_s0 + $0x58] sm:$0xff] (!%p4761_p6) }
 0x3ec   : > { %v3186_v35 = vpop.xlane.xlu0 %3185  ;;  %3439 = vrot.lane.b32.xlu1 (!%p4761_p6), %v3368_v62, %s4960_s17  ;;  %v3375_v40 = vld [vmem:[#allocation2 + $0x70] sm:$0xff] (!%p4761_p6) }
 0x3ed   : > { %3279 = vst.msk [vmem:[#allocation2 + $0x90] sm:$0xff] %vm2428_vm1, %v3247_v20  ;;  %v3246_v7 = vadd.f32 %v3186_v35, %v2990_v26 }
 0x3ee   : > { %v3195_v5 = vpop.xlane.xlu1 %3194  ;;  %3441 = vrot.lane.b32.xlu0 (!%p4761_p6), %v3369_v47, %s4960_s17  ;;  %v3374_v29 = vld [vmem:[#allocation2 + $0x68] sm:$0xff] (!%p4761_p6)  ;;  %v3339_v47 = vmul.f32 (!%p4761_p6), 2.0, %v9844_v53 }
 0x3ef   : > { %v3249_v42 = vadd.f32 %v3195_v5, %v2993_v13  ;;  %3278 = vst.msk [vmem:[#allocation2 + $0x88] sm:$0xff] %vm2428_vm1, %v3246_v7 }
 0x3f0   : > { %v3192_v58 = vpop.xlane.xlu0 %3191  ;;  %3443 = vrot.lane.b32.xlu1 (!%p4761_p6), %v3370_v51, %s4960_s17  ;;  %v3377_v8 = vld [vmem:[#allocation2 + $0x80] sm:$0xff] (!%p4761_p6) }
 0x3f1   : > { %3281 = vst.msk [vmem:[#allocation2 + $0xa0] sm:$0xff] %vm2428_vm1, %v3249_v42  ;;  %v3248_v12 = vadd.f32 %v3192_v58, %v2992_v57 }
 0x3f2   : > { %v3201_v63 = vpop.xlane.xlu1 %3200  ;;  %3445 = vrot.lane.b32.xlu0 (!%p4761_p6), %v3371_v4, %s4960_s17  ;;  %v3376_v15 = vld [vmem:[#allocation2 + $0x78] sm:$0xff] (!%p4761_p6) }
 0x3f3   : > { %v3251_v22 = vadd.f32 %v3201_v63, %v2995_v46  ;;  %3280 = vst.msk [vmem:[#allocation2 + $0x98] sm:$0xff] %vm2428_vm1, %v3248_v12  ;;  %v9780_v63 = vld [vmem:[%s10874_s0] sm:$0xff] (!%p4761_p6) }
 0x3f4   : > { %v3198_v54 = vpop.xlane.xlu0 %3197  ;;  %3447 = vrot.lane.b32.xlu1 (!%p4761_p6), %v3372_v31, %s4960_s17  ;;  %v3379_v6 = vld [vmem:[#allocation2 + $0x90] sm:$0xff] (!%p4761_p6)  ;;  %v9858_v31 = vld [vmem:[%s10874_s0 + $0x60] sm:$0xff] (!%p4761_p6) }
 0x3f5   : > { %3283 = vst.msk [vmem:[#allocation2 + $0xb0] sm:$0xff] %vm2428_vm1, %v3251_v22  ;;  %v3250_v32 = vadd.f32 %v3198_v54, %v2994_v30  ;;  %v9785_v30 = vld [vmem:[%s10874_s0 + $0x10] sm:$0xff] (!%p4761_p6)  ;;  %v3329_v22 = vmul.f32 (!%p4761_p6), 2.0, %v9780_v63 }
 0x3f6   : > { %v3207_v23 = vpop.xlane.xlu1 %3206  ;;  %3449 = vrot.lane.b32.xlu0 (!%p4761_p6), %v3373_v25, %s4960_s17  ;;  %v3378_v41 = vld [vmem:[#allocation2 + $0x88] sm:$0xff] (!%p4761_p6)  ;;  %v3331_v54 = vmul.f32 (!%p4761_p6), 2.0, %v9785_v30 }
 0x3f7   : > { %v3253_v9 = vadd.f32 %v3207_v23, %v2997_v36  ;;  %3282 = vst.msk [vmem:[#allocation2 + $0xa8] sm:$0xff] %vm2428_vm1, %v3250_v32  ;;  %v9791_v36 = vld [vmem:[%s10874_s0 + $0x8] sm:$0xff] (!%p4761_p6) }
 0x3f8   : > { %v3204_v16 = vpop.xlane.xlu0 %3203  ;;  %3451 = vrot.lane.b32.xlu1 (!%p4761_p6), %v3374_v29, %s4960_s17  ;;  %v3381_v26 = vld [vmem:[#allocation2 + $0xa0] sm:$0xff] (!%p4761_p6)  ;;  %v3340_v29 = vmul.f32 (!%p4761_p6), 2.0, %v9852_v37 }
 0x3f9   : > { %3285 = vst.msk [vmem:[#allocation2 + $0xc0] sm:$0xff] %vm2428_vm1, %v3253_v9  ;;  %v3252_v49 = vadd.f32 %v3204_v16, %v2996_v0  ;;  %v9797_v0 = vld [vmem:[%s10874_s0 + $0x18] sm:$0xff] (!%p4761_p6)  ;;  %v9803_v16 = vld [vmem:[%s10874_s0 + $0x20] sm:$0xff] (!%p4761_p6) }
 0x3fa   : > { %v3213_v27 = vpop.xlane.xlu1 %3212  ;;  %3453 = vrot.lane.b32.xlu0 (!%p4761_p6), %v3375_v40, %s4960_s17  ;;  %v3380_v14 = vld [vmem:[#allocation2 + $0x98] sm:$0xff] (!%p4761_p6)  ;;  %v9866_v40 = vld [vmem:[%s10874_s0 + $0x68] sm:$0xff] (!%p4761_p6) }
 0x3fb   : > { %v3255_v11 = vadd.f32 %v3213_v27, %v2999_v61  ;;  %3284 = vst.msk [vmem:[#allocation2 + $0xb8] sm:$0xff] %vm2428_vm1, %v3252_v49  ;;  %v3330_v61 = vmul.f32 (!%p4761_p6), 2.0, %v9791_v36  ;;  %v3332_v27 = vmul.f32 (!%p4761_p6), 2.0, %v9797_v0 }
 0x3fc   : > { %v3210_v3 = vpop.xlane.xlu0 %3209  ;;  %3455 = vrot.lane.b32.xlu1 (!%p4761_p6), %v3376_v15, %s4960_s17  ;;  %v3383_v13 = vld [vmem:[#allocation2 + $0xb0] sm:$0xff] (!%p4761_p6) }
 0x3fd   : > { %3287 = vst.msk [vmem:[#allocation2 + $0xd0] sm:$0xff] %vm2428_vm1, %v3255_v11  ;;  %v3254_v21 = vadd.f32 %v3210_v3, %v2998_v39 }
 0x3fe   : > { %v3219_v38 = vpop.xlane.xlu1 %3218  ;;  %3457 = vrot.lane.b32.xlu0 (!%p4761_p6), %v3377_v8, %s4960_s17  ;;  %v3382_v10 = vld [vmem:[#allocation2 + $0xa8] sm:$0xff] (!%p4761_p6)  ;;  %v3341_v8 = vmul.f32 (!%p4761_p6), 2.0, %v9858_v31 }
 0x3ff   : > { %v3257_v2 = vadd.f32 %v3219_v38, %v3001_v55  ;;  %3286 = vst.msk [vmem:[#allocation2 + $0xc8] sm:$0xff] %vm2428_vm1, %v3254_v21  ;;  %v9810_v55 = vld [vmem:[%s10874_s0 + $0x28] sm:$0xff] (!%p4761_p6)  ;;  %v3333_v21 = vmul.f32 (!%p4761_p6), 2.0, %v9803_v16  ;;  %v9816_v38 = vld [vmem:[%s10874_s0 + $0x30] sm:$0xff] (!%p4761_p6) }
 0x400   : > { %v3216_v33 = vpop.xlane.xlu0 %3215  ;;  %3459 = vrot.lane.b32.xlu1 (!%p4761_p6), %v3378_v41, %s4960_s17  ;;  %v3385_v7 = vld [vmem:[#allocation2 + $0xc0] sm:$0xff] (!%p4761_p6) }
 0x401   : > { %3289 = vst.msk [vmem:[#allocation2 + $0xe0] sm:$0xff] %vm2428_vm1, %v3257_v2  ;;  %v3256_v34 = vadd.f32 %v3216_v33, %v3000_v1  ;;  %v3334_v2 = vmul.f32 (!%p4761_p6), 2.0, %v9810_v55 }
 0x402   : > { %v3225_v19 = vpop.xlane.xlu1 %3224  ;;  %3461 = vrot.lane.b32.xlu0 (!%p4761_p6), %v3379_v6, %s4960_s17  ;;  %v3384_v20 = vld [vmem:[#allocation2 + $0xb8] sm:$0xff] (!%p4761_p6) }
 0x403   : > { %v3259_v45 = vadd.f32 %v3225_v19, %v3003_v43  ;;  %3288 = vst.msk [vmem:[#allocation2 + $0xd8] sm:$0xff] %vm2428_vm1, %v3256_v34  ;;  %v9824_v34 = vld [vmem:[%s10874_s0 + $0x38] sm:$0xff] (!%p4761_p6) }
 0x404   : > { %v3222_v17 = vpop.xlane.xlu0 %3221  ;;  %3463 = vrot.lane.b32.xlu1 (!%p4761_p6), %v3380_v14, %s4960_s17  ;;  %v3387_v57 = vld [vmem:[#allocation2 + $0xd0] sm:$0xff] (!%p4761_p6) }
 0x405   : > { %3291 = vst.msk [vmem:[#allocation2 + $0xf0] sm:$0xff] %vm2428_vm1, %v3259_v45  ;;  %v3258_v24 = vadd.f32 %v3222_v17, %v3002_v50  ;;  %3296 = sbr.rel (%p4761_p6) target bundleno = 1715 (0x6b3), region = 36  ;;  %v3335_v50 = vmul.f32 (!%p4761_p6), 2.0, %v9816_v38  ;;  %v9830_v45 = vld [vmem:[%s10874_s0 + $0x40] sm:$0xff] (!%p4761_p6)  ;;  %v9872_v14 = vld [vmem:[%s10874_s0 + $0x70] sm:$0xff] (!%p4761_p6) }
 0x406   : > { %3465 = vrot.lane.b32.xlu0 (!%p4761_p6), %v3381_v26, %s4960_s17  ;;  %v3386_v35 = vld [vmem:[#allocation2 + $0xc8] sm:$0xff] (!%p4761_p6)  ;;  %v3337_v60 = vmul.f32 (!%p4761_p6), 2.0, %v9830_v45 }
 0x407   : > { %3290 = vst.msk [vmem:[#allocation2 + $0xe8] sm:$0xff] %vm2428_vm1, %v3258_v24  ;;  %v3336_v24 = vmul.f32 (!%p4761_p6), 2.0, %v9824_v34 }
 0x408   : > { %v3228_v44 = vpop.xlane.xlu0 %3227  ;;  %3467 = vrot.lane.b32.xlu1 (!%p4761_p6), %v3382_v10, %s4960_s17  ;;  %v3389_v46 = vld [vmem:[#allocation2 + $0xe0] sm:$0xff] (!%p4761_p6)  ;;  %v3342_v10 = vmul.f32 (!%p4761_p6), 2.0, %v9866_v40 }
 0x409   : > { %v3260_v59 = vadd.f32 %v3228_v44, %v3004_v48 }
 0x40a   : > { %3469 = vrot.lane.b32.xlu0 (!%p4761_p6), %v3383_v13, %s4960_s17  ;;  %v3388_v5 = vld [vmem:[#allocation2 + $0xd8] sm:$0xff] (!%p4761_p6) }
 0x40b   : > { %3292 = vst.msk [vmem:[#allocation2 + $0xf8] sm:$0xff] %vm2428_vm1, %v3260_v59  ;;  %v9838_v59 = vld [vmem:[%s10874_s0 + $0x48] sm:$0xff] (!%p4761_p6)  ;;  %v9880_v13 = vld [vmem:[%s10874_s0 + $0x78] sm:$0xff] (!%p4761_p6) }
 0x40c   : > { %3471 = vrot.lane.b32.xlu1 %v3384_v20, %s4960_s17  ;;  %v3391_v12 = vld [vmem:[#allocation2 + $0xf0] sm:$0xff]  ;;  %v3338_v18 = vmul.f32 2.0, %v9838_v59 }
 0x40e   : > { %3473 = vrot.lane.b32.xlu0 %v3385_v7, %s4960_s17  ;;  %v3390_v42 = vld [vmem:[#allocation2 + $0xe8] sm:$0xff]  ;;  %v3343_v7 = vmul.f32 2.0, %v9872_v14 }
 0x410   : > { %3475 = vrot.lane.b32.xlu1 %v3386_v35, %s4960_s17 }
 0x412   : > { %3477 = vrot.lane.b32.xlu0 %v3387_v57, %s4960_s17  ;;  %v3392_v58 = vld [vmem:[#allocation2 + $0xf8] sm:$0xff] }
 0x414   : > { %3479 = vrot.lane.b32.xlu1 %v3388_v5, %s4960_s17  ;;  %v9886_v5 = vld [vmem:[%s10874_s0 + $0x80] sm:$0xff] }
 0x416   : > { %3481 = vrot.lane.b32.xlu0 %v3389_v46, %s4960_s17 }
 0x418   : > { %3483 = vrot.lane.b32.xlu1 %v3390_v42, %s4960_s17  ;;  %v3344_v42 = vmul.f32 2.0, %v9880_v13 }
 0x41a   : > { %3485 = vrot.lane.b32.xlu0 %v3391_v12, %s4960_s17  ;;  %v9894_v12 = vld [vmem:[%s10874_s0 + $0x88] sm:$0xff] }
 0x41c   : > { %3487 = vrot.lane.b32.xlu1 %v3392_v58, %s4960_s17 }
 0x450   : > { %v3426_v32 = vpop.permute.xlu0 %3425 }
 0x451   : > { %v3521_v9 = vmul.f32 %v3426_v32, %v3329_v22  ;;  %v9900_v32 = vld [vmem:[%s10874_s0 + $0x90] sm:$0xff] }
 0x452   : > { %v3430_v23 = vpop.permute.xlu1 %3429 }
 0x453   : > { %3585 = vrot.lane.b32.xlu0 %v3521_v9, %s4961_s22  ;;  %v3523_v49 = vmul.f32 %v3430_v23, %v3331_v54  ;;  %v3345_v54 = vmul.f32 2.0, %v9886_v5  ;;  %v3346_v9 = vmul.f32 2.0, %v9894_v12 }
 0x454   : > { %v3428_v39 = vpop.permute.xlu0 %3427 }
 0x455   : > { %v3522_v3 = vmul.f32 %v3428_v39, %v3330_v61 }
 0x456   : > { %v3432_v11 = vpop.permute.xlu1 %3431 }
 0x457   : > { %3587 = vrot.lane.b32.xlu1 %v3522_v3, %s4961_s22  ;;  %3589 = vrot.lane.b32.xlu0 %v3523_v49, %s4961_s22  ;;  %v3524_v1 = vmul.f32 %v3432_v11, %v3332_v27  ;;  %v9908_v27 = vld [vmem:[%s10874_s0 + $0x98] sm:$0xff]  ;;  %v3347_v11 = vmul.f32 2.0, %v9900_v32  ;;  %v9914_v3 = vld [vmem:[%s10874_s0 + $0xa0] sm:$0xff] }
 0x458   : > { %v3434_v33 = vpop.permute.xlu0 %3433 }
 0x459   : > { %v3525_v19 = vmul.f32 %v3434_v33, %v3333_v21  ;;  %v9922_v33 = vld [vmem:[%s10874_s0 + $0xa8] sm:$0xff] }
 0x45a   : > { %v3436_v43 = vpop.permute.xlu1 %3435 }
 0x45b   : > { %3591 = vrot.lane.b32.xlu1 %v3524_v1, %s4961_s22  ;;  %v3526_v17 = vmul.f32 %v3436_v43, %v3334_v2  ;;  %3593 = vrot.lane.b32.xlu0 %v3525_v19, %s4961_s22  ;;  %v3348_v1 = vmul.f32 2.0, %v9908_v27 }
 0x45c   : > { %v3438_v44 = vpop.permute.xlu0 %3437 }
 0x45d   : > { %v3527_v52 = vmul.f32 %v3438_v44, %v3335_v50  ;;  %v3349_v50 = vmul.f32 2.0, %v9914_v3 }
 0x45e   : > { %v3440_v48 = vpop.permute.xlu1 %3439 }
 0x45f   : > { %3595 = vrot.lane.b32.xlu1 %v3526_v17, %s4961_s22  ;;  %v3528_v28 = vmul.f32 %v3440_v48, %v3336_v24  ;;  %3597 = vrot.lane.b32.xlu0 %v3527_v52, %s4961_s22  ;;  %v9928_v17 = vld [vmem:[%s10874_s0 + $0xb0] sm:$0xff]  ;;  %v3350_v48 = vmul.f32 2.0, %v9922_v33 }
 0x460   : > { %v3442_v62 = vpop.permute.xlu0 %3441 }
 0x461   : > { %v3529_v51 = vmul.f32 %v3442_v62, %v3337_v60  ;;  %v9936_v60 = vld [vmem:[%s10874_s0 + $0xb8] sm:$0xff] }
 0x462   : > { %v3444_v56 = vpop.permute.xlu1 %3443 }
 0x463   : > { %3599 = vrot.lane.b32.xlu1 %v3528_v28, %s4961_s22  ;;  %v3530_v4 = vmul.f32 %v3444_v56, %v3338_v18  ;;  %3601 = vrot.lane.b32.xlu0 %v3529_v51, %s4961_s22  ;;  %v3351_v18 = vmul.f32 2.0, %v9928_v17  ;;  %v9942_v56 = vld [vmem:[%s10874_s0 + $0xc0] sm:$0xff]  ;;  %v3352_v51 = vmul.f32 2.0, %v9936_v60 }
 0x464   : > { %v3446_v15 = vpop.permute.xlu0 %3445 }
 0x465   : > { %v3531_v41 = vmul.f32 %v3446_v15, %v3339_v47  ;;  %v3353_v15 = vmul.f32 2.0, %v9942_v56 }
 0x466   : > { %v3448_v25 = vpop.permute.xlu1 %3447 }
 0x467   : > { %3603 = vrot.lane.b32.xlu1 %v3530_v4, %s4961_s22  ;;  %v3532_v6 = vmul.f32 %v3448_v25, %v3340_v29  ;;  %3605 = vrot.lane.b32.xlu0 %v3531_v41, %s4961_s22  ;;  %v9950_v29 = vld [vmem:[%s10874_s0 + $0xc8] sm:$0xff]  ;;  %v9956_v41 = vld [vmem:[%s10874_s0 + $0xd0] sm:$0xff] }
 0x468   : > { %v3450_v20 = vpop.permute.xlu0 %3449 }
 0x469   : > { %v3533_v35 = vmul.f32 %v3450_v20, %v3341_v8  ;;  %v9964_v20 = vld [vmem:[%s10874_s0 + $0xd8] sm:$0xff] }
 0x46a   : > { %v3452_v26 = vpop.permute.xlu1 %3451 }
 0x46b   : > { %3607 = vrot.lane.b32.xlu1 %v3532_v6, %s4961_s22  ;;  %v3534_v57 = vmul.f32 %v3452_v26, %v3342_v10  ;;  %3609 = vrot.lane.b32.xlu0 %v3533_v35, %s4961_s22  ;;  %v3354_v6 = vmul.f32 2.0, %v9950_v29 }
 0x46c   : > { %v3454_v58 = vpop.permute.xlu0 %3453 }
 0x46d   : > { %v3535_v22 = vmul.f32 %v3454_v58, %v3343_v7  ;;  %v3355_v7 = vmul.f32 2.0, %v9956_v41 }
 0x46e   : > { %v3456_v46 = vpop.permute.xlu1 %3455 }
 0x46f   : > { %3611 = vrot.lane.b32.xlu1 %v3534_v57, %s4961_s22  ;;  %v3536_v23 = vmul.f32 %v3456_v46, %v3344_v42  ;;  %3613 = vrot.lane.b32.xlu0 %v3535_v22, %s4961_s22  ;;  %v9970_v57 = vld [vmem:[%s10874_s0 + $0xe0] sm:$0xff]  ;;  %v3356_v46 = vmul.f32 2.0, %v9964_v20 }
 0x470   : > { %v3458_v49 = vpop.permute.xlu0 %3457 }
 0x471   : > { %v3537_v39 = vmul.f32 %v3458_v49, %v3345_v54  ;;  %v9978_v54 = vld [vmem:[%s10874_s0 + $0xe8] sm:$0xff] }
 0x472   : > { %v3460_v61 = vpop.permute.xlu1 %3459 }
 0x473   : > { %3615 = vrot.lane.b32.xlu1 %v3536_v23, %s4961_s22  ;;  %v3538_v21 = vmul.f32 %v3460_v61, %v3346_v9  ;;  %3617 = vrot.lane.b32.xlu0 %v3537_v39, %s4961_s22  ;;  %v3357_v9 = vmul.f32 2.0, %v9970_v57  ;;  %v9984_v61 = vld [vmem:[%s10874_s0 + $0xf0] sm:$0xff]  ;;  %v3358_v39 = vmul.f32 2.0, %v9978_v54 }
 0x474   : > { %v3462_v43 = vpop.permute.xlu0 %3461 }
 0x475   : > { %v3539_v19 = vmul.f32 %v3462_v43, %v3347_v11  ;;  %v3359_v43 = vmul.f32 2.0, %v9984_v61 }
 0x476   : > { %v3464_v2 = vpop.permute.xlu1 %3463 }
 0x477   : > { %3619 = vrot.lane.b32.xlu1 %v3538_v21, %s4961_s22  ;;  %v3540_v24 = vmul.f32 %v3464_v2, %v3348_v1  ;;  %3621 = vrot.lane.b32.xlu0 %v3539_v19, %s4961_s22  ;;  %v9992_v1 = vld [vmem:[%s10874_s0 + $0xf8] sm:$0xff] }
 0x478   : > { %v3466_v52 = vpop.permute.xlu0 %3465 }
 0x479   : > { %v3541_v28 = vmul.f32 %v3466_v52, %v3349_v50  ;;  %v3360_v50 = vmul.f32 2.0, %v9992_v1 }
 0x47a   : > { %v3468_v44 = vpop.permute.xlu1 %3467 }
 0x47b   : > { %3623 = vrot.lane.b32.xlu1 %v3540_v24, %s4961_s22  ;;  %v3542_v62 = vmul.f32 %v3468_v44, %v3350_v48  ;;  %3625 = vrot.lane.b32.xlu0 %v3541_v28, %s4961_s22  ;;  %v3745_v28 = vld [vmem:[#allocation3] sm:$0xff] }
 0x47c   : > { %v3470_v4 = vpop.permute.xlu0 %3469 }
 0x47d   : > { %v3543_v25 = vmul.f32 %v3470_v4, %v3351_v18  ;;  %v3746_v18 = vld [vmem:[#allocation3 + $0x8] sm:$0xff] }
 0x47e   : > { %v3472_v47 = vpop.permute.xlu1 %3471  ;;  %v3750_v4 = vld [vmem:[#allocation3 + $0x28] sm:$0xff] }
 0x47f   : > { %3627 = vrot.lane.b32.xlu1 %v3542_v62, %s4961_s22  ;;  %v3544_v8 = vmul.f32 %v3472_v47, %v3352_v51  ;;  %3629 = vrot.lane.b32.xlu0 %v3543_v25, %s4961_s22  ;;  %v3747_v62 = vld [vmem:[#allocation3 + $0x10] sm:$0xff]  ;;  %v3748_v51 = vld [vmem:[#allocation3 + $0x18] sm:$0xff]  ;;  %v3749_v47 = vld [vmem:[#allocation3 + $0x20] sm:$0xff] }
 0x480   : > { %v3474_v26 = vpop.permute.xlu0 %3473  ;;  %v3751_v25 = vld [vmem:[#allocation3 + $0x30] sm:$0xff] }
 0x481   : > { %v3545_v35 = vmul.f32 %v3474_v26, %v3353_v15  ;;  %v3752_v15 = vld [vmem:[#allocation3 + $0x38] sm:$0xff] }
 0x482   : > { %v3476_v10 = vpop.permute.xlu1 %3475  ;;  %v3756_v26 = vld [vmem:[#allocation3 + $0x58] sm:$0xff] }
 0x483   : > { %3631 = vrot.lane.b32.xlu1 %v3544_v8, %s4961_s22  ;;  %v3546_v42 = vmul.f32 %v3476_v10, %v3354_v6  ;;  %3633 = vrot.lane.b32.xlu0 %v3545_v35, %s4961_s22  ;;  %v3753_v8 = vld [vmem:[#allocation3 + $0x40] sm:$0xff]  ;;  %v3754_v6 = vld [vmem:[#allocation3 + $0x48] sm:$0xff]  ;;  %v3755_v10 = vld [vmem:[#allocation3 + $0x50] sm:$0xff] }
 0x484   : > { %v3478_v22 = vpop.permute.xlu0 %3477  ;;  %v3757_v35 = vld [vmem:[#allocation3 + $0x60] sm:$0xff] }
 0x485   : > { %v3547_v23 = vmul.f32 %v3478_v22, %v3355_v7  ;;  %v3758_v7 = vld [vmem:[#allocation3 + $0x68] sm:$0xff] }
 0x486   : > { %v3480_v58 = vpop.permute.xlu1 %3479  ;;  %v3762_v22 = vld [vmem:[#allocation3 + $0x88] sm:$0xff] }
 0x487   : > { %3635 = vrot.lane.b32.xlu1 %v3546_v42, %s4961_s22  ;;  %v3548_v49 = vmul.f32 %v3480_v58, %v3356_v46  ;;  %3637 = vrot.lane.b32.xlu0 %v3547_v23, %s4961_s22  ;;  %v3759_v42 = vld [vmem:[#allocation3 + $0x70] sm:$0xff]  ;;  %v3760_v46 = vld [vmem:[#allocation3 + $0x78] sm:$0xff]  ;;  %v3761_v58 = vld [vmem:[#allocation3 + $0x80] sm:$0xff] }
 0x488   : > { %v3482_v21 = vpop.permute.xlu0 %3481  ;;  %v3763_v23 = vld [vmem:[#allocation3 + $0x90] sm:$0xff] }
 0x489   : > { %v3549_v2 = vmul.f32 %v3482_v21, %v3357_v9  ;;  %v3764_v9 = vld [vmem:[#allocation3 + $0x98] sm:$0xff] }
 0x48a   : > { %v3484_v11 = vpop.permute.xlu1 %3483  ;;  %v3768_v21 = vld [vmem:[#allocation3 + $0xb8] sm:$0xff] }
 0x48b   : > { %3639 = vrot.lane.b32.xlu1 %v3548_v49, %s4961_s22  ;;  %v3550_v19 = vmul.f32 %v3484_v11, %v3358_v39  ;;  %3641 = vrot.lane.b32.xlu0 %v3549_v2, %s4961_s22  ;;  %v3765_v49 = vld [vmem:[#allocation3 + $0xa0] sm:$0xff]  ;;  %v3766_v39 = vld [vmem:[#allocation3 + $0xa8] sm:$0xff]  ;;  %v3767_v11 = vld [vmem:[#allocation3 + $0xb0] sm:$0xff] }
 0x48c   : > { %v3486_v48 = vpop.permute.xlu0 %3485  ;;  %v3769_v2 = vld [vmem:[#allocation3 + $0xc0] sm:$0xff] }
 0x48d   : > { %v3551_v44 = vmul.f32 %v3486_v48, %v3359_v43  ;;  %v3770_v43 = vld [vmem:[#allocation3 + $0xc8] sm:$0xff]  ;;  %v3773_v48 = vld [vmem:[#allocation3 + $0xe0] sm:$0xff] }
 0x48e   : > { %v3488_v24 = vpop.permute.xlu1 %3487 }
 0x48f   : > { %3643 = vrot.lane.b32.xlu1 %v3550_v19, %s4961_s22  ;;  %v3552_v52 = vmul.f32 %v3488_v24, %v3360_v50  ;;  %3645 = vrot.lane.b32.xlu0 %v3551_v44, %s4961_s22  ;;  %v3771_v19 = vld [vmem:[#allocation3 + $0xd0] sm:$0xff]  ;;  %v3772_v24 = vld [vmem:[#allocation3 + $0xd8] sm:$0xff] }
 0x493   : > { %3647 = vrot.lane.b32.xlu1 %v3552_v52, %s4961_s22  ;;  %3809 = vrot.lane.b32.xlu0 %v3745_v28, %s4960_s17  ;;  %v3774_v28 = vld [vmem:[#allocation3 + $0xe8] sm:$0xff] }
 0x497   : > { %3811 = vrot.lane.b32.xlu1 %v3746_v18, %s4960_s17  ;;  %3813 = vrot.lane.b32.xlu0 %v3747_v62, %s4960_s17  ;;  %v3775_v18 = vld [vmem:[#allocation3 + $0xf0] sm:$0xff] }
 0x49b   : > { %3815 = vrot.lane.b32.xlu1 %v3748_v51, %s4960_s17  ;;  %3817 = vrot.lane.b32.xlu0 %v3749_v47, %s4960_s17  ;;  %v3776_v47 = vld [vmem:[#allocation3 + $0xf8] sm:$0xff] }
 0x49f   : > { %3819 = vrot.lane.b32.xlu1 %v3750_v4, %s4960_s17  ;;  %3821 = vrot.lane.b32.xlu0 %v3751_v25, %s4960_s17 }
 0x4a3   : > { %3823 = vrot.lane.b32.xlu1 %v3752_v15, %s4960_s17  ;;  %3825 = vrot.lane.b32.xlu0 %v3753_v8, %s4960_s17 }
 0x4a7   : > { %3827 = vrot.lane.b32.xlu1 %v3754_v6, %s4960_s17  ;;  %3829 = vrot.lane.b32.xlu0 %v3755_v10, %s4960_s17 }
 0x4ab   : > { %3831 = vrot.lane.b32.xlu1 %v3756_v26, %s4960_s17  ;;  %3833 = vrot.lane.b32.xlu0 %v3757_v35, %s4960_s17 }
 0x4af   : > { %3835 = vrot.lane.b32.xlu1 %v3758_v7, %s4960_s17  ;;  %3837 = vrot.lane.b32.xlu0 %v3759_v42, %s4960_s17 }
 0x4b3   : > { %3839 = vrot.lane.b32.xlu1 %v3760_v46, %s4960_s17  ;;  %3841 = vrot.lane.b32.xlu0 %v3761_v58, %s4960_s17 }
 0x4b7   : > { %3843 = vrot.lane.b32.xlu1 %v3762_v22, %s4960_s17  ;;  %3845 = vrot.lane.b32.xlu0 %v3763_v23, %s4960_s17 }
 0x4bb   : > { %3847 = vrot.lane.b32.xlu1 %v3764_v9, %s4960_s17  ;;  %3849 = vrot.lane.b32.xlu0 %v3765_v49, %s4960_s17 }
 0x4bf   : > { %3851 = vrot.lane.b32.xlu1 %v3766_v39, %s4960_s17  ;;  %3853 = vrot.lane.b32.xlu0 %v3767_v11, %s4960_s17 }
 0x4c3   : > { %3855 = vrot.lane.b32.xlu1 %v3768_v21, %s4960_s17  ;;  %3857 = vrot.lane.b32.xlu0 %v3769_v2, %s4960_s17 }
 0x4c5   : > { %v3586_v50 = vpop.permute.xlu0 %3585 }
 0x4c6   : > { %3681 = vst.msk [vmem:[%s10876_s2] sm:$0xff] %vm2428_vm1, %v3586_v50 }
 0x4c7   : > { %3859 = vrot.lane.b32.xlu1 %v3770_v43, %s4960_s17  ;;  %3861 = vrot.lane.b32.xlu0 %v3771_v19, %s4960_s17 }
 0x4c9   : > { %v3588_v44 = vpop.permute.xlu1 %3587  ;;  %v3590_v52 = vpop.permute.xlu0 %3589 }
 0x4ca   : > { %3682 = vst.msk [vmem:[%s10876_s2 + $0x8] sm:$0xff] %vm2428_vm1, %v3588_v44  ;;  %3683 = vst.msk [vmem:[%s10876_s2 + $0x10] sm:$0xff] %vm2428_vm1, %v3590_v52  ;;  %v10150_v52 = vmul.f32 -12.0, %v9780_v63 }
 0x4cb   : > { %3863 = vrot.lane.b32.xlu1 %v3772_v24, %s4960_s17  ;;  %3865 = vrot.lane.b32.xlu0 %v3773_v48, %s4960_s17 }
 0x4cd   : > { %v3592_v62 = vpop.permute.xlu1 %3591  ;;  %v3594_v51 = vpop.permute.xlu0 %3593 }
 0x4ce   : > { %3684 = vst.msk [vmem:[%s10876_s2 + $0x18] sm:$0xff] %vm2428_vm1, %v3592_v62  ;;  %3685 = vst.msk [vmem:[%s10876_s2 + $0x20] sm:$0xff] %vm2428_vm1, %v3594_v51  ;;  %v10161_v62 = vmul.f32 -12.0, %v9785_v30  ;;  %v10164_v51 = vmul.f32 -12.0, %v9791_v36  ;;  %v10176_v30 = vmul.f32 -12.0, %v9803_v16 }
 0x4cf   : > { %3867 = vrot.lane.b32.xlu1 %v3774_v28, %s4960_s17  ;;  %3869 = vrot.lane.b32.xlu0 %v3775_v18, %s4960_s17 }
 0x4d1   : > { %v3596_v4 = vpop.permute.xlu1 %3595  ;;  %v3598_v25 = vpop.permute.xlu0 %3597 }
 0x4d2   : > { %3686 = vst.msk [vmem:[%s10876_s2 + $0x28] sm:$0xff] %vm2428_vm1, %v3596_v4  ;;  %3687 = vst.msk [vmem:[%s10876_s2 + $0x30] sm:$0xff] %vm2428_vm1, %v3598_v25  ;;  %v10173_v25 = vmul.f32 -12.0, %v9797_v0 }
 0x4d3   : > { %3871 = vrot.lane.b32.xlu1 %v3776_v47, %s4960_s17 }
 0x4d5   : > { %v3600_v15 = vpop.permute.xlu1 %3599  ;;  %v3602_v8 = vpop.permute.xlu0 %3601 }
 0x4d6   : > { %3688 = vst.msk [vmem:[%s10876_s2 + $0x38] sm:$0xff] %vm2428_vm1, %v3600_v15  ;;  %3689 = vst.msk [vmem:[%s10876_s2 + $0x40] sm:$0xff] %vm2428_vm1, %v3602_v8 }
 0x4d9   : > { %v3604_v6 = vpop.permute.xlu1 %3603  ;;  %v3606_v10 = vpop.permute.xlu0 %3605 }
 0x4da   : > { %3690 = vst.msk [vmem:[%s10876_s2 + $0x48] sm:$0xff] %vm2428_vm1, %v3604_v6  ;;  %3691 = vst.msk [vmem:[%s10876_s2 + $0x50] sm:$0xff] %vm2428_vm1, %v3606_v10  ;;  %v10183_v10 = vmul.f32 -12.0, %v9810_v55 }
 0x4dd   : > { %v3608_v26 = vpop.permute.xlu1 %3607  ;;  %v3610_v35 = vpop.permute.xlu0 %3609 }
 0x4de   : > { %3692 = vst.msk [vmem:[%s10876_s2 + $0x58] sm:$0xff] %vm2428_vm1, %v3608_v26  ;;  %3693 = vst.msk [vmem:[%s10876_s2 + $0x60] sm:$0xff] %vm2428_vm1, %v3610_v35  ;;  %v10186_v26 = vmul.f32 -12.0, %v9816_v38 }
 0x4e1   : > { %v3612_v7 = vpop.permute.xlu1 %3611  ;;  %v3614_v42 = vpop.permute.xlu0 %3613 }
 0x4e2   : > { %3694 = vst.msk [vmem:[%s10876_s2 + $0x68] sm:$0xff] %vm2428_vm1, %v3612_v7  ;;  %3695 = vst.msk [vmem:[%s10876_s2 + $0x70] sm:$0xff] %vm2428_vm1, %v3614_v42  ;;  %v10193_v42 = vmul.f32 -12.0, %v9824_v34 }
 0x4e5   : > { %v3616_v46 = vpop.permute.xlu1 %3615  ;;  %v3618_v58 = vpop.permute.xlu0 %3617 }
 0x4e6   : > { %3696 = vst.msk [vmem:[%s10876_s2 + $0x78] sm:$0xff] %vm2428_vm1, %v3616_v46  ;;  %3697 = vst.msk [vmem:[%s10876_s2 + $0x80] sm:$0xff] %vm2428_vm1, %v3618_v58  ;;  %v10196_v46 = vmul.f32 -12.0, %v9830_v45 }
 0x4e9   : > { %v3620_v22 = vpop.permute.xlu1 %3619  ;;  %v3622_v23 = vpop.permute.xlu0 %3621 }
 0x4ea   : > { %3698 = vst.msk [vmem:[%s10876_s2 + $0x88] sm:$0xff] %vm2428_vm1, %v3620_v22  ;;  %3699 = vst.msk [vmem:[%s10876_s2 + $0x90] sm:$0xff] %vm2428_vm1, %v3622_v23  ;;  %v10203_v23 = vmul.f32 -12.0, %v9838_v59 }
 0x4ed   : > { %v3624_v9 = vpop.permute.xlu1 %3623  ;;  %v3626_v49 = vpop.permute.xlu0 %3625 }
 0x4ee   : > { %3700 = vst.msk [vmem:[%s10876_s2 + $0x98] sm:$0xff] %vm2428_vm1, %v3624_v9  ;;  %3701 = vst.msk [vmem:[%s10876_s2 + $0xa0] sm:$0xff] %vm2428_vm1, %v3626_v49  ;;  %v10206_v9 = vmul.f32 -12.0, %v9844_v53 }
 0x4f1   : > { %v3628_v39 = vpop.permute.xlu1 %3627  ;;  %v3630_v11 = vpop.permute.xlu0 %3629 }
 0x4f2   : > { %3702 = vst.msk [vmem:[%s10876_s2 + $0xa8] sm:$0xff] %vm2428_vm1, %v3628_v39  ;;  %3703 = vst.msk [vmem:[%s10876_s2 + $0xb0] sm:$0xff] %vm2428_vm1, %v3630_v11  ;;  %v10213_v11 = vmul.f32 -12.0, %v9852_v37 }
 0x4f5   : > { %v3632_v21 = vpop.permute.xlu1 %3631  ;;  %v3634_v2 = vpop.permute.xlu0 %3633 }
 0x4f6   : > { %3704 = vst.msk [vmem:[%s10876_s2 + $0xb8] sm:$0xff] %vm2428_vm1, %v3632_v21  ;;  %3705 = vst.msk [vmem:[%s10876_s2 + $0xc0] sm:$0xff] %vm2428_vm1, %v3634_v2  ;;  %v10216_v21 = vmul.f32 -12.0, %v9858_v31 }
 0x4f9   : > { %v3636_v43 = vpop.permute.xlu1 %3635  ;;  %v3638_v19 = vpop.permute.xlu0 %3637 }
 0x4fa   : > { %3706 = vst.msk [vmem:[%s10876_s2 + $0xc8] sm:$0xff] %vm2428_vm1, %v3636_v43  ;;  %3707 = vst.msk [vmem:[%s10876_s2 + $0xd0] sm:$0xff] %vm2428_vm1, %v3638_v19  ;;  %v10223_v19 = vmul.f32 -12.0, %v9866_v40 }
 0x4fd   : > { %v3640_v50 = vpop.permute.xlu1 %3639  ;;  %v3642_v24 = vpop.permute.xlu0 %3641 }
 0x4fe   : > { %3708 = vst.msk [vmem:[%s10876_s2 + $0xd8] sm:$0xff] %vm2428_vm1, %v3640_v50  ;;  %3709 = vst.msk [vmem:[%s10876_s2 + $0xe0] sm:$0xff] %vm2428_vm1, %v3642_v24  ;;  %v10226_v50 = vmul.f32 -12.0, %v9872_v14 }
 0x501   : > { %v3644_v48 = vpop.permute.xlu1 %3643  ;;  %v3646_v44 = vpop.permute.xlu0 %3645 }
 0x502   : > { %3710 = vst.msk [vmem:[%s10876_s2 + $0xe8] sm:$0xff] %vm2428_vm1, %v3644_v48  ;;  %3711 = vst.msk [vmem:[%s10876_s2 + $0xf0] sm:$0xff] %vm2428_vm1, %v3646_v44  ;;  %v10233_v44 = vmul.f32 -12.0, %v9880_v13 }
 0x505   : > { %v3648_v28 = vpop.permute.xlu1 %3647  ;;  %v3810_v18 = vpop.permute.xlu0 %3809 }
 0x506   : > { %3712 = vst.msk [vmem:[%s10876_s2 + $0xf8] sm:$0xff] %vm2428_vm1, %v3648_v28  ;;  %v3905_v63 = vmul.f32 %v3810_v18, %v10150_v52  ;;  %v10236_v28 = vmul.f32 -12.0, %v9886_v5 }
 0x508   : > { %3969 = vrot.lane.b32.xlu0 %v3905_v63, %s4962_s23 }
 0x509   : > { %v3812_v47 = vpop.permute.xlu1 %3811  ;;  %v3814_v4 = vpop.permute.xlu0 %3813 }
 0x50a   : > { %v3906_v36 = vmul.f32 %v3812_v47, %v10164_v51  ;;  %v3907_v15 = vmul.f32 %v3814_v4, %v10161_v62  ;;  %v10243_v47 = vmul.f32 -12.0, %v9894_v12  ;;  %v10246_v4 = vmul.f32 -12.0, %v9900_v32 }
 0x50c   : > { %3971 = vrot.lane.b32.xlu1 %v3906_v36, %s4962_s23  ;;  %3973 = vrot.lane.b32.xlu0 %v3907_v15, %s4962_s23 }
 0x50d   : > { %v3816_v8 = vpop.permute.xlu1 %3815  ;;  %v3818_v6 = vpop.permute.xlu0 %3817 }
 0x50e   : > { %v3908_v0 = vmul.f32 %v3816_v8, %v10173_v25  ;;  %v3909_v16 = vmul.f32 %v3818_v6, %v10176_v30  ;;  %v10253_v8 = vmul.f32 -12.0, %v9908_v27  ;;  %v10256_v6 = vmul.f32 -12.0, %v9914_v3 }
 0x510   : > { %3975 = vrot.lane.b32.xlu1 %v3908_v0, %s4962_s23  ;;  %3977 = vrot.lane.b32.xlu0 %v3909_v16, %s4962_s23 }
 0x511   : > { %v3820_v35 = vpop.permute.xlu1 %3819  ;;  %v3822_v7 = vpop.permute.xlu0 %3821 }
 0x512   : > { %v3910_v55 = vmul.f32 %v3820_v35, %v10183_v10  ;;  %v3911_v38 = vmul.f32 %v3822_v7, %v10186_v26  ;;  %v10263_v35 = vmul.f32 -12.0, %v9922_v33  ;;  %v10266_v7 = vmul.f32 -12.0, %v9928_v17 }
 0x514   : > { %3979 = vrot.lane.b32.xlu1 %v3910_v55, %s4962_s23  ;;  %3981 = vrot.lane.b32.xlu0 %v3911_v38, %s4962_s23 }
 0x515   : > { %v3824_v58 = vpop.permute.xlu1 %3823  ;;  %v3826_v22 = vpop.permute.xlu0 %3825 }
 0x516   : > { %v3912_v34 = vmul.f32 %v3824_v58, %v10193_v42  ;;  %v3913_v45 = vmul.f32 %v3826_v22, %v10196_v46  ;;  %v10273_v58 = vmul.f32 -12.0, %v9936_v60  ;;  %v10276_v22 = vmul.f32 -12.0, %v9942_v56 }
 0x518   : > { %3983 = vrot.lane.b32.xlu1 %v3912_v34, %s4962_s23  ;;  %3985 = vrot.lane.b32.xlu0 %v3913_v45, %s4962_s23 }
 0x519   : > { %v3828_v49 = vpop.permute.xlu1 %3827  ;;  %v3830_v39 = vpop.permute.xlu0 %3829 }
 0x51a   : > { %v3914_v59 = vmul.f32 %v3828_v49, %v10203_v23  ;;  %v3915_v53 = vmul.f32 %v3830_v39, %v10206_v9  ;;  %v10283_v49 = vmul.f32 -12.0, %v9950_v29  ;;  %v10286_v39 = vmul.f32 -12.0, %v9956_v41 }
 0x51c   : > { %3987 = vrot.lane.b32.xlu1 %v3914_v59, %s4962_s23  ;;  %3989 = vrot.lane.b32.xlu0 %v3915_v53, %s4962_s23 }
 0x51d   : > { %v3832_v2 = vpop.permute.xlu1 %3831  ;;  %v3834_v43 = vpop.permute.xlu0 %3833 }
 0x51e   : > { %v3916_v37 = vmul.f32 %v3832_v2, %v10213_v11  ;;  %v3917_v31 = vmul.f32 %v3834_v43, %v10216_v21  ;;  %v10293_v2 = vmul.f32 -12.0, %v9964_v20  ;;  %v10296_v43 = vmul.f32 -12.0, %v9970_v57 }
 0x520   : > { %3991 = vrot.lane.b32.xlu1 %v3916_v37, %s4962_s23  ;;  %3993 = vrot.lane.b32.xlu0 %v3917_v31, %s4962_s23 }
 0x521   : > { %v3836_v24 = vpop.permute.xlu1 %3835  ;;  %v3838_v48 = vpop.permute.xlu0 %3837 }
 0x522   : > { %v3918_v40 = vmul.f32 %v3836_v24, %v10223_v19  ;;  %v3919_v14 = vmul.f32 %v3838_v48, %v10226_v50  ;;  %v10303_v24 = vmul.f32 -12.0, %v9978_v54  ;;  %v10306_v48 = vmul.f32 -12.0, %v9984_v61 }
 0x524   : > { %3995 = vrot.lane.b32.xlu1 %v3918_v40, %s4962_s23  ;;  %3997 = vrot.lane.b32.xlu0 %v3919_v14, %s4962_s23 }
 0x525   : > { %v3840_v18 = vpop.permute.xlu1 %3839  ;;  %v3842_v63 = vpop.permute.xlu0 %3841 }
 0x526   : > { %v3920_v13 = vmul.f32 %v3840_v18, %v10233_v44  ;;  %v3921_v5 = vmul.f32 %v3842_v63, %v10236_v28  ;;  %v10313_v18 = vmul.f32 -12.0, %v9992_v1  ;;  %v4101_v1 = vld [vmem:[#allocation4 + $0x18] sm:$0xff] }
 0x528   : > { %3999 = vrot.lane.b32.xlu1 %v3920_v13, %s4962_s23  ;;  %4001 = vrot.lane.b32.xlu0 %v3921_v5, %s4962_s23  ;;  %v4098_v13 = vld [vmem:[#allocation4] sm:$0xff] }
 0x529   : > { %v3844_v36 = vpop.permute.xlu1 %3843  ;;  %v3846_v15 = vpop.permute.xlu0 %3845 }
 0x52a   : > { %v3922_v12 = vmul.f32 %v3844_v36, %v10243_v47  ;;  %v3923_v32 = vmul.f32 %v3846_v15, %v10246_v4  ;;  %v4099_v36 = vld [vmem:[#allocation4 + $0x8] sm:$0xff]  ;;  %v4100_v15 = vld [vmem:[#allocation4 + $0x10] sm:$0xff] }
 0x52c   : > { %4003 = vrot.lane.b32.xlu1 %v3922_v12, %s4962_s23  ;;  %4005 = vrot.lane.b32.xlu0 %v3923_v32, %s4962_s23  ;;  %v4102_v12 = vld [vmem:[#allocation4 + $0x20] sm:$0xff]  ;;  %v4103_v32 = vld [vmem:[#allocation4 + $0x28] sm:$0xff] }
 0x52d   : > { %v3848_v0 = vpop.permute.xlu1 %3847  ;;  %v3850_v16 = vpop.permute.xlu0 %3849 }
 0x52e   : > { %v3924_v27 = vmul.f32 %v3848_v0, %v10253_v8  ;;  %v3925_v3 = vmul.f32 %v3850_v16, %v10256_v6  ;;  %v4104_v0 = vld [vmem:[#allocation4 + $0x30] sm:$0xff]  ;;  %v4105_v16 = vld [vmem:[#allocation4 + $0x38] sm:$0xff] }
 0x530   : > { %4007 = vrot.lane.b32.xlu1 %v3924_v27, %s4962_s23  ;;  %4009 = vrot.lane.b32.xlu0 %v3925_v3, %s4962_s23  ;;  %v4106_v27 = vld [vmem:[#allocation4 + $0x40] sm:$0xff]  ;;  %v4107_v3 = vld [vmem:[#allocation4 + $0x48] sm:$0xff] }
 0x531   : > { %v3852_v55 = vpop.permute.xlu1 %3851  ;;  %v3854_v38 = vpop.permute.xlu0 %3853 }
 0x532   : > { %v3926_v33 = vmul.f32 %v3852_v55, %v10263_v35  ;;  %v3927_v17 = vmul.f32 %v3854_v38, %v10266_v7  ;;  %v4108_v55 = vld [vmem:[#allocation4 + $0x50] sm:$0xff]  ;;  %v4109_v38 = vld [vmem:[#allocation4 + $0x58] sm:$0xff] }
 0x534   : > { %4011 = vrot.lane.b32.xlu1 %v3926_v33, %s4962_s23  ;;  %4013 = vrot.lane.b32.xlu0 %v3927_v17, %s4962_s23  ;;  %v4110_v33 = vld [vmem:[#allocation4 + $0x60] sm:$0xff]  ;;  %v4111_v17 = vld [vmem:[#allocation4 + $0x68] sm:$0xff] }
 0x535   : > { %v3856_v34 = vpop.permute.xlu1 %3855  ;;  %v3858_v45 = vpop.permute.xlu0 %3857 }
 0x536   : > { %v3928_v60 = vmul.f32 %v3856_v34, %v10273_v58  ;;  %v3929_v56 = vmul.f32 %v3858_v45, %v10276_v22  ;;  %v4112_v34 = vld [vmem:[#allocation4 + $0x70] sm:$0xff]  ;;  %v4113_v45 = vld [vmem:[#allocation4 + $0x78] sm:$0xff] }
 0x538   : > { %4015 = vrot.lane.b32.xlu1 %v3928_v60, %s4962_s23  ;;  %4017 = vrot.lane.b32.xlu0 %v3929_v56, %s4962_s23  ;;  %v4114_v60 = vld [vmem:[#allocation4 + $0x80] sm:$0xff]  ;;  %v4115_v56 = vld [vmem:[#allocation4 + $0x88] sm:$0xff] }
 0x539   : > { %v3860_v59 = vpop.permute.xlu1 %3859  ;;  %v3862_v53 = vpop.permute.xlu0 %3861 }
 0x53a   : > { %v3930_v29 = vmul.f32 %v3860_v59, %v10283_v49  ;;  %v3931_v41 = vmul.f32 %v3862_v53, %v10286_v39  ;;  %v4116_v59 = vld [vmem:[#allocation4 + $0x90] sm:$0xff]  ;;  %v4117_v53 = vld [vmem:[#allocation4 + $0x98] sm:$0xff] }
 0x53c   : > { %4019 = vrot.lane.b32.xlu1 %v3930_v29, %s4962_s23  ;;  %4021 = vrot.lane.b32.xlu0 %v3931_v41, %s4962_s23  ;;  %v4118_v29 = vld [vmem:[#allocation4 + $0xa0] sm:$0xff]  ;;  %v4119_v41 = vld [vmem:[#allocation4 + $0xa8] sm:$0xff] }
 0x53d   : > { %v3864_v37 = vpop.permute.xlu1 %3863  ;;  %v3866_v31 = vpop.permute.xlu0 %3865 }
 0x53e   : > { %v3932_v20 = vmul.f32 %v3864_v37, %v10293_v2  ;;  %v3933_v57 = vmul.f32 %v3866_v31, %v10296_v43  ;;  %v4120_v37 = vld [vmem:[#allocation4 + $0xb0] sm:$0xff]  ;;  %v4121_v31 = vld [vmem:[#allocation4 + $0xb8] sm:$0xff] }
 0x540   : > { %4023 = vrot.lane.b32.xlu1 %v3932_v20, %s4962_s23  ;;  %4025 = vrot.lane.b32.xlu0 %v3933_v57, %s4962_s23  ;;  %v4122_v20 = vld [vmem:[#allocation4 + $0xc0] sm:$0xff]  ;;  %v4123_v57 = vld [vmem:[#allocation4 + $0xc8] sm:$0xff] }
 0x541   : > { %v3868_v40 = vpop.permute.xlu1 %3867  ;;  %v3870_v14 = vpop.permute.xlu0 %3869 }
 0x542   : > { %v3934_v63 = vmul.f32 %v3868_v40, %v10303_v24  ;;  %v3935_v54 = vmul.f32 %v3870_v14, %v10306_v48  ;;  %v4124_v40 = vld [vmem:[#allocation4 + $0xd0] sm:$0xff] }
 0x544   : > { %4027 = vrot.lane.b32.xlu1 %v3934_v63, %s4962_s23  ;;  %4029 = vrot.lane.b32.xlu0 %v3935_v54, %s4962_s23  ;;  %v4125_v63 = vld [vmem:[#allocation4 + $0xd8] sm:$0xff]  ;;  %v4126_v54 = vld [vmem:[#allocation4 + $0xe0] sm:$0xff] }
 0x545   : > { %v3872_v61 = vpop.permute.xlu1 %3871 }
 0x546   : > { %v3936_v5 = vmul.f32 %v3872_v61, %v10313_v18 }
 0x548   : > { %4031 = vrot.lane.b32.xlu1 %v3936_v5, %s4962_s23  ;;  %4162 = vrot.lane.b32.xlu0 %v4098_v13, %s4960_s17  ;;  %v4127_v5 = vld [vmem:[#allocation4 + $0xe8] sm:$0xff] }
 0x54c   : > { %4164 = vrot.lane.b32.xlu1 %v4099_v36, %s4960_s17  ;;  %4166 = vrot.lane.b32.xlu0 %v4100_v15, %s4960_s17  ;;  %v4128_v36 = vld [vmem:[#allocation4 + $0xf0] sm:$0xff] }
 0x550   : > { %4168 = vrot.lane.b32.xlu1 %v4101_v1, %s4960_s17  ;;  %4170 = vrot.lane.b32.xlu0 %v4102_v12, %s4960_s17  ;;  %v4129_v12 = vld [vmem:[#allocation4 + $0xf8] sm:$0xff] }
 0x554   : > { %4172 = vrot.lane.b32.xlu1 %v4103_v32, %s4960_s17  ;;  %4174 = vrot.lane.b32.xlu0 %v4104_v0, %s4960_s17 }
 0x558   : > { %4176 = vrot.lane.b32.xlu1 %v4105_v16, %s4960_s17  ;;  %4178 = vrot.lane.b32.xlu0 %v4106_v27, %s4960_s17 }
 0x55c   : > { %4180 = vrot.lane.b32.xlu1 %v4107_v3, %s4960_s17  ;;  %4182 = vrot.lane.b32.xlu0 %v4108_v55, %s4960_s17 }
 0x560   : > { %4184 = vrot.lane.b32.xlu1 %v4109_v38, %s4960_s17  ;;  %4186 = vrot.lane.b32.xlu0 %v4110_v33, %s4960_s17 }
 0x564   : > { %4188 = vrot.lane.b32.xlu1 %v4111_v17, %s4960_s17  ;;  %4190 = vrot.lane.b32.xlu0 %v4112_v34, %s4960_s17 }
 0x568   : > { %4192 = vrot.lane.b32.xlu1 %v4113_v45, %s4960_s17  ;;  %4194 = vrot.lane.b32.xlu0 %v4114_v60, %s4960_s17 }
 0x56c   : > { %4196 = vrot.lane.b32.xlu1 %v4115_v56, %s4960_s17  ;;  %4198 = vrot.lane.b32.xlu0 %v4116_v59, %s4960_s17 }
 0x570   : > { %4200 = vrot.lane.b32.xlu1 %v4117_v53, %s4960_s17  ;;  %4202 = vrot.lane.b32.xlu0 %v4118_v29, %s4960_s17 }
 0x574   : > { %4204 = vrot.lane.b32.xlu1 %v4119_v41, %s4960_s17  ;;  %4206 = vrot.lane.b32.xlu0 %v4120_v37, %s4960_s17 }
 0x578   : > { %4208 = vrot.lane.b32.xlu1 %v4121_v31, %s4960_s17  ;;  %4210 = vrot.lane.b32.xlu0 %v4122_v20, %s4960_s17 }
 0x57a   : > { %v3970_v14 = vpop.permute.xlu0 %3969 }
 0x57b   : > { %4066 = vst.msk [vmem:[%s10876_s2] sm:$0xff] %vm4065_vm2, %v3970_v14 }
 0x57c   : > { %4212 = vrot.lane.b32.xlu1 %v4123_v57, %s4960_s17  ;;  %4214 = vrot.lane.b32.xlu0 %v4124_v40, %s4960_s17 }
 0x57e   : > { %v3972_v61 = vpop.permute.xlu1 %3971  ;;  %v3974_v13 = vpop.permute.xlu0 %3973 }
 0x57f   : > { %4067 = vst.msk [vmem:[%s10876_s2 + $0x8] sm:$0xff] %vm4065_vm2, %v3972_v61  ;;  %4068 = vst.msk [vmem:[%s10876_s2 + $0x10] sm:$0xff] %vm4065_vm2, %v3974_v13 }
 0x580   : > { %4216 = vrot.lane.b32.xlu1 %v4125_v63, %s4960_s17  ;;  %4218 = vrot.lane.b32.xlu0 %v4126_v54, %s4960_s17 }
 0x582   : > { %v3976_v15 = vpop.permute.xlu1 %3975  ;;  %v3978_v1 = vpop.permute.xlu0 %3977 }
 0x583   : > { %4069 = vst.msk [vmem:[%s10876_s2 + $0x18] sm:$0xff] %vm4065_vm2, %v3976_v15  ;;  %4070 = vst.msk [vmem:[%s10876_s2 + $0x20] sm:$0xff] %vm4065_vm2, %v3978_v1 }
 0x584   : > { %4220 = vrot.lane.b32.xlu1 %v4127_v5, %s4960_s17  ;;  %4222 = vrot.lane.b32.xlu0 %v4128_v36, %s4960_s17 }
 0x586   : > { %v3980_v32 = vpop.permute.xlu1 %3979  ;;  %v3982_v0 = vpop.permute.xlu0 %3981 }
 0x587   : > { %4071 = vst.msk [vmem:[%s10876_s2 + $0x28] sm:$0xff] %vm4065_vm2, %v3980_v32  ;;  %4072 = vst.msk [vmem:[%s10876_s2 + $0x30] sm:$0xff] %vm4065_vm2, %v3982_v0 }
 0x588   : > { %4224 = vrot.lane.b32.xlu1 %v4129_v12, %s4960_s17 }
 0x58a   : > { %v3984_v16 = vpop.permute.xlu1 %3983  ;;  %v3986_v27 = vpop.permute.xlu0 %3985 }
 0x58b   : > { %4073 = vst.msk [vmem:[%s10876_s2 + $0x38] sm:$0xff] %vm4065_vm2, %v3984_v16  ;;  %4074 = vst.msk [vmem:[%s10876_s2 + $0x40] sm:$0xff] %vm4065_vm2, %v3986_v27 }
 0x58e   : > { %v3988_v3 = vpop.permute.xlu1 %3987  ;;  %v3990_v55 = vpop.permute.xlu0 %3989 }
 0x58f   : > { %4075 = vst.msk [vmem:[%s10876_s2 + $0x48] sm:$0xff] %vm4065_vm2, %v3988_v3  ;;  %4076 = vst.msk [vmem:[%s10876_s2 + $0x50] sm:$0xff] %vm4065_vm2, %v3990_v55 }
 0x592   : > { %v3992_v38 = vpop.permute.xlu1 %3991  ;;  %v3994_v33 = vpop.permute.xlu0 %3993 }
 0x593   : > { %4077 = vst.msk [vmem:[%s10876_s2 + $0x58] sm:$0xff] %vm4065_vm2, %v3992_v38  ;;  %4078 = vst.msk [vmem:[%s10876_s2 + $0x60] sm:$0xff] %vm4065_vm2, %v3994_v33 }
 0x596   : > { %v3996_v17 = vpop.permute.xlu1 %3995  ;;  %v3998_v34 = vpop.permute.xlu0 %3997 }
 0x597   : > { %4079 = vst.msk [vmem:[%s10876_s2 + $0x68] sm:$0xff] %vm4065_vm2, %v3996_v17  ;;  %4080 = vst.msk [vmem:[%s10876_s2 + $0x70] sm:$0xff] %vm4065_vm2, %v3998_v34 }
 0x59a   : > { %v4000_v45 = vpop.permute.xlu1 %3999  ;;  %v4002_v60 = vpop.permute.xlu0 %4001 }
 0x59b   : > { %4081 = vst.msk [vmem:[%s10876_s2 + $0x78] sm:$0xff] %vm4065_vm2, %v4000_v45  ;;  %4082 = vst.msk [vmem:[%s10876_s2 + $0x80] sm:$0xff] %vm4065_vm2, %v4002_v60 }
 0x59e   : > { %v4004_v56 = vpop.permute.xlu1 %4003  ;;  %v4006_v59 = vpop.permute.xlu0 %4005 }
 0x59f   : > { %4083 = vst.msk [vmem:[%s10876_s2 + $0x88] sm:$0xff] %vm4065_vm2, %v4004_v56  ;;  %4084 = vst.msk [vmem:[%s10876_s2 + $0x90] sm:$0xff] %vm4065_vm2, %v4006_v59 }
 0x5a2   : > { %v4008_v53 = vpop.permute.xlu1 %4007  ;;  %v4010_v29 = vpop.permute.xlu0 %4009 }
 0x5a3   : > { %4085 = vst.msk [vmem:[%s10876_s2 + $0x98] sm:$0xff] %vm4065_vm2, %v4008_v53  ;;  %4086 = vst.msk [vmem:[%s10876_s2 + $0xa0] sm:$0xff] %vm4065_vm2, %v4010_v29 }
 0x5a6   : > { %v4012_v41 = vpop.permute.xlu1 %4011  ;;  %v4014_v37 = vpop.permute.xlu0 %4013 }
 0x5a7   : > { %4087 = vst.msk [vmem:[%s10876_s2 + $0xa8] sm:$0xff] %vm4065_vm2, %v4012_v41  ;;  %4088 = vst.msk [vmem:[%s10876_s2 + $0xb0] sm:$0xff] %vm4065_vm2, %v4014_v37 }
 0x5aa   : > { %v4016_v31 = vpop.permute.xlu1 %4015  ;;  %v4018_v20 = vpop.permute.xlu0 %4017 }
 0x5ab   : > { %4089 = vst.msk [vmem:[%s10876_s2 + $0xb8] sm:$0xff] %vm4065_vm2, %v4016_v31  ;;  %4090 = vst.msk [vmem:[%s10876_s2 + $0xc0] sm:$0xff] %vm4065_vm2, %v4018_v20 }
 0x5ae   : > { %v4020_v57 = vpop.permute.xlu1 %4019  ;;  %v4022_v40 = vpop.permute.xlu0 %4021 }
 0x5af   : > { %4091 = vst.msk [vmem:[%s10876_s2 + $0xc8] sm:$0xff] %vm4065_vm2, %v4020_v57  ;;  %4092 = vst.msk [vmem:[%s10876_s2 + $0xd0] sm:$0xff] %vm4065_vm2, %v4022_v40 }
 0x5b2   : > { %v4024_v14 = vpop.permute.xlu1 %4023  ;;  %v4026_v63 = vpop.permute.xlu0 %4025 }
 0x5b3   : > { %4093 = vst.msk [vmem:[%s10876_s2 + $0xd8] sm:$0xff] %vm4065_vm2, %v4024_v14  ;;  %4094 = vst.msk [vmem:[%s10876_s2 + $0xe0] sm:$0xff] %vm4065_vm2, %v4026_v63 }
 0x5b6   : > { %v4028_v54 = vpop.permute.xlu1 %4027  ;;  %v4030_v61 = vpop.permute.xlu0 %4029 }
 0x5b7   : > { %4095 = vst.msk [vmem:[%s10876_s2 + $0xe8] sm:$0xff] %vm4065_vm2, %v4028_v54  ;;  %4096 = vst.msk [vmem:[%s10876_s2 + $0xf0] sm:$0xff] %vm4065_vm2, %v4030_v61 }
 0x5ba   : > { %v4032_v13 = vpop.permute.xlu1 %4031  ;;  %v4163_v5 = vpop.permute.xlu0 %4162 }
 0x5bb   : > { %4097 = vst.msk [vmem:[%s10876_s2 + $0xf8] sm:$0xff] %vm4065_vm2, %v4032_v13  ;;  %v4258_v36 = vmul.f32 %v4163_v5, %v10150_v52 }
 0x5bd   : > { %4322 = vrot.lane.b32.xlu0 %v4258_v36, %s4963_s14 }
 0x5be   : > { %v4165_v15 = vpop.permute.xlu1 %4164  ;;  %v4167_v1 = vpop.permute.xlu0 %4166 }
 0x5bf   : > { %v4259_v12 = vmul.f32 %v4165_v15, %v10164_v51  ;;  %v4260_v32 = vmul.f32 %v4167_v1, %v10161_v62 }
 0x5c1   : > { %4324 = vrot.lane.b32.xlu1 %v4259_v12, %s4963_s14  ;;  %4326 = vrot.lane.b32.xlu0 %v4260_v32, %s4963_s14 }
 0x5c2   : > { %v4169_v0 = vpop.permute.xlu1 %4168  ;;  %v4171_v16 = vpop.permute.xlu0 %4170 }
 0x5c3   : > { %v4261_v27 = vmul.f32 %v4169_v0, %v10173_v25  ;;  %v4262_v3 = vmul.f32 %v4171_v16, %v10176_v30 }
 0x5c5   : > { %4328 = vrot.lane.b32.xlu1 %v4261_v27, %s4963_s14  ;;  %4330 = vrot.lane.b32.xlu0 %v4262_v3, %s4963_s14 }
 0x5c6   : > { %v4173_v55 = vpop.permute.xlu1 %4172  ;;  %v4175_v38 = vpop.permute.xlu0 %4174 }
 0x5c7   : > { %v4263_v33 = vmul.f32 %v4173_v55, %v10183_v10  ;;  %v4264_v17 = vmul.f32 %v4175_v38, %v10186_v26 }
 0x5c9   : > { %4332 = vrot.lane.b32.xlu1 %v4263_v33, %s4963_s14  ;;  %4334 = vrot.lane.b32.xlu0 %v4264_v17, %s4963_s14 }
 0x5ca   : > { %v4177_v34 = vpop.permute.xlu1 %4176  ;;  %v4179_v45 = vpop.permute.xlu0 %4178 }
 0x5cb   : > { %v4265_v60 = vmul.f32 %v4177_v34, %v10193_v42  ;;  %v4266_v56 = vmul.f32 %v4179_v45, %v10196_v46 }
 0x5cd   : > { %4336 = vrot.lane.b32.xlu1 %v4265_v60, %s4963_s14  ;;  %4338 = vrot.lane.b32.xlu0 %v4266_v56, %s4963_s14 }
 0x5ce   : > { %v4181_v59 = vpop.permute.xlu1 %4180  ;;  %v4183_v53 = vpop.permute.xlu0 %4182 }
 0x5cf   : > { %v4267_v29 = vmul.f32 %v4181_v59, %v10203_v23  ;;  %v4268_v41 = vmul.f32 %v4183_v53, %v10206_v9 }
 0x5d1   : > { %4340 = vrot.lane.b32.xlu1 %v4267_v29, %s4963_s14  ;;  %4342 = vrot.lane.b32.xlu0 %v4268_v41, %s4963_s14 }
 0x5d2   : > { %v4185_v37 = vpop.permute.xlu1 %4184  ;;  %v4187_v31 = vpop.permute.xlu0 %4186 }
 0x5d3   : > { %v4269_v20 = vmul.f32 %v4185_v37, %v10213_v11  ;;  %v4270_v57 = vmul.f32 %v4187_v31, %v10216_v21 }
 0x5d5   : > { %4344 = vrot.lane.b32.xlu1 %v4269_v20, %s4963_s14  ;;  %4346 = vrot.lane.b32.xlu0 %v4270_v57, %s4963_s14 }
 0x5d6   : > { %v4189_v40 = vpop.permute.xlu1 %4188  ;;  %v4191_v14 = vpop.permute.xlu0 %4190 }
 0x5d7   : > { %v4271_v63 = vmul.f32 %v4189_v40, %v10223_v19  ;;  %v4272_v54 = vmul.f32 %v4191_v14, %v10226_v50 }
 0x5d9   : > { %4348 = vrot.lane.b32.xlu1 %v4271_v63, %s4963_s14  ;;  %4350 = vrot.lane.b32.xlu0 %v4272_v54, %s4963_s14 }
 0x5da   : > { %v4193_v61 = vpop.permute.xlu1 %4192  ;;  %v4195_v13 = vpop.permute.xlu0 %4194 }
 0x5db   : > { %v4273_v5 = vmul.f32 %v4193_v61, %v10233_v44  ;;  %v4274_v36 = vmul.f32 %v4195_v13, %v10236_v28  ;;  %v4451_v13 = vld [vmem:[#allocation5] sm:$0xff] }
 0x5dd   : > { %4352 = vrot.lane.b32.xlu1 %v4273_v5, %s4963_s14  ;;  %4354 = vrot.lane.b32.xlu0 %v4274_v36, %s4963_s14  ;;  %v4452_v36 = vld [vmem:[#allocation5 + $0x8] sm:$0xff] }
 0x5de   : > { %v4197_v15 = vpop.permute.xlu1 %4196  ;;  %v4199_v1 = vpop.permute.xlu0 %4198 }
 0x5df   : > { %v4275_v12 = vmul.f32 %v4197_v15, %v10243_v47  ;;  %v4276_v32 = vmul.f32 %v4199_v1, %v10246_v4  ;;  %v4453_v15 = vld [vmem:[#allocation5 + $0x10] sm:$0xff]  ;;  %v4454_v1 = vld [vmem:[#allocation5 + $0x18] sm:$0xff] }
 0x5e1   : > { %4356 = vrot.lane.b32.xlu1 %v4275_v12, %s4963_s14  ;;  %4358 = vrot.lane.b32.xlu0 %v4276_v32, %s4963_s14  ;;  %v4455_v12 = vld [vmem:[#allocation5 + $0x20] sm:$0xff]  ;;  %v4456_v32 = vld [vmem:[#allocation5 + $0x28] sm:$0xff] }
 0x5e2   : > { %v4201_v0 = vpop.permute.xlu1 %4200  ;;  %v4203_v16 = vpop.permute.xlu0 %4202 }
 0x5e3   : > { %v4277_v27 = vmul.f32 %v4201_v0, %v10253_v8  ;;  %v4278_v3 = vmul.f32 %v4203_v16, %v10256_v6  ;;  %v4457_v0 = vld [vmem:[#allocation5 + $0x30] sm:$0xff]  ;;  %v4458_v16 = vld [vmem:[#allocation5 + $0x38] sm:$0xff] }
 0x5e5   : > { %4360 = vrot.lane.b32.xlu1 %v4277_v27, %s4963_s14  ;;  %4362 = vrot.lane.b32.xlu0 %v4278_v3, %s4963_s14  ;;  %v4459_v27 = vld [vmem:[#allocation5 + $0x40] sm:$0xff]  ;;  %v4460_v3 = vld [vmem:[#allocation5 + $0x48] sm:$0xff] }
 0x5e6   : > { %v4205_v55 = vpop.permute.xlu1 %4204  ;;  %v4207_v38 = vpop.permute.xlu0 %4206 }
 0x5e7   : > { %v4279_v33 = vmul.f32 %v4205_v55, %v10263_v35  ;;  %v4280_v17 = vmul.f32 %v4207_v38, %v10266_v7  ;;  %v4461_v55 = vld [vmem:[#allocation5 + $0x50] sm:$0xff]  ;;  %v4462_v38 = vld [vmem:[#allocation5 + $0x58] sm:$0xff] }
 0x5e9   : > { %4364 = vrot.lane.b32.xlu1 %v4279_v33, %s4963_s14  ;;  %4366 = vrot.lane.b32.xlu0 %v4280_v17, %s4963_s14  ;;  %v4463_v33 = vld [vmem:[#allocation5 + $0x60] sm:$0xff]  ;;  %v4464_v17 = vld [vmem:[#allocation5 + $0x68] sm:$0xff] }
 0x5ea   : > { %v4209_v34 = vpop.permute.xlu1 %4208  ;;  %v4211_v45 = vpop.permute.xlu0 %4210 }
 0x5eb   : > { %v4281_v60 = vmul.f32 %v4209_v34, %v10273_v58  ;;  %v4282_v56 = vmul.f32 %v4211_v45, %v10276_v22  ;;  %v4465_v34 = vld [vmem:[#allocation5 + $0x70] sm:$0xff]  ;;  %v4466_v45 = vld [vmem:[#allocation5 + $0x78] sm:$0xff] }
 0x5ed   : > { %4368 = vrot.lane.b32.xlu1 %v4281_v60, %s4963_s14  ;;  %4370 = vrot.lane.b32.xlu0 %v4282_v56, %s4963_s14  ;;  %v4467_v60 = vld [vmem:[#allocation5 + $0x80] sm:$0xff]  ;;  %v4468_v56 = vld [vmem:[#allocation5 + $0x88] sm:$0xff] }
 0x5ee   : > { %v4213_v59 = vpop.permute.xlu1 %4212  ;;  %v4215_v53 = vpop.permute.xlu0 %4214 }
 0x5ef   : > { %v4283_v29 = vmul.f32 %v4213_v59, %v10283_v49  ;;  %v4284_v41 = vmul.f32 %v4215_v53, %v10286_v39  ;;  %v4469_v59 = vld [vmem:[#allocation5 + $0x90] sm:$0xff]  ;;  %v4470_v53 = vld [vmem:[#allocation5 + $0x98] sm:$0xff] }
 0x5f1   : > { %4372 = vrot.lane.b32.xlu1 %v4283_v29, %s4963_s14  ;;  %4374 = vrot.lane.b32.xlu0 %v4284_v41, %s4963_s14  ;;  %v4471_v29 = vld [vmem:[#allocation5 + $0xa0] sm:$0xff]  ;;  %v4472_v41 = vld [vmem:[#allocation5 + $0xa8] sm:$0xff] }
 0x5f2   : > { %v4217_v37 = vpop.permute.xlu1 %4216  ;;  %v4219_v31 = vpop.permute.xlu0 %4218 }
 0x5f3   : > { %v4285_v20 = vmul.f32 %v4217_v37, %v10293_v2  ;;  %v4286_v57 = vmul.f32 %v4219_v31, %v10296_v43  ;;  %v4473_v37 = vld [vmem:[#allocation5 + $0xb0] sm:$0xff]  ;;  %v4474_v31 = vld [vmem:[#allocation5 + $0xb8] sm:$0xff] }
 0x5f5   : > { %4376 = vrot.lane.b32.xlu1 %v4285_v20, %s4963_s14  ;;  %4378 = vrot.lane.b32.xlu0 %v4286_v57, %s4963_s14  ;;  %v4475_v20 = vld [vmem:[#allocation5 + $0xc0] sm:$0xff]  ;;  %v4476_v57 = vld [vmem:[#allocation5 + $0xc8] sm:$0xff] }
 0x5f6   : > { %v4221_v40 = vpop.permute.xlu1 %4220  ;;  %v4223_v14 = vpop.permute.xlu0 %4222 }
 0x5f7   : > { %v4287_v63 = vmul.f32 %v4221_v40, %v10303_v24  ;;  %v4288_v54 = vmul.f32 %v4223_v14, %v10306_v48  ;;  %v4477_v40 = vld [vmem:[#allocation5 + $0xd0] sm:$0xff] }
 0x5f9   : > { %4380 = vrot.lane.b32.xlu1 %v4287_v63, %s4963_s14  ;;  %4382 = vrot.lane.b32.xlu0 %v4288_v54, %s4963_s14  ;;  %v4478_v63 = vld [vmem:[#allocation5 + $0xd8] sm:$0xff]  ;;  %v4479_v54 = vld [vmem:[#allocation5 + $0xe0] sm:$0xff] }
 0x5fa   : > { %v4225_v61 = vpop.permute.xlu1 %4224 }
 0x5fb   : > { %v4289_v5 = vmul.f32 %v4225_v61, %v10313_v18 }
 0x5fd   : > { %4384 = vrot.lane.b32.xlu1 %v4289_v5, %s4963_s14  ;;  %4515 = vrot.lane.b32.xlu0 %v4451_v13, %s4960_s17  ;;  %v4480_v5 = vld [vmem:[#allocation5 + $0xe8] sm:$0xff] }
 0x601   : > { %4517 = vrot.lane.b32.xlu1 %v4452_v36, %s4960_s17  ;;  %4519 = vrot.lane.b32.xlu0 %v4453_v15, %s4960_s17  ;;  %v4481_v36 = vld [vmem:[#allocation5 + $0xf0] sm:$0xff] }
 0x605   : > { %4521 = vrot.lane.b32.xlu1 %v4454_v1, %s4960_s17  ;;  %4523 = vrot.lane.b32.xlu0 %v4455_v12, %s4960_s17  ;;  %v4482_v12 = vld [vmem:[#allocation5 + $0xf8] sm:$0xff] }
 0x609   : > { %4525 = vrot.lane.b32.xlu1 %v4456_v32, %s4960_s17  ;;  %4527 = vrot.lane.b32.xlu0 %v4457_v0, %s4960_s17 }
 0x60d   : > { %4529 = vrot.lane.b32.xlu1 %v4458_v16, %s4960_s17  ;;  %4531 = vrot.lane.b32.xlu0 %v4459_v27, %s4960_s17 }
 0x611   : > { %4533 = vrot.lane.b32.xlu1 %v4460_v3, %s4960_s17  ;;  %4535 = vrot.lane.b32.xlu0 %v4461_v55, %s4960_s17 }
 0x615   : > { %4537 = vrot.lane.b32.xlu1 %v4462_v38, %s4960_s17  ;;  %4539 = vrot.lane.b32.xlu0 %v4463_v33, %s4960_s17 }
 0x619   : > { %4541 = vrot.lane.b32.xlu1 %v4464_v17, %s4960_s17  ;;  %4543 = vrot.lane.b32.xlu0 %v4465_v34, %s4960_s17 }
 0x61d   : > { %4545 = vrot.lane.b32.xlu1 %v4466_v45, %s4960_s17  ;;  %4547 = vrot.lane.b32.xlu0 %v4467_v60, %s4960_s17 }
 0x621   : > { %4549 = vrot.lane.b32.xlu1 %v4468_v56, %s4960_s17  ;;  %4551 = vrot.lane.b32.xlu0 %v4469_v59, %s4960_s17 }
 0x625   : > { %4553 = vrot.lane.b32.xlu1 %v4470_v53, %s4960_s17  ;;  %4555 = vrot.lane.b32.xlu0 %v4471_v29, %s4960_s17 }
 0x629   : > { %4557 = vrot.lane.b32.xlu1 %v4472_v41, %s4960_s17  ;;  %4559 = vrot.lane.b32.xlu0 %v4473_v37, %s4960_s17 }
 0x62d   : > { %4561 = vrot.lane.b32.xlu1 %v4474_v31, %s4960_s17  ;;  %4563 = vrot.lane.b32.xlu0 %v4475_v20, %s4960_s17 }
 0x62f   : > { %v4323_v14 = vpop.permute.xlu0 %4322 }
 0x630   : > { %4419 = vst.msk [vmem:[%s10876_s2] sm:$0xff] %vm4418_vm3, %v4323_v14 }
 0x631   : > { %4565 = vrot.lane.b32.xlu1 %v4476_v57, %s4960_s17  ;;  %4567 = vrot.lane.b32.xlu0 %v4477_v40, %s4960_s17 }
 0x633   : > { %v4325_v61 = vpop.permute.xlu1 %4324  ;;  %v4327_v13 = vpop.permute.xlu0 %4326 }
 0x634   : > { %4420 = vst.msk [vmem:[%s10876_s2 + $0x8] sm:$0xff] %vm4418_vm3, %v4325_v61  ;;  %4421 = vst.msk [vmem:[%s10876_s2 + $0x10] sm:$0xff] %vm4418_vm3, %v4327_v13 }
 0x635   : > { %4569 = vrot.lane.b32.xlu1 %v4478_v63, %s4960_s17  ;;  %4571 = vrot.lane.b32.xlu0 %v4479_v54, %s4960_s17 }
 0x637   : > { %v4329_v15 = vpop.permute.xlu1 %4328  ;;  %v4331_v1 = vpop.permute.xlu0 %4330 }
 0x638   : > { %4422 = vst.msk [vmem:[%s10876_s2 + $0x18] sm:$0xff] %vm4418_vm3, %v4329_v15  ;;  %4423 = vst.msk [vmem:[%s10876_s2 + $0x20] sm:$0xff] %vm4418_vm3, %v4331_v1 }
 0x639   : > { %4573 = vrot.lane.b32.xlu1 %v4480_v5, %s4960_s17  ;;  %4575 = vrot.lane.b32.xlu0 %v4481_v36, %s4960_s17 }
 0x63b   : > { %v4333_v32 = vpop.permute.xlu1 %4332  ;;  %v4335_v0 = vpop.permute.xlu0 %4334 }
 0x63c   : > { %4424 = vst.msk [vmem:[%s10876_s2 + $0x28] sm:$0xff] %vm4418_vm3, %v4333_v32  ;;  %4425 = vst.msk [vmem:[%s10876_s2 + $0x30] sm:$0xff] %vm4418_vm3, %v4335_v0 }
 0x63d   : > { %4577 = vrot.lane.b32.xlu1 %v4482_v12, %s4960_s17 }
 0x63f   : > { %v4337_v16 = vpop.permute.xlu1 %4336  ;;  %v4339_v27 = vpop.permute.xlu0 %4338 }
 0x640   : > { %4426 = vst.msk [vmem:[%s10876_s2 + $0x38] sm:$0xff] %vm4418_vm3, %v4337_v16  ;;  %4427 = vst.msk [vmem:[%s10876_s2 + $0x40] sm:$0xff] %vm4418_vm3, %v4339_v27 }
 0x643   : > { %v4341_v3 = vpop.permute.xlu1 %4340  ;;  %v4343_v55 = vpop.permute.xlu0 %4342 }
 0x644   : > { %4428 = vst.msk [vmem:[%s10876_s2 + $0x48] sm:$0xff] %vm4418_vm3, %v4341_v3  ;;  %4429 = vst.msk [vmem:[%s10876_s2 + $0x50] sm:$0xff] %vm4418_vm3, %v4343_v55 }
 0x647   : > { %v4345_v38 = vpop.permute.xlu1 %4344  ;;  %v4347_v33 = vpop.permute.xlu0 %4346 }
 0x648   : > { %4430 = vst.msk [vmem:[%s10876_s2 + $0x58] sm:$0xff] %vm4418_vm3, %v4345_v38  ;;  %4431 = vst.msk [vmem:[%s10876_s2 + $0x60] sm:$0xff] %vm4418_vm3, %v4347_v33 }
 0x64b   : > { %v4349_v17 = vpop.permute.xlu1 %4348  ;;  %v4351_v34 = vpop.permute.xlu0 %4350 }
 0x64c   : > { %4432 = vst.msk [vmem:[%s10876_s2 + $0x68] sm:$0xff] %vm4418_vm3, %v4349_v17  ;;  %4433 = vst.msk [vmem:[%s10876_s2 + $0x70] sm:$0xff] %vm4418_vm3, %v4351_v34 }
 0x64f   : > { %v4353_v45 = vpop.permute.xlu1 %4352  ;;  %v4355_v60 = vpop.permute.xlu0 %4354 }
 0x650   : > { %4434 = vst.msk [vmem:[%s10876_s2 + $0x78] sm:$0xff] %vm4418_vm3, %v4353_v45  ;;  %4435 = vst.msk [vmem:[%s10876_s2 + $0x80] sm:$0xff] %vm4418_vm3, %v4355_v60 }
 0x653   : > { %v4357_v56 = vpop.permute.xlu1 %4356  ;;  %v4359_v59 = vpop.permute.xlu0 %4358 }
 0x654   : > { %4436 = vst.msk [vmem:[%s10876_s2 + $0x88] sm:$0xff] %vm4418_vm3, %v4357_v56  ;;  %4437 = vst.msk [vmem:[%s10876_s2 + $0x90] sm:$0xff] %vm4418_vm3, %v4359_v59 }
 0x657   : > { %v4361_v53 = vpop.permute.xlu1 %4360  ;;  %v4363_v29 = vpop.permute.xlu0 %4362 }
 0x658   : > { %4438 = vst.msk [vmem:[%s10876_s2 + $0x98] sm:$0xff] %vm4418_vm3, %v4361_v53  ;;  %4439 = vst.msk [vmem:[%s10876_s2 + $0xa0] sm:$0xff] %vm4418_vm3, %v4363_v29 }
 0x65b   : > { %v4365_v41 = vpop.permute.xlu1 %4364  ;;  %v4367_v37 = vpop.permute.xlu0 %4366 }
 0x65c   : > { %4440 = vst.msk [vmem:[%s10876_s2 + $0xa8] sm:$0xff] %vm4418_vm3, %v4365_v41  ;;  %4441 = vst.msk [vmem:[%s10876_s2 + $0xb0] sm:$0xff] %vm4418_vm3, %v4367_v37 }
 0x65f   : > { %v4369_v31 = vpop.permute.xlu1 %4368  ;;  %v4371_v20 = vpop.permute.xlu0 %4370 }
 0x660   : > { %4442 = vst.msk [vmem:[%s10876_s2 + $0xb8] sm:$0xff] %vm4418_vm3, %v4369_v31  ;;  %4443 = vst.msk [vmem:[%s10876_s2 + $0xc0] sm:$0xff] %vm4418_vm3, %v4371_v20 }
 0x663   : > { %v4373_v57 = vpop.permute.xlu1 %4372  ;;  %v4375_v40 = vpop.permute.xlu0 %4374 }
 0x664   : > { %4444 = vst.msk [vmem:[%s10876_s2 + $0xc8] sm:$0xff] %vm4418_vm3, %v4373_v57  ;;  %4445 = vst.msk [vmem:[%s10876_s2 + $0xd0] sm:$0xff] %vm4418_vm3, %v4375_v40 }
 0x667   : > { %v4377_v14 = vpop.permute.xlu1 %4376  ;;  %v4379_v63 = vpop.permute.xlu0 %4378 }
 0x668   : > { %4446 = vst.msk [vmem:[%s10876_s2 + $0xd8] sm:$0xff] %vm4418_vm3, %v4377_v14  ;;  %4447 = vst.msk [vmem:[%s10876_s2 + $0xe0] sm:$0xff] %vm4418_vm3, %v4379_v63 }
 0x66b   : > { %v4381_v54 = vpop.permute.xlu1 %4380  ;;  %v4383_v61 = vpop.permute.xlu0 %4382 }
 0x66c   : > { %4448 = vst.msk [vmem:[%s10876_s2 + $0xe8] sm:$0xff] %vm4418_vm3, %v4381_v54  ;;  %4449 = vst.msk [vmem:[%s10876_s2 + $0xf0] sm:$0xff] %vm4418_vm3, %v4383_v61 }
 0x66f   : > { %v4385_v13 = vpop.permute.xlu1 %4384  ;;  %v4516_v5 = vpop.permute.xlu0 %4515 }
 0x670   : > { %4450 = vst.msk [vmem:[%s10876_s2 + $0xf8] sm:$0xff] %vm4418_vm3, %v4385_v13  ;;  %v4611_v36 = vmul.f32 %v4516_v5, %v10150_v52 }
 0x672   : > { %4644 = vst.msk [vmem:[%s10876_s2] sm:$0xff] %vm4643_vm4, %v4611_v36 }
 0x673   : > { %v4518_v15 = vpop.permute.xlu1 %4517  ;;  %v4520_v1 = vpop.permute.xlu0 %4519 }
 0x674   : > { %v4612_v12 = vmul.f32 %v4518_v15, %v10164_v51  ;;  %v4613_v32 = vmul.f32 %v4520_v1, %v10161_v62 }
 0x676   : > { %4645 = vst.msk [vmem:[%s10876_s2 + $0x8] sm:$0xff] %vm4643_vm4, %v4612_v12  ;;  %4646 = vst.msk [vmem:[%s10876_s2 + $0x10] sm:$0xff] %vm4643_vm4, %v4613_v32 }
 0x677   : > { %v4522_v52 = vpop.permute.xlu1 %4521  ;;  %v4524_v0 = vpop.permute.xlu0 %4523 }
 0x678   : > { %v4614_v16 = vmul.f32 %v4522_v52, %v10173_v25  ;;  %v4615_v27 = vmul.f32 %v4524_v0, %v10176_v30 }
 0x67a   : > { %4647 = vst.msk [vmem:[%s10876_s2 + $0x18] sm:$0xff] %vm4643_vm4, %v4614_v16  ;;  %4648 = vst.msk [vmem:[%s10876_s2 + $0x20] sm:$0xff] %vm4643_vm4, %v4615_v27 }
 0x67b   : > { %v4526_v62 = vpop.permute.xlu1 %4525  ;;  %v4528_v51 = vpop.permute.xlu0 %4527 }
 0x67c   : > { %v4616_v3 = vmul.f32 %v4526_v62, %v10183_v10  ;;  %v4617_v55 = vmul.f32 %v4528_v51, %v10186_v26 }
 0x67e   : > { %4649 = vst.msk [vmem:[%s10876_s2 + $0x28] sm:$0xff] %vm4643_vm4, %v4616_v3  ;;  %4650 = vst.msk [vmem:[%s10876_s2 + $0x30] sm:$0xff] %vm4643_vm4, %v4617_v55 }
 0x67f   : > { %v4530_v25 = vpop.permute.xlu1 %4529  ;;  %v4532_v30 = vpop.permute.xlu0 %4531 }
 0x680   : > { %v4618_v38 = vmul.f32 %v4530_v25, %v10193_v42  ;;  %v4619_v33 = vmul.f32 %v4532_v30, %v10196_v46 }
 0x682   : > { %4651 = vst.msk [vmem:[%s10876_s2 + $0x38] sm:$0xff] %vm4643_vm4, %v4618_v38  ;;  %4652 = vst.msk [vmem:[%s10876_s2 + $0x40] sm:$0xff] %vm4643_vm4, %v4619_v33 }
 0x683   : > { %v4534_v10 = vpop.permute.xlu1 %4533  ;;  %v4536_v26 = vpop.permute.xlu0 %4535 }
 0x684   : > { %v4620_v17 = vmul.f32 %v4534_v10, %v10203_v23  ;;  %v4621_v34 = vmul.f32 %v4536_v26, %v10206_v9 }
 0x686   : > { %4653 = vst.msk [vmem:[%s10876_s2 + $0x48] sm:$0xff] %vm4643_vm4, %v4620_v17  ;;  %4654 = vst.msk [vmem:[%s10876_s2 + $0x50] sm:$0xff] %vm4643_vm4, %v4621_v34 }
 0x687   : > { %v4538_v42 = vpop.permute.xlu1 %4537  ;;  %v4540_v46 = vpop.permute.xlu0 %4539 }
 0x688   : > { %v4622_v45 = vmul.f32 %v4538_v42, %v10213_v11  ;;  %v4623_v60 = vmul.f32 %v4540_v46, %v10216_v21 }
 0x68a   : > { %4655 = vst.msk [vmem:[%s10876_s2 + $0x58] sm:$0xff] %vm4643_vm4, %v4622_v45  ;;  %4656 = vst.msk [vmem:[%s10876_s2 + $0x60] sm:$0xff] %vm4643_vm4, %v4623_v60 }
 0x68b   : > { %v4542_v23 = vpop.permute.xlu1 %4541  ;;  %v4544_v9 = vpop.permute.xlu0 %4543 }
 0x68c   : > { %v4624_v56 = vmul.f32 %v4542_v23, %v10223_v19  ;;  %v4625_v59 = vmul.f32 %v4544_v9, %v10226_v50 }
 0x68e   : > { %4657 = vst.msk [vmem:[%s10876_s2 + $0x68] sm:$0xff] %vm4643_vm4, %v4624_v56  ;;  %4658 = vst.msk [vmem:[%s10876_s2 + $0x70] sm:$0xff] %vm4643_vm4, %v4625_v59 }
 0x68f   : > { %v4546_v11 = vpop.permute.xlu1 %4545  ;;  %v4548_v21 = vpop.permute.xlu0 %4547 }
 0x690   : > { %v4626_v53 = vmul.f32 %v4546_v11, %v10233_v44  ;;  %v4627_v29 = vmul.f32 %v4548_v21, %v10236_v28 }
 0x692   : > { %4659 = vst.msk [vmem:[%s10876_s2 + $0x78] sm:$0xff] %vm4643_vm4, %v4626_v53  ;;  %4660 = vst.msk [vmem:[%s10876_s2 + $0x80] sm:$0xff] %vm4643_vm4, %v4627_v29 }
 0x693   : > { %v4550_v19 = vpop.permute.xlu1 %4549  ;;  %v4552_v50 = vpop.permute.xlu0 %4551 }
 0x694   : > { %v4628_v41 = vmul.f32 %v4550_v19, %v10243_v47  ;;  %v4629_v37 = vmul.f32 %v4552_v50, %v10246_v4 }
 0x696   : > { %4661 = vst.msk [vmem:[%s10876_s2 + $0x88] sm:$0xff] %vm4643_vm4, %v4628_v41  ;;  %4662 = vst.msk [vmem:[%s10876_s2 + $0x90] sm:$0xff] %vm4643_vm4, %v4629_v37 }
 0x697   : > { %v4554_v44 = vpop.permute.xlu1 %4553  ;;  %v4556_v28 = vpop.permute.xlu0 %4555 }
 0x698   : > { %v4630_v31 = vmul.f32 %v4554_v44, %v10253_v8  ;;  %v4631_v20 = vmul.f32 %v4556_v28, %v10256_v6 }
 0x69a   : > { %4663 = vst.msk [vmem:[%s10876_s2 + $0x98] sm:$0xff] %vm4643_vm4, %v4630_v31  ;;  %4664 = vst.msk [vmem:[%s10876_s2 + $0xa0] sm:$0xff] %vm4643_vm4, %v4631_v20 }
 0x69b   : > { %v4558_v47 = vpop.permute.xlu1 %4557  ;;  %v4560_v4 = vpop.permute.xlu0 %4559 }
 0x69c   : > { %v4632_v57 = vmul.f32 %v4558_v47, %v10263_v35  ;;  %v4633_v40 = vmul.f32 %v4560_v4, %v10266_v7 }
 0x69e   : > { %4665 = vst.msk [vmem:[%s10876_s2 + $0xa8] sm:$0xff] %vm4643_vm4, %v4632_v57  ;;  %4666 = vst.msk [vmem:[%s10876_s2 + $0xb0] sm:$0xff] %vm4643_vm4, %v4633_v40 }
 0x69f   : > { %v4562_v8 = vpop.permute.xlu1 %4561  ;;  %v4564_v6 = vpop.permute.xlu0 %4563 }
 0x6a0   : > { %v4634_v14 = vmul.f32 %v4562_v8, %v10273_v58  ;;  %v4635_v63 = vmul.f32 %v4564_v6, %v10276_v22 }
 0x6a2   : > { %4667 = vst.msk [vmem:[%s10876_s2 + $0xb8] sm:$0xff] %vm4643_vm4, %v4634_v14  ;;  %4668 = vst.msk [vmem:[%s10876_s2 + $0xc0] sm:$0xff] %vm4643_vm4, %v4635_v63 }
 0x6a3   : > { %v4566_v35 = vpop.permute.xlu1 %4565  ;;  %v4568_v7 = vpop.permute.xlu0 %4567 }
 0x6a4   : > { %v4636_v54 = vmul.f32 %v4566_v35, %v10283_v49  ;;  %v4637_v61 = vmul.f32 %v4568_v7, %v10286_v39 }
 0x6a6   : > { %4669 = vst.msk [vmem:[%s10876_s2 + $0xc8] sm:$0xff] %vm4643_vm4, %v4636_v54  ;;  %4670 = vst.msk [vmem:[%s10876_s2 + $0xd0] sm:$0xff] %vm4643_vm4, %v4637_v61 }
 0x6a7   : > { %v4570_v58 = vpop.permute.xlu1 %4569  ;;  %v4572_v22 = vpop.permute.xlu0 %4571 }
 0x6a8   : > { %v4638_v13 = vmul.f32 %v4570_v58, %v10293_v2  ;;  %v4639_v5 = vmul.f32 %v4572_v22, %v10296_v43 }
 0x6aa   : > { %4671 = vst.msk [vmem:[%s10876_s2 + $0xd8] sm:$0xff] %vm4643_vm4, %v4638_v13  ;;  %4672 = vst.msk [vmem:[%s10876_s2 + $0xe0] sm:$0xff] %vm4643_vm4, %v4639_v5 }
 0x6ab   : > { %v4574_v49 = vpop.permute.xlu1 %4573  ;;  %v4576_v39 = vpop.permute.xlu0 %4575 }
 0x6ac   : > { %v4640_v36 = vmul.f32 %v4574_v49, %v10303_v24  ;;  %v4641_v15 = vmul.f32 %v4576_v39, %v10306_v48 }
 0x6ae   : > { %4673 = vst.msk [vmem:[%s10876_s2 + $0xe8] sm:$0xff] %vm4643_vm4, %v4640_v36  ;;  %4674 = vst.msk [vmem:[%s10876_s2 + $0xf0] sm:$0xff] %vm4643_vm4, %v4641_v15 }
 0x6af   : > { %v4578_v2 = vpop.permute.xlu1 %4577 }
 0x6b0   : > { %v4642_v43 = vmul.f32 %v4578_v2, %v10313_v18 }
 0x6b2   : > { %4675 = vst.msk [vmem:[%s10876_s2 + $0xf8] sm:$0xff] %vm4643_vm4, %v4642_v43 }
 0x6b3 PF: > { %s12_s11 = sadd.s32 1, %s4954_s11   ;;  %s12293_s9 = smov %s4950_s10 }
 0x6b4   : > { %p9_p7 = scmp.ge.s32.totalorder %s12_s11, 4   ;;  %s12294_s10 = smov %s12296_s12 }
 0x6b6   :  { %11 = sbr.rel (!%p9_p7) target bundleno = 2 (0x2), region = 69 }

</bundles_post_ra>
